<compile_context>
chip_gen: v5e
topology: v5e:2x2
jax: 0.10.0
libtpu: 0.0.40
codegen_flags: <defaults>
</compile_context>

<pallas_src>
import functools

import jax
import jax.numpy as jnp
from jax.experimental import pallas as pl
from jax.experimental.pallas import tpu as pltpu


def _lstm_kernel(gi0_ref, *refs, hidden, seq_len, fused):
    H = hidden
    if fused:
        wfused_ref, b1_ref, head_ref, out_ref, hcat_ref = refs
    else:
        wa_ref, whh1_ref, b1_ref, head_ref, out_ref = refs
    Bp = out_ref.shape[0]

    # Only the bias broadcast is hoisted (JAX does not CSE broadcast_in_dim);
    # weight refs are loaded at their use sites so matmul operands never become
    # long-lived SSA values (no register-allocator spill risk).
    b1b = jnp.broadcast_to(b1_ref[...], (Bp, 4 * H))

    def sigmoid(x):
        # One EUP push per gate (tanh) instead of exp + divide.
        return 0.5 * jnp.tanh(0.5 * x) + 0.5

    def gate_math(gates, c_prev):
        # PyTorch gate order: i, f, g, o.  Elementwise math stays in f32.
        i = sigmoid(gates[:, 0 * H:1 * H])
        f = sigmoid(gates[:, 1 * H:2 * H])
        g = jnp.tanh(gates[:, 2 * H:3 * H])
        o = sigmoid(gates[:, 3 * H:4 * H])
        c_new = f * c_prev + i * g
        h_new = o * jnp.tanh(c_new)
        return h_new, c_new

    c0 = jnp.zeros((Bp, H), jnp.float32)
    c1 = jnp.zeros((Bp, H), jnp.float32)

    # Layer 0, step 0: h0(-1) == 0, so the gates are just the (precomputed)
    # input projection gi0[0] = x(0) @ Wih0 + b0.
    h0, c0 = gate_math(gi0_ref[0], c0)
    h1 = jnp.zeros((Bp, H), jnp.float32)

    if fused:
        hcat_ref[:, :H] = h0.astype(jnp.bfloat16)
        hcat_ref[:, H:] = jnp.zeros((Bp, H), jnp.bfloat16)   # h1(-1) == 0
    else:
        h0b = h0.astype(jnp.bfloat16)
        h1b = jnp.zeros((Bp, H), jnp.bfloat16)

    # T is small & static -> fully unrolled recurrence (no grid / scan overhead).
    # TODO(synk): for much larger seq_len switch to lax.fori_loop(unroll=4..8)
    # with pl.ds indexing so intermediates don't blow up vreg live ranges.
    # TODO(synk): on v6e/v7x, confirm in the bundle dump that Mosaic hoists the
    # constant weight push out of this unrolled loop; otherwise drive the MXU
    # explicitly with pltpu.matmul_push_rhs / matmul_acc_lhs / matmul_pop.
    for t in range(seq_len):
        if fused:
            # [h0(t), h1(t-1)] @ W_fused: cols [0,4H) = h0@Whh0,
            # cols [4H,8H) = h0@Wih1 + h1_prev@Whh1 (summed by the MXU).
            m = jnp.dot(hcat_ref[...], wfused_ref[...],
                        preferred_element_type=jnp.float32)            # (Bp, 8H)
            rec0 = m[:, :4 * H]
            gates1 = m[:, 4 * H:] + b1b
        else:
            # v5e: two independent K=128 matmuls (no dependence between them).
            ma = jnp.dot(h0b, wa_ref[...],
                         preferred_element_type=jnp.float32)           # (Bp, 8H)
            rec0 = ma[:, :4 * H]
            if t == 0:
                gates1 = ma[:, 4 * H:] + b1b                           # h1(-1)==0
            else:
                mb = jnp.dot(h1b, whh1_ref[...],
                             preferred_element_type=jnp.float32)       # (Bp, 4H)
                gates1 = ma[:, 4 * H:] + mb + b1b

        # Layer 1, step t.
        h1, c1 = gate_math(gates1, c1)

        # Layer 0, step t+1 (skipped on the last iteration: result unused).
        if t + 1 < seq_len:
            if fused:
                hcat_ref[:, H:] = h1.astype(jnp.bfloat16)
            else:
                h1b = h1.astype(jnp.bfloat16)
            h0, c0 = gate_math(gi0_ref[t + 1] + rec0, c0)
            if fused:
                hcat_ref[:, :H] = h0.astype(jnp.bfloat16)
            else:
                h0b = h0.astype(jnp.bfloat16)

    # Linear head on hn[-1] == h1(T-1); runs once, kept f32 for accuracy.
    # head_ref rows [0,H) = Wlin (lane-padded to 128), row H = blin.
    out = (jnp.dot(h1, head_ref[:H, :], preferred_element_type=jnp.float32)
           + head_ref[pl.ds(H, 1), :])
    out_ref[...] = out.astype(out_ref.dtype)


def _use_split_recurrent_matmul():
    """v5e's MXU is 128x128: the fused K=2H=256 matmul doubles weight pushes
    there, so fall back to two independent K=128 matmuls.  On v6e/v7x a K=128
    operand pads to 256 anyway, so the fused single matmul is free (and lets
    the MXU sum the two layer-1 contributions)."""
    try:
        kind = jax.devices()[0].device_kind.lower()
    except Exception:
        return False
    return ("v5 lite" in kind) or ("v5e" in kind) or ("v5litepod" in kind)


def multilayer_lstm_forward(x_btf, params, *, hidden):
    """x_btf: (B, T, F_in) batch-first, like the PyTorch module. Returns (out, outputs)."""
    B, T, _ = x_btf.shape
    (wih0_t, whh0_t, b0, wih1_t, whh1_t, b1, wlin_t, blin) = params
    H = hidden
    Fout = wlin_t.shape[1]
    LANES = 128
    assert Fout <= LANES

    # Pad batch to a full f32 sublane (8): unmasked vregs for gate math / stores.
    Bp = max(8, ((B + 7) // 8) * 8)
    x_tbf = jnp.transpose(x_btf, (1, 0, 2)).astype(jnp.float32)   # time-major
    x_tbf = jnp.pad(x_tbf, ((0, 0), (0, Bp - B), (0, 0)))

    # Hoisted layer-0 input projection (x @ Wih0 + b0) for all timesteps.
    gi0 = jnp.einsum('tbf,fg->tbg', x_tbf, wih0_t) + b0           # (T, Bp, 4H) f32

    # Linear head packed into one lane-dense operand: rows [0,H) = Wlin padded
    # to 128 lanes, row H = blin.  Output is (Bp, 128) -> unmasked vreg store.
    head = jnp.concatenate(
        [jnp.pad(wlin_t, ((0, 0), (0, LANES - Fout))),
         jnp.pad(blin, ((0, 0), (0, LANES - Fout)))], axis=0)     # (H+1, 128) f32

    use_split = _use_split_recurrent_matmul()
    if use_split:
        # v5e: h0 @ [Whh0 | Wih1] and h1_prev @ Whh1, both K=128.
        wa = jnp.concatenate([whh0_t, wih1_t], axis=1).astype(jnp.bfloat16)  # (H, 8H)
        whh1_bf16 = whh1_t.astype(jnp.bfloat16)                              # (H, 4H)
        inputs = (gi0, wa, whh1_bf16, b1, head)
        scratch = []
    else:
        # v6e/v7x: fused block-structured (2H, 8H) weight, one matmul per step.
        # Row-block 0 (h0): [Whh0 | Wih1]; row-block 1 (h1_prev): [0 | Whh1].
        wf = jnp.zeros((2 * H, 8 * H), jnp.float32)
        wf = wf.at[:H, :4 * H].set(whh0_t)
        wf = wf.at[:H, 4 * H:].set(wih1_t)
        wf = wf.at[H:, 4 * H:].set(whh1_t)
        inputs = (gi0, wf.astype(jnp.bfloat16), b1, head)
        scratch = [pltpu.VMEM((Bp, 2 * H), jnp.bfloat16)]   # persistent bf16 [h0|h1] LHS

    kernel = functools.partial(_lstm_kernel, hidden=H, seq_len=T,
                               fused=not use_split)
    vmem = pl.BlockSpec(memory_space=pltpu.MemorySpace.VMEM)

    out = pl.pallas_call(
        kernel,
        out_shape=jax.ShapeDtypeStruct((Bp, LANES), jnp.float32),
        in_specs=[vmem] * len(inputs),
        out_specs=vmem,
        scratch_shapes=scratch,
        # No grid: the whole problem (<2 MiB) lives in VMEM; T-step recurrence
        # is a fully-unrolled in-kernel loop.
        # TODO(synk): when this forward is batched over many independent
        # sequences, add a leading "parallel" grid axis (or shard above the
        # pallas_call) so both v7x TensorCores are used.
    )(*inputs)

    out = out[:B, :Fout]
    # forward(): outputs = cat(empty, out) == out when future_preds == 0.
    return out, out


def _reference_forward(x_btf, params, *, hidden):
    """Pure-JAX reference (lax.scan LSTM, f32) for correctness checking."""
    (wih0_t, whh0_t, b0, wih1_t, whh1_t, b1, wlin_t, blin) = params
    B, _, _ = x_btf.shape
    H = hidden

    def cell(inp, h_prev, c_prev, wih, whh, b):
        gates = inp @ wih + h_prev @ whh + b
        i = jax.nn.sigmoid(gates[:, 0 * H:1 * H])
        f = jax.nn.sigmoid(gates[:, 1 * H:2 * H])
        g = jnp.tanh(gates[:, 2 * H:3 * H])
        o = jax.nn.sigmoid(gates[:, 3 * H:4 * H])
        c = f * c_prev + i * g
        return o * jnp.tanh(c), c

    def step(carry, x_t):
        h0, c0, h1, c1 = carry
        h0, c0 = cell(x_t, h0, c0, wih0_t, whh0_t, b0)
        h1, c1 = cell(h0, h1, c1, wih1_t, whh1_t, b1)
        return (h0, c0, h1, c1), None

    zeros = jnp.zeros((B, H), jnp.float32)
    (h0, c0, h1, c1), _ = jax.lax.scan(step, (zeros,) * 4,
                                       jnp.transpose(x_btf, (1, 0, 2)))
    return h1 @ wlin_t + blin


def init_params(key, n_in, n_out, hidden):
    """PyTorch-style uniform(-1/sqrt(H), 1/sqrt(H)) init, deterministic."""
    H = hidden
    k = 1.0 / jnp.sqrt(jnp.float32(H))
    keys = jax.random.split(key, 12)
    u = lambda kk, shape: jax.random.uniform(kk, shape, jnp.float32, -k, k)

    # layer 0
    wih0_t = u(keys[0], (n_in, 4 * H))
    whh0_t = u(keys[1], (H, 4 * H))
    b0 = u(keys[2], (1, 4 * H)) + u(keys[3], (1, 4 * H))     # b_ih + b_hh
    # layer 1
    wih1_t = u(keys[4], (H, 4 * H))
    whh1_t = u(keys[5], (H, 4 * H))
    b1 = u(keys[6], (1, 4 * H)) + u(keys[7], (1, 4 * H))
    # linear head
    kl = 1.0 / jnp.sqrt(jnp.float32(H))
    wlin_t = jax.random.uniform(keys[8], (H, n_out), jnp.float32, -kl, kl)
    blin = jax.random.uniform(keys[9], (1, n_out), jnp.float32, -kl, kl)
    return (wih0_t, whh0_t, b0, wih1_t, whh1_t, b1, wlin_t, blin)


if __name__ == "__main__":
    n_in, n_out, hidden = 6, 6, 128
    B, T = 4, 8

    key = jax.random.PRNGKey(0)
    kx, kp = jax.random.split(key)
    x = jax.random.normal(kx, (B, T, n_in), jnp.float32)     # batch-first (B, T, F)
    params = init_params(kp, n_in, n_out, hidden)

    out, outputs = multilayer_lstm_forward(x, params, hidden=hidden)
    out = jax.block_until_ready(out)

    ref = _reference_forward(x, params, hidden=hidden)
    assert out.shape == (B, n_out)
    # Tolerance loosened vs the f32 reference because the recurrent / layer-1
    # input weights (and the h operands of those matmuls) are bf16 in-kernel.
    # At T=8 the bf16 hidden-state drift is well inside 1e-2; for much longer
    # sequences keep only the weights in bf16 and the activations f32.
    assert jnp.allclose(out, ref, atol=1e-2, rtol=1e-2), "mismatch vs reference"

    print("KERNEL_OK")
</pallas_src>

<mosaic_0001>
module attributes {stable_mosaic.version = 11 : i64} {
  func.func @_lstm_kernel(%arg0: memref<8x8x512xf32, #tpu.memory_space<vmem>>, %arg1: memref<256x1024xbf16, #tpu.memory_space<vmem>>, %arg2: memref<1x512xf32, #tpu.memory_space<vmem>>, %arg3: memref<129x128xf32, #tpu.memory_space<vmem>>, %arg4: memref<8x128xf32, #tpu.memory_space<vmem>>, %arg5: memref<8x256xbf16, #tpu.memory_space<vmem>>) attributes {dimension_semantics = [], scalar_prefetch = 0 : i64, scratch_operands = 1 : i64, tpu.core_type = #tpu.core_type<tc>} {
    %c0 = arith.constant 0 : index
    %c0_0 = arith.constant 0 : index
    %0 = vector.load %arg2[%c0, %c0_0] : memref<1x512xf32, #tpu.memory_space<vmem>>, vector<1x512xf32>
    %1 = vector.shape_cast %0 : vector<1x512xf32> to vector<1x512xf32>
    %2 = vector.broadcast %1 : vector<1x512xf32> to vector<8x512xf32>
    %cst = arith.constant 0.000000e+00 : f32
    %3 = vector.broadcast %cst : f32 to vector<8x128xf32>
    %cst_1 = arith.constant 0.000000e+00 : f32
    %4 = vector.broadcast %cst_1 : f32 to vector<8x128xf32>
    %c0_2 = arith.constant 0 : index
    %c0_3 = arith.constant 0 : index
    %c0_4 = arith.constant 0 : index
    %5 = vector.load %arg0[%c0_2, %c0_3, %c0_4] : memref<8x8x512xf32, #tpu.memory_space<vmem>>, vector<1x8x512xf32>
    %6 = vector.shape_cast %5 : vector<1x8x512xf32> to vector<8x512xf32>
    %7 = vector.extract_strided_slice %6 {offsets = [0, 0], sizes = [8, 128], strides = [1, 1]} : vector<8x512xf32> to vector<8x128xf32>
    %cst_5 = arith.constant 5.000000e-01 : f32
    %8 = vector.broadcast %cst_5 : f32 to vector<8x128xf32>
    %9 = arith.mulf %8, %7 : vector<8x128xf32>
    %10 = math.tanh %9 : vector<8x128xf32>
    %cst_6 = arith.constant 5.000000e-01 : f32
    %11 = vector.broadcast %cst_6 : f32 to vector<8x128xf32>
    %12 = arith.mulf %11, %10 : vector<8x128xf32>
    %cst_7 = arith.constant 5.000000e-01 : f32
    %13 = vector.broadcast %cst_7 : f32 to vector<8x128xf32>
    %14 = arith.addf %12, %13 : vector<8x128xf32>
    %15 = vector.extract_strided_slice %6 {offsets = [0, 128], sizes = [8, 128], strides = [1, 1]} : vector<8x512xf32> to vector<8x128xf32>
    %cst_8 = arith.constant 5.000000e-01 : f32
    %16 = vector.broadcast %cst_8 : f32 to vector<8x128xf32>
    %17 = arith.mulf %16, %15 : vector<8x128xf32>
    %18 = math.tanh %17 : vector<8x128xf32>
    %cst_9 = arith.constant 5.000000e-01 : f32
    %19 = vector.broadcast %cst_9 : f32 to vector<8x128xf32>
    %20 = arith.mulf %19, %18 : vector<8x128xf32>
    %cst_10 = arith.constant 5.000000e-01 : f32
    %21 = vector.broadcast %cst_10 : f32 to vector<8x128xf32>
    %22 = arith.addf %20, %21 : vector<8x128xf32>
    %23 = vector.extract_strided_slice %6 {offsets = [0, 256], sizes = [8, 128], strides = [1, 1]} : vector<8x512xf32> to vector<8x128xf32>
    %24 = math.tanh %23 : vector<8x128xf32>
    %25 = vector.extract_strided_slice %6 {offsets = [0, 384], sizes = [8, 128], strides = [1, 1]} : vector<8x512xf32> to vector<8x128xf32>
    %cst_11 = arith.constant 5.000000e-01 : f32
    %26 = vector.broadcast %cst_11 : f32 to vector<8x128xf32>
    %27 = arith.mulf %26, %25 : vector<8x128xf32>
    %28 = math.tanh %27 : vector<8x128xf32>
    %cst_12 = arith.constant 5.000000e-01 : f32
    %29 = vector.broadcast %cst_12 : f32 to vector<8x128xf32>
    %30 = arith.mulf %29, %28 : vector<8x128xf32>
    %cst_13 = arith.constant 5.000000e-01 : f32
    %31 = vector.broadcast %cst_13 : f32 to vector<8x128xf32>
    %32 = arith.addf %30, %31 : vector<8x128xf32>
    %33 = arith.mulf %22, %3 : vector<8x128xf32>
    %34 = arith.mulf %14, %24 : vector<8x128xf32>
    %35 = arith.addf %33, %34 : vector<8x128xf32>
    %36 = math.tanh %35 : vector<8x128xf32>
    %37 = arith.mulf %32, %36 : vector<8x128xf32>
    %38 = arith.truncf %37 : vector<8x128xf32> to vector<8x128xbf16>
    %c0_14 = arith.constant 0 : index
    %c0_15 = arith.constant 0 : index
    %39 = vector.load %arg5[%c0_14, %c0_15] : memref<8x256xbf16, #tpu.memory_space<vmem>>, vector<8x128xbf16>
    tpu.vector_store %arg5[%c0_14, %c0_15], %38 {strides = array<i32>} : memref<8x256xbf16, #tpu.memory_space<vmem>>, vector<8x128xbf16>,
    %cst_16 = arith.constant 0.000000e+00 : bf16
    %40 = vector.broadcast %cst_16 : bf16 to vector<8x128xbf16>
    %c0_17 = arith.constant 0 : index
    %c128 = arith.constant 128 : index
    %41 = vector.load %arg5[%c0_17, %c128] : memref<8x256xbf16, #tpu.memory_space<vmem>>, vector<8x128xbf16>
    tpu.vector_store %arg5[%c0_17, %c128], %40 {strides = array<i32>} : memref<8x256xbf16, #tpu.memory_space<vmem>>, vector<8x128xbf16>,
    %c0_18 = arith.constant 0 : index
    %c0_19 = arith.constant 0 : index
    %42 = vector.load %arg5[%c0_18, %c0_19] : memref<8x256xbf16, #tpu.memory_space<vmem>>, vector<8x256xbf16>
    %c0_20 = arith.constant 0 : index
    %c0_21 = arith.constant 0 : index
    %43 = vector.load %arg1[%c0_20, %c0_21] : memref<256x1024xbf16, #tpu.memory_space<vmem>>, vector<256x1024xbf16>
    %cst_22 = arith.constant dense<0.000000e+00> : vector<8x1024xf32>
    %44 = tpu.matmul %42, %43, %cst_22 {dimension_numbers = #tpu.dot_dimension_numbers<[1], [0], [0], [1], [0, 0, 1, 1], [], []>} : vector<8x256xbf16>, vector<256x1024xbf16>, vector<8x1024xf32> -> vector<8x1024xf32>
    %45 = vector.extract_strided_slice %44 {offsets = [0, 0], sizes = [8, 512], strides = [1, 1]} : vector<8x1024xf32> to vector<8x512xf32>
    %46 = vector.extract_strided_slice %44 {offsets = [0, 512], sizes = [8, 512], strides = [1, 1]} : vector<8x1024xf32> to vector<8x512xf32>
    %47 = arith.addf %46, %2 : vector<8x512xf32>
    %48 = vector.extract_strided_slice %47 {offsets = [0, 0], sizes = [8, 128], strides = [1, 1]} : vector<8x512xf32> to vector<8x128xf32>
    %cst_23 = arith.constant 5.000000e-01 : f32
    %49 = vector.broadcast %cst_23 : f32 to vector<8x128xf32>
    %50 = arith.mulf %49, %48 : vector<8x128xf32>
    %51 = math.tanh %50 : vector<8x128xf32>
    %cst_24 = arith.constant 5.000000e-01 : f32
    %52 = vector.broadcast %cst_24 : f32 to vector<8x128xf32>
    %53 = arith.mulf %52, %51 : vector<8x128xf32>
    %cst_25 = arith.constant 5.000000e-01 : f32
    %54 = vector.broadcast %cst_25 : f32 to vector<8x128xf32>
    %55 = arith.addf %53, %54 : vector<8x128xf32>
    %56 = vector.extract_strided_slice %47 {offsets = [0, 128], sizes = [8, 128], strides = [1, 1]} : vector<8x512xf32> to vector<8x128xf32>
    %cst_26 = arith.constant 5.000000e-01 : f32
    %57 = vector.broadcast %cst_26 : f32 to vector<8x128xf32>
    %58 = arith.mulf %57, %56 : vector<8x128xf32>
    %59 = math.tanh %58 : vector<8x128xf32>
    %cst_27 = arith.constant 5.000000e-01 : f32
    %60 = vector.broadcast %cst_27 : f32 to vector<8x128xf32>
    %61 = arith.mulf %60, %59 : vector<8x128xf32>
    %cst_28 = arith.constant 5.000000e-01 : f32
    %62 = vector.broadcast %cst_28 : f32 to vector<8x128xf32>
    %63 = arith.addf %61, %62 : vector<8x128xf32>
    %64 = vector.extract_strided_slice %47 {offsets = [0, 256], sizes = [8, 128], strides = [1, 1]} : vector<8x512xf32> to vector<8x128xf32>
    %65 = math.tanh %64 : vector<8x128xf32>
    %66 = vector.extract_strided_slice %47 {offsets = [0, 384], sizes = [8, 128], strides = [1, 1]} : vector<8x512xf32> to vector<8x128xf32>
    %cst_29 = arith.constant 5.000000e-01 : f32
    %67 = vector.broadcast %cst_29 : f32 to vector<8x128xf32>
    %68 = arith.mulf %67, %66 : vector<8x128xf32>
    %69 = math.tanh %68 : vector<8x128xf32>
    %cst_30 = arith.constant 5.000000e-01 : f32
    %70 = vector.broadcast %cst_30 : f32 to vector<8x128xf32>
    %71 = arith.mulf %70, %69 : vector<8x128xf32>
    %cst_31 = arith.constant 5.000000e-01 : f32
    %72 = vector.broadcast %cst_31 : f32 to vector<8x128xf32>
    %73 = arith.addf %71, %72 : vector<8x128xf32>
    %74 = arith.mulf %63, %4 : vector<8x128xf32>
    %75 = arith.mulf %55, %65 : vector<8x128xf32>
    %76 = arith.addf %74, %75 : vector<8x128xf32>
    %77 = math.tanh %76 : vector<8x128xf32>
    %78 = arith.mulf %73, %77 : vector<8x128xf32>
    %79 = arith.truncf %78 : vector<8x128xf32> to vector<8x128xbf16>
    %c0_32 = arith.constant 0 : index
    %c128_33 = arith.constant 128 : index
    %80 = vector.load %arg5[%c0_32, %c128_33] : memref<8x256xbf16, #tpu.memory_space<vmem>>, vector<8x128xbf16>
    tpu.vector_store %arg5[%c0_32, %c128_33], %79 {strides = array<i32>} : memref<8x256xbf16, #tpu.memory_space<vmem>>, vector<8x128xbf16>,
    %c1 = arith.constant 1 : index
    %c0_34 = arith.constant 0 : index
    %c0_35 = arith.constant 0 : index
    %81 = vector.load %arg0[%c1, %c0_34, %c0_35] : memref<8x8x512xf32, #tpu.memory_space<vmem>>, vector<1x8x512xf32>
    %82 = vector.shape_cast %81 : vector<1x8x512xf32> to vector<8x512xf32>
    %83 = arith.addf %82, %45 : vector<8x512xf32>
    %84 = vector.extract_strided_slice %83 {offsets = [0, 0], sizes = [8, 128], strides = [1, 1]} : vector<8x512xf32> to vector<8x128xf32>
    %cst_36 = arith.constant 5.000000e-01 : f32
    %85 = vector.broadcast %cst_36 : f32 to vector<8x128xf32>
    %86 = arith.mulf %85, %84 : vector<8x128xf32>
    %87 = math.tanh %86 : vector<8x128xf32>
    %cst_37 = arith.constant 5.000000e-01 : f32
    %88 = vector.broadcast %cst_37 : f32 to vector<8x128xf32>
    %89 = arith.mulf %88, %87 : vector<8x128xf32>
    %cst_38 = arith.constant 5.000000e-01 : f32
    %90 = vector.broadcast %cst_38 : f32 to vector<8x128xf32>
    %91 = arith.addf %89, %90 : vector<8x128xf32>
    %92 = vector.extract_strided_slice %83 {offsets = [0, 128], sizes = [8, 128], strides = [1, 1]} : vector<8x512xf32> to vector<8x128xf32>
    %cst_39 = arith.constant 5.000000e-01 : f32
    %93 = vector.broadcast %cst_39 : f32 to vector<8x128xf32>
    %94 = arith.mulf %93, %92 : vector<8x128xf32>
    %95 = math.tanh %94 : vector<8x128xf32>
    %cst_40 = arith.constant 5.000000e-01 : f32
    %96 = vector.broadcast %cst_40 : f32 to vector<8x128xf32>
    %97 = arith.mulf %96, %95 : vector<8x128xf32>
    %cst_41 = arith.constant 5.000000e-01 : f32
    %98 = vector.broadcast %cst_41 : f32 to vector<8x128xf32>
    %99 = arith.addf %97, %98 : vector<8x128xf32>
    %100 = vector.extract_strided_slice %83 {offsets = [0, 256], sizes = [8, 128], strides = [1, 1]} : vector<8x512xf32> to vector<8x128xf32>
    %101 = math.tanh %100 : vector<8x128xf32>
    %102 = vector.extract_strided_slice %83 {offsets = [0, 384], sizes = [8, 128], strides = [1, 1]} : vector<8x512xf32> to vector<8x128xf32>
    %cst_42 = arith.constant 5.000000e-01 : f32
    %103 = vector.broadcast %cst_42 : f32 to vector<8x128xf32>
    %104 = arith.mulf %103, %102 : vector<8x128xf32>
    %105 = math.tanh %104 : vector<8x128xf32>
    %cst_43 = arith.constant 5.000000e-01 : f32
    %106 = vector.broadcast %cst_43 : f32 to vector<8x128xf32>
    %107 = arith.mulf %106, %105 : vector<8x128xf32>
    %cst_44 = arith.constant 5.000000e-01 : f32
    %108 = vector.broadcast %cst_44 : f32 to vector<8x128xf32>
    %109 = arith.addf %107, %108 : vector<8x128xf32>
    %110 = arith.mulf %99, %35 : vector<8x128xf32>
    %111 = arith.mulf %91, %101 : vector<8x128xf32>
    %112 = arith.addf %110, %111 : vector<8x128xf32>
    %113 = math.tanh %112 : vector<8x128xf32>
    %114 = arith.mulf %109, %113 : vector<8x128xf32>
    %115 = arith.truncf %114 : vector<8x128xf32> to vector<8x128xbf16>
    %c0_45 = arith.constant 0 : index
    %c0_46 = arith.constant 0 : index
    %116 = vector.load %arg5[%c0_45, %c0_46] : memref<8x256xbf16, #tpu.memory_space<vmem>>, vector<8x128xbf16>
    tpu.vector_store %arg5[%c0_45, %c0_46], %115 {strides = array<i32>} : memref<8x256xbf16, #tpu.memory_space<vmem>>, vector<8x128xbf16>,
    %c0_47 = arith.constant 0 : index
    %c0_48 = arith.constant 0 : index
    %117 = vector.load %arg5[%c0_47, %c0_48] : memref<8x256xbf16, #tpu.memory_space<vmem>>, vector<8x256xbf16>
    %c0_49 = arith.constant 0 : index
    %c0_50 = arith.constant 0 : index
    %118 = vector.load %arg1[%c0_49, %c0_50] : memref<256x1024xbf16, #tpu.memory_space<vmem>>, vector<256x1024xbf16>
    %cst_51 = arith.constant dense<0.000000e+00> : vector<8x1024xf32>
    %119 = tpu.matmul %117, %118, %cst_51 {dimension_numbers = #tpu.dot_dimension_numbers<[1], [0], [0], [1], [0, 0, 1, 1], [], []>} : vector<8x256xbf16>, vector<256x1024xbf16>, vector<8x1024xf32> -> vector<8x1024xf32>
    %120 = vector.extract_strided_slice %119 {offsets = [0, 0], sizes = [8, 512], strides = [1, 1]} : vector<8x1024xf32> to vector<8x512xf32>
    %121 = vector.extract_strided_slice %119 {offsets = [0, 512], sizes = [8, 512], strides = [1, 1]} : vector<8x1024xf32> to vector<8x512xf32>
    %122 = arith.addf %121, %2 : vector<8x512xf32>
    %123 = vector.extract_strided_slice %122 {offsets = [0, 0], sizes = [8, 128], strides = [1, 1]} : vector<8x512xf32> to vector<8x128xf32>
    %cst_52 = arith.constant 5.000000e-01 : f32
    %124 = vector.broadcast %cst_52 : f32 to vector<8x128xf32>
    %125 = arith.mulf %124, %123 : vector<8x128xf32>
    %126 = math.tanh %125 : vector<8x128xf32>
    %cst_53 = arith.constant 5.000000e-01 : f32
    %127 = vector.broadcast %cst_53 : f32 to vector<8x128xf32>
    %128 = arith.mulf %127, %126 : vector<8x128xf32>
    %cst_54 = arith.constant 5.000000e-01 : f32
    %129 = vector.broadcast %cst_54 : f32 to vector<8x128xf32>
    %130 = arith.addf %128, %129 : vector<8x128xf32>
    %131 = vector.extract_strided_slice %122 {offsets = [0, 128], sizes = [8, 128], strides = [1, 1]} : vector<8x512xf32> to vector<8x128xf32>
    %cst_55 = arith.constant 5.000000e-01 : f32
    %132 = vector.broadcast %cst_55 : f32 to vector<8x128xf32>
    %133 = arith.mulf %132, %131 : vector<8x128xf32>
    %134 = math.tanh %133 : vector<8x128xf32>
    %cst_56 = arith.constant 5.000000e-01 : f32
    %135 = vector.broadcast %cst_56 : f32 to vector<8x128xf32>
    %136 = arith.mulf %135, %134 : vector<8x128xf32>
    %cst_57 = arith.constant 5.000000e-01 : f32
    %137 = vector.broadcast %cst_57 : f32 to vector<8x128xf32>
    %138 = arith.addf %136, %137 : vector<8x128xf32>
    %139 = vector.extract_strided_slice %122 {offsets = [0, 256], sizes = [8, 128], strides = [1, 1]} : vector<8x512xf32> to vector<8x128xf32>
    %140 = math.tanh %139 : vector<8x128xf32>
    %141 = vector.extract_strided_slice %122 {offsets = [0, 384], sizes = [8, 128], strides = [1, 1]} : vector<8x512xf32> to vector<8x128xf32>
    %cst_58 = arith.constant 5.000000e-01 : f32
    %142 = vector.broadcast %cst_58 : f32 to vector<8x128xf32>
    %143 = arith.mulf %142, %141 : vector<8x128xf32>
    %144 = math.tanh %143 : vector<8x128xf32>
    %cst_59 = arith.constant 5.000000e-01 : f32
    %145 = vector.broadcast %cst_59 : f32 to vector<8x128xf32>
    %146 = arith.mulf %145, %144 : vector<8x128xf32>
    %cst_60 = arith.constant 5.000000e-01 : f32
    %147 = vector.broadcast %cst_60 : f32 to vector<8x128xf32>
    %148 = arith.addf %146, %147 : vector<8x128xf32>
    %149 = arith.mulf %138, %76 : vector<8x128xf32>
    %150 = arith.mulf %130, %140 : vector<8x128xf32>
    %151 = arith.addf %149, %150 : vector<8x128xf32>
    %152 = math.tanh %151 : vector<8x128xf32>
    %153 = arith.mulf %148, %152 : vector<8x128xf32>
    %154 = arith.truncf %153 : vector<8x128xf32> to vector<8x128xbf16>
    %c0_61 = arith.constant 0 : index
    %c128_62 = arith.constant 128 : index
    %155 = vector.load %arg5[%c0_61, %c128_62] : memref<8x256xbf16, #tpu.memory_space<vmem>>, vector<8x128xbf16>
    tpu.vector_store %arg5[%c0_61, %c128_62], %154 {strides = array<i32>} : memref<8x256xbf16, #tpu.memory_space<vmem>>, vector<8x128xbf16>,
    %c2 = arith.constant 2 : index
    %c0_63 = arith.constant 0 : index
    %c0_64 = arith.constant 0 : index
    %156 = vector.load %arg0[%c2, %c0_63, %c0_64] : memref<8x8x512xf32, #tpu.memory_space<vmem>>, vector<1x8x512xf32>
    %157 = vector.shape_cast %156 : vector<1x8x512xf32> to vector<8x512xf32>
    %158 = arith.addf %157, %120 : vector<8x512xf32>
    %159 = vector.extract_strided_slice %158 {offsets = [0, 0], sizes = [8, 128], strides = [1, 1]} : vector<8x512xf32> to vector<8x128xf32>
    %cst_65 = arith.constant 5.000000e-01 : f32
    %160 = vector.broadcast %cst_65 : f32 to vector<8x128xf32>
    %161 = arith.mulf %160, %159 : vector<8x128xf32>
    %162 = math.tanh %161 : vector<8x128xf32>
    %cst_66 = arith.constant 5.000000e-01 : f32
    %163 = vector.broadcast %cst_66 : f32 to vector<8x128xf32>
    %164 = arith.mulf %163, %162 : vector<8x128xf32>
    %cst_67 = arith.constant 5.000000e-01 : f32
    %165 = vector.broadcast %cst_67 : f32 to vector<8x128xf32>
    %166 = arith.addf %164, %165 : vector<8x128xf32>
    %167 = vector.extract_strided_slice %158 {offsets = [0, 128], sizes = [8, 128], strides = [1, 1]} : vector<8x512xf32> to vector<8x128xf32>
    %cst_68 = arith.constant 5.000000e-01 : f32
    %168 = vector.broadcast %cst_68 : f32 to vector<8x128xf32>
    %169 = arith.mulf %168, %167 : vector<8x128xf32>
    %170 = math.tanh %169 : vector<8x128xf32>
    %cst_69 = arith.constant 5.000000e-01 : f32
    %171 = vector.broadcast %cst_69 : f32 to vector<8x128xf32>
    %172 = arith.mulf %171, %170 : vector<8x128xf32>
    %cst_70 = arith.constant 5.000000e-01 : f32
    %173 = vector.broadcast %cst_70 : f32 to vector<8x128xf32>
    %174 = arith.addf %172, %173 : vector<8x128xf32>
    %175 = vector.extract_strided_slice %158 {offsets = [0, 256], sizes = [8, 128], strides = [1, 1]} : vector<8x512xf32> to vector<8x128xf32>
    %176 = math.tanh %175 : vector<8x128xf32>
    %177 = vector.extract_strided_slice %158 {offsets = [0, 384], sizes = [8, 128], strides = [1, 1]} : vector<8x512xf32> to vector<8x128xf32>
    %cst_71 = arith.constant 5.000000e-01 : f32
    %178 = vector.broadcast %cst_71 : f32 to vector<8x128xf32>
    %179 = arith.mulf %178, %177 : vector<8x128xf32>
    %180 = math.tanh %179 : vector<8x128xf32>
    %cst_72 = arith.constant 5.000000e-01 : f32
    %181 = vector.broadcast %cst_72 : f32 to vector<8x128xf32>
    %182 = arith.mulf %181, %180 : vector<8x128xf32>
    %cst_73 = arith.constant 5.000000e-01 : f32
    %183 = vector.broadcast %cst_73 : f32 to vector<8x128xf32>
    %184 = arith.addf %182, %183 : vector<8x128xf32>
    %185 = arith.mulf %174, %112 : vector<8x128xf32>
    %186 = arith.mulf %166, %176 : vector<8x128xf32>
    %187 = arith.addf %185, %186 : vector<8x128xf32>
    %188 = math.tanh %187 : vector<8x128xf32>
    %189 = arith.mulf %184, %188 : vector<8x128xf32>
    %190 = arith.truncf %189 : vector<8x128xf32> to vector<8x128xbf16>
    %c0_74 = arith.constant 0 : index
    %c0_75 = arith.constant 0 : index
    %191 = vector.load %arg5[%c0_74, %c0_75] : memref<8x256xbf16, #tpu.memory_space<vmem>>, vector<8x128xbf16>
    tpu.vector_store %arg5[%c0_74, %c0_75], %190 {strides = array<i32>} : memref<8x256xbf16, #tpu.memory_space<vmem>>, vector<8x128xbf16>,
    %c0_76 = arith.constant 0 : index
    %c0_77 = arith.constant 0 : index
    %192 = vector.load %arg5[%c0_76, %c0_77] : memref<8x256xbf16, #tpu.memory_space<vmem>>, vector<8x256xbf16>
    %c0_78 = arith.constant 0 : index
    %c0_79 = arith.constant 0 : index
    %193 = vector.load %arg1[%c0_78, %c0_79] : memref<256x1024xbf16, #tpu.memory_space<vmem>>, vector<256x1024xbf16>
    %cst_80 = arith.constant dense<0.000000e+00> : vector<8x1024xf32>
    %194 = tpu.matmul %192, %193, %cst_80 {dimension_numbers = #tpu.dot_dimension_numbers<[1], [0], [0], [1], [0, 0, 1, 1], [], []>} : vector<8x256xbf16>, vector<256x1024xbf16>, vector<8x1024xf32> -> vector<8x1024xf32>
    %195 = vector.extract_strided_slice %194 {offsets = [0, 0], sizes = [8, 512], strides = [1, 1]} : vector<8x1024xf32> to vector<8x512xf32>
    %196 = vector.extract_strided_slice %194 {offsets = [0, 512], sizes = [8, 512], strides = [1, 1]} : vector<8x1024xf32> to vector<8x512xf32>
    %197 = arith.addf %196, %2 : vector<8x512xf32>
    %198 = vector.extract_strided_slice %197 {offsets = [0, 0], sizes = [8, 128], strides = [1, 1]} : vector<8x512xf32> to vector<8x128xf32>
    %cst_81 = arith.constant 5.000000e-01 : f32
    %199 = vector.broadcast %cst_81 : f32 to vector<8x128xf32>
    %200 = arith.mulf %199, %198 : vector<8x128xf32>
    %201 = math.tanh %200 : vector<8x128xf32>
    %cst_82 = arith.constant 5.000000e-01 : f32
    %202 = vector.broadcast %cst_82 : f32 to vector<8x128xf32>
    %203 = arith.mulf %202, %201 : vector<8x128xf32>
    %cst_83 = arith.constant 5.000000e-01 : f32
    %204 = vector.broadcast %cst_83 : f32 to vector<8x128xf32>
    %205 = arith.addf %203, %204 : vector<8x128xf32>
    %206 = vector.extract_strided_slice %197 {offsets = [0, 128], sizes = [8, 128], strides = [1, 1]} : vector<8x512xf32> to vector<8x128xf32>
    %cst_84 = arith.constant 5.000000e-01 : f32
    %207 = vector.broadcast %cst_84 : f32 to vector<8x128xf32>
    %208 = arith.mulf %207, %206 : vector<8x128xf32>
    %209 = math.tanh %208 : vector<8x128xf32>
    %cst_85 = arith.constant 5.000000e-01 : f32
    %210 = vector.broadcast %cst_85 : f32 to vector<8x128xf32>
    %211 = arith.mulf %210, %209 : vector<8x128xf32>
    %cst_86 = arith.constant 5.000000e-01 : f32
    %212 = vector.broadcast %cst_86 : f32 to vector<8x128xf32>
    %213 = arith.addf %211, %212 : vector<8x128xf32>
    %214 = vector.extract_strided_slice %197 {offsets = [0, 256], sizes = [8, 128], strides = [1, 1]} : vector<8x512xf32> to vector<8x128xf32>
    %215 = math.tanh %214 : vector<8x128xf32>
    %216 = vector.extract_strided_slice %197 {offsets = [0, 384], sizes = [8, 128], strides = [1, 1]} : vector<8x512xf32> to vector<8x128xf32>
    %cst_87 = arith.constant 5.000000e-01 : f32
    %217 = vector.broadcast %cst_87 : f32 to vector<8x128xf32>
    %218 = arith.mulf %217, %216 : vector<8x128xf32>
    %219 = math.tanh %218 : vector<8x128xf32>
    %cst_88 = arith.constant 5.000000e-01 : f32
    %220 = vector.broadcast %cst_88 : f32 to vector<8x128xf32>
    %221 = arith.mulf %220, %219 : vector<8x128xf32>
    %cst_89 = arith.constant 5.000000e-01 : f32
    %222 = vector.broadcast %cst_89 : f32 to vector<8x128xf32>
    %223 = arith.addf %221, %222 : vector<8x128xf32>
    %224 = arith.mulf %213, %151 : vector<8x128xf32>
    %225 = arith.mulf %205, %215 : vector<8x128xf32>
    %226 = arith.addf %224, %225 : vector<8x128xf32>
    %227 = math.tanh %226 : vector<8x128xf32>
    %228 = arith.mulf %223, %227 : vector<8x128xf32>
    %229 = arith.truncf %228 : vector<8x128xf32> to vector<8x128xbf16>
    %c0_90 = arith.constant 0 : index
    %c128_91 = arith.constant 128 : index
    %230 = vector.load %arg5[%c0_90, %c128_91] : memref<8x256xbf16, #tpu.memory_space<vmem>>, vector<8x128xbf16>
    tpu.vector_store %arg5[%c0_90, %c128_91], %229 {strides = array<i32>} : memref<8x256xbf16, #tpu.memory_space<vmem>>, vector<8x128xbf16>,
    %c3 = arith.constant 3 : index
    %c0_92 = arith.constant 0 : index
    %c0_93 = arith.constant 0 : index
    %231 = vector.load %arg0[%c3, %c0_92, %c0_93] : memref<8x8x512xf32, #tpu.memory_space<vmem>>, vector<1x8x512xf32>
    %232 = vector.shape_cast %231 : vector<1x8x512xf32> to vector<8x512xf32>
    %233 = arith.addf %232, %195 : vector<8x512xf32>
    %234 = vector.extract_strided_slice %233 {offsets = [0, 0], sizes = [8, 128], strides = [1, 1]} : vector<8x512xf32> to vector<8x128xf32>
    %cst_94 = arith.constant 5.000000e-01 : f32
    %235 = vector.broadcast %cst_94 : f32 to vector<8x128xf32>
    %236 = arith.mulf %235, %234 : vector<8x128xf32>
    %237 = math.tanh %236 : vector<8x128xf32>
    %cst_95 = arith.constant 5.000000e-01 : f32
    %238 = vector.broadcast %cst_95 : f32 to vector<8x128xf32>
    %239 = arith.mulf %238, %237 : vector<8x128xf32>
    %cst_96 = arith.constant 5.000000e-01 : f32
    %240 = vector.broadcast %cst_96 : f32 to vector<8x128xf32>
    %241 = arith.addf %239, %240 : vector<8x128xf32>
    %242 = vector.extract_strided_slice %233 {offsets = [0, 128], sizes = [8, 128], strides = [1, 1]} : vector<8x512xf32> to vector<8x128xf32>
    %cst_97 = arith.constant 5.000000e-01 : f32
    %243 = vector.broadcast %cst_97 : f32 to vector<8x128xf32>
    %244 = arith.mulf %243, %242 : vector<8x128xf32>
    %245 = math.tanh %244 : vector<8x128xf32>
    %cst_98 = arith.constant 5.000000e-01 : f32
    %246 = vector.broadcast %cst_98 : f32 to vector<8x128xf32>
    %247 = arith.mulf %246, %245 : vector<8x128xf32>
    %cst_99 = arith.constant 5.000000e-01 : f32
    %248 = vector.broadcast %cst_99 : f32 to vector<8x128xf32>
    %249 = arith.addf %247, %248 : vector<8x128xf32>
    %250 = vector.extract_strided_slice %233 {offsets = [0, 256], sizes = [8, 128], strides = [1, 1]} : vector<8x512xf32> to vector<8x128xf32>
    %251 = math.tanh %250 : vector<8x128xf32>
    %252 = vector.extract_strided_slice %233 {offsets = [0, 384], sizes = [8, 128], strides = [1, 1]} : vector<8x512xf32> to vector<8x128xf32>
    %cst_100 = arith.constant 5.000000e-01 : f32
    %253 = vector.broadcast %cst_100 : f32 to vector<8x128xf32>
    %254 = arith.mulf %253, %252 : vector<8x128xf32>
    %255 = math.tanh %254 : vector<8x128xf32>
    %cst_101 = arith.constant 5.000000e-01 : f32
    %256 = vector.broadcast %cst_101 : f32 to vector<8x128xf32>
    %257 = arith.mulf %256, %255 : vector<8x128xf32>
    %cst_102 = arith.constant 5.000000e-01 : f32
    %258 = vector.broadcast %cst_102 : f32 to vector<8x128xf32>
    %259 = arith.addf %257, %258 : vector<8x128xf32>
    %260 = arith.mulf %249, %187 : vector<8x128xf32>
    %261 = arith.mulf %241, %251 : vector<8x128xf32>
    %262 = arith.addf %260, %261 : vector<8x128xf32>
    %263 = math.tanh %262 : vector<8x128xf32>
    %264 = arith.mulf %259, %263 : vector<8x128xf32>
    %265 = arith.truncf %264 : vector<8x128xf32> to vector<8x128xbf16>
    %c0_103 = arith.constant 0 : index
    %c0_104 = arith.constant 0 : index
    %266 = vector.load %arg5[%c0_103, %c0_104] : memref<8x256xbf16, #tpu.memory_space<vmem>>, vector<8x128xbf16>
    tpu.vector_store %arg5[%c0_103, %c0_104], %265 {strides = array<i32>} : memref<8x256xbf16, #tpu.memory_space<vmem>>, vector<8x128xbf16>,
    %c0_105 = arith.constant 0 : index
    %c0_106 = arith.constant 0 : index
    %267 = vector.load %arg5[%c0_105, %c0_106] : memref<8x256xbf16, #tpu.memory_space<vmem>>, vector<8x256xbf16>
    %c0_107 = arith.constant 0 : index
    %c0_108 = arith.constant 0 : index
    %268 = vector.load %arg1[%c0_107, %c0_108] : memref<256x1024xbf16, #tpu.memory_space<vmem>>, vector<256x1024xbf16>
    %cst_109 = arith.constant dense<0.000000e+00> : vector<8x1024xf32>
    %269 = tpu.matmul %267, %268, %cst_109 {dimension_numbers = #tpu.dot_dimension_numbers<[1], [0], [0], [1], [0, 0, 1, 1], [], []>} : vector<8x256xbf16>, vector<256x1024xbf16>, vector<8x1024xf32> -> vector<8x1024xf32>
    %270 = vector.extract_strided_slice %269 {offsets = [0, 0], sizes = [8, 512], strides = [1, 1]} : vector<8x1024xf32> to vector<8x512xf32>
    %271 = vector.extract_strided_slice %269 {offsets = [0, 512], sizes = [8, 512], strides = [1, 1]} : vector<8x1024xf32> to vector<8x512xf32>
    %272 = arith.addf %271, %2 : vector<8x512xf32>
    %273 = vector.extract_strided_slice %272 {offsets = [0, 0], sizes = [8, 128], strides = [1, 1]} : vector<8x512xf32> to vector<8x128xf32>
    %cst_110 = arith.constant 5.000000e-01 : f32
    %274 = vector.broadcast %cst_110 : f32 to vector<8x128xf32>
    %275 = arith.mulf %274, %273 : vector<8x128xf32>
    %276 = math.tanh %275 : vector<8x128xf32>
    %cst_111 = arith.constant 5.000000e-01 : f32
    %277 = vector.broadcast %cst_111 : f32 to vector<8x128xf32>
    %278 = arith.mulf %277, %276 : vector<8x128xf32>
    %cst_112 = arith.constant 5.000000e-01 : f32
    %279 = vector.broadcast %cst_112 : f32 to vector<8x128xf32>
    %280 = arith.addf %278, %279 : vector<8x128xf32>
    %281 = vector.extract_strided_slice %272 {offsets = [0, 128], sizes = [8, 128], strides = [1, 1]} : vector<8x512xf32> to vector<8x128xf32>
    %cst_113 = arith.constant 5.000000e-01 : f32
    %282 = vector.broadcast %cst_113 : f32 to vector<8x128xf32>
    %283 = arith.mulf %282, %281 : vector<8x128xf32>
    %284 = math.tanh %283 : vector<8x128xf32>
    %cst_114 = arith.constant 5.000000e-01 : f32
    %285 = vector.broadcast %cst_114 : f32 to vector<8x128xf32>
    %286 = arith.mulf %285, %284 : vector<8x128xf32>
    %cst_115 = arith.constant 5.000000e-01 : f32
    %287 = vector.broadcast %cst_115 : f32 to vector<8x128xf32>
    %288 = arith.addf %286, %287 : vector<8x128xf32>
    %289 = vector.extract_strided_slice %272 {offsets = [0, 256], sizes = [8, 128], strides = [1, 1]} : vector<8x512xf32> to vector<8x128xf32>
    %290 = math.tanh %289 : vector<8x128xf32>
    %291 = vector.extract_strided_slice %272 {offsets = [0, 384], sizes = [8, 128], strides = [1, 1]} : vector<8x512xf32> to vector<8x128xf32>
    %cst_116 = arith.constant 5.000000e-01 : f32
    %292 = vector.broadcast %cst_116 : f32 to vector<8x128xf32>
    %293 = arith.mulf %292, %291 : vector<8x128xf32>
    %294 = math.tanh %293 : vector<8x128xf32>
    %cst_117 = arith.constant 5.000000e-01 : f32
    %295 = vector.broadcast %cst_117 : f32 to vector<8x128xf32>
    %296 = arith.mulf %295, %294 : vector<8x128xf32>
    %cst_118 = arith.constant 5.000000e-01 : f32
    %297 = vector.broadcast %cst_118 : f32 to vector<8x128xf32>
    %298 = arith.addf %296, %297 : vector<8x128xf32>
    %299 = arith.mulf %288, %226 : vector<8x128xf32>
    %300 = arith.mulf %280, %290 : vector<8x128xf32>
    %301 = arith.addf %299, %300 : vector<8x128xf32>
    %302 = math.tanh %301 : vector<8x128xf32>
    %303 = arith.mulf %298, %302 : vector<8x128xf32>
    %304 = arith.truncf %303 : vector<8x128xf32> to vector<8x128xbf16>
    %c0_119 = arith.constant 0 : index
    %c128_120 = arith.constant 128 : index
    %305 = vector.load %arg5[%c0_119, %c128_120] : memref<8x256xbf16, #tpu.memory_space<vmem>>, vector<8x128xbf16>
    tpu.vector_store %arg5[%c0_119, %c128_120], %304 {strides = array<i32>} : memref<8x256xbf16, #tpu.memory_space<vmem>>, vector<8x128xbf16>,
    %c4 = arith.constant 4 : index
    %c0_121 = arith.constant 0 : index
    %c0_122 = arith.constant 0 : index
    %306 = vector.load %arg0[%c4, %c0_121, %c0_122] : memref<8x8x512xf32, #tpu.memory_space<vmem>>, vector<1x8x512xf32>
    %307 = vector.shape_cast %306 : vector<1x8x512xf32> to vector<8x512xf32>
    %308 = arith.addf %307, %270 : vector<8x512xf32>
    %309 = vector.extract_strided_slice %308 {offsets = [0, 0], sizes = [8, 128], strides = [1, 1]} : vector<8x512xf32> to vector<8x128xf32>
    %cst_123 = arith.constant 5.000000e-01 : f32
    %310 = vector.broadcast %cst_123 : f32 to vector<8x128xf32>
    %311 = arith.mulf %310, %309 : vector<8x128xf32>
    %312 = math.tanh %311 : vector<8x128xf32>
    %cst_124 = arith.constant 5.000000e-01 : f32
    %313 = vector.broadcast %cst_124 : f32 to vector<8x128xf32>
    %314 = arith.mulf %313, %312 : vector<8x128xf32>
    %cst_125 = arith.constant 5.000000e-01 : f32
    %315 = vector.broadcast %cst_125 : f32 to vector<8x128xf32>
    %316 = arith.addf %314, %315 : vector<8x128xf32>
    %317 = vector.extract_strided_slice %308 {offsets = [0, 128], sizes = [8, 128], strides = [1, 1]} : vector<8x512xf32> to vector<8x128xf32>
    %cst_126 = arith.constant 5.000000e-01 : f32
    %318 = vector.broadcast %cst_126 : f32 to vector<8x128xf32>
    %319 = arith.mulf %318, %317 : vector<8x128xf32>
    %320 = math.tanh %319 : vector<8x128xf32>
    %cst_127 = arith.constant 5.000000e-01 : f32
    %321 = vector.broadcast %cst_127 : f32 to vector<8x128xf32>
    %322 = arith.mulf %321, %320 : vector<8x128xf32>
    %cst_128 = arith.constant 5.000000e-01 : f32
    %323 = vector.broadcast %cst_128 : f32 to vector<8x128xf32>
    %324 = arith.addf %322, %323 : vector<8x128xf32>
    %325 = vector.extract_strided_slice %308 {offsets = [0, 256], sizes = [8, 128], strides = [1, 1]} : vector<8x512xf32> to vector<8x128xf32>
    %326 = math.tanh %325 : vector<8x128xf32>
    %327 = vector.extract_strided_slice %308 {offsets = [0, 384], sizes = [8, 128], strides = [1, 1]} : vector<8x512xf32> to vector<8x128xf32>
    %cst_129 = arith.constant 5.000000e-01 : f32
    %328 = vector.broadcast %cst_129 : f32 to vector<8x128xf32>
    %329 = arith.mulf %328, %327 : vector<8x128xf32>
    %330 = math.tanh %329 : vector<8x128xf32>
    %cst_130 = arith.constant 5.000000e-01 : f32
    %331 = vector.broadcast %cst_130 : f32 to vector<8x128xf32>
    %332 = arith.mulf %331, %330 : vector<8x128xf32>
    %cst_131 = arith.constant 5.000000e-01 : f32
    %333 = vector.broadcast %cst_131 : f32 to vector<8x128xf32>
    %334 = arith.addf %332, %333 : vector<8x128xf32>
    %335 = arith.mulf %324, %262 : vector<8x128xf32>
    %336 = arith.mulf %316, %326 : vector<8x128xf32>
    %337 = arith.addf %335, %336 : vector<8x128xf32>
    %338 = math.tanh %337 : vector<8x128xf32>
    %339 = arith.mulf %334, %338 : vector<8x128xf32>
    %340 = arith.truncf %339 : vector<8x128xf32> to vector<8x128xbf16>
    %c0_132 = arith.constant 0 : index
    %c0_133 = arith.constant 0 : index
    %341 = vector.load %arg5[%c0_132, %c0_133] : memref<8x256xbf16, #tpu.memory_space<vmem>>, vector<8x128xbf16>
    tpu.vector_store %arg5[%c0_132, %c0_133], %340 {strides = array<i32>} : memref<8x256xbf16, #tpu.memory_space<vmem>>, vector<8x128xbf16>,
    %c0_134 = arith.constant 0 : index
    %c0_135 = arith.constant 0 : index
    %342 = vector.load %arg5[%c0_134, %c0_135] : memref<8x256xbf16, #tpu.memory_space<vmem>>, vector<8x256xbf16>
    %c0_136 = arith.constant 0 : index
    %c0_137 = arith.constant 0 : index
    %343 = vector.load %arg1[%c0_136, %c0_137] : memref<256x1024xbf16, #tpu.memory_space<vmem>>, vector<256x1024xbf16>
    %cst_138 = arith.constant dense<0.000000e+00> : vector<8x1024xf32>
    %344 = tpu.matmul %342, %343, %cst_138 {dimension_numbers = #tpu.dot_dimension_numbers<[1], [0], [0], [1], [0, 0, 1, 1], [], []>} : vector<8x256xbf16>, vector<256x1024xbf16>, vector<8x1024xf32> -> vector<8x1024xf32>
    %345 = vector.extract_strided_slice %344 {offsets = [0, 0], sizes = [8, 512], strides = [1, 1]} : vector<8x1024xf32> to vector<8x512xf32>
    %346 = vector.extract_strided_slice %344 {offsets = [0, 512], sizes = [8, 512], strides = [1, 1]} : vector<8x1024xf32> to vector<8x512xf32>
    %347 = arith.addf %346, %2 : vector<8x512xf32>
    %348 = vector.extract_strided_slice %347 {offsets = [0, 0], sizes = [8, 128], strides = [1, 1]} : vector<8x512xf32> to vector<8x128xf32>
    %cst_139 = arith.constant 5.000000e-01 : f32
    %349 = vector.broadcast %cst_139 : f32 to vector<8x128xf32>
    %350 = arith.mulf %349, %348 : vector<8x128xf32>
    %351 = math.tanh %350 : vector<8x128xf32>
    %cst_140 = arith.constant 5.000000e-01 : f32
    %352 = vector.broadcast %cst_140 : f32 to vector<8x128xf32>
    %353 = arith.mulf %352, %351 : vector<8x128xf32>
    %cst_141 = arith.constant 5.000000e-01 : f32
    %354 = vector.broadcast %cst_141 : f32 to vector<8x128xf32>
    %355 = arith.addf %353, %354 : vector<8x128xf32>
    %356 = vector.extract_strided_slice %347 {offsets = [0, 128], sizes = [8, 128], strides = [1, 1]} : vector<8x512xf32> to vector<8x128xf32>
    %cst_142 = arith.constant 5.000000e-01 : f32
    %357 = vector.broadcast %cst_142 : f32 to vector<8x128xf32>
    %358 = arith.mulf %357, %356 : vector<8x128xf32>
    %359 = math.tanh %358 : vector<8x128xf32>
    %cst_143 = arith.constant 5.000000e-01 : f32
    %360 = vector.broadcast %cst_143 : f32 to vector<8x128xf32>
    %361 = arith.mulf %360, %359 : vector<8x128xf32>
    %cst_144 = arith.constant 5.000000e-01 : f32
    %362 = vector.broadcast %cst_144 : f32 to vector<8x128xf32>
    %363 = arith.addf %361, %362 : vector<8x128xf32>
    %364 = vector.extract_strided_slice %347 {offsets = [0, 256], sizes = [8, 128], strides = [1, 1]} : vector<8x512xf32> to vector<8x128xf32>
    %365 = math.tanh %364 : vector<8x128xf32>
    %366 = vector.extract_strided_slice %347 {offsets = [0, 384], sizes = [8, 128], strides = [1, 1]} : vector<8x512xf32> to vector<8x128xf32>
    %cst_145 = arith.constant 5.000000e-01 : f32
    %367 = vector.broadcast %cst_145 : f32 to vector<8x128xf32>
    %368 = arith.mulf %367, %366 : vector<8x128xf32>
    %369 = math.tanh %368 : vector<8x128xf32>
    %cst_146 = arith.constant 5.000000e-01 : f32
    %370 = vector.broadcast %cst_146 : f32 to vector<8x128xf32>
    %371 = arith.mulf %370, %369 : vector<8x128xf32>
    %cst_147 = arith.constant 5.000000e-01 : f32
    %372 = vector.broadcast %cst_147 : f32 to vector<8x128xf32>
    %373 = arith.addf %371, %372 : vector<8x128xf32>
    %374 = arith.mulf %363, %301 : vector<8x128xf32>
    %375 = arith.mulf %355, %365 : vector<8x128xf32>
    %376 = arith.addf %374, %375 : vector<8x128xf32>
    %377 = math.tanh %376 : vector<8x128xf32>
    %378 = arith.mulf %373, %377 : vector<8x128xf32>
    %379 = arith.truncf %378 : vector<8x128xf32> to vector<8x128xbf16>
    %c0_148 = arith.constant 0 : index
    %c128_149 = arith.constant 128 : index
    %380 = vector.load %arg5[%c0_148, %c128_149] : memref<8x256xbf16, #tpu.memory_space<vmem>>, vector<8x128xbf16>
    tpu.vector_store %arg5[%c0_148, %c128_149], %379 {strides = array<i32>} : memref<8x256xbf16, #tpu.memory_space<vmem>>, vector<8x128xbf16>,
    %c5 = arith.constant 5 : index
    %c0_150 = arith.constant 0 : index
    %c0_151 = arith.constant 0 : index
    %381 = vector.load %arg0[%c5, %c0_150, %c0_151] : memref<8x8x512xf32, #tpu.memory_space<vmem>>, vector<1x8x512xf32>
    %382 = vector.shape_cast %381 : vector<1x8x512xf32> to vector<8x512xf32>
    %383 = arith.addf %382, %345 : vector<8x512xf32>
    %384 = vector.extract_strided_slice %383 {offsets = [0, 0], sizes = [8, 128], strides = [1, 1]} : vector<8x512xf32> to vector<8x128xf32>
    %cst_152 = arith.constant 5.000000e-01 : f32
    %385 = vector.broadcast %cst_152 : f32 to vector<8x128xf32>
    %386 = arith.mulf %385, %384 : vector<8x128xf32>
    %387 = math.tanh %386 : vector<8x128xf32>
    %cst_153 = arith.constant 5.000000e-01 : f32
    %388 = vector.broadcast %cst_153 : f32 to vector<8x128xf32>
    %389 = arith.mulf %388, %387 : vector<8x128xf32>
    %cst_154 = arith.constant 5.000000e-01 : f32
    %390 = vector.broadcast %cst_154 : f32 to vector<8x128xf32>
    %391 = arith.addf %389, %390 : vector<8x128xf32>
    %392 = vector.extract_strided_slice %383 {offsets = [0, 128], sizes = [8, 128], strides = [1, 1]} : vector<8x512xf32> to vector<8x128xf32>
    %cst_155 = arith.constant 5.000000e-01 : f32
    %393 = vector.broadcast %cst_155 : f32 to vector<8x128xf32>
    %394 = arith.mulf %393, %392 : vector<8x128xf32>
    %395 = math.tanh %394 : vector<8x128xf32>
    %cst_156 = arith.constant 5.000000e-01 : f32
    %396 = vector.broadcast %cst_156 : f32 to vector<8x128xf32>
    %397 = arith.mulf %396, %395 : vector<8x128xf32>
    %cst_157 = arith.constant 5.000000e-01 : f32
    %398 = vector.broadcast %cst_157 : f32 to vector<8x128xf32>
    %399 = arith.addf %397, %398 : vector<8x128xf32>
    %400 = vector.extract_strided_slice %383 {offsets = [0, 256], sizes = [8, 128], strides = [1, 1]} : vector<8x512xf32> to vector<8x128xf32>
    %401 = math.tanh %400 : vector<8x128xf32>
    %402 = vector.extract_strided_slice %383 {offsets = [0, 384], sizes = [8, 128], strides = [1, 1]} : vector<8x512xf32> to vector<8x128xf32>
    %cst_158 = arith.constant 5.000000e-01 : f32
    %403 = vector.broadcast %cst_158 : f32 to vector<8x128xf32>
    %404 = arith.mulf %403, %402 : vector<8x128xf32>
    %405 = math.tanh %404 : vector<8x128xf32>
    %cst_159 = arith.constant 5.000000e-01 : f32
    %406 = vector.broadcast %cst_159 : f32 to vector<8x128xf32>
    %407 = arith.mulf %406, %405 : vector<8x128xf32>
    %cst_160 = arith.constant 5.000000e-01 : f32
    %408 = vector.broadcast %cst_160 : f32 to vector<8x128xf32>
    %409 = arith.addf %407, %408 : vector<8x128xf32>
    %410 = arith.mulf %399, %337 : vector<8x128xf32>
    %411 = arith.mulf %391, %401 : vector<8x128xf32>
    %412 = arith.addf %410, %411 : vector<8x128xf32>
    %413 = math.tanh %412 : vector<8x128xf32>
    %414 = arith.mulf %409, %413 : vector<8x128xf32>
    %415 = arith.truncf %414 : vector<8x128xf32> to vector<8x128xbf16>
    %c0_161 = arith.constant 0 : index
    %c0_162 = arith.constant 0 : index
    %416 = vector.load %arg5[%c0_161, %c0_162] : memref<8x256xbf16, #tpu.memory_space<vmem>>, vector<8x128xbf16>
    tpu.vector_store %arg5[%c0_161, %c0_162], %415 {strides = array<i32>} : memref<8x256xbf16, #tpu.memory_space<vmem>>, vector<8x128xbf16>,
    %c0_163 = arith.constant 0 : index
    %c0_164 = arith.constant 0 : index
    %417 = vector.load %arg5[%c0_163, %c0_164] : memref<8x256xbf16, #tpu.memory_space<vmem>>, vector<8x256xbf16>
    %c0_165 = arith.constant 0 : index
    %c0_166 = arith.constant 0 : index
    %418 = vector.load %arg1[%c0_165, %c0_166] : memref<256x1024xbf16, #tpu.memory_space<vmem>>, vector<256x1024xbf16>
    %cst_167 = arith.constant dense<0.000000e+00> : vector<8x1024xf32>
    %419 = tpu.matmul %417, %418, %cst_167 {dimension_numbers = #tpu.dot_dimension_numbers<[1], [0], [0], [1], [0, 0, 1, 1], [], []>} : vector<8x256xbf16>, vector<256x1024xbf16>, vector<8x1024xf32> -> vector<8x1024xf32>
    %420 = vector.extract_strided_slice %419 {offsets = [0, 0], sizes = [8, 512], strides = [1, 1]} : vector<8x1024xf32> to vector<8x512xf32>
    %421 = vector.extract_strided_slice %419 {offsets = [0, 512], sizes = [8, 512], strides = [1, 1]} : vector<8x1024xf32> to vector<8x512xf32>
    %422 = arith.addf %421, %2 : vector<8x512xf32>
    %423 = vector.extract_strided_slice %422 {offsets = [0, 0], sizes = [8, 128], strides = [1, 1]} : vector<8x512xf32> to vector<8x128xf32>
    %cst_168 = arith.constant 5.000000e-01 : f32
    %424 = vector.broadcast %cst_168 : f32 to vector<8x128xf32>
    %425 = arith.mulf %424, %423 : vector<8x128xf32>
    %426 = math.tanh %425 : vector<8x128xf32>
    %cst_169 = arith.constant 5.000000e-01 : f32
    %427 = vector.broadcast %cst_169 : f32 to vector<8x128xf32>
    %428 = arith.mulf %427, %426 : vector<8x128xf32>
    %cst_170 = arith.constant 5.000000e-01 : f32
    %429 = vector.broadcast %cst_170 : f32 to vector<8x128xf32>
    %430 = arith.addf %428, %429 : vector<8x128xf32>
    %431 = vector.extract_strided_slice %422 {offsets = [0, 128], sizes = [8, 128], strides = [1, 1]} : vector<8x512xf32> to vector<8x128xf32>
    %cst_171 = arith.constant 5.000000e-01 : f32
    %432 = vector.broadcast %cst_171 : f32 to vector<8x128xf32>
    %433 = arith.mulf %432, %431 : vector<8x128xf32>
    %434 = math.tanh %433 : vector<8x128xf32>
    %cst_172 = arith.constant 5.000000e-01 : f32
    %435 = vector.broadcast %cst_172 : f32 to vector<8x128xf32>
    %436 = arith.mulf %435, %434 : vector<8x128xf32>
    %cst_173 = arith.constant 5.000000e-01 : f32
    %437 = vector.broadcast %cst_173 : f32 to vector<8x128xf32>
    %438 = arith.addf %436, %437 : vector<8x128xf32>
    %439 = vector.extract_strided_slice %422 {offsets = [0, 256], sizes = [8, 128], strides = [1, 1]} : vector<8x512xf32> to vector<8x128xf32>
    %440 = math.tanh %439 : vector<8x128xf32>
    %441 = vector.extract_strided_slice %422 {offsets = [0, 384], sizes = [8, 128], strides = [1, 1]} : vector<8x512xf32> to vector<8x128xf32>
    %cst_174 = arith.constant 5.000000e-01 : f32
    %442 = vector.broadcast %cst_174 : f32 to vector<8x128xf32>
    %443 = arith.mulf %442, %441 : vector<8x128xf32>
    %444 = math.tanh %443 : vector<8x128xf32>
    %cst_175 = arith.constant 5.000000e-01 : f32
    %445 = vector.broadcast %cst_175 : f32 to vector<8x128xf32>
    %446 = arith.mulf %445, %444 : vector<8x128xf32>
    %cst_176 = arith.constant 5.000000e-01 : f32
    %447 = vector.broadcast %cst_176 : f32 to vector<8x128xf32>
    %448 = arith.addf %446, %447 : vector<8x128xf32>
    %449 = arith.mulf %438, %376 : vector<8x128xf32>
    %450 = arith.mulf %430, %440 : vector<8x128xf32>
    %451 = arith.addf %449, %450 : vector<8x128xf32>
    %452 = math.tanh %451 : vector<8x128xf32>
    %453 = arith.mulf %448, %452 : vector<8x128xf32>
    %454 = arith.truncf %453 : vector<8x128xf32> to vector<8x128xbf16>
    %c0_177 = arith.constant 0 : index
    %c128_178 = arith.constant 128 : index
    %455 = vector.load %arg5[%c0_177, %c128_178] : memref<8x256xbf16, #tpu.memory_space<vmem>>, vector<8x128xbf16>
    tpu.vector_store %arg5[%c0_177, %c128_178], %454 {strides = array<i32>} : memref<8x256xbf16, #tpu.memory_space<vmem>>, vector<8x128xbf16>,
    %c6 = arith.constant 6 : index
    %c0_179 = arith.constant 0 : index
    %c0_180 = arith.constant 0 : index
    %456 = vector.load %arg0[%c6, %c0_179, %c0_180] : memref<8x8x512xf32, #tpu.memory_space<vmem>>, vector<1x8x512xf32>
    %457 = vector.shape_cast %456 : vector<1x8x512xf32> to vector<8x512xf32>
    %458 = arith.addf %457, %420 : vector<8x512xf32>
    %459 = vector.extract_strided_slice %458 {offsets = [0, 0], sizes = [8, 128], strides = [1, 1]} : vector<8x512xf32> to vector<8x128xf32>
    %cst_181 = arith.constant 5.000000e-01 : f32
    %460 = vector.broadcast %cst_181 : f32 to vector<8x128xf32>
    %461 = arith.mulf %460, %459 : vector<8x128xf32>
    %462 = math.tanh %461 : vector<8x128xf32>
    %cst_182 = arith.constant 5.000000e-01 : f32
    %463 = vector.broadcast %cst_182 : f32 to vector<8x128xf32>
    %464 = arith.mulf %463, %462 : vector<8x128xf32>
    %cst_183 = arith.constant 5.000000e-01 : f32
    %465 = vector.broadcast %cst_183 : f32 to vector<8x128xf32>
    %466 = arith.addf %464, %465 : vector<8x128xf32>
    %467 = vector.extract_strided_slice %458 {offsets = [0, 128], sizes = [8, 128], strides = [1, 1]} : vector<8x512xf32> to vector<8x128xf32>
    %cst_184 = arith.constant 5.000000e-01 : f32
    %468 = vector.broadcast %cst_184 : f32 to vector<8x128xf32>
    %469 = arith.mulf %468, %467 : vector<8x128xf32>
    %470 = math.tanh %469 : vector<8x128xf32>
    %cst_185 = arith.constant 5.000000e-01 : f32
    %471 = vector.broadcast %cst_185 : f32 to vector<8x128xf32>
    %472 = arith.mulf %471, %470 : vector<8x128xf32>
    %cst_186 = arith.constant 5.000000e-01 : f32
    %473 = vector.broadcast %cst_186 : f32 to vector<8x128xf32>
    %474 = arith.addf %472, %473 : vector<8x128xf32>
    %475 = vector.extract_strided_slice %458 {offsets = [0, 256], sizes = [8, 128], strides = [1, 1]} : vector<8x512xf32> to vector<8x128xf32>
    %476 = math.tanh %475 : vector<8x128xf32>
    %477 = vector.extract_strided_slice %458 {offsets = [0, 384], sizes = [8, 128], strides = [1, 1]} : vector<8x512xf32> to vector<8x128xf32>
    %cst_187 = arith.constant 5.000000e-01 : f32
    %478 = vector.broadcast %cst_187 : f32 to vector<8x128xf32>
    %479 = arith.mulf %478, %477 : vector<8x128xf32>
    %480 = math.tanh %479 : vector<8x128xf32>
    %cst_188 = arith.constant 5.000000e-01 : f32
    %481 = vector.broadcast %cst_188 : f32 to vector<8x128xf32>
    %482 = arith.mulf %481, %480 : vector<8x128xf32>
    %cst_189 = arith.constant 5.000000e-01 : f32
    %483 = vector.broadcast %cst_189 : f32 to vector<8x128xf32>
    %484 = arith.addf %482, %483 : vector<8x128xf32>
    %485 = arith.mulf %474, %412 : vector<8x128xf32>
    %486 = arith.mulf %466, %476 : vector<8x128xf32>
    %487 = arith.addf %485, %486 : vector<8x128xf32>
    %488 = math.tanh %487 : vector<8x128xf32>
    %489 = arith.mulf %484, %488 : vector<8x128xf32>
    %490 = arith.truncf %489 : vector<8x128xf32> to vector<8x128xbf16>
    %c0_190 = arith.constant 0 : index
    %c0_191 = arith.constant 0 : index
    %491 = vector.load %arg5[%c0_190, %c0_191] : memref<8x256xbf16, #tpu.memory_space<vmem>>, vector<8x128xbf16>
    tpu.vector_store %arg5[%c0_190, %c0_191], %490 {strides = array<i32>} : memref<8x256xbf16, #tpu.memory_space<vmem>>, vector<8x128xbf16>,
    %c0_192 = arith.constant 0 : index
    %c0_193 = arith.constant 0 : index
    %492 = vector.load %arg5[%c0_192, %c0_193] : memref<8x256xbf16, #tpu.memory_space<vmem>>, vector<8x256xbf16>
    %c0_194 = arith.constant 0 : index
    %c0_195 = arith.constant 0 : index
    %493 = vector.load %arg1[%c0_194, %c0_195] : memref<256x1024xbf16, #tpu.memory_space<vmem>>, vector<256x1024xbf16>
    %cst_196 = arith.constant dense<0.000000e+00> : vector<8x1024xf32>
    %494 = tpu.matmul %492, %493, %cst_196 {dimension_numbers = #tpu.dot_dimension_numbers<[1], [0], [0], [1], [0, 0, 1, 1], [], []>} : vector<8x256xbf16>, vector<256x1024xbf16>, vector<8x1024xf32> -> vector<8x1024xf32>
    %495 = vector.extract_strided_slice %494 {offsets = [0, 0], sizes = [8, 512], strides = [1, 1]} : vector<8x1024xf32> to vector<8x512xf32>
    %496 = vector.extract_strided_slice %494 {offsets = [0, 512], sizes = [8, 512], strides = [1, 1]} : vector<8x1024xf32> to vector<8x512xf32>
    %497 = arith.addf %496, %2 : vector<8x512xf32>
    %498 = vector.extract_strided_slice %497 {offsets = [0, 0], sizes = [8, 128], strides = [1, 1]} : vector<8x512xf32> to vector<8x128xf32>
    %cst_197 = arith.constant 5.000000e-01 : f32
    %499 = vector.broadcast %cst_197 : f32 to vector<8x128xf32>
    %500 = arith.mulf %499, %498 : vector<8x128xf32>
    %501 = math.tanh %500 : vector<8x128xf32>
    %cst_198 = arith.constant 5.000000e-01 : f32
    %502 = vector.broadcast %cst_198 : f32 to vector<8x128xf32>
    %503 = arith.mulf %502, %501 : vector<8x128xf32>
    %cst_199 = arith.constant 5.000000e-01 : f32
    %504 = vector.broadcast %cst_199 : f32 to vector<8x128xf32>
    %505 = arith.addf %503, %504 : vector<8x128xf32>
    %506 = vector.extract_strided_slice %497 {offsets = [0, 128], sizes = [8, 128], strides = [1, 1]} : vector<8x512xf32> to vector<8x128xf32>
    %cst_200 = arith.constant 5.000000e-01 : f32
    %507 = vector.broadcast %cst_200 : f32 to vector<8x128xf32>
    %508 = arith.mulf %507, %506 : vector<8x128xf32>
    %509 = math.tanh %508 : vector<8x128xf32>
    %cst_201 = arith.constant 5.000000e-01 : f32
    %510 = vector.broadcast %cst_201 : f32 to vector<8x128xf32>
    %511 = arith.mulf %510, %509 : vector<8x128xf32>
    %cst_202 = arith.constant 5.000000e-01 : f32
    %512 = vector.broadcast %cst_202 : f32 to vector<8x128xf32>
    %513 = arith.addf %511, %512 : vector<8x128xf32>
    %514 = vector.extract_strided_slice %497 {offsets = [0, 256], sizes = [8, 128], strides = [1, 1]} : vector<8x512xf32> to vector<8x128xf32>
    %515 = math.tanh %514 : vector<8x128xf32>
    %516 = vector.extract_strided_slice %497 {offsets = [0, 384], sizes = [8, 128], strides = [1, 1]} : vector<8x512xf32> to vector<8x128xf32>
    %cst_203 = arith.constant 5.000000e-01 : f32
    %517 = vector.broadcast %cst_203 : f32 to vector<8x128xf32>
    %518 = arith.mulf %517, %516 : vector<8x128xf32>
    %519 = math.tanh %518 : vector<8x128xf32>
    %cst_204 = arith.constant 5.000000e-01 : f32
    %520 = vector.broadcast %cst_204 : f32 to vector<8x128xf32>
    %521 = arith.mulf %520, %519 : vector<8x128xf32>
    %cst_205 = arith.constant 5.000000e-01 : f32
    %522 = vector.broadcast %cst_205 : f32 to vector<8x128xf32>
    %523 = arith.addf %521, %522 : vector<8x128xf32>
    %524 = arith.mulf %513, %451 : vector<8x128xf32>
    %525 = arith.mulf %505, %515 : vector<8x128xf32>
    %526 = arith.addf %524, %525 : vector<8x128xf32>
    %527 = math.tanh %526 : vector<8x128xf32>
    %528 = arith.mulf %523, %527 : vector<8x128xf32>
    %529 = arith.truncf %528 : vector<8x128xf32> to vector<8x128xbf16>
    %c0_206 = arith.constant 0 : index
    %c128_207 = arith.constant 128 : index
    %530 = vector.load %arg5[%c0_206, %c128_207] : memref<8x256xbf16, #tpu.memory_space<vmem>>, vector<8x128xbf16>
    tpu.vector_store %arg5[%c0_206, %c128_207], %529 {strides = array<i32>} : memref<8x256xbf16, #tpu.memory_space<vmem>>, vector<8x128xbf16>,
    %c7 = arith.constant 7 : index
    %c0_208 = arith.constant 0 : index
    %c0_209 = arith.constant 0 : index
    %531 = vector.load %arg0[%c7, %c0_208, %c0_209] : memref<8x8x512xf32, #tpu.memory_space<vmem>>, vector<1x8x512xf32>
    %532 = vector.shape_cast %531 : vector<1x8x512xf32> to vector<8x512xf32>
    %533 = arith.addf %532, %495 : vector<8x512xf32>
    %534 = vector.extract_strided_slice %533 {offsets = [0, 0], sizes = [8, 128], strides = [1, 1]} : vector<8x512xf32> to vector<8x128xf32>
    %cst_210 = arith.constant 5.000000e-01 : f32
    %535 = vector.broadcast %cst_210 : f32 to vector<8x128xf32>
    %536 = arith.mulf %535, %534 : vector<8x128xf32>
    %537 = math.tanh %536 : vector<8x128xf32>
    %cst_211 = arith.constant 5.000000e-01 : f32
    %538 = vector.broadcast %cst_211 : f32 to vector<8x128xf32>
    %539 = arith.mulf %538, %537 : vector<8x128xf32>
    %cst_212 = arith.constant 5.000000e-01 : f32
    %540 = vector.broadcast %cst_212 : f32 to vector<8x128xf32>
    %541 = arith.addf %539, %540 : vector<8x128xf32>
    %542 = vector.extract_strided_slice %533 {offsets = [0, 128], sizes = [8, 128], strides = [1, 1]} : vector<8x512xf32> to vector<8x128xf32>
    %cst_213 = arith.constant 5.000000e-01 : f32
    %543 = vector.broadcast %cst_213 : f32 to vector<8x128xf32>
    %544 = arith.mulf %543, %542 : vector<8x128xf32>
    %545 = math.tanh %544 : vector<8x128xf32>
    %cst_214 = arith.constant 5.000000e-01 : f32
    %546 = vector.broadcast %cst_214 : f32 to vector<8x128xf32>
    %547 = arith.mulf %546, %545 : vector<8x128xf32>
    %cst_215 = arith.constant 5.000000e-01 : f32
    %548 = vector.broadcast %cst_215 : f32 to vector<8x128xf32>
    %549 = arith.addf %547, %548 : vector<8x128xf32>
    %550 = vector.extract_strided_slice %533 {offsets = [0, 256], sizes = [8, 128], strides = [1, 1]} : vector<8x512xf32> to vector<8x128xf32>
    %551 = math.tanh %550 : vector<8x128xf32>
    %552 = vector.extract_strided_slice %533 {offsets = [0, 384], sizes = [8, 128], strides = [1, 1]} : vector<8x512xf32> to vector<8x128xf32>
    %cst_216 = arith.constant 5.000000e-01 : f32
    %553 = vector.broadcast %cst_216 : f32 to vector<8x128xf32>
    %554 = arith.mulf %553, %552 : vector<8x128xf32>
    %555 = math.tanh %554 : vector<8x128xf32>
    %cst_217 = arith.constant 5.000000e-01 : f32
    %556 = vector.broadcast %cst_217 : f32 to vector<8x128xf32>
    %557 = arith.mulf %556, %555 : vector<8x128xf32>
    %cst_218 = arith.constant 5.000000e-01 : f32
    %558 = vector.broadcast %cst_218 : f32 to vector<8x128xf32>
    %559 = arith.addf %557, %558 : vector<8x128xf32>
    %560 = arith.mulf %549, %487 : vector<8x128xf32>
    %561 = arith.mulf %541, %551 : vector<8x128xf32>
    %562 = arith.addf %560, %561 : vector<8x128xf32>
    %563 = math.tanh %562 : vector<8x128xf32>
    %564 = arith.mulf %559, %563 : vector<8x128xf32>
    %565 = arith.truncf %564 : vector<8x128xf32> to vector<8x128xbf16>
    %c0_219 = arith.constant 0 : index
    %c0_220 = arith.constant 0 : index
    %566 = vector.load %arg5[%c0_219, %c0_220] : memref<8x256xbf16, #tpu.memory_space<vmem>>, vector<8x128xbf16>
    tpu.vector_store %arg5[%c0_219, %c0_220], %565 {strides = array<i32>} : memref<8x256xbf16, #tpu.memory_space<vmem>>, vector<8x128xbf16>,
    %c0_221 = arith.constant 0 : index
    %c0_222 = arith.constant 0 : index
    %567 = vector.load %arg5[%c0_221, %c0_222] : memref<8x256xbf16, #tpu.memory_space<vmem>>, vector<8x256xbf16>
    %c0_223 = arith.constant 0 : index
    %c0_224 = arith.constant 0 : index
    %568 = vector.load %arg1[%c0_223, %c0_224] : memref<256x1024xbf16, #tpu.memory_space<vmem>>, vector<256x1024xbf16>
    %cst_225 = arith.constant dense<0.000000e+00> : vector<8x1024xf32>
    %569 = tpu.matmul %567, %568, %cst_225 {dimension_numbers = #tpu.dot_dimension_numbers<[1], [0], [0], [1], [0, 0, 1, 1], [], []>} : vector<8x256xbf16>, vector<256x1024xbf16>, vector<8x1024xf32> -> vector<8x1024xf32>
    %570 = vector.extract_strided_slice %569 {offsets = [0, 512], sizes = [8, 512], strides = [1, 1]} : vector<8x1024xf32> to vector<8x512xf32>
    %571 = arith.addf %570, %2 : vector<8x512xf32>
    %572 = vector.extract_strided_slice %571 {offsets = [0, 0], sizes = [8, 128], strides = [1, 1]} : vector<8x512xf32> to vector<8x128xf32>
    %cst_226 = arith.constant 5.000000e-01 : f32
    %573 = vector.broadcast %cst_226 : f32 to vector<8x128xf32>
    %574 = arith.mulf %573, %572 : vector<8x128xf32>
    %575 = math.tanh %574 : vector<8x128xf32>
    %cst_227 = arith.constant 5.000000e-01 : f32
    %576 = vector.broadcast %cst_227 : f32 to vector<8x128xf32>
    %577 = arith.mulf %576, %575 : vector<8x128xf32>
    %cst_228 = arith.constant 5.000000e-01 : f32
    %578 = vector.broadcast %cst_228 : f32 to vector<8x128xf32>
    %579 = arith.addf %577, %578 : vector<8x128xf32>
    %580 = vector.extract_strided_slice %571 {offsets = [0, 128], sizes = [8, 128], strides = [1, 1]} : vector<8x512xf32> to vector<8x128xf32>
    %cst_229 = arith.constant 5.000000e-01 : f32
    %581 = vector.broadcast %cst_229 : f32 to vector<8x128xf32>
    %582 = arith.mulf %581, %580 : vector<8x128xf32>
    %583 = math.tanh %582 : vector<8x128xf32>
    %cst_230 = arith.constant 5.000000e-01 : f32
    %584 = vector.broadcast %cst_230 : f32 to vector<8x128xf32>
    %585 = arith.mulf %584, %583 : vector<8x128xf32>
    %cst_231 = arith.constant 5.000000e-01 : f32
    %586 = vector.broadcast %cst_231 : f32 to vector<8x128xf32>
    %587 = arith.addf %585, %586 : vector<8x128xf32>
    %588 = vector.extract_strided_slice %571 {offsets = [0, 256], sizes = [8, 128], strides = [1, 1]} : vector<8x512xf32> to vector<8x128xf32>
    %589 = math.tanh %588 : vector<8x128xf32>
    %590 = vector.extract_strided_slice %571 {offsets = [0, 384], sizes = [8, 128], strides = [1, 1]} : vector<8x512xf32> to vector<8x128xf32>
    %cst_232 = arith.constant 5.000000e-01 : f32
    %591 = vector.broadcast %cst_232 : f32 to vector<8x128xf32>
    %592 = arith.mulf %591, %590 : vector<8x128xf32>
    %593 = math.tanh %592 : vector<8x128xf32>
    %cst_233 = arith.constant 5.000000e-01 : f32
    %594 = vector.broadcast %cst_233 : f32 to vector<8x128xf32>
    %595 = arith.mulf %594, %593 : vector<8x128xf32>
    %cst_234 = arith.constant 5.000000e-01 : f32
    %596 = vector.broadcast %cst_234 : f32 to vector<8x128xf32>
    %597 = arith.addf %595, %596 : vector<8x128xf32>
    %598 = arith.mulf %587, %526 : vector<8x128xf32>
    %599 = arith.mulf %579, %589 : vector<8x128xf32>
    %600 = arith.addf %598, %599 : vector<8x128xf32>
    %601 = math.tanh %600 : vector<8x128xf32>
    %602 = arith.mulf %597, %601 : vector<8x128xf32>
    %c0_235 = arith.constant 0 : index
    %c0_236 = arith.constant 0 : index
    %603 = vector.load %arg3[%c0_235, %c0_236] : memref<129x128xf32, #tpu.memory_space<vmem>>, vector<128x128xf32>
    %cst_237 = arith.constant dense<0.000000e+00> : vector<8x128xf32>
    %604 = tpu.matmul %602, %603, %cst_237 {dimension_numbers = #tpu.dot_dimension_numbers<[1], [0], [0], [1], [0, 0, 1, 1], [], []>} : vector<8x128xf32>, vector<128x128xf32>, vector<8x128xf32> -> vector<8x128xf32>
    %c128_238 = arith.constant 128 : index
    %c0_239 = arith.constant 0 : index
    %605 = vector.load %arg3[%c128_238, %c0_239] : memref<129x128xf32, #tpu.memory_space<vmem>>, vector<1x128xf32>
    %606 = vector.broadcast %605 : vector<1x128xf32> to vector<8x128xf32>
    %607 = arith.addf %604, %606 : vector<8x128xf32>
    %c0_240 = arith.constant 0 : index
    %c0_241 = arith.constant 0 : index
    %608 = vector.load %arg4[%c0_240, %c0_241] : memref<8x128xf32, #tpu.memory_space<vmem>>, vector<8x128xf32>
    tpu.vector_store %arg4[%c0_240, %c0_241], %607 {strides = array<i32>} : memref<8x128xf32, #tpu.memory_space<vmem>>, vector<8x128xf32>,
    return
  }
}

</mosaic_0001>

<bundles_post_ra>
// kernel: tpu_custom_call.1
= control target key start
LH: loop header
LB: loop body
LE: loop exit
PB: predicated region body
PF: predicated region fallthrough
CT: control target
= control target key end

     0   :  { %9 = vsyncpa [#allocation4], 0  ;;  %s13371_s0 = inlined_call_operand.hbm [shape: f32[8,8,512], index: 0, kind: input, shape index: {}]   ;;  %s13372_s1 = inlined_call_operand.hbm [shape: bf16[256,1024], index: 1, kind: input, shape index: {}]   ;;  %s13373_s2 = inlined_call_operand.hbm [shape: f32[1,512], index: 2, kind: input, shape index: {}]   ;;  %s13374_s3 = inlined_call_operand.hbm [shape: f32[129,128], index: 3, kind: input, shape index: {}]   ;;  %s13375_s4 = inlined_call_operand.hbm [shape: f32[8,128], index: 4, kind: output, shape index: {}]  }
   0x1   :  { %10 = vsyncpa [#allocation7], 0 }
   0x2   :  { %11 = vsyncpa [#allocation10], 0 }
   0x3   :  { %12 = vsyncpa [#allocation5], 0  ;;  %s30_s17 = sshll.u32 %s13372_s1, 4  ;;  %s13049_s18 = smov [#allocation6]   ;;  %s31_s17 = int_to_ptr.hbm [resolvable:$true] %s30_s17 }
   0x4   :  { %s32_s19 = sshll.u32 %s13049_s18, 4  ;;  %s17_s22 = sshll.u32 %s13371_s0, 4  ;;  %s33_s19 = int_to_ptr.vmem [resolvable:$true] %s32_s19  ;;  %s18_s22 = int_to_ptr.hbm [resolvable:$true] %s17_s22 }
   0x5   :  { %s13050_s23 = smov 512   ;;  %s13051_s24 = smov 32  }
   0x6   :  { %38 = dma.hbm_to_vmem [thread:$0]  %s31_s17, 16384, %s33_s19, [#allocation7], %s13050_s23, %s13050_s23, %s13051_s24  }
   0x7   :  { %s13052_s25 = smov [#allocation3]   ;;  %s44_s29 = sshll.u32 %s13373_s2, 4  ;;  %s45_s29 = int_to_ptr.hbm [resolvable:$true] %s44_s29 }
   0x8   :  { %s19_s26 = sshll.u32 %s13052_s25, 4  ;;  %s54_s5 = sshll.u32 %s13374_s3, 4  ;;  %s20_s26 = int_to_ptr.vmem [resolvable:$true] %s19_s26  ;;  %s55_s5 = int_to_ptr.hbm [resolvable:$true] %s54_s5 }
   0x9   :  { %25 = dma.hbm_to_vmem [thread:$0]  %s18_s22, 4096, %s20_s26, [#allocation4], %s13050_s23, %s13050_s23, %s13051_s24  }
   0xa   :  { %s13053_s6 = smov [#allocation8]   ;;  %s13054_s0 = smov [#allocation9]  }
   0xb   :  { %s46_s7 = sshll.u32 %s13053_s6, 4  ;;  %s56_s8 = sshll.u32 %s13054_s0, 4  ;;  %s47_s7 = int_to_ptr.vmem [resolvable:$true] %s46_s7  ;;  %s57_s8 = int_to_ptr.vmem [resolvable:$true] %s56_s8 }
   0xc   :  { %49 = dma.hbm_to_vmem [thread:$0]  %s45_s29, 64, %s47_s7, [#allocation7]  }
   0xd   :  { %s13055_s9 = smov 128   ;;  %s13056_s10 = smov 8  }
   0xe   :  { %62 = dma.hbm_to_vmem [thread:$0]  %s55_s5, 2176, %s57_s8, [#allocation10], %s13055_s9, %s13055_s9, %s13056_s10  }
   0xf   :  { %13041 = dma.done.wait [#allocation4], 4096  }
  0x10   :  { %13042 = vsyncadd [#allocation4], 4294963200 }
  0x11   :  { %13043 = dma.done.wait [#allocation7], 16448  }
  0x12   :  { %13044 = vsyncadd [#allocation7], 4294950848 }
  0x13   :  { %13045 = dma.done.wait [#allocation10], 2176  }
  0x14   :  { %13046 = vsyncadd [#allocation10], 4294965120  ;;  %v8176_v0 = vld [vmem:[#allocation6 + $0x1c0] sm:$0xf]  ;;  %v11846_v5 = vld [vmem:[#allocation6 + $0x1c4] sm:$0xf] }
  0x15   :  { %v11850_v1 = vld [vmem:[#allocation6 + $0x1dc] sm:$0xf0]  ;;  %v8178_v6 = vld [vmem:[#allocation6 + $0x1e0] sm:$0xf0]  ;;  %s13058_s2 = smov [#allocation11]   ;;  %s7938_s13 = sshll.u32 %s13375_s4, 4  ;;  %s7939_s13 = int_to_ptr.hbm [resolvable:$true] %s7938_s13 }
  0x16   :  { %v8432_v2 = vld [vmem:[#allocation6 + $0x3c0] sm:$0xf]  ;;  %v8177_v3 = vor.u32 %v11850_v1, %v8176_v0  ;;  %v8181_v8 = vor.u32 %v11846_v5, %v8178_v6  ;;  %v11910_v9 = vld [vmem:[#allocation6 + $0x3c4] sm:$0xf]  ;;  %s7936_s3 = sshll.u32 %s13058_s2, 4  ;;  %s7937_s3 = int_to_ptr.vmem [resolvable:$true] %s7936_s3 }
  0x17   :  { %v11914_v4 = vld [vmem:[#allocation6 + $0x3dc] sm:$0xf0]  ;;  %v8434_v10 = vld [vmem:[#allocation6 + $0x3e0] sm:$0xf0] }
  0x18   :  { %v8433_v7 = vor.u32 %v11914_v4, %v8432_v2  ;;  %v8144_v11 = vld [vmem:[#allocation6 + $0x180] sm:$0xf]  ;;  %891 = vmatpush.bf16.msra.mxu0 %v8177_v3  ;;  %v8437_v12 = vor.u32 %v11910_v9, %v8434_v10  ;;  %917 = vmatpush.bf16.msra.mxu2 %v8181_v8  ;;  %v11838_v18 = vld [vmem:[#allocation6 + $0x184] sm:$0xf] }
  0x19   :  { %v11842_v13 = vld [vmem:[#allocation6 + $0x19c] sm:$0xf0]  ;;  %v8146_v19 = vld [vmem:[#allocation6 + $0x1a0] sm:$0xf0] }
  0x1a   :  { %v8400_v14 = vld [vmem:[#allocation6 + $0x380] sm:$0xf]  ;;  %904 = vmatpush.bf16.msra.mxu1 %v8433_v7  ;;  %v8145_v16 = vor.u32 %v11842_v13, %v8144_v11  ;;  %v11902_v20 = vld [vmem:[#allocation6 + $0x384] sm:$0xf]  ;;  %930 = vmatpush.bf16.msra.mxu3 %v8437_v12  ;;  %v8149_v21 = vor.u32 %v11838_v18, %v8146_v19 }
  0x1b   :  { %v11906_v15 = vld [vmem:[#allocation6 + $0x39c] sm:$0xf0]  ;;  %v8402_v22 = vld [vmem:[#allocation6 + $0x3a0] sm:$0xf0] }
  0x1c   :  { %v8401_v17 = vor.u32 %v11906_v15, %v8400_v14  ;;  %v8112_v23 = vld [vmem:[#allocation6 + $0x140] sm:$0xf]  ;;  %v8405_v25 = vor.u32 %v11902_v20, %v8402_v22  ;;  %v11830_v28 = vld [vmem:[#allocation6 + $0x144] sm:$0xf]  ;;  %892 = vmatpush.bf16.msra.mxu0 %v8145_v16  ;;  %918 = vmatpush.bf16.msra.mxu2 %v8149_v21 }
  0x1d   :  { %v11834_v24 = vld [vmem:[#allocation6 + $0x15c] sm:$0xf0]  ;;  %v8114_v30 = vld [vmem:[#allocation6 + $0x160] sm:$0xf0] }
  0x1e   :  { %v8368_v26 = vld [vmem:[#allocation6 + $0x340] sm:$0xf]  ;;  %v8113_v29 = vor.u32 %v11834_v24, %v8112_v23  ;;  %v11894_v31 = vld [vmem:[#allocation6 + $0x344] sm:$0xf]  ;;  %905 = vmatpush.bf16.msra.mxu1 %v8401_v17  ;;  %v8117_v34 = vor.u32 %v11830_v28, %v8114_v30  ;;  %931 = vmatpush.bf16.msra.mxu3 %v8405_v25  ;;  %v8184_v28 = vld [vmem:[#allocation6 + $0x1c8] sm:$0xf] }
  0x1f   :  { %v11898_v27 = vld [vmem:[#allocation6 + $0x35c] sm:$0xf0]  ;;  %v8370_v32 = vld [vmem:[#allocation6 + $0x360] sm:$0xf0]  ;;  %v8440_v30 = vld [vmem:[#allocation6 + $0x3c8] sm:$0xf] }
  0x20   :  { %v8369_v33 = vor.u32 %v11898_v27, %v8368_v26  ;;  %v8080_v35 = vld [vmem:[#allocation6 + $0x100] sm:$0xf]  ;;  %v8373_v38 = vor.u32 %v11894_v31, %v8370_v32  ;;  %v11822_v40 = vld [vmem:[#allocation6 + $0x104] sm:$0xf]  ;;  %893 = vmatpush.bf16.msra.mxu0 %v8113_v29  ;;  %919 = vmatpush.bf16.msra.mxu2 %v8117_v34  ;;  %v11851_v29 = vld [vmem:[#allocation6 + $0x1e4] sm:$0xf0] }
  0x21   :  { %v11826_v36 = vld [vmem:[#allocation6 + $0x11c] sm:$0xf0]  ;;  %v8082_v41 = vld [vmem:[#allocation6 + $0x120] sm:$0xf0]  ;;  %v11915_v32 = vld [vmem:[#allocation6 + $0x3e4] sm:$0xf0] }
  0x22   :  { %v8336_v37 = vld [vmem:[#allocation6 + $0x300] sm:$0xf]  ;;  %v11886_v42 = vld [vmem:[#allocation6 + $0x304] sm:$0xf]  ;;  %v8081_v44 = vor.u32 %v11826_v36, %v8080_v35  ;;  %906 = vmatpush.bf16.msra.mxu1 %v8369_v33  ;;  %v8085_v46 = vor.u32 %v11822_v40, %v8082_v41  ;;  %932 = vmatpush.bf16.msra.mxu3 %v8373_v38  ;;  %v11847_v33 = vld [vmem:[#allocation6 + $0x1cc] sm:$0xf]  ;;  %v8185_v40 = vor.u32 %v11851_v29, %v8184_v28 }
  0x23   :  { %v11890_v39 = vld [vmem:[#allocation6 + $0x31c] sm:$0xf0]  ;;  %v8338_v43 = vld [vmem:[#allocation6 + $0x320] sm:$0xf0]  ;;  %v8186_v34 = vld [vmem:[#allocation6 + $0x1e8] sm:$0xf0] }
  0x24   :  { %v8337_v45 = vor.u32 %v11890_v39, %v8336_v37  ;;  %v8048_v47 = vld [vmem:[#allocation6 + $0xc0] sm:$0xf]  ;;  %v8341_v50 = vor.u32 %v11886_v42, %v8338_v43  ;;  %v11814_v52 = vld [vmem:[#allocation6 + $0xc4] sm:$0xf]  ;;  %894 = vmatpush.bf16.msra.mxu0 %v8081_v44  ;;  %920 = vmatpush.bf16.msra.mxu2 %v8085_v46  ;;  %v11911_v37 = vld [vmem:[#allocation6 + $0x3cc] sm:$0xf]  ;;  %v8441_v42 = vor.u32 %v11915_v32, %v8440_v30 }
  0x25   :  { %v11818_v48 = vld [vmem:[#allocation6 + $0xdc] sm:$0xf0]  ;;  %v8050_v53 = vld [vmem:[#allocation6 + $0xe0] sm:$0xf0]  ;;  %v8442_v38 = vld [vmem:[#allocation6 + $0x3e8] sm:$0xf0]  ;;  %v8189_v43 = vor.u32 %v11847_v33, %v8186_v34 }
  0x26   :  { %v8304_v49 = vld [vmem:[#allocation6 + $0x2c0] sm:$0xf]  ;;  %v11878_v54 = vld [vmem:[#allocation6 + $0x2c4] sm:$0xf]  ;;  %v8049_v56 = vor.u32 %v11818_v48, %v8048_v47  ;;  %907 = vmatpush.bf16.msra.mxu1 %v8337_v45  ;;  %v8053_v58 = vor.u32 %v11814_v52, %v8050_v53  ;;  %933 = vmatpush.bf16.msra.mxu3 %v8341_v50  ;;  %v8152_v41 = vld [vmem:[#allocation6 + $0x188] sm:$0xf]  ;;  %v8445_v47 = vor.u32 %v11911_v37, %v8442_v38 }
  0x27   :  { %v11882_v51 = vld [vmem:[#allocation6 + $0x2dc] sm:$0xf0]  ;;  %v8306_v55 = vld [vmem:[#allocation6 + $0x2e0] sm:$0xf0]  ;;  %v11843_v44 = vld [vmem:[#allocation6 + $0x1a4] sm:$0xf0] }
  0x28   :  { %v8305_v57 = vor.u32 %v11882_v51, %v8304_v49  ;;  %v8016_v59 = vld [vmem:[#allocation6 + $0x80] sm:$0xf]  ;;  %v8309_v62 = vor.u32 %v11878_v54, %v8306_v55  ;;  %v11806_v0 = vld [vmem:[#allocation6 + $0x84] sm:$0xf]  ;;  %895 = vmatpush.bf16.msra.mxu0 %v8049_v56  ;;  %921 = vmatpush.bf16.msra.mxu2 %v8053_v58  ;;  %v8408_v45 = vld [vmem:[#allocation6 + $0x388] sm:$0xf]  ;;  %v8153_v54 = vor.u32 %v11843_v44, %v8152_v41 }
  0x29   :  { %v11810_v60 = vld [vmem:[#allocation6 + $0x9c] sm:$0xf0]  ;;  %v8018_v1 = vld [vmem:[#allocation6 + $0xa0] sm:$0xf0]  ;;  %v11907_v46 = vld [vmem:[#allocation6 + $0x3a4] sm:$0xf0] }
  0x2a   :  { %v8272_v61 = vld [vmem:[#allocation6 + $0x280] sm:$0xf]  ;;  %v11870_v2 = vld [vmem:[#allocation6 + $0x284] sm:$0xf]  ;;  %v8017_v4 = vor.u32 %v11810_v60, %v8016_v59  ;;  %908 = vmatpush.bf16.msra.mxu1 %v8305_v57  ;;  %v8021_v6 = vor.u32 %v11806_v0, %v8018_v1  ;;  %934 = vmatpush.bf16.msra.mxu3 %v8309_v62  ;;  %v11839_v48 = vld [vmem:[#allocation6 + $0x18c] sm:$0xf]  ;;  %v8409_v58 = vor.u32 %v11907_v46, %v8408_v45 }
  0x2b   :  { %v11874_v63 = vld [vmem:[#allocation6 + $0x29c] sm:$0xf0]  ;;  %v8274_v3 = vld [vmem:[#allocation6 + $0x2a0] sm:$0xf0]  ;;  %v8154_v49 = vld [vmem:[#allocation6 + $0x1a8] sm:$0xf0] }
  0x2c   :  { %v8273_v5 = vor.u32 %v11874_v63, %v8272_v61  ;;  %v7984_v7 = vld [vmem:[#allocation6 + $0x40] sm:$0xf]  ;;  %v8277_v10 = vor.u32 %v11870_v2, %v8274_v3  ;;  %v11798_v12 = vld [vmem:[#allocation6 + $0x44] sm:$0xf]  ;;  %896 = vmatpush.bf16.msra.mxu0 %v8017_v4  ;;  %922 = vmatpush.bf16.msra.mxu2 %v8021_v6  ;;  %v11903_v50 = vld [vmem:[#allocation6 + $0x38c] sm:$0xf]  ;;  %v8157_v59 = vor.u32 %v11839_v48, %v8154_v49 }
  0x2d   :  { %v11802_v8 = vld [vmem:[#allocation6 + $0x5c] sm:$0xf0]  ;;  %v7986_v13 = vld [vmem:[#allocation6 + $0x60] sm:$0xf0]  ;;  %v8410_v51 = vld [vmem:[#allocation6 + $0x3a8] sm:$0xf0] }
  0x2e   :  { %v8240_v9 = vld [vmem:[#allocation6 + $0x240] sm:$0xf]  ;;  %v11862_v14 = vld [vmem:[#allocation6 + $0x244] sm:$0xf]  ;;  %v7985_v16 = vor.u32 %v11802_v8, %v7984_v7  ;;  %909 = vmatpush.bf16.msra.mxu1 %v8273_v5  ;;  %v7989_v20 = vor.u32 %v11798_v12, %v7986_v13  ;;  %935 = vmatpush.bf16.msra.mxu3 %v8277_v10  ;;  %v8120_v52 = vld [vmem:[#allocation6 + $0x148] sm:$0xf]  ;;  %v8413_v63 = vor.u32 %v11903_v50, %v8410_v51 }
  0x2f   :  { %v11866_v11 = vld [vmem:[#allocation6 + $0x25c] sm:$0xf0]  ;;  %v8242_v15 = vld [vmem:[#allocation6 + $0x260] sm:$0xf0]  ;;  %v11835_v53 = vld [vmem:[#allocation6 + $0x164] sm:$0xf0] }
  0x30   :  { %v7952_v17 = vld [vmem:[#allocation6] sm:$0xf]  ;;  %v8241_v19 = vor.u32 %v11866_v11, %v8240_v9  ;;  %v11790_v23 = vld [vmem:[#allocation6 + $0x4] sm:$0xf]  ;;  %v8245_v24 = vor.u32 %v11862_v14, %v8242_v15  ;;  %897 = vmatpush.bf16.msra.mxu0 %v7985_v16  ;;  %923 = vmatpush.bf16.msra.mxu2 %v7989_v20  ;;  %v8376_v55 = vld [vmem:[#allocation6 + $0x348] sm:$0xf]  ;;  %v8121_v7 = vor.u32 %v11835_v53, %v8120_v52 }
  0x31   :  { %v11794_v18 = vld [vmem:[#allocation6 + $0x1c] sm:$0xf0]  ;;  %v7954_v25 = vld [vmem:[#allocation6 + $0x20] sm:$0xf0]  ;;  %v11899_v56 = vld [vmem:[#allocation6 + $0x364] sm:$0xf0] }
  0x32   :  { %v8208_v21 = vld [vmem:[#allocation6 + $0x200] sm:$0xf]  ;;  %v11854_v26 = vld [vmem:[#allocation6 + $0x204] sm:$0xf]  ;;  %v7953_v31 = vor.u32 %v11794_v18, %v7952_v17  ;;  %910 = vmatpush.bf16.msra.mxu1 %v8241_v19  ;;  %v7957_v36 = vor.u32 %v11790_v23, %v7954_v25  ;;  %936 = vmatpush.bf16.msra.mxu3 %v8245_v24  ;;  %v11831_v57 = vld [vmem:[#allocation6 + $0x14c] sm:$0xf]  ;;  %v8377_v9 = vor.u32 %v11899_v56, %v8376_v55 }
  0x33   :  { %v11858_v22 = vld [vmem:[#allocation6 + $0x21c] sm:$0xf0]  ;;  %v8210_v27 = vld [vmem:[#allocation6 + $0x220] sm:$0xf0]  ;;  %v8122_v60 = vld [vmem:[#allocation6 + $0x168] sm:$0xf0] }
  0x34   :  { %v8209_v35 = vor.u32 %v11858_v22, %v8208_v21  ;;  %v8213_v39 = vor.u32 %v11854_v26, %v8210_v27  ;;  %898 = vmatpush.bf16.msra.mxu0 %v7953_v31  ;;  %924 = vmatpush.bf16.msra.mxu2 %v7957_v36  ;;  %v11895_v61 = vld [vmem:[#allocation6 + $0x34c] sm:$0xf]  ;;  %v90_v62 = vld [vmem:[#allocation3] sm:$0xff]  ;;  %v13057_v3 = vmov 0   ;;  %v92_v4 = vld [vmem:[#allocation3 + $0x10] sm:$0xff]  ;;  %v8125_v10 = vor.u32 %v11831_v57, %v8122_v60 }
  0x35   :  { %v8378_v0 = vld [vmem:[#allocation6 + $0x368] sm:$0xf0]  ;;  %v94_v2 = vmul.f32 0.5, %v90_v62  ;;  %114 = vst [vmem:[#allocation2 + $0x4] sm:$0xf] %v13057_v3  ;;  %v93_v5 = vld [vmem:[#allocation3 + $0x18] sm:$0xff] }
  0x36   :  { %911 = vmatpush.bf16.msra.mxu1 %v8209_v35  ;;  %937 = vmatpush.bf16.msra.mxu3 %v8213_v39  ;;  %v91_v1 = vld [vmem:[#allocation3 + $0x8] sm:$0xff]  ;;  %v8381_v14 = vor.u32 %v11895_v61, %v8378_v0  ;;  %v103_v17 = vmul.f32 0.5, %v93_v5 }
  0x37   :  { %v98_v6 = vmul.f32 0.5, %v91_v1  ;;  %v8088_v8 = vld [vmem:[#allocation6 + $0x108] sm:$0xf]  ;;  %12761 = vtanh.f32 %v94_v2  ;;  %v11823_v15 = vld [vmem:[#allocation6 + $0x10c] sm:$0xf] }
  0x38   :  { %943 = vmatpush.bf16.msrb.mxu0 %v8185_v40  ;;  %969 = vmatpush.bf16.msrb.mxu2 %v8189_v43  ;;  %v11827_v11 = vld [vmem:[#allocation6 + $0x124] sm:$0xf0]  ;;  %v8090_v16 = vld [vmem:[#allocation6 + $0x128] sm:$0xf0] }
  0x39   :  { %v8344_v12 = vld [vmem:[#allocation6 + $0x308] sm:$0xf]  ;;  %12763 = vtanh.f32 %v98_v6  ;;  %v11887_v18 = vld [vmem:[#allocation6 + $0x30c] sm:$0xf]  ;;  %v8089_v20 = vor.u32 %v11827_v11, %v8088_v8  ;;  %v8093_v22 = vor.u32 %v11823_v15, %v8090_v16 }
  0x3a   :  { %956 = vmatpush.bf16.msrb.mxu1 %v8441_v42  ;;  %982 = vmatpush.bf16.msrb.mxu3 %v8445_v47  ;;  %v11891_v13 = vld [vmem:[#allocation6 + $0x324] sm:$0xf0]  ;;  %12765 = vtanh.f32 %v92_v4  ;;  %v8346_v19 = vld [vmem:[#allocation6 + $0x328] sm:$0xf0] }
  0x3b   :  { %v8345_v21 = vor.u32 %v11891_v13, %v8344_v12  ;;  %v8056_v23 = vld [vmem:[#allocation6 + $0xc8] sm:$0xf]  ;;  %v8349_v27 = vor.u32 %v11887_v18, %v8346_v19  ;;  %v11815_v29 = vld [vmem:[#allocation6 + $0xcc] sm:$0xf]  ;;  %12767 = vtanh.f32 %v103_v17 }
  0x3c   :  { %944 = vmatpush.bf16.msrb.mxu0 %v8153_v54  ;;  %970 = vmatpush.bf16.msrb.mxu2 %v8157_v59  ;;  %v11819_v24 = vld [vmem:[#allocation6 + $0xe4] sm:$0xf0]  ;;  %v8058_v30 = vld [vmem:[#allocation6 + $0xe8] sm:$0xf0] }
  0x3d   :  { %v8312_v25 = vld [vmem:[#allocation6 + $0x2c8] sm:$0xf]  ;;  %v12762_v26 = vpop.eup %12761  ;;  %v11879_v32 = vld [vmem:[#allocation6 + $0x2cc] sm:$0xf]  ;;  %v8057_v36 = vor.u32 %v11819_v24, %v8056_v23  ;;  %v8061_v41 = vor.u32 %v11815_v29, %v8058_v30  ;;  %v8192_v24 = vld [vmem:[#allocation6 + $0x1d0] sm:$0xf] }
  0x3e   :  { %957 = vmatpush.bf16.msrb.mxu1 %v8409_v58  ;;  %983 = vmatpush.bf16.msrb.mxu3 %v8413_v63  ;;  %v11883_v28 = vld [vmem:[#allocation6 + $0x2e4] sm:$0xf0]  ;;  %v8314_v33 = vld [vmem:[#allocation6 + $0x2e8] sm:$0xf0]  ;;  %v96_v34 = vmul.f32 0.5, %v12762_v26 }
  0x3f   :  { %v12764_v31 = vpop.eup %12763  ;;  %v8024_v38 = vld [vmem:[#allocation6 + $0x88] sm:$0xf]  ;;  %v8313_v40 = vor.u32 %v11883_v28, %v8312_v25  ;;  %v8317_v45 = vor.u32 %v11879_v32, %v8314_v33  ;;  %v11807_v47 = vld [vmem:[#allocation6 + $0x8c] sm:$0xf]  ;;  %v11852_v25 = vld [vmem:[#allocation6 + $0x1ec] sm:$0xf0] }
  0x40   :  { %945 = vmatpush.bf16.msrb.mxu0 %v8121_v7  ;;  %971 = vmatpush.bf16.msrb.mxu2 %v8125_v10  ;;  %v12766_v35 = vpop.eup %12765  ;;  %v100_v37 = vmul.f32 0.5, %v12764_v31  ;;  %v11811_v39 = vld [vmem:[#allocation6 + $0xa4] sm:$0xf0]  ;;  %v97_v42 = vadd.f32 0.5, %v96_v34  ;;  %v8026_v48 = vld [vmem:[#allocation6 + $0xa8] sm:$0xf0] }
  0x41   :  { %v8280_v43 = vld [vmem:[#allocation6 + $0x288] sm:$0xf]  ;;  %v11871_v50 = vld [vmem:[#allocation6 + $0x28c] sm:$0xf]  ;;  %v12768_v52 = vpop.eup %12767  ;;  %v8025_v54 = vor.u32 %v11811_v39, %v8024_v38  ;;  %v8029_v56 = vor.u32 %v11807_v47, %v8026_v48  ;;  %v8448_v26 = vld [vmem:[#allocation6 + $0x3d0] sm:$0xf] }
  0x42   :  { %958 = vmatpush.bf16.msrb.mxu1 %v8377_v9  ;;  %984 = vmatpush.bf16.msrb.mxu3 %v8381_v14  ;;  %v11875_v44 = vld [vmem:[#allocation6 + $0x2a4] sm:$0xf0]  ;;  %v101_v46 = vadd.f32 0.5, %v100_v37  ;;  %v108_v49 = vmul.f32 %v12766_v35, %v97_v42  ;;  %v8282_v51 = vld [vmem:[#allocation6 + $0x2a8] sm:$0xf0]  ;;  %v105_v1 = vmul.f32 0.5, %v12768_v52  ;;  %v8193_v37 = vor.u32 %v11852_v25, %v8192_v24 }
  0x43   :  { %v8281_v55 = vor.u32 %v11875_v44, %v8280_v43  ;;  %v7992_v57 = vld [vmem:[#allocation6 + $0x48] sm:$0xf]  ;;  %v8285_v61 = vor.u32 %v11871_v50, %v8282_v51  ;;  %v11799_v63 = vld [vmem:[#allocation6 + $0x4c] sm:$0xf]  ;;  %v11916_v28 = vld [vmem:[#allocation6 + $0x3ec] sm:$0xf0] }
  0x44   :  { %946 = vmatpush.bf16.msrb.mxu0 %v8089_v20  ;;  %972 = vmatpush.bf16.msrb.mxu2 %v8093_v22  ;;  %v107_v53 = vmul.f32 0.0, %v101_v46  ;;  %v11803_v58 = vld [vmem:[#allocation6 + $0x64] sm:$0xf0]  ;;  %v7994_v0 = vld [vmem:[#allocation6 + $0x68] sm:$0xf0]  ;;  %v106_v14 = vadd.f32 0.5, %v105_v1  ;;  %v8449_v38 = vor.u32 %v11916_v28, %v8448_v26 }
  0x45   :  { %v8248_v59 = vld [vmem:[#allocation6 + $0x248] sm:$0xf]  ;;  %v11863_v2 = vld [vmem:[#allocation6 + $0x24c] sm:$0xf]  ;;  %v7993_v4 = vor.u32 %v11803_v58, %v7992_v57  ;;  %v7997_v6 = vor.u32 %v11799_v63, %v7994_v0  ;;  %v11848_v29 = vld [vmem:[#allocation6 + $0x1d4] sm:$0xf] }
  0x46   :  { %959 = vmatpush.bf16.msrb.mxu1 %v8345_v21  ;;  %985 = vmatpush.bf16.msrb.mxu3 %v8349_v27  ;;  %v13096_v60 = vadd.f32 %v108_v49, %v107_v53  ;;  %v11867_v62 = vld [vmem:[#allocation6 + $0x264] sm:$0xf0]  ;;  %v8250_v3 = vld [vmem:[#allocation6 + $0x268] sm:$0xf0]  ;;  %v8194_v32 = vld [vmem:[#allocation6 + $0x1f0] sm:$0xf0] }
  0x47   :  { %v8249_v5 = vor.u32 %v11867_v62, %v8248_v59  ;;  %v7960_v7 = vld [vmem:[#allocation6 + $0x8] sm:$0xf]  ;;  %v8253_v10 = vor.u32 %v11863_v2, %v8250_v3  ;;  %v11791_v12 = vld [vmem:[#allocation6 + $0xc] sm:$0xf]  ;;  %v11912_v33 = vld [vmem:[#allocation6 + $0x3d4] sm:$0xf] }
  0x48   :  { %947 = vmatpush.bf16.msrb.mxu0 %v8057_v36  ;;  %973 = vmatpush.bf16.msrb.mxu2 %v8061_v41  ;;  %12769 = vtanh.f32 %v13096_v60  ;;  %v11795_v8 = vld [vmem:[#allocation6 + $0x24] sm:$0xf0]  ;;  %v7962_v13 = vld [vmem:[#allocation6 + $0x28] sm:$0xf0]  ;;  %v8450_v34 = vld [vmem:[#allocation6 + $0x3f0] sm:$0xf0]  ;;  %v8197_v41 = vor.u32 %v11848_v29, %v8194_v32 }
  0x49   :  { %v8216_v9 = vld [vmem:[#allocation6 + $0x208] sm:$0xf]  ;;  %v11855_v15 = vld [vmem:[#allocation6 + $0x20c] sm:$0xf]  ;;  %v7961_v17 = vor.u32 %v11795_v8, %v7960_v7  ;;  %v7965_v19 = vor.u32 %v11791_v12, %v7962_v13  ;;  %v8160_v39 = vld [vmem:[#allocation6 + $0x190] sm:$0xf]  ;;  %v8453_v42 = vor.u32 %v11912_v33, %v8450_v34 }
  0x4a   :  { %960 = vmatpush.bf16.msrb.mxu1 %v8313_v40  ;;  %986 = vmatpush.bf16.msrb.mxu3 %v8317_v45  ;;  %v11859_v11 = vld [vmem:[#allocation6 + $0x224] sm:$0xf0]  ;;  %v8218_v16 = vld [vmem:[#allocation6 + $0x228] sm:$0xf0]  ;;  %v11844_v40 = vld [vmem:[#allocation6 + $0x1ac] sm:$0xf0] }
  0x4b   :  { %v8217_v18 = vor.u32 %v11859_v11, %v8216_v9  ;;  %v8221_v21 = vor.u32 %v11855_v15, %v8218_v16  ;;  %v8416_v43 = vld [vmem:[#allocation6 + $0x390] sm:$0xf]  ;;  %v11840_v45 = vld [vmem:[#allocation6 + $0x194] sm:$0xf]  ;;  %v8161_v49 = vor.u32 %v11844_v40, %v8160_v39 }
  0x4c   :  { %948 = vmatpush.bf16.msrb.mxu0 %v8025_v54  ;;  %974 = vmatpush.bf16.msrb.mxu2 %v8029_v56  ;;  %v11908_v44 = vld [vmem:[#allocation6 + $0x3ac] sm:$0xf0]  ;;  %v8162_v46 = vld [vmem:[#allocation6 + $0x1b0] sm:$0xf0] }
  0x4d   :  { %v11904_v47 = vld [vmem:[#allocation6 + $0x394] sm:$0xf]  ;;  %v8417_v50 = vor.u32 %v11908_v44, %v8416_v43  ;;  %v8128_v51 = vld [vmem:[#allocation6 + $0x150] sm:$0xf]  ;;  %v8165_v53 = vor.u32 %v11840_v45, %v8162_v46 }
  0x4e   :  { %961 = vmatpush.bf16.msrb.mxu1 %v8281_v55  ;;  %987 = vmatpush.bf16.msrb.mxu3 %v8285_v61  ;;  %v12770_v20 = vpop.eup %12769  ;;  %v8418_v48 = vld [vmem:[#allocation6 + $0x3b0] sm:$0xf0]  ;;  %v11836_v52 = vld [vmem:[#allocation6 + $0x16c] sm:$0xf0] }
  0x4f   :  { %v111_v22 = vmul.f32 %v12770_v20, %v106_v14  ;;  %v8421_v54 = vor.u32 %v11904_v47, %v8418_v48  ;;  %v8384_v55 = vld [vmem:[#allocation6 + $0x350] sm:$0xf]  ;;  %v11832_v57 = vld [vmem:[#allocation6 + $0x154] sm:$0xf]  ;;  %v8129_v62 = vor.u32 %v11836_v52, %v8128_v51 }
  0x50   :  { %949 = vmatpush.bf16.msrb.mxu0 %v7993_v4  ;;  %975 = vmatpush.bf16.msrb.mxu2 %v7997_v6  ;;  %v11900_v56 = vld [vmem:[#allocation6 + $0x36c] sm:$0xf0]  ;;  %v8130_v58 = vld [vmem:[#allocation6 + $0x170] sm:$0xf0] }
  0x51   :  { %v112_v23 = vpack.c.bf16 %v111_v22, %v111_v22  ;;  %v11896_v59 = vld [vmem:[#allocation6 + $0x354] sm:$0xf]  ;;  %v8385_v63 = vor.u32 %v11900_v56, %v8384_v55  ;;  %v8096_v0 = vld [vmem:[#allocation6 + $0x110] sm:$0xf]  ;;  %v8133_v2 = vor.u32 %v11832_v57, %v8130_v58 }
  0x52   :  { %962 = vmatpush.bf16.msrb.mxu1 %v8249_v5  ;;  %988 = vmatpush.bf16.msrb.mxu3 %v8253_v10  ;;  %v8386_v61 = vld [vmem:[#allocation6 + $0x370] sm:$0xf0]  ;;  %v11828_v1 = vld [vmem:[#allocation6 + $0x12c] sm:$0xf0] }
  0x53   :  { %113 = vst [vmem:[#allocation2] sm:$0xf] %v112_v23  ;;  %v8389_v3 = vor.u32 %v11896_v59, %v8386_v61  ;;  %v8352_v4 = vld [vmem:[#allocation6 + $0x310] sm:$0xf]  ;;  %v11824_v6 = vld [vmem:[#allocation6 + $0x114] sm:$0xf]  ;;  %v8097_v10 = vor.u32 %v11828_v1, %v8096_v0 }
  0x54   :  { %950 = vmatpush.bf16.msrb.mxu0 %v7961_v17  ;;  %976 = vmatpush.bf16.msrb.mxu2 %v7965_v19  ;;  %v11892_v5 = vld [vmem:[#allocation6 + $0x32c] sm:$0xf0]  ;;  %v8098_v7 = vld [vmem:[#allocation6 + $0x130] sm:$0xf0]  ;;  %v8200_v61 = vld [vmem:[#allocation6 + $0x1d8] sm:$0xf] }
  0x55   :  { %v11888_v8 = vld [vmem:[#allocation6 + $0x314] sm:$0xf]  ;;  %v8353_v11 = vor.u32 %v11892_v5, %v8352_v4  ;;  %v8064_v12 = vld [vmem:[#allocation6 + $0xd0] sm:$0xf]  ;;  %v8101_v14 = vor.u32 %v11824_v6, %v8098_v7  ;;  %v11917_v0 = vld [vmem:[#allocation6 + $0x3f4] sm:$0xf0] }
  0x56   :  { %963 = vmatpush.bf16.msrb.mxu1 %v8217_v18  ;;  %989 = vmatpush.bf16.msrb.mxu3 %v8221_v21  ;;  %v8354_v9 = vld [vmem:[#allocation6 + $0x330] sm:$0xf0]  ;;  %v11820_v13 = vld [vmem:[#allocation6 + $0xec] sm:$0xf0]  ;;  %v11849_v1 = vld [vmem:[#allocation6 + $0x1dc] sm:$0xf] }
  0x57   :  { %v8357_v15 = vor.u32 %v11888_v8, %v8354_v9  ;;  %v8320_v16 = vld [vmem:[#allocation6 + $0x2d0] sm:$0xf]  ;;  %v11816_v18 = vld [vmem:[#allocation6 + $0xd4] sm:$0xf]  ;;  %v8065_v22 = vor.u32 %v11820_v13, %v8064_v12  ;;  %v8202_v4 = vld [vmem:[#allocation6 + $0x1f8] sm:$0xf0] }
  0x58   :  { %v11884_v17 = vld [vmem:[#allocation6 + $0x2ec] sm:$0xf0]  ;;  %v8066_v19 = vld [vmem:[#allocation6 + $0xf0] sm:$0xf0]  ;;  %v11913_v5 = vld [vmem:[#allocation6 + $0x3dc] sm:$0xf]  ;;  %v8205_v13 = vor.u32 %v11849_v1, %v8202_v4 }
  0x59   :  { %v11880_v20 = vld [vmem:[#allocation6 + $0x2d4] sm:$0xf]  ;;  %v8321_v23 = vor.u32 %v11884_v17, %v8320_v16  ;;  %v8032_v24 = vld [vmem:[#allocation6 + $0x90] sm:$0xf]  ;;  %v8069_v26 = vor.u32 %v11816_v18, %v8066_v19  ;;  %v8458_v6 = vld [vmem:[#allocation6 + $0x3f8] sm:$0xf0] }
  0x5a   :  { %v115_v27 = vld [vmem:[#allocation2] sm:$0xff]  ;;  %v8322_v21 = vld [vmem:[#allocation6 + $0x2f0] sm:$0xf0]  ;;  %v11812_v25 = vld [vmem:[#allocation6 + $0xac] sm:$0xf0] }
  0x5b   :  { %v245_v30 = vunpack.c.l.b16 %v115_v27  ;;  %v246_v31 = vunpack.c.h.b16 %v115_v27  ;;  %v8325_v27 = vor.u32 %v11880_v20, %v8322_v21  ;;  %v8288_v28 = vld [vmem:[#allocation6 + $0x290] sm:$0xf]  ;;  %v11872_v32 = vld [vmem:[#allocation6 + $0x294] sm:$0xf]  ;;  %v8033_v34 = vor.u32 %v11812_v25, %v8032_v24  ;;  %v11845_v12 = vld [vmem:[#allocation6 + $0x1b4] sm:$0xf0] }
  0x5c   :  { %v11876_v29 = vld [vmem:[#allocation6 + $0x2ac] sm:$0xf0]  ;;  %v8290_v33 = vld [vmem:[#allocation6 + $0x2b0] sm:$0xf0]  ;;  %v11909_v16 = vld [vmem:[#allocation6 + $0x3b4] sm:$0xf0] }
  0x5d   :  { %v13099_v35 = vpack.c.b16 %v245_v30, %v245_v30  ;;  %v13101_v36 = vpack.c.b16 %v246_v31, %v246_v31  ;;  %v11808_v30 = vld [vmem:[#allocation6 + $0x94] sm:$0xf]  ;;  %v11804_v39 = vld [vmem:[#allocation6 + $0x6c] sm:$0xf0]  ;;  %v11841_v17 = vld [vmem:[#allocation6 + $0x19c] sm:$0xf] }
  0x5e   :  { %v8034_v31 = vld [vmem:[#allocation6 + $0xb0] sm:$0xf0]  ;;  %v11868_v43 = vld [vmem:[#allocation6 + $0x26c] sm:$0xf0]  ;;  %v8170_v18 = vld [vmem:[#allocation6 + $0x1b8] sm:$0xf0] }
  0x5f   :  { %925 = vmatmul.bf16.vlgmr.msra.gmra.mxu2 %v13099_v35  ;;  %938 = vmatmul.bf16.vlgmr.msra.gmra.mxu3 %v13101_v36  ;;  %v8037_v40 = vor.u32 %v11808_v30, %v8034_v31  ;;  %v11800_v44 = vld [vmem:[#allocation6 + $0x54] sm:$0xf]  ;;  %v7968_v48 = vld [vmem:[#allocation6 + $0x10] sm:$0xf]  ;;  %v11905_v19 = vld [vmem:[#allocation6 + $0x39c] sm:$0xf]  ;;  %v8173_v25 = vor.u32 %v11841_v17, %v8170_v18 }
  0x60   :  { %899 = vmatmul.bf16.vlgmr.msra.gmra.mxu0 %v13099_v35  ;;  %912 = vmatmul.bf16.vlgmr.msra.gmra.mxu1 %v13101_v36  ;;  %v8002_v45 = vld [vmem:[#allocation6 + $0x70] sm:$0xf0]  ;;  %v11796_v51 = vld [vmem:[#allocation6 + $0x2c] sm:$0xf0]  ;;  %v8426_v20 = vld [vmem:[#allocation6 + $0x3b8] sm:$0xf0] }
  0x61   :  { %995 = vmatpush.bf16.msra.mxu0 %v8193_v37  ;;  %1008 = vmatpush.bf16.msra.mxu1 %v8449_v38  ;;  %v8289_v37 = vor.u32 %v11876_v29, %v8288_v28  ;;  %v8000_v38 = vld [vmem:[#allocation6 + $0x50] sm:$0xf]  ;;  %v11864_v46 = vld [vmem:[#allocation6 + $0x254] sm:$0xf]  ;;  %v11837_v24 = vld [vmem:[#allocation6 + $0x174] sm:$0xf0] }
  0x62   :  { %1021 = vmatpush.bf16.msra.mxu2 %v8197_v41  ;;  %1034 = vmatpush.bf16.msra.mxu3 %v8453_v42  ;;  %v8293_v41 = vor.u32 %v11872_v32, %v8290_v33  ;;  %v8256_v42 = vld [vmem:[#allocation6 + $0x250] sm:$0xf]  ;;  %v8258_v47 = vld [vmem:[#allocation6 + $0x270] sm:$0xf0]  ;;  %v11901_v28 = vld [vmem:[#allocation6 + $0x374] sm:$0xf0] }
  0x63   :  { %v8224_v52 = vld [vmem:[#allocation6 + $0x210] sm:$0xf]  ;;  %v8261_v55 = vor.u32 %v11864_v46, %v8258_v47  ;;  %v11792_v56 = vld [vmem:[#allocation6 + $0x14] sm:$0xf]  ;;  %v11833_v29 = vld [vmem:[#allocation6 + $0x15c] sm:$0xf] }
  0x64   :  { %v7970_v57 = vld [vmem:[#allocation6 + $0x30] sm:$0xf0]  ;;  %v8138_v30 = vld [vmem:[#allocation6 + $0x178] sm:$0xf0] }
  0x65   :  { %996 = vmatpush.bf16.msra.mxu0 %v8161_v49  ;;  %1009 = vmatpush.bf16.msra.mxu1 %v8417_v50  ;;  %v8001_v49 = vor.u32 %v11804_v39, %v8000_v38  ;;  %v8257_v50 = vor.u32 %v11868_v43, %v8256_v42  ;;  %v11856_v58 = vld [vmem:[#allocation6 + $0x214] sm:$0xf]  ;;  %v7973_v7 = vor.u32 %v11792_v56, %v7970_v57  ;;  %v11897_v31 = vld [vmem:[#allocation6 + $0x35c] sm:$0xf]  ;;  %v11829_v38 = vld [vmem:[#allocation6 + $0x134] sm:$0xf0] }
  0x66   :  { %1022 = vmatpush.bf16.msra.mxu2 %v8165_v53  ;;  %1035 = vmatpush.bf16.msra.mxu3 %v8421_v54  ;;  %v11860_v53 = vld [vmem:[#allocation6 + $0x22c] sm:$0xf0]  ;;  %v8005_v54 = vor.u32 %v11800_v44, %v8002_v45  ;;  %v8226_v59 = vld [vmem:[#allocation6 + $0x230] sm:$0xf0]  ;;  %v8394_v32 = vld [vmem:[#allocation6 + $0x378] sm:$0xf0]  ;;  %v8141_v39 = vor.u32 %v11833_v29, %v8138_v30 }
  0x67   :  { %v8229_v8 = vor.u32 %v11856_v58, %v8226_v59  ;;  %v11893_v42 = vld [vmem:[#allocation6 + $0x334] sm:$0xf0]  ;;  %v11825_v43 = vld [vmem:[#allocation6 + $0x11c] sm:$0xf] }
  0x68   :  { %v8106_v44 = vld [vmem:[#allocation6 + $0x138] sm:$0xf0] }
  0x69   :  { %997 = vmatpush.bf16.msra.mxu0 %v8129_v62  ;;  %1010 = vmatpush.bf16.msra.mxu1 %v8385_v63  ;;  %v11853_v62 = vld [vmem:[#allocation6 + $0x1f4] sm:$0xf0]  ;;  %v11889_v45 = vld [vmem:[#allocation6 + $0x31c] sm:$0xf] }
  0x6a   :  { %1023 = vmatpush.bf16.msra.mxu2 %v8133_v2  ;;  %1036 = vmatpush.bf16.msra.mxu3 %v8389_v3  ;;  %v8456_v63 = vld [vmem:[#allocation6 + $0x3d8] sm:$0xf]  ;;  %v7969_v2 = vor.u32 %v11796_v51, %v7968_v48  ;;  %v8225_v3 = vor.u32 %v11860_v53, %v8224_v52  ;;  %v8201_v9 = vor.u32 %v11853_v62, %v8200_v61  ;;  %v8362_v46 = vld [vmem:[#allocation6 + $0x338] sm:$0xf0] }
  0x6b   :  { %v8109_v51 = vor.u32 %v11825_v43, %v8106_v44  ;;  %v8365_v52 = vor.u32 %v11889_v45, %v8362_v46  ;;  %v8328_v53 = vld [vmem:[#allocation6 + $0x2d8] sm:$0xf]  ;;  %v8074_v56 = vld [vmem:[#allocation6 + $0xf8] sm:$0xf0]  ;;  %v1125_v45 = vld [vmem:[#allocation3 + $0x28] sm:$0xff] }
  0x6c   :  { %v11881_v57 = vld [vmem:[#allocation6 + $0x2dc] sm:$0xf]  ;;  %v8040_v62 = vld [vmem:[#allocation6 + $0x98] sm:$0xf] }
  0x6d   :  { %998 = vmatpush.bf16.msra.mxu0 %v8097_v10  ;;  %1011 = vmatpush.bf16.msra.mxu1 %v8353_v11  ;;  %v8457_v10 = vor.u32 %v11917_v0, %v8456_v63  ;;  %v8168_v11 = vld [vmem:[#allocation6 + $0x198] sm:$0xf]  ;;  %v8330_v58 = vld [vmem:[#allocation6 + $0x2f8] sm:$0xf0] }
  0x6e   :  { %1024 = vmatpush.bf16.msra.mxu2 %v8101_v14  ;;  %1037 = vmatpush.bf16.msra.mxu3 %v8357_v15  ;;  %v8461_v14 = vor.u32 %v11913_v5, %v8458_v6  ;;  %v8424_v15 = vld [vmem:[#allocation6 + $0x398] sm:$0xf]  ;;  %v8169_v21 = vor.u32 %v11845_v12, %v8168_v11  ;;  %v8333_v1 = vor.u32 %v11881_v57, %v8330_v58  ;;  %v11809_v4 = vld [vmem:[#allocation6 + $0x9c] sm:$0xf]  ;;  %v11978_v57 = vld [vmem:[#allocation6 + $0x1dc] sm:$0xf0] }
  0x6f   :  { %977 = vmatmul.bf16.vlgmr.msrb.gmra.mxu2 %v13099_v35  ;;  %990 = vmatmul.bf16.vlgmr.msrb.gmra.mxu3 %v13101_v36  ;;  %v11813_v63 = vld [vmem:[#allocation6 + $0xb4] sm:$0xf0]  ;;  %v8042_v5 = vld [vmem:[#allocation6 + $0xb8] sm:$0xf0] }
  0x70   :  { %951 = vmatmul.bf16.vlgmr.msrb.gmra.mxu0 %v13099_v35  ;;  %964 = vmatmul.bf16.vlgmr.msrb.gmra.mxu1 %v13101_v36  ;;  %v11873_v6 = vld [vmem:[#allocation6 + $0x29c] sm:$0xf]  ;;  %v11805_v11 = vld [vmem:[#allocation6 + $0x74] sm:$0xf0]  ;;  %v8045_v12 = vor.u32 %v11809_v4, %v8042_v5 }
  0x71   :  { %999 = vmatpush.bf16.msra.mxu0 %v8065_v22  ;;  %1012 = vmatpush.bf16.msra.mxu1 %v8321_v23  ;;  %v8425_v22 = vor.u32 %v11909_v16, %v8424_v15  ;;  %v8136_v23 = vld [vmem:[#allocation6 + $0x158] sm:$0xf]  ;;  %v11801_v16 = vld [vmem:[#allocation6 + $0x5c] sm:$0xf] }
  0x72   :  { %1025 = vmatpush.bf16.msra.mxu2 %v8069_v26  ;;  %1038 = vmatpush.bf16.msra.mxu3 %v8325_v27  ;;  %v8429_v26 = vor.u32 %v11905_v19, %v8426_v20  ;;  %v8392_v27 = vld [vmem:[#allocation6 + $0x358] sm:$0xf]  ;;  %v8137_v33 = vor.u32 %v11837_v24, %v8136_v23  ;;  %v8010_v17 = vld [vmem:[#allocation6 + $0x78] sm:$0xf0] }
  0x73   :  { %v11869_v15 = vld [vmem:[#allocation6 + $0x274] sm:$0xf0]  ;;  %v11865_v18 = vld [vmem:[#allocation6 + $0x25c] sm:$0xf]  ;;  %v8013_v24 = vor.u32 %v11801_v16, %v8010_v17 }
  0x74   :  { %v8266_v19 = vld [vmem:[#allocation6 + $0x278] sm:$0xf0]  ;;  %v11797_v23 = vld [vmem:[#allocation6 + $0x34] sm:$0xf0] }
  0x75   :  { %1000 = vmatpush.bf16.msra.mxu0 %v8033_v34  ;;  %1013 = vmatpush.bf16.msra.mxu1 %v8289_v37  ;;  %v8393_v34 = vor.u32 %v11901_v28, %v8392_v27  ;;  %v8104_v37 = vld [vmem:[#allocation6 + $0x118] sm:$0xf]  ;;  %v11793_v28 = vld [vmem:[#allocation6 + $0x1c] sm:$0xf] }
  0x76   :  { %1026 = vmatpush.bf16.msra.mxu2 %v8037_v40  ;;  %1039 = vmatpush.bf16.msra.mxu3 %v8293_v41  ;;  %v8397_v40 = vor.u32 %v11897_v31, %v8394_v32  ;;  %v8360_v41 = vld [vmem:[#allocation6 + $0x318] sm:$0xf]  ;;  %v8105_v47 = vor.u32 %v11829_v38, %v8104_v37  ;;  %v7978_v29 = vld [vmem:[#allocation6 + $0x38] sm:$0xf0] }
  0x77   :  { %v8361_v48 = vor.u32 %v11893_v42, %v8360_v41  ;;  %v11861_v27 = vld [vmem:[#allocation6 + $0x234] sm:$0xf0]  ;;  %v11857_v30 = vld [vmem:[#allocation6 + $0x21c] sm:$0xf] }
  0x78   :  { %v8234_v31 = vld [vmem:[#allocation6 + $0x238] sm:$0xf0] }
  0x79   :  { %1001 = vmatpush.bf16.msra.mxu0 %v8001_v49  ;;  %1014 = vmatpush.bf16.msra.mxu1 %v8257_v50  ;;  %v8072_v49 = vld [vmem:[#allocation6 + $0xd8] sm:$0xf]  ;;  %v8237_v37 = vor.u32 %v11857_v30, %v8234_v31  ;;  %v8624_v31 = vld [vmem:[#allocation6 + $0x140] sm:$0xf] }
  0x7a   :  { %1027 = vmatpush.bf16.msra.mxu2 %v8005_v54  ;;  %1040 = vmatpush.bf16.msra.mxu3 %v8261_v55  ;;  %v11821_v50 = vld [vmem:[#allocation6 + $0xf4] sm:$0xf0]  ;;  %v11817_v55 = vld [vmem:[#allocation6 + $0xdc] sm:$0xf] }
  0x7b   :  { %v11885_v54 = vld [vmem:[#allocation6 + $0x2f4] sm:$0xf0]  ;;  %v8073_v59 = vor.u32 %v11821_v50, %v8072_v49  ;;  %v8077_v0 = vor.u32 %v11817_v55, %v8074_v56  ;;  %v1126_v55 = vld [vmem:[#allocation3 + $0x30] sm:$0xff]  ;;  %v8688_v56 = vld [vmem:[#allocation6 + $0x1c0] sm:$0xf] }
  0x7c   :  { %v8329_v61 = vor.u32 %v11885_v54, %v8328_v53  ;;  %v1127_v16 = vld [vmem:[#allocation3 + $0x38] sm:$0xff] }
  0x7d   :  { %1002 = vmatpush.bf16.msra.mxu0 %v7969_v2  ;;  %1015 = vmatpush.bf16.msra.mxu1 %v8225_v3  ;;  %v8296_v2 = vld [vmem:[#allocation6 + $0x298] sm:$0xf] }
  0x7e   :  { %1028 = vmatpush.bf16.msra.mxu2 %v7973_v7  ;;  %1041 = vmatpush.bf16.msra.mxu3 %v8229_v8  ;;  %v11877_v3 = vld [vmem:[#allocation6 + $0x2b4] sm:$0xf0]  ;;  %v8298_v7 = vld [vmem:[#allocation6 + $0x2b8] sm:$0xf0]  ;;  %v8041_v8 = vor.u32 %v11813_v63, %v8040_v62  ;;  %v12042_v62 = vld [vmem:[#allocation6 + $0x3dc] sm:$0xf0] }
  0x7f   :  { %v11974_v63 = vld [vmem:[#allocation6 + $0x1c4] sm:$0xf] }
  0x80   :  { %1003 = vmatmul.bf16.vlgmr.msra.gmra.mxu0 %v13099_v35  ;;  %1016 = vmatmul.bf16.vlgmr.msra.gmra.mxu1 %v13101_v36 }
  0x81   :  { %1047 = vmatpush.bf16.msrb.mxu0 %v8201_v9  ;;  %1060 = vmatpush.bf16.msrb.mxu1 %v8457_v10  ;;  %v8297_v9 = vor.u32 %v11877_v3, %v8296_v2  ;;  %v8008_v10 = vld [vmem:[#allocation6 + $0x58] sm:$0xf]  ;;  %v8690_v2 = vld [vmem:[#allocation6 + $0x1e0] sm:$0xf0] }
  0x82   :  { %1073 = vmatpush.bf16.msrb.mxu2 %v8205_v13  ;;  %1086 = vmatpush.bf16.msrb.mxu3 %v8461_v14  ;;  %v8301_v13 = vor.u32 %v11873_v6, %v8298_v7  ;;  %v8264_v14 = vld [vmem:[#allocation6 + $0x258] sm:$0xf]  ;;  %v8009_v20 = vor.u32 %v11805_v11, %v8008_v10  ;;  %v12038_v3 = vld [vmem:[#allocation6 + $0x3c4] sm:$0xf]  ;;  %v8693_v7 = vor.u32 %v11974_v63, %v8690_v2  ;;  %v8656_v10 = vld [vmem:[#allocation6 + $0x180] sm:$0xf] }
  0x83   :  { %1029 = vmatmul.bf16.vlgmr.msra.gmra.mxu2 %v13099_v35  ;;  %1042 = vmatmul.bf16.vlgmr.msra.gmra.mxu3 %v13101_v36  ;;  %v11970_v11 = vld [vmem:[#allocation6 + $0x19c] sm:$0xf0] }
  0x84   :  { %v8657_v17 = vor.u32 %v11970_v11, %v8656_v10  ;;  %v11946_v63 = vld [vmem:[#allocation6 + $0xdc] sm:$0xf0] }
  0x85   :  { %1048 = vmatpush.bf16.msrb.mxu0 %v8169_v21  ;;  %1061 = vmatpush.bf16.msrb.mxu1 %v8425_v22  ;;  %v8265_v21 = vor.u32 %v11869_v15, %v8264_v14  ;;  %v7976_v22 = vld [vmem:[#allocation6 + $0x18] sm:$0xf]  ;;  %v13123_v11 = vld [vmem:[#allocation8] sm:$0xf] }
  0x86   :  { %1074 = vmatpush.bf16.msrb.mxu2 %v8173_v25  ;;  %1087 = vmatpush.bf16.msrb.mxu3 %v8429_v26  ;;  %v8269_v25 = vor.u32 %v11865_v18, %v8266_v19  ;;  %v8232_v26 = vld [vmem:[#allocation6 + $0x218] sm:$0xf]  ;;  %v7977_v32 = vor.u32 %v11797_v23, %v7976_v22  ;;  %v12034_v18 = vld [vmem:[#allocation6 + $0x39c] sm:$0xf0]  ;;  %v11966_v19 = vld [vmem:[#allocation6 + $0x184] sm:$0xf] }
  0x87   :  { %v8658_v22 = vld [vmem:[#allocation6 + $0x1a0] sm:$0xf0] }
  0x88   :  { %v12030_v23 = vld [vmem:[#allocation6 + $0x384] sm:$0xf] }
  0x89   :  { %1049 = vmatpush.bf16.msrb.mxu0 %v8137_v33  ;;  %1062 = vmatpush.bf16.msrb.mxu1 %v8393_v34  ;;  %v8233_v33 = vor.u32 %v11861_v27, %v8232_v26  ;;  %v7981_v34 = vor.u32 %v11793_v28, %v7978_v29  ;;  %v8661_v26 = vor.u32 %v11966_v19, %v8658_v22  ;;  %v13126_v19 = vperm.slane %v13123_v11, 0  ;;  %v11934_v22 = vld [vmem:[#allocation6 + $0x84] sm:$0xf] }
  0x8a   :  { %1075 = vmatpush.bf16.msrb.mxu2 %v8141_v39  ;;  %1088 = vmatpush.bf16.msrb.mxu3 %v8397_v40  ;;  %v1124_v40 = vld [vmem:[#allocation3 + $0x20] sm:$0xff] }
  0x8d   :  { %1050 = vmatpush.bf16.msrb.mxu0 %v8105_v47  ;;  %1063 = vmatpush.bf16.msrb.mxu1 %v8361_v48 }
  0x8e   :  { %1076 = vmatpush.bf16.msrb.mxu2 %v8109_v51  ;;  %1089 = vmatpush.bf16.msrb.mxu3 %v8365_v52 }
  0x91   :  { %1051 = vmatpush.bf16.msrb.mxu0 %v8073_v59  ;;  %1064 = vmatpush.bf16.msrb.mxu1 %v8329_v61  ;;  %v8689_v59 = vor.u32 %v11978_v57, %v8688_v56  ;;  %v8944_v61 = vld [vmem:[#allocation6 + $0x3c0] sm:$0xf]  ;;  %v12014_v57 = vld [vmem:[#allocation6 + $0x304] sm:$0xf] }
  0x92   :  { %1077 = vmatpush.bf16.msrb.mxu2 %v8077_v0  ;;  %1090 = vmatpush.bf16.msrb.mxu3 %v8333_v1  ;;  %v8945_v1 = vor.u32 %v12042_v62, %v8944_v61 }
  0x95   :  { %1052 = vmatpush.bf16.msrb.mxu0 %v8041_v8  ;;  %1065 = vmatpush.bf16.msrb.mxu1 %v8297_v9  ;;  %v8946_v8 = vld [vmem:[#allocation6 + $0x3e0] sm:$0xf0] }
  0x96   :  { %1078 = vmatpush.bf16.msrb.mxu2 %v8045_v12  ;;  %1091 = vmatpush.bf16.msrb.mxu3 %v8301_v13  ;;  %v8949_v9 = vor.u32 %v12038_v3, %v8946_v8  ;;  %v8912_v12 = vld [vmem:[#allocation6 + $0x380] sm:$0xf]  ;;  %v11942_v3 = vld [vmem:[#allocation6 + $0xc4] sm:$0xf] }
  0x99   :  { %1053 = vmatpush.bf16.msrb.mxu0 %v8009_v20  ;;  %1066 = vmatpush.bf16.msrb.mxu1 %v8265_v21  ;;  %v8913_v21 = vor.u32 %v12034_v18, %v8912_v12 }
  0x9a   :  { %1079 = vmatpush.bf16.msrb.mxu2 %v8013_v24  ;;  %1092 = vmatpush.bf16.msrb.mxu3 %v8269_v25  ;;  %v8914_v24 = vld [vmem:[#allocation6 + $0x3a0] sm:$0xf0] }
  0x9b   :  { %v8917_v27 = vor.u32 %v12030_v23, %v8914_v24 }
  0x9d   :  { %1054 = vmatpush.bf16.msrb.mxu0 %v7977_v32  ;;  %1067 = vmatpush.bf16.msrb.mxu1 %v8233_v33  ;;  %v11962_v32 = vld [vmem:[#allocation6 + $0x15c] sm:$0xf0] }
  0x9e   :  { %1080 = vmatpush.bf16.msrb.mxu2 %v7981_v34  ;;  %1093 = vmatpush.bf16.msrb.mxu3 %v8237_v37  ;;  %v8880_v33 = vld [vmem:[#allocation6 + $0x340] sm:$0xf]  ;;  %v8625_v34 = vor.u32 %v11962_v32, %v8624_v31 }
  0x9f   :  { %v12026_v37 = vld [vmem:[#allocation6 + $0x35c] sm:$0xf0] }
  0xa0   :  { %1055 = vmatmul.bf16.vlgmr.msrb.gmra.mxu0 %v13099_v35  ;;  %1068 = vmatmul.bf16.vlgmr.msrb.gmra.mxu1 %v13101_v36 }
  0xa1   :  { %1081 = vmatmul.bf16.vlgmr.msrb.gmra.mxu2 %v13099_v35  ;;  %1094 = vmatmul.bf16.vlgmr.msrb.gmra.mxu3 %v13101_v36 }
  0xa2   :  { %1928 = vmatpush.bf16.msra.mxu0 %v8689_v59  ;;  %1941 = vmatpush.bf16.msra.mxu1 %v8945_v1  ;;  %v8560_v59 = vld [vmem:[#allocation6 + $0xc0] sm:$0xf] }
  0xa3   :  { %1954 = vmatpush.bf16.msra.mxu2 %v8693_v7  ;;  %1967 = vmatpush.bf16.msra.mxu3 %v8949_v9  ;;  %v12010_v1 = vld [vmem:[#allocation6 + $0x2dc] sm:$0xf0]  ;;  %v8561_v2 = vor.u32 %v11946_v63, %v8560_v59  ;;  %v8818_v7 = vld [vmem:[#allocation6 + $0x2e0] sm:$0xf0] }
  0xa4   :  { %v8466_v59 = vld [vmem:[#allocation6 + $0x20] sm:$0xf0] }
  0xa5   :  { %v8722_v63 = vld [vmem:[#allocation6 + $0x220] sm:$0xf0] }
  0xa6   :  { %1929 = vmatpush.bf16.msra.mxu0 %v8657_v17  ;;  %1942 = vmatpush.bf16.msra.mxu1 %v8913_v21  ;;  %v8784_v17 = vld [vmem:[#allocation6 + $0x280] sm:$0xf] }
  0xa7   :  { %1955 = vmatpush.bf16.msra.mxu2 %v8661_v26  ;;  %1968 = vmatpush.bf16.msra.mxu3 %v8917_v27  ;;  %v12002_v21 = vld [vmem:[#allocation6 + $0x29c] sm:$0xf0]  ;;  %v11998_v26 = vld [vmem:[#allocation6 + $0x284] sm:$0xf] }
  0xa8   :  { %v8785_v24 = vor.u32 %v12002_v21, %v8784_v17  ;;  %v8786_v27 = vld [vmem:[#allocation6 + $0x2a0] sm:$0xf0]  ;;  %v11971_v21 = vld [vmem:[#allocation6 + $0x1a4] sm:$0xf0] }
  0xaa   :  { %1930 = vmatpush.bf16.msra.mxu0 %v8625_v34  ;;  %v8496_v34 = vld [vmem:[#allocation6 + $0x40] sm:$0xf] }
  0xdd   :  { %v900_v38 = vpop.f32.mrf.mxu0  ;;  %v913_v39 = vpop.f32.mrf.mxu1 }
  0xde   :  { %v914_v41 = vadd.f32 %v913_v39, %v900_v38  ;;  %v11958_v38 = vld [vmem:[#allocation6 + $0x144] sm:$0xf] }
  0xdf   :  { %v8626_v39 = vld [vmem:[#allocation6 + $0x160] sm:$0xf0] }
  0xe0   :  { %v1128_v42 = vadd.f32 %v1124_v40, %v914_v41 }
  0xe2   :  { %v926_v43 = vpop.f32.mrf.mxu2  ;;  %v939_v44 = vpop.f32.mrf.mxu3  ;;  %v1132_v46 = vmul.f32 0.5, %v1128_v42  ;;  %v8881_v42 = vor.u32 %v12026_v37, %v8880_v33  ;;  %v8789_v33 = vor.u32 %v11998_v26, %v8786_v27  ;;  %v11930_v37 = vld [vmem:[#allocation6 + $0x5c] sm:$0xf0]  ;;  %v8666_v27 = vld [vmem:[#allocation6 + $0x1a8] sm:$0xf0] }
  0xe3   :  { %v940_v47 = vadd.f32 %v939_v44, %v926_v43  ;;  %v8629_v43 = vor.u32 %v11958_v38, %v8626_v39  ;;  %v12022_v44 = vld [vmem:[#allocation6 + $0x344] sm:$0xf]  ;;  %v8752_v38 = vld [vmem:[#allocation6 + $0x240] sm:$0xf] }
  0xe4   :  { %12771 = vtanh.f32 %v1132_v46  ;;  %1943 = vmatpush.bf16.msra.mxu1 %v8881_v42  ;;  %v11926_v42 = vld [vmem:[#allocation6 + $0x44] sm:$0xf] }
  0xe5   :  { %v1129_v48 = vadd.f32 %v1125_v45, %v940_v47  ;;  %v902_v49 = vpop.f32.mrf.mxu0  ;;  %v915_v50 = vpop.f32.mrf.mxu1  ;;  %v8882_v45 = vld [vmem:[#allocation6 + $0x360] sm:$0xf0]  ;;  %1956 = vmatpush.bf16.msra.mxu2 %v8629_v43 }
  0xe6   :  { %v8885_v47 = vor.u32 %v12022_v44, %v8882_v45  ;;  %v11954_v49 = vld [vmem:[#allocation6 + $0x11c] sm:$0xf0]  ;;  %v8498_v43 = vld [vmem:[#allocation6 + $0x60] sm:$0xf0] }
  0xe7   :  { %v1136_v51 = vmul.f32 0.5, %v1129_v48  ;;  %v8592_v48 = vld [vmem:[#allocation6 + $0x100] sm:$0xf] }
  0xe8   :  { %v8848_v50 = vld [vmem:[#allocation6 + $0x300] sm:$0xf]  ;;  %1969 = vmatpush.bf16.msra.mxu3 %v8885_v47 }
  0xe9   :  { %12773 = vtanh.f32 %v1136_v51 }
  0xea   :  { %v928_v52 = vpop.f32.mrf.mxu2  ;;  %v941_v35 = vpop.f32.mrf.mxu3 }
  0xeb   :  { %v12772_v53 = vpop.eup %12771  ;;  %v8593_v52 = vor.u32 %v11954_v49, %v8592_v48  ;;  %v12018_v35 = vld [vmem:[#allocation6 + $0x31c] sm:$0xf0]  ;;  %v8501_v49 = vor.u32 %v11926_v42, %v8498_v43  ;;  %v8634_v42 = vld [vmem:[#allocation6 + $0x168] sm:$0xf0] }
  0xec   :  { %v1134_v4 = vmul.f32 0.5, %v12772_v53  ;;  %v11950_v53 = vld [vmem:[#allocation6 + $0x104] sm:$0xf]  ;;  %v12023_v43 = vld [vmem:[#allocation6 + $0x34c] sm:$0xf] }
  0xed   :  { %v952_v36 = vpop.f32.mrf.mxu0  ;;  %v965_v54 = vpop.f32.mrf.mxu1  ;;  %1931 = vmatpush.bf16.msra.mxu0 %v8593_v52 }
  0xee   :  { %v966_v58 = vadd.f32 %v965_v54, %v952_v36  ;;  %v1135_v25 = vadd.f32 0.5, %v1134_v4  ;;  %v8594_v36 = vld [vmem:[#allocation6 + $0x120] sm:$0xf0] }
  0xef   :  { %v12774_v0 = vpop.eup %12773  ;;  %v8597_v56 = vor.u32 %v11950_v53, %v8594_v36  ;;  %v8562_v4 = vld [vmem:[#allocation6 + $0xe0] sm:$0xf0]  ;;  %v11922_v53 = vld [vmem:[#allocation6 + $0x1c] sm:$0xf0] }
  0xf0   :  { %v1138_v5 = vmul.f32 0.5, %v12774_v0  ;;  %v1130_v6 = vadd.f32 %v1126_v55, %v966_v58  ;;  %v8849_v55 = vor.u32 %v12018_v35, %v8848_v50  ;;  %v8850_v58 = vld [vmem:[#allocation6 + $0x320] sm:$0xf0]  ;;  %v8816_v0 = vld [vmem:[#allocation6 + $0x2c0] sm:$0xf]  ;;  %v8565_v8 = vor.u32 %v11942_v3, %v8562_v4 }
  0xf1   :  { %v8853_v62 = vor.u32 %v12014_v57, %v8850_v58  ;;  %1957 = vmatpush.bf16.msra.mxu2 %v8597_v56  ;;  %1932 = vmatpush.bf16.msra.mxu0 %v8561_v2  ;;  %v11990_v50 = vld [vmem:[#allocation6 + $0x244] sm:$0xf]  ;;  %v8464_v35 = vld [vmem:[#allocation6] sm:$0xf]  ;;  %v8696_v4 = vld [vmem:[#allocation6 + $0x1c8] sm:$0xf] }
  0xf2   :  { %v1139_v13 = vadd.f32 0.5, %v1138_v5  ;;  %12775 = vtanh.f32 %v1130_v6  ;;  %v978_v14 = vpop.f32.mrf.mxu2  ;;  %v991_v15 = vpop.f32.mrf.mxu3  ;;  %v12006_v5 = vld [vmem:[#allocation6 + $0x2c4] sm:$0xf]  ;;  %1944 = vmatpush.bf16.msra.mxu1 %v8849_v55  ;;  %v8817_v6 = vor.u32 %v12010_v1, %v8816_v0  ;;  %v8465_v36 = vor.u32 %v11922_v53, %v8464_v35  ;;  %v8602_v53 = vld [vmem:[#allocation6 + $0x128] sm:$0xf0] }
  0xf3   :  { %v992_v20 = vadd.f32 %v991_v15, %v978_v14  ;;  %1970 = vmatpush.bf16.msra.mxu3 %v8853_v62  ;;  %v8528_v15 = vld [vmem:[#allocation6 + $0x80] sm:$0xf]  ;;  %v11918_v55 = vld [vmem:[#allocation6 + $0x4] sm:$0xf] }
  0xf4   :  { %v1145_v40 = vmul.f32 %v1139_v13, %v13096_v60  ;;  %v8821_v13 = vor.u32 %v12006_v5, %v8818_v7  ;;  %v11982_v62 = vld [vmem:[#allocation6 + $0x204] sm:$0xf]  ;;  %v8469_v2 = vor.u32 %v11918_v55, %v8466_v59  ;;  %v11979_v5 = vld [vmem:[#allocation6 + $0x1e4] sm:$0xf0]  ;;  %v13134_v55 = vperm.slane %v13123_v11, 2 }
  0xf5   :  { %v1131_v28 = vadd.f32 %v1127_v16, %v992_v20  ;;  %v954_v29 = vpop.f32.mrf.mxu0  ;;  %v967_v30 = vpop.f32.mrf.mxu1  ;;  %v11938_v16 = vld [vmem:[#allocation6 + $0x9c] sm:$0xf0]  ;;  %1958 = vmatpush.bf16.msra.mxu2 %v8565_v8  ;;  %v8725_v3 = vor.u32 %v11982_v62, %v8722_v63  ;;  %v8697_v7 = vor.u32 %v11979_v5, %v8696_v4  ;;  %v12043_v8 = vld [vmem:[#allocation6 + $0x3e4] sm:$0xf0]  ;;  %v11943_v4 = vld [vmem:[#allocation6 + $0xcc] sm:$0xf] }
  0xf6   :  { %1945 = vmatpush.bf16.msra.mxu1 %v8817_v6  ;;  %v8529_v20 = vor.u32 %v11938_v16, %v8528_v15  ;;  %v13129_v30 = vperm.slane %v13123_v11, 1  ;;  %v8952_v6 = vld [vmem:[#allocation6 + $0x3c8] sm:$0xf]  ;;  %v8570_v5 = vld [vmem:[#allocation6 + $0xe8] sm:$0xf0] }
  0xf7   :  { %v1141_v41 = vmul.f32 0.5, %v1131_v28  ;;  %1971 = vmatpush.bf16.msra.mxu3 %v8821_v13  ;;  %v12039_v13 = vld [vmem:[#allocation6 + $0x3cc] sm:$0xf]  ;;  %v8568_v59 = vld [vmem:[#allocation6 + $0xc8] sm:$0xf] }
  0xf8   :  { %v12776_v46 = vpop.eup %12775  ;;  %1933 = vmatpush.bf16.msra.mxu0 %v8529_v20  ;;  %v8664_v20 = vld [vmem:[#allocation6 + $0x188] sm:$0xf] }
  0xf9   :  { %v1146_v51 = vmul.f32 %v12776_v46, %v1135_v25  ;;  %12777 = vtanh.f32 %v1141_v41  ;;  %v8530_v25 = vld [vmem:[#allocation6 + $0xa0] sm:$0xf0]  ;;  %v11994_v41 = vld [vmem:[#allocation6 + $0x25c] sm:$0xf0]  ;;  %v11947_v62 = vld [vmem:[#allocation6 + $0xe4] sm:$0xf0] }
  0xfa   :  { %v980_v60 = vpop.f32.mrf.mxu2  ;;  %v993_v54 = vpop.f32.mrf.mxu3  ;;  %v8533_v32 = vor.u32 %v11934_v22, %v8530_v25  ;;  %1946 = vmatpush.bf16.msra.mxu1 %v8785_v24  ;;  %v8753_v48 = vor.u32 %v11994_v41, %v8752_v38  ;;  %v8665_v22 = vor.u32 %v11971_v21, %v8664_v20  ;;  %v12035_v24 = vld [vmem:[#allocation6 + $0x3a4] sm:$0xf0]  ;;  %v11967_v25 = vld [vmem:[#allocation6 + $0x18c] sm:$0xf] }
  0xfb   :  { %v13120_v61 = vadd.f32 %v1146_v51, %v1145_v40  ;;  %v8497_v40 = vor.u32 %v11930_v37, %v8496_v34  ;;  %1972 = vmatpush.bf16.msra.mxu3 %v8789_v33  ;;  %v8754_v51 = vld [vmem:[#allocation6 + $0x260] sm:$0xf0]  ;;  %v8720_v60 = vld [vmem:[#allocation6 + $0x200] sm:$0xf]  ;;  %v8632_v33 = vld [vmem:[#allocation6 + $0x148] sm:$0xf] }
  0xfc   :  { %1959 = vmatpush.bf16.msra.mxu2 %v8533_v32  ;;  %v8757_v52 = vor.u32 %v11990_v50, %v8754_v51  ;;  %v11986_v54 = vld [vmem:[#allocation6 + $0x21c] sm:$0xf0]  ;;  %v11963_v34 = vld [vmem:[#allocation6 + $0x164] sm:$0xf0] }
  0xfd   :  { %12779 = vtanh.f32 %v13120_v61  ;;  %v1004_v10 = vpop.f32.mrf.mxu0  ;;  %v1017_v12 = vpop.f32.mrf.mxu1  ;;  %1934 = vmatpush.bf16.msra.mxu0 %v8497_v40  ;;  %v8721_v58 = vor.u32 %v11986_v54, %v8720_v60  ;;  %v8633_v37 = vor.u32 %v11963_v34, %v8632_v33  ;;  %v8888_v38 = vld [vmem:[#allocation6 + $0x348] sm:$0xf]  ;;  %v11959_v40 = vld [vmem:[#allocation6 + $0x14c] sm:$0xf] }
  0xfe   :  { %v1018_v44 = vadd.f32 %v1017_v12, %v1004_v10  ;;  %1947 = vmatpush.bf16.msra.mxu1 %v8753_v48  ;;  %v8953_v10 = vor.u32 %v12043_v8, %v8952_v6  ;;  %v8698_v12 = vld [vmem:[#allocation6 + $0x1e8] sm:$0xf0]  ;;  %v11955_v48 = vld [vmem:[#allocation6 + $0x124] sm:$0xf0] }
  0xff   :  { %v12778_v9 = vpop.eup %12777  ;;  %1973 = vmatpush.bf16.msra.mxu3 %v8757_v52  ;;  %v8856_v50 = vld [vmem:[#allocation6 + $0x308] sm:$0xf]  ;;  %v11951_v52 = vld [vmem:[#allocation6 + $0x10c] sm:$0xf] }
 0x100   :  { %v1143_v14 = vmul.f32 0.5, %v12778_v9  ;;  %1960 = vmatpush.bf16.msra.mxu2 %v8501_v49  ;;  %v1099_v56 = vadd.f32 %v1018_v44, %v13126_v19  ;;  %v11975_v9 = vld [vmem:[#allocation6 + $0x1cc] sm:$0xf]  ;;  %v8637_v44 = vor.u32 %v11959_v40, %v8634_v42  ;;  %v12019_v51 = vld [vmem:[#allocation6 + $0x324] sm:$0xf0] }
 0x101   :  { %1935 = vmatpush.bf16.msra.mxu0 %v8465_v36  ;;  %v8701_v17 = vor.u32 %v11975_v9, %v8698_v12  ;;  %v8857_v35 = vor.u32 %v12019_v51, %v8856_v50  ;;  %v12015_v36 = vld [vmem:[#allocation6 + $0x30c] sm:$0xf]  ;;  %v8824_v63 = vld [vmem:[#allocation6 + $0x2c8] sm:$0xf] }
 0x102   :  { %v1144_v18 = vadd.f32 0.5, %v1143_v14  ;;  %1948 = vmatpush.bf16.msra.mxu1 %v8721_v58  ;;  %v8954_v14 = vld [vmem:[#allocation6 + $0x3e8] sm:$0xf0]  ;;  %v1103_v15 = vmul.f32 0.5, %v1099_v56  ;;  %v8605_v56 = vor.u32 %v11951_v52, %v8602_v53  ;;  %v8792_v20 = vld [vmem:[#allocation6 + $0x288] sm:$0xf] }
 0x103   :  { %v12780_v23 = vpop.eup %12779  ;;  %1974 = vmatpush.bf16.msra.mxu3 %v8725_v3  ;;  %v8858_v60 = vld [vmem:[#allocation6 + $0x328] sm:$0xf0]  ;;  %v12011_v3 = vld [vmem:[#allocation6 + $0x2e4] sm:$0xf0] }
 0x104   :  { %v1149_v28 = vmul.f32 %v12780_v23, %v1144_v18  ;;  %1961 = vmatpush.bf16.msra.mxu2 %v8469_v2  ;;  %v8957_v18 = vor.u32 %v12039_v13, %v8954_v14  ;;  %v8920_v23 = vld [vmem:[#allocation6 + $0x388] sm:$0xf]  ;;  %12781 = vtanh.f32 %v1103_v15  ;;  %v8569_v2 = vor.u32 %v11947_v62, %v8568_v59  ;;  %v12007_v9 = vld [vmem:[#allocation6 + $0x2cc] sm:$0xf] }
 0x105   :  { %v1006_v46 = vpop.f32.mrf.mxu0  ;;  %v1019_v47 = vpop.f32.mrf.mxu1  ;;  %1980 = vmatpush.bf16.msrb.mxu0 %v8697_v7  ;;  %v8921_v26 = vor.u32 %v12035_v24, %v8920_v23  ;;  %v13137_v7 = vperm.slane %v13123_v11, 3  ;;  %v8825_v8 = vor.u32 %v12011_v3, %v8824_v63  ;;  %v8573_v14 = vor.u32 %v11943_v4, %v8570_v5  ;;  %v11935_v11 = vld [vmem:[#allocation6 + $0x8c] sm:$0xf]  ;;  %v11995_v33 = vld [vmem:[#allocation6 + $0x264] sm:$0xf0] }
 0x106   :  { %v1030_v29 = vpop.f32.mrf.mxu2  ;;  %v1043_v31 = vpop.f32.mrf.mxu3  ;;  %v1150_v39 = vpack.c.bf16 %v1149_v28, %v1149_v28  ;;  %1993 = vmatpush.bf16.msrb.mxu1 %v8953_v10  ;;  %v12031_v28 = vld [vmem:[#allocation6 + $0x38c] sm:$0xf]  ;;  %v8600_v47 = vld [vmem:[#allocation6 + $0x108] sm:$0xf] }
 0x107   :  { %v1044_v45 = vadd.f32 %v1043_v31, %v1030_v29  ;;  %2019 = vmatpush.bf16.msrb.mxu3 %v8957_v18  ;;  %v8922_v29 = vld [vmem:[#allocation6 + $0x3a8] sm:$0xf0]  ;;  %v8669_v31 = vor.u32 %v11967_v25, %v8666_v27  ;;  %v8601_v49 = vor.u32 %v11955_v48, %v8600_v47  ;;  %v11939_v18 = vld [vmem:[#allocation6 + $0xa4] sm:$0xf0] }
 0x108   :  { %1151 = vst [vmem:[#allocation2] sm:$0xf] %v1150_v39  ;;  %2006 = vmatpush.bf16.msrb.mxu2 %v8701_v17  ;;  %v8925_v32 = vor.u32 %v12031_v28, %v8922_v29  ;;  %v12027_v39 = vld [vmem:[#allocation6 + $0x364] sm:$0xf0]  ;;  %v8826_v10 = vld [vmem:[#allocation6 + $0x2e8] sm:$0xf0] }
 0x109   :  { %v1100_v57 = vadd.f32 %v1044_v45, %v13129_v30  ;;  %1981 = vmatpush.bf16.msrb.mxu0 %v8665_v22  ;;  %v8889_v41 = vor.u32 %v12027_v39, %v8888_v38  ;;  %v8890_v45 = vld [vmem:[#allocation6 + $0x368] sm:$0xf0]  ;;  %v8829_v15 = vor.u32 %v12007_v9, %v8826_v10  ;;  %v8536_v17 = vld [vmem:[#allocation6 + $0x88] sm:$0xf] }
 0x10a   :  { %1994 = vmatpush.bf16.msrb.mxu1 %v8921_v26  ;;  %v8893_v46 = vor.u32 %v12023_v43, %v8890_v45  ;;  %v12782_v54 = vpop.eup %12781  ;;  %v8537_v21 = vor.u32 %v11939_v18, %v8536_v17  ;;  %v12003_v22 = vld [vmem:[#allocation6 + $0x2a4] sm:$0xf0]  ;;  %v8538_v23 = vld [vmem:[#allocation6 + $0xa8] sm:$0xf0]  ;;  %v8960_v17 = vld [vmem:[#allocation6 + $0x3d0] sm:$0xf] }
 0x10b   :  { %v1107_v16 = vmul.f32 0.5, %v1100_v57  ;;  %2020 = vmatpush.bf16.msrb.mxu3 %v8925_v32  ;;  %v8861_v57 = vor.u32 %v12015_v36, %v8858_v60  ;;  %v1105_v12 = vmul.f32 0.5, %v12782_v54  ;;  %v8793_v24 = vor.u32 %v12003_v22, %v8792_v20  ;;  %v11999_v25 = vld [vmem:[#allocation6 + $0x28c] sm:$0xf]  ;;  %v8504_v27 = vld [vmem:[#allocation6 + $0x48] sm:$0xf] }
 0x10c   :  { %2007 = vmatpush.bf16.msrb.mxu2 %v8669_v31  ;;  %v8794_v26 = vld [vmem:[#allocation6 + $0x2a8] sm:$0xf0]  ;;  %v8541_v28 = vor.u32 %v11935_v11, %v8538_v23  ;;  %v11931_v31 = vld [vmem:[#allocation6 + $0x64] sm:$0xf0]  ;;  %v12044_v20 = vld [vmem:[#allocation6 + $0x3ec] sm:$0xf0] }
 0x10d   :  { %12783 = vtanh.f32 %v1107_v16  ;;  %1982 = vmatpush.bf16.msrb.mxu0 %v8633_v37  ;;  %v8797_v29 = vor.u32 %v11999_v25, %v8794_v26  ;;  %v8760_v32 = vld [vmem:[#allocation6 + $0x248] sm:$0xf]  ;;  %v11927_v38 = vld [vmem:[#allocation6 + $0x4c] sm:$0xf]  ;;  %v8505_v45 = vor.u32 %v11931_v31, %v8504_v27  ;;  %v1106_v47 = vadd.f32 0.5, %v1105_v12 }
 0x10e   :  { %v1032_v0 = vpop.f32.mrf.mxu2  ;;  %v1045_v1 = vpop.f32.mrf.mxu3  ;;  %1995 = vmatpush.bf16.msrb.mxu1 %v8889_v41  ;;  %v8506_v39 = vld [vmem:[#allocation6 + $0x68] sm:$0xf0]  ;;  %v8761_v48 = vor.u32 %v11995_v33, %v8760_v32  ;;  %v11923_v50 = vld [vmem:[#allocation6 + $0x24] sm:$0xf0]  ;;  %v8706_v23 = vld [vmem:[#allocation6 + $0x1f0] sm:$0xf0] }
 0x10f   :  { %2021 = vmatpush.bf16.msrb.mxu3 %v8893_v46  ;;  %v11991_v40 = vld [vmem:[#allocation6 + $0x24c] sm:$0xf]  ;;  %v8509_v52 = vor.u32 %v11927_v38, %v8506_v39  ;;  %v8728_v53 = vld [vmem:[#allocation6 + $0x208] sm:$0xf]  ;;  %v8962_v25 = vld [vmem:[#allocation6 + $0x3f0] sm:$0xf0] }
 0x110   :  { %2008 = vmatpush.bf16.msrb.mxu2 %v8637_v44  ;;  %v8762_v46 = vld [vmem:[#allocation6 + $0x268] sm:$0xf0]  ;;  %v11987_v36 = vld [vmem:[#allocation6 + $0x224] sm:$0xf0]  ;;  %v8672_v31 = vld [vmem:[#allocation6 + $0x190] sm:$0xf] }
 0x111   :  { %1983 = vmatpush.bf16.msrb.mxu0 %v8601_v49  ;;  %v8472_v49 = vld [vmem:[#allocation6 + $0x8] sm:$0xf]  ;;  %v11919_v60 = vld [vmem:[#allocation6 + $0xc] sm:$0xf]  ;;  %v11972_v32 = vld [vmem:[#allocation6 + $0x1ac] sm:$0xf0] }
 0x112   :  { %1996 = vmatpush.bf16.msrb.mxu1 %v8857_v35  ;;  %v8765_v35 = vor.u32 %v11991_v40, %v8762_v46  ;;  %v12036_v38 = vld [vmem:[#allocation6 + $0x3ac] sm:$0xf0]  ;;  %v11968_v39 = vld [vmem:[#allocation6 + $0x194] sm:$0xf] }
 0x113   :  { %v12784_v58 = vpop.eup %12783  ;;  %2022 = vmatpush.bf16.msrb.mxu3 %v8861_v57  ;;  %v11983_v57 = vld [vmem:[#allocation6 + $0x20c] sm:$0xf]  ;;  %v8674_v40 = vld [vmem:[#allocation6 + $0x1b0] sm:$0xf0]  ;;  %v11964_v46 = vld [vmem:[#allocation6 + $0x16c] sm:$0xf0] }
 0x114   :  { %v1109_v13 = vmul.f32 0.5, %v12784_v58  ;;  %2009 = vmatpush.bf16.msrb.mxu2 %v8605_v56  ;;  %v8474_v56 = vld [vmem:[#allocation6 + $0x28] sm:$0xf0] }
 0x115   :  { %1984 = vmatpush.bf16.msrb.mxu0 %v8569_v2  ;;  %v8730_v58 = vld [vmem:[#allocation6 + $0x228] sm:$0xf0]  ;;  %v8477_v3 = vor.u32 %v11919_v60, %v8474_v56  ;;  %v11956_v56 = vld [vmem:[#allocation6 + $0x12c] sm:$0xf0] }
 0x116   :  { %1997 = vmatpush.bf16.msrb.mxu1 %v8825_v8  ;;  %v1110_v41 = vadd.f32 0.5, %v1109_v13  ;;  %v8733_v4 = vor.u32 %v11983_v57, %v8730_v58 }
 0x117   :  { %2023 = vmatpush.bf16.msrb.mxu3 %v8829_v15  ;;  %v8704_v15 = vld [vmem:[#allocation6 + $0x1d0] sm:$0xf] }
 0x118   :  { %2010 = vmatpush.bf16.msrb.mxu2 %v8573_v14  ;;  %v1116_v59 = vmul.f32 0.0, %v1110_v41  ;;  %v12032_v41 = vld [vmem:[#allocation6 + $0x394] sm:$0xf] }
 0x119   :  { %1985 = vmatpush.bf16.msrb.mxu0 %v8537_v21  ;;  %v11976_v21 = vld [vmem:[#allocation6 + $0x1d4] sm:$0xf] }
 0x11a   :  { %1998 = vmatpush.bf16.msrb.mxu1 %v8793_v24  ;;  %v12040_v24 = vld [vmem:[#allocation6 + $0x3d4] sm:$0xf]  ;;  %v8709_v33 = vor.u32 %v11976_v21, %v8706_v23  ;;  %v8544_v21 = vld [vmem:[#allocation6 + $0x90] sm:$0xf] }
 0x11b   :  { %2024 = vmatpush.bf16.msrb.mxu3 %v8797_v29  ;;  %v8961_v29 = vor.u32 %v12044_v20, %v8960_v17  ;;  %v8834_v17 = vld [vmem:[#allocation6 + $0x2f0] sm:$0xf0] }
 0x11c   :  { %2011 = vmatpush.bf16.msrb.mxu2 %v8541_v28 }
 0x11d   :  { %v1056_v0 = vpop.f32.mrf.mxu0  ;;  %v1069_v1 = vpop.f32.mrf.mxu1  ;;  %1986 = vmatpush.bf16.msrb.mxu0 %v8505_v45  ;;  %v8640_v45 = vld [vmem:[#allocation6 + $0x150] sm:$0xf] }
 0x11e   :  { %v1070_v6 = vadd.f32 %v1069_v1, %v1056_v0  ;;  %v8473_v0 = vor.u32 %v11923_v50, %v8472_v49  ;;  %1999 = vmatpush.bf16.msrb.mxu1 %v8761_v48  ;;  %v8729_v1 = vor.u32 %v11987_v36, %v8728_v53  ;;  %v8896_v49 = vld [vmem:[#allocation6 + $0x350] sm:$0xf]  ;;  %v8898_v53 = vld [vmem:[#allocation6 + $0x370] sm:$0xf0]  ;;  %v8641_v36 = vor.u32 %v11964_v46, %v8640_v45 }
 0x11f   :  { %2025 = vmatpush.bf16.msrb.mxu3 %v8765_v35  ;;  %v12028_v50 = vld [vmem:[#allocation6 + $0x36c] sm:$0xf0]  ;;  %v12024_v35 = vld [vmem:[#allocation6 + $0x354] sm:$0xf] }
 0x120   :  { %v1101_v16 = vadd.f32 %v1070_v6, %v13134_v55  ;;  %2012 = vmatpush.bf16.msrb.mxu2 %v8509_v52  ;;  %v8642_v52 = vld [vmem:[#allocation6 + $0x170] sm:$0xf0]  ;;  %v8897_v60 = vor.u32 %v12028_v50, %v8896_v49  ;;  %v8901_v58 = vor.u32 %v12024_v35, %v8898_v53  ;;  %v11924_v50 = vld [vmem:[#allocation6 + $0x2c] sm:$0xf0] }
 0x121   :  { %1987 = vmatpush.bf16.msrb.mxu0 %v8473_v0  ;;  %v8610_v0 = vld [vmem:[#allocation6 + $0x130] sm:$0xf0] }
 0x122   :  { %12785 = vtanh.f32 %v1101_v16  ;;  %2000 = vmatpush.bf16.msrb.mxu1 %v8729_v1  ;;  %v11980_v16 = vld [vmem:[#allocation6 + $0x1ec] sm:$0xf0]  ;;  %v12016_v1 = vld [vmem:[#allocation6 + $0x314] sm:$0xf] }
 0x123   :  { %2026 = vmatpush.bf16.msrb.mxu3 %v8733_v4  ;;  %v8705_v28 = vor.u32 %v11980_v16, %v8704_v15  ;;  %v8578_v15 = vld [vmem:[#allocation6 + $0xf0] sm:$0xf0] }
 0x124   :  { %v1082_v34 = vpop.f32.mrf.mxu2  ;;  %v1095_v37 = vpop.f32.mrf.mxu3  ;;  %2013 = vmatpush.bf16.msrb.mxu2 %v8477_v3  ;;  %v8866_v3 = vld [vmem:[#allocation6 + $0x330] sm:$0xf0] }
 0x125   :  { %v1096_v42 = vadd.f32 %v1095_v37, %v1082_v34  ;;  %v1058_v43 = vpop.f32.mrf.mxu0  ;;  %v1071_v44 = vpop.f32.mrf.mxu1  ;;  %v8965_v34 = vor.u32 %v12040_v24, %v8962_v25  ;;  %v8928_v37 = vld [vmem:[#allocation6 + $0x390] sm:$0xf]  ;;  %v12008_v16 = vld [vmem:[#allocation6 + $0x2d4] sm:$0xf] }
 0x126   :  { %v8673_v43 = vor.u32 %v11972_v32, %v8672_v31  ;;  %v8929_v44 = vor.u32 %v12036_v38, %v8928_v37  ;;  %v8837_v23 = vor.u32 %v12008_v16, %v8834_v17  ;;  %v8800_v24 = vld [vmem:[#allocation6 + $0x290] sm:$0xf]  ;;  %v12000_v31 = vld [vmem:[#allocation6 + $0x294] sm:$0xf]  ;;  %v8936_v16 = vld [vmem:[#allocation6 + $0x398] sm:$0xf] }
 0x127   :  { %v1102_v51 = vadd.f32 %v1096_v42, %v13137_v7  ;;  %v8930_v42 = vld [vmem:[#allocation6 + $0x3b0] sm:$0xf0]  ;;  %v12004_v25 = vld [vmem:[#allocation6 + $0x2ac] sm:$0xf0]  ;;  %v12037_v17 = vld [vmem:[#allocation6 + $0x3b4] sm:$0xf0] }
 0x128   :  { %v12786_v54 = vpop.eup %12785  ;;  %v8933_v48 = vor.u32 %v12032_v41, %v8930_v42  ;;  %v8802_v32 = vld [vmem:[#allocation6 + $0x2b0] sm:$0xf0]  ;;  %v8512_v37 = vld [vmem:[#allocation6 + $0x50] sm:$0xf] }
 0x129   :  { %v1117_v62 = vmul.f32 %v12786_v54, %v1106_v47  ;;  %v1112_v63 = vmul.f32 0.5, %v1102_v51  ;;  %v8677_v47 = vor.u32 %v11968_v39, %v8674_v40  ;;  %v11960_v51 = vld [vmem:[#allocation6 + $0x154] sm:$0xf]  ;;  %v8608_v54 = vld [vmem:[#allocation6 + $0x110] sm:$0xf]  ;;  %v8805_v40 = vor.u32 %v12000_v31, %v8802_v32 }
 0x12a   :  { %v8645_v57 = vor.u32 %v11960_v51, %v8642_v52  ;;  %v8609_v4 = vor.u32 %v11956_v56, %v8608_v54  ;;  %v11932_v38 = vld [vmem:[#allocation6 + $0x6c] sm:$0xf0]  ;;  %v11992_v45 = vld [vmem:[#allocation6 + $0x254] sm:$0xf]  ;;  %v8904_v31 = vld [vmem:[#allocation6 + $0x358] sm:$0xf] }
 0x12b   :  { %v13141_v2 = vadd.f32 %v1117_v62, %v1116_v59  ;;  %12787 = vtanh.f32 %v1112_v63  ;;  %v8864_v59 = vld [vmem:[#allocation6 + $0x310] sm:$0xf]  ;;  %v11952_v63 = vld [vmem:[#allocation6 + $0x114] sm:$0xf]  ;;  %v12029_v32 = vld [vmem:[#allocation6 + $0x374] sm:$0xf0] }
 0x12c   :  { %v1084_v5 = vpop.f32.mrf.mxu2  ;;  %v1097_v6 = vpop.f32.mrf.mxu3  ;;  %v12020_v62 = vld [vmem:[#allocation6 + $0x32c] sm:$0xf0]  ;;  %v8770_v46 = vld [vmem:[#allocation6 + $0x270] sm:$0xf0] }
 0x12d   :  { %12789 = vtanh.f32 %v13141_v2  ;;  %v8865_v5 = vor.u32 %v12020_v62, %v8864_v59  ;;  %v8576_v6 = vld [vmem:[#allocation6 + $0xd0] sm:$0xf]  ;;  %v8773_v53 = vor.u32 %v11992_v45, %v8770_v46  ;;  %v11984_v54 = vld [vmem:[#allocation6 + $0x214] sm:$0xf]  ;;  %v8968_v59 = vld [vmem:[#allocation6 + $0x3d8] sm:$0xf] }
 0x12e   :  { %v8768_v41 = vld [vmem:[#allocation6 + $0x250] sm:$0xf]  ;;  %v8738_v56 = vld [vmem:[#allocation6 + $0x230] sm:$0xf0]  ;;  %v12045_v62 = vld [vmem:[#allocation6 + $0x3f4] sm:$0xf0] }
 0x12f   :  { %v11996_v42 = vld [vmem:[#allocation6 + $0x26c] sm:$0xf0]  ;;  %v8872_v45 = vld [vmem:[#allocation6 + $0x318] sm:$0xf] }
 0x130   :  { %v8769_v49 = vor.u32 %v11996_v42, %v8768_v41  ;;  %v8736_v51 = vld [vmem:[#allocation6 + $0x210] sm:$0xf]  ;;  %v8616_v41 = vld [vmem:[#allocation6 + $0x118] sm:$0xf] }
 0x131   :  { %v12788_v8 = vpop.eup %12787  ;;  %v11988_v52 = vld [vmem:[#allocation6 + $0x22c] sm:$0xf0]  ;;  %v11957_v42 = vld [vmem:[#allocation6 + $0x134] sm:$0xf0] }
 0x132   :  { %v1114_v9 = vmul.f32 0.5, %v12788_v8  ;;  %v11948_v8 = vld [vmem:[#allocation6 + $0xec] sm:$0xf0]  ;;  %v12021_v46 = vld [vmem:[#allocation6 + $0x334] sm:$0xf0] }
 0x133   :  { %v12790_v10 = vpop.eup %12789 }
 0x134   :  { %v1115_v12 = vadd.f32 0.5, %v1114_v9  ;;  %v8613_v9 = vor.u32 %v11952_v63, %v8610_v0  ;;  %v11977_v63 = vld [vmem:[#allocation6 + $0x1dc] sm:$0xf] }
 0x136   :  { %v1120_v13 = vmul.f32 %v12790_v10, %v1115_v12  ;;  %v8869_v10 = vor.u32 %v12016_v1, %v8866_v3  ;;  %v8832_v12 = vld [vmem:[#allocation6 + $0x2d0] sm:$0xf]  ;;  %v8737_v1 = vor.u32 %v11988_v52, %v8736_v51  ;;  %v8714_v3 = vld [vmem:[#allocation6 + $0x1f8] sm:$0xf0]  ;;  %v8617_v51 = vor.u32 %v11957_v42, %v8616_v41 }
 0x137   :  { %v8873_v52 = vor.u32 %v12021_v46, %v8872_v45  ;;  %v11985_v41 = vld [vmem:[#allocation6 + $0x21c] sm:$0xf] }
 0x138   :  { %v1121_v14 = vpack.c.bf16 %v1120_v13, %v1120_v13  ;;  %v12012_v13 = vld [vmem:[#allocation6 + $0x2ec] sm:$0xf0]  ;;  %v8746_v42 = vld [vmem:[#allocation6 + $0x238] sm:$0xf0] }
 0x139   :  { %v8833_v20 = vor.u32 %v12012_v13, %v8832_v12  ;;  %v8680_v12 = vld [vmem:[#allocation6 + $0x198] sm:$0xf]  ;;  %v8749_v46 = vor.u32 %v11985_v41, %v8746_v42  ;;  %v9392_v41 = vld [vmem:[#allocation6 + $0x340] sm:$0xf] }
 0x13a   :  { %1122 = vst [vmem:[#allocation2 + $0x4] sm:$0xf] %v1121_v14  ;;  %v11944_v14 = vld [vmem:[#allocation6 + $0xd4] sm:$0xf]  ;;  %v11973_v13 = vld [vmem:[#allocation6 + $0x1b4] sm:$0xf0] }
 0x13b   :  { %v12154_v42 = vld [vmem:[#allocation6 + $0x35c] sm:$0xf0] }
 0x141   :  { %v1152_v18 = vld [vmem:[#allocation2] sm:$0xff] }
 0x142   :  { %v1282_v22 = vunpack.c.l.b16 %v1152_v18  ;;  %v1283_v11 = vunpack.c.h.b16 %v1152_v18  ;;  %v8577_v18 = vor.u32 %v11948_v8, %v8576_v6  ;;  %v8741_v8 = vor.u32 %v11984_v54, %v8738_v56  ;;  %v8840_v54 = vld [vmem:[#allocation6 + $0x2d8] sm:$0xf] }
 0x143   :  { %v12013_v56 = vld [vmem:[#allocation6 + $0x2f4] sm:$0xf0] }
 0x144   :  { %v13144_v26 = vpack.c.b16 %v1282_v22, %v1282_v22  ;;  %v13146_v27 = vpack.c.b16 %v1283_v11, %v1283_v11  ;;  %v11940_v22 = vld [vmem:[#allocation6 + $0xac] sm:$0xf0]  ;;  %v8581_v11 = vor.u32 %v11944_v14, %v8578_v15  ;;  %v8717_v14 = vor.u32 %v11977_v63, %v8714_v3  ;;  %v11941_v3 = vld [vmem:[#allocation6 + $0xb4] sm:$0xf0] }
 0x146   :  { %1936 = vmatmul.bf16.vlgmr.msra.gmra.mxu0 %v13144_v26  ;;  %1949 = vmatmul.bf16.vlgmr.msra.gmra.mxu1 %v13146_v27 }
 0x147   :  { %1962 = vmatmul.bf16.vlgmr.msra.gmra.mxu2 %v13144_v26  ;;  %1975 = vmatmul.bf16.vlgmr.msra.gmra.mxu3 %v13146_v27 }
 0x148   :  { %2032 = vmatpush.bf16.msra.mxu0 %v8705_v28  ;;  %2045 = vmatpush.bf16.msra.mxu1 %v8961_v29  ;;  %v11936_v28 = vld [vmem:[#allocation6 + $0x94] sm:$0xf] }
 0x149   :  { %2058 = vmatpush.bf16.msra.mxu2 %v8709_v33  ;;  %2071 = vmatpush.bf16.msra.mxu3 %v8965_v34  ;;  %v8546_v29 = vld [vmem:[#allocation6 + $0xb0] sm:$0xf0]  ;;  %v8545_v33 = vor.u32 %v11940_v22, %v8544_v21  ;;  %v8801_v34 = vor.u32 %v12004_v25, %v8800_v24  ;;  %v12033_v21 = vld [vmem:[#allocation6 + $0x39c] sm:$0xf]  ;;  %v8648_v24 = vld [vmem:[#allocation6 + $0x158] sm:$0xf] }
 0x14a   :  { %v8549_v39 = vor.u32 %v11936_v28, %v8546_v29  ;;  %v8938_v22 = vld [vmem:[#allocation6 + $0x3b8] sm:$0xf0]  ;;  %v11965_v25 = vld [vmem:[#allocation6 + $0x174] sm:$0xf0] }
 0x14b   :  { %v8941_v29 = vor.u32 %v12033_v21, %v8938_v22  ;;  %v8776_v21 = vld [vmem:[#allocation6 + $0x258] sm:$0xf] }
 0x14c   :  { %2033 = vmatpush.bf16.msra.mxu0 %v8673_v43  ;;  %2046 = vmatpush.bf16.msra.mxu1 %v8929_v44  ;;  %v11928_v43 = vld [vmem:[#allocation6 + $0x54] sm:$0xf]  ;;  %v11997_v22 = vld [vmem:[#allocation6 + $0x274] sm:$0xf0] }
 0x14d   :  { %2059 = vmatpush.bf16.msra.mxu2 %v8677_v47  ;;  %2072 = vmatpush.bf16.msra.mxu3 %v8933_v48  ;;  %v8514_v44 = vld [vmem:[#allocation6 + $0x70] sm:$0xf0]  ;;  %v8480_v47 = vld [vmem:[#allocation6 + $0x10] sm:$0xf]  ;;  %v8513_v48 = vor.u32 %v11932_v38, %v8512_v37  ;;  %v12025_v37 = vld [vmem:[#allocation6 + $0x35c] sm:$0xf] }
 0x14e   :  { %v8517_v35 = vor.u32 %v11928_v43, %v8514_v44  ;;  %v8481_v0 = vor.u32 %v11924_v50, %v8480_v47  ;;  %v8906_v38 = vld [vmem:[#allocation6 + $0x378] sm:$0xf0] }
 0x14f   :  { %v8909_v44 = vor.u32 %v12025_v37, %v8906_v38  ;;  %v11953_v47 = vld [vmem:[#allocation6 + $0x11c] sm:$0xf]  ;;  %v8744_v37 = vld [vmem:[#allocation6 + $0x218] sm:$0xf] }
 0x150   :  { %2034 = vmatpush.bf16.msra.mxu0 %v8641_v36  ;;  %2047 = vmatpush.bf16.msra.mxu1 %v8897_v60  ;;  %v11920_v36 = vld [vmem:[#allocation6 + $0x14] sm:$0xf]  ;;  %v8874_v50 = vld [vmem:[#allocation6 + $0x338] sm:$0xf0]  ;;  %v11989_v38 = vld [vmem:[#allocation6 + $0x234] sm:$0xf0] }
 0x151   :  { %2060 = vmatpush.bf16.msra.mxu2 %v8645_v57  ;;  %2073 = vmatpush.bf16.msra.mxu3 %v8901_v58  ;;  %v8482_v60 = vld [vmem:[#allocation6 + $0x30] sm:$0xf0]  ;;  %v8712_v57 = vld [vmem:[#allocation6 + $0x1d8] sm:$0xf] }
 0x152   :  { %v11981_v58 = vld [vmem:[#allocation6 + $0x1f4] sm:$0xf0]  ;;  %v8485_v6 = vor.u32 %v11920_v36, %v8482_v60 }
 0x154   :  { %2035 = vmatpush.bf16.msra.mxu0 %v8609_v4  ;;  %2048 = vmatpush.bf16.msra.mxu1 %v8865_v5  ;;  %v12041_v4 = vld [vmem:[#allocation6 + $0x3dc] sm:$0xf] }
 0x155   :  { %2061 = vmatpush.bf16.msra.mxu2 %v8613_v9  ;;  %2074 = vmatpush.bf16.msra.mxu3 %v8869_v10  ;;  %v8970_v5 = vld [vmem:[#allocation6 + $0x3f8] sm:$0xf0]  ;;  %v8713_v9 = vor.u32 %v11981_v58, %v8712_v57  ;;  %v8969_v10 = vor.u32 %v12045_v62, %v8968_v59 }
 0x156   :  { %1988 = vmatmul.bf16.vlgmr.msrb.gmra.mxu0 %v13144_v26  ;;  %2001 = vmatmul.bf16.vlgmr.msrb.gmra.mxu1 %v13146_v27  ;;  %v8973_v15 = vor.u32 %v12041_v4, %v8970_v5  ;;  %v11945_v57 = vld [vmem:[#allocation6 + $0xdc] sm:$0xf] }
 0x157   :  { %2014 = vmatmul.bf16.vlgmr.msrb.gmra.mxu2 %v13144_v26  ;;  %2027 = vmatmul.bf16.vlgmr.msrb.gmra.mxu3 %v13146_v27  ;;  %v8586_v58 = vld [vmem:[#allocation6 + $0xf8] sm:$0xf0] }
 0x158   :  { %2036 = vmatpush.bf16.msra.mxu0 %v8577_v18  ;;  %2049 = vmatpush.bf16.msra.mxu1 %v8833_v20  ;;  %v11969_v18 = vld [vmem:[#allocation6 + $0x19c] sm:$0xf]  ;;  %v8589_v4 = vor.u32 %v11945_v57, %v8586_v58 }
 0x159   :  { %2062 = vmatpush.bf16.msra.mxu2 %v8581_v11  ;;  %2075 = vmatpush.bf16.msra.mxu3 %v8837_v23  ;;  %v8682_v20 = vld [vmem:[#allocation6 + $0x1b8] sm:$0xf0]  ;;  %v8681_v11 = vor.u32 %v11973_v13, %v8680_v12  ;;  %v8937_v23 = vor.u32 %v12037_v17, %v8936_v16  ;;  %v8520_v16 = vld [vmem:[#allocation6 + $0x58] sm:$0xf] }
 0x15a   :  { %v8685_v28 = vor.u32 %v11969_v18, %v8682_v20  ;;  %v12009_v59 = vld [vmem:[#allocation6 + $0x2dc] sm:$0xf]  ;;  %v11933_v17 = vld [vmem:[#allocation6 + $0x74] sm:$0xf0] }
 0x15b   :  { %v8842_v62 = vld [vmem:[#allocation6 + $0x2f8] sm:$0xf0] }
 0x15c   :  { %2037 = vmatpush.bf16.msra.mxu0 %v8545_v33  ;;  %2050 = vmatpush.bf16.msra.mxu1 %v8801_v34  ;;  %v11961_v33 = vld [vmem:[#allocation6 + $0x15c] sm:$0xf]  ;;  %v8845_v5 = vor.u32 %v12009_v59, %v8842_v62  ;;  %v9200_v59 = vld [vmem:[#allocation6 + $0x1c0] sm:$0xf] }
 0x15d   :  { %2063 = vmatpush.bf16.msra.mxu2 %v8549_v39  ;;  %2076 = vmatpush.bf16.msra.mxu3 %v8805_v40  ;;  %v8650_v34 = vld [vmem:[#allocation6 + $0x178] sm:$0xf0]  ;;  %v8649_v39 = vor.u32 %v11965_v25, %v8648_v24  ;;  %v8905_v40 = vor.u32 %v12029_v32, %v8904_v31  ;;  %v8488_v31 = vld [vmem:[#allocation6 + $0x18] sm:$0xf]  ;;  %v12106_v62 = vld [vmem:[#allocation6 + $0x1dc] sm:$0xf0] }
 0x15e   :  { %v8653_v43 = vor.u32 %v11961_v33, %v8650_v34  ;;  %v12001_v12 = vld [vmem:[#allocation6 + $0x29c] sm:$0xf]  ;;  %v11925_v32 = vld [vmem:[#allocation6 + $0x34] sm:$0xf0] }
 0x15f   :  { %v8810_v13 = vld [vmem:[#allocation6 + $0x2b8] sm:$0xf0] }
 0x160   :  { %2038 = vmatpush.bf16.msra.mxu0 %v8513_v48  ;;  %2051 = vmatpush.bf16.msra.mxu1 %v8769_v49  ;;  %v8618_v48 = vld [vmem:[#allocation6 + $0x138] sm:$0xf0]  ;;  %v8813_v20 = vor.u32 %v12001_v12, %v8810_v13  ;;  %v2163_v12 = vld [vmem:[#allocation3 + $0x50] sm:$0xff] }
 0x161   :  { %2064 = vmatpush.bf16.msra.mxu2 %v8517_v35  ;;  %2077 = vmatpush.bf16.msra.mxu3 %v8773_v53  ;;  %v12017_v49 = vld [vmem:[#allocation6 + $0x31c] sm:$0xf]  ;;  %v8584_v35 = vld [vmem:[#allocation6 + $0xd8] sm:$0xf]  ;;  %v8621_v36 = vor.u32 %v11953_v47, %v8618_v48 }
 0x162   :  { %v11949_v53 = vld [vmem:[#allocation6 + $0xf4] sm:$0xf0]  ;;  %v8877_v60 = vor.u32 %v12017_v49, %v8874_v50  ;;  %v11993_v24 = vld [vmem:[#allocation6 + $0x25c] sm:$0xf]  ;;  %v2161_v49 = vld [vmem:[#allocation3 + $0x40] sm:$0xff] }
 0x163   :  { %v8585_v63 = vor.u32 %v11949_v53, %v8584_v35  ;;  %v8778_v25 = vld [vmem:[#allocation6 + $0x278] sm:$0xf0] }
 0x164   :  { %2039 = vmatpush.bf16.msra.mxu0 %v8481_v0  ;;  %2052 = vmatpush.bf16.msra.mxu1 %v8737_v1  ;;  %v8841_v0 = vor.u32 %v12013_v56, %v8840_v54  ;;  %v8552_v1 = vld [vmem:[#allocation6 + $0x98] sm:$0xf]  ;;  %v8781_v34 = vor.u32 %v11993_v24, %v8778_v25 }
 0x165   :  { %2065 = vmatpush.bf16.msra.mxu2 %v8485_v6  ;;  %2078 = vmatpush.bf16.msra.mxu3 %v8741_v8  ;;  %v8808_v6 = vld [vmem:[#allocation6 + $0x298] sm:$0xf] }
 0x166   :  { %v12005_v8 = vld [vmem:[#allocation6 + $0x2b4] sm:$0xf0] }
 0x167   :  { %2040 = vmatmul.bf16.vlgmr.msra.gmra.mxu0 %v13144_v26  ;;  %2053 = vmatmul.bf16.vlgmr.msra.gmra.mxu1 %v13146_v27 }
 0x168   :  { %2084 = vmatpush.bf16.msrb.mxu0 %v8713_v9  ;;  %2097 = vmatpush.bf16.msrb.mxu1 %v8969_v10  ;;  %v11937_v9 = vld [vmem:[#allocation6 + $0x9c] sm:$0xf] }
 0x169   :  { %2110 = vmatpush.bf16.msrb.mxu2 %v8717_v14  ;;  %2123 = vmatpush.bf16.msrb.mxu3 %v8973_v15  ;;  %v8554_v10 = vld [vmem:[#allocation6 + $0xb8] sm:$0xf0]  ;;  %v8553_v14 = vor.u32 %v11941_v3, %v8552_v1  ;;  %v8809_v15 = vor.u32 %v12005_v8, %v8808_v6  ;;  %v12166_v6 = vld [vmem:[#allocation6 + $0x3c4] sm:$0xf] }
 0x16a   :  { %2066 = vmatmul.bf16.vlgmr.msra.gmra.mxu2 %v13144_v26  ;;  %2079 = vmatmul.bf16.vlgmr.msra.gmra.mxu3 %v13146_v27  ;;  %v8557_v18 = vor.u32 %v11937_v9, %v8554_v10  ;;  %v9458_v8 = vld [vmem:[#allocation6 + $0x3e0] sm:$0xf0] }
 0x16c   :  { %2085 = vmatpush.bf16.msrb.mxu0 %v8681_v11  ;;  %2098 = vmatpush.bf16.msrb.mxu1 %v8937_v23  ;;  %v11929_v11 = vld [vmem:[#allocation6 + $0x5c] sm:$0xf] }
 0x16d   :  { %2111 = vmatpush.bf16.msrb.mxu2 %v8685_v28  ;;  %2124 = vmatpush.bf16.msrb.mxu3 %v8941_v29  ;;  %v8522_v23 = vld [vmem:[#allocation6 + $0x78] sm:$0xf0]  ;;  %v8521_v28 = vor.u32 %v11933_v17, %v8520_v16  ;;  %v8777_v29 = vor.u32 %v11997_v22, %v8776_v21  ;;  %v9168_v17 = vld [vmem:[#allocation6 + $0x180] sm:$0xf] }
 0x16e   :  { %v8525_v33 = vor.u32 %v11929_v11, %v8522_v23  ;;  %v12162_v22 = vld [vmem:[#allocation6 + $0x39c] sm:$0xf0]  ;;  %v12094_v11 = vld [vmem:[#allocation6 + $0x184] sm:$0xf] }
 0x16f   :  { %v9170_v23 = vld [vmem:[#allocation6 + $0x1a0] sm:$0xf0] }
 0x170   :  { %2086 = vmatpush.bf16.msrb.mxu0 %v8649_v39  ;;  %2099 = vmatpush.bf16.msrb.mxu1 %v8905_v40  ;;  %v11921_v39 = vld [vmem:[#allocation6 + $0x1c] sm:$0xf] }
 0x171   :  { %2112 = vmatpush.bf16.msrb.mxu2 %v8653_v43  ;;  %2125 = vmatpush.bf16.msrb.mxu3 %v8909_v44  ;;  %v8490_v40 = vld [vmem:[#allocation6 + $0x38] sm:$0xf0]  ;;  %v8489_v43 = vor.u32 %v11925_v32, %v8488_v31  ;;  %v8745_v44 = vor.u32 %v11989_v38, %v8744_v37  ;;  %v9426_v31 = vld [vmem:[#allocation6 + $0x3a0] sm:$0xf0]  ;;  %v9136_v38 = vld [vmem:[#allocation6 + $0x140] sm:$0xf] }
 0x172   :  { %v8493_v45 = vor.u32 %v11921_v39, %v8490_v40  ;;  %v12090_v39 = vld [vmem:[#allocation6 + $0x15c] sm:$0xf0] }
 0x173   :  { %v9137_v40 = vor.u32 %v12090_v39, %v9136_v38  ;;  %v12062_v38 = vld [vmem:[#allocation6 + $0x84] sm:$0xf] }
 0x174   :  { %2087 = vmatpush.bf16.msrb.mxu0 %v8617_v51  ;;  %2100 = vmatpush.bf16.msrb.mxu1 %v8873_v52  ;;  %v9042_v39 = vld [vmem:[#allocation6 + $0xa0] sm:$0xf0] }
 0x175   :  { %2113 = vmatpush.bf16.msrb.mxu2 %v8621_v36  ;;  %2126 = vmatpush.bf16.msrb.mxu3 %v8877_v60  ;;  %v2162_v36 = vld [vmem:[#allocation3 + $0x48] sm:$0xff] }
 0x178   :  { %2088 = vmatpush.bf16.msrb.mxu0 %v8585_v63  ;;  %2101 = vmatpush.bf16.msrb.mxu1 %v8841_v0  ;;  %v12170_v63 = vld [vmem:[#allocation6 + $0x3dc] sm:$0xf0]  ;;  %v12102_v0 = vld [vmem:[#allocation6 + $0x1c4] sm:$0xf] }
 0x179   :  { %2114 = vmatpush.bf16.msrb.mxu2 %v8589_v4  ;;  %2127 = vmatpush.bf16.msrb.mxu3 %v8845_v5  ;;  %v9202_v5 = vld [vmem:[#allocation6 + $0x1e0] sm:$0xf0] }
 0x17a   :  { %v9205_v13 = vor.u32 %v12102_v0, %v9202_v5  ;;  %v9362_v5 = vld [vmem:[#allocation6 + $0x320] sm:$0xf0] }
 0x17c   :  { %2089 = vmatpush.bf16.msrb.mxu0 %v8553_v14  ;;  %2102 = vmatpush.bf16.msrb.mxu1 %v8809_v15  ;;  %v9461_v14 = vor.u32 %v12166_v6, %v9458_v8  ;;  %v9072_v6 = vld [vmem:[#allocation6 + $0xc0] sm:$0xf] }
 0x17d   :  { %2115 = vmatpush.bf16.msrb.mxu2 %v8557_v18  ;;  %2128 = vmatpush.bf16.msrb.mxu3 %v8813_v20  ;;  %v12098_v18 = vld [vmem:[#allocation6 + $0x19c] sm:$0xf0] }
 0x17e   :  { %v9424_v20 = vld [vmem:[#allocation6 + $0x380] sm:$0xf]  ;;  %v9169_v21 = vor.u32 %v12098_v18, %v9168_v17  ;;  %v12070_v17 = vld [vmem:[#allocation6 + $0xc4] sm:$0xf] }
 0x17f   :  { %v9425_v25 = vor.u32 %v12162_v22, %v9424_v20  ;;  %v9074_v18 = vld [vmem:[#allocation6 + $0xe0] sm:$0xf0] }
 0x180   :  { %2090 = vmatpush.bf16.msrb.mxu0 %v8521_v28  ;;  %2103 = vmatpush.bf16.msrb.mxu1 %v8777_v29  ;;  %v9173_v28 = vor.u32 %v12094_v11, %v9170_v23  ;;  %v12158_v29 = vld [vmem:[#allocation6 + $0x384] sm:$0xf]  ;;  %v9077_v22 = vor.u32 %v12070_v17, %v9074_v18  ;;  %v9208_v17 = vld [vmem:[#allocation6 + $0x1c8] sm:$0xf] }
 0x181   :  { %2116 = vmatpush.bf16.msrb.mxu2 %v8525_v33  ;;  %2129 = vmatpush.bf16.msrb.mxu3 %v8781_v34  ;;  %v9429_v34 = vor.u32 %v12158_v29, %v9426_v31  ;;  %v12134_v11 = vld [vmem:[#allocation6 + $0x2c4] sm:$0xf]  ;;  %v12066_v29 = vld [vmem:[#allocation6 + $0x9c] sm:$0xf0] }
 0x182   :  { %v9330_v23 = vld [vmem:[#allocation6 + $0x2e0] sm:$0xf0]  ;;  %v9296_v31 = vld [vmem:[#allocation6 + $0x280] sm:$0xf] }
 0x184   :  { %2091 = vmatpush.bf16.msrb.mxu0 %v8489_v43  ;;  %2104 = vmatpush.bf16.msrb.mxu1 %v8745_v44  ;;  %v12086_v43 = vld [vmem:[#allocation6 + $0x144] sm:$0xf] }
 0x185   :  { %2117 = vmatpush.bf16.msrb.mxu2 %v8493_v45  ;;  %2130 = vmatpush.bf16.msrb.mxu3 %v8749_v46  ;;  %v2164_v46 = vld [vmem:[#allocation3 + $0x58] sm:$0xff] }
 0x187   :  { %2092 = vmatmul.bf16.vlgmr.msrb.gmra.mxu0 %v13144_v26  ;;  %2105 = vmatmul.bf16.vlgmr.msrb.gmra.mxu1 %v13146_v27 }
 0x188   :  { %2118 = vmatmul.bf16.vlgmr.msrb.gmra.mxu2 %v13144_v26  ;;  %2131 = vmatmul.bf16.vlgmr.msrb.gmra.mxu3 %v13146_v27  ;;  %v9456_v26 = vld [vmem:[#allocation6 + $0x3c0] sm:$0xf]  ;;  %v9201_v27 = vor.u32 %v12106_v62, %v9200_v59 }
 0x189   :  { %v9457_v4 = vor.u32 %v12170_v63, %v9456_v26  ;;  %2991 = vmatpush.bf16.msra.mxu2 %v9205_v13  ;;  %3004 = vmatpush.bf16.msra.mxu3 %v9461_v14  ;;  %v12146_v26 = vld [vmem:[#allocation6 + $0x31c] sm:$0xf0]  ;;  %v9106_v63 = vld [vmem:[#allocation6 + $0x120] sm:$0xf0] }
 0x18a   :  { %2965 = vmatpush.bf16.msra.mxu0 %v9201_v27  ;;  %v12078_v27 = vld [vmem:[#allocation6 + $0x104] sm:$0xf]  ;;  %v12074_v13 = vld [vmem:[#allocation6 + $0xdc] sm:$0xf0] }
 0x18b   :  { %2978 = vmatpush.bf16.msra.mxu1 %v9457_v4  ;;  %v12142_v4 = vld [vmem:[#allocation6 + $0x304] sm:$0xf]  ;;  %v9328_v14 = vld [vmem:[#allocation6 + $0x2c0] sm:$0xf] }
 0x18d   :  { %2992 = vmatpush.bf16.msra.mxu2 %v9173_v28  ;;  %3005 = vmatpush.bf16.msra.mxu3 %v9429_v34  ;;  %v9040_v28 = vld [vmem:[#allocation6 + $0x80] sm:$0xf] }
 0x18e   :  { %2966 = vmatpush.bf16.msra.mxu0 %v9169_v21  ;;  %v9041_v34 = vor.u32 %v12066_v29, %v9040_v28 }
 0x18f   :  { %2979 = vmatpush.bf16.msra.mxu1 %v9425_v25  ;;  %v9333_v25 = vor.u32 %v12134_v11, %v9330_v23  ;;  %v12171_v11 = vld [vmem:[#allocation6 + $0x3e4] sm:$0xf0] }
 0x192   :  { %2967 = vmatpush.bf16.msra.mxu0 %v9137_v40 }
 0x1c3   :  { %v1937_v47 = vpop.f32.mrf.mxu0  ;;  %v1950_v48 = vpop.f32.mrf.mxu1 }
 0x1c4   :  { %v1951_v50 = vadd.f32 %v1950_v48, %v1937_v47  ;;  %v9393_v47 = vor.u32 %v12154_v42, %v9392_v41  ;;  %v9138_v48 = vld [vmem:[#allocation6 + $0x160] sm:$0xf0]  ;;  %v9045_v41 = vor.u32 %v12062_v38, %v9042_v39  ;;  %v12099_v38 = vld [vmem:[#allocation6 + $0x1a4] sm:$0xf0] }
 0x1c5   :  { %v12126_v42 = vld [vmem:[#allocation6 + $0x284] sm:$0xf]  ;;  %v9432_v39 = vld [vmem:[#allocation6 + $0x388] sm:$0xf] }
 0x1c6   :  { %v2165_v51 = vadd.f32 %v2161_v49, %v1951_v50  ;;  %v12150_v49 = vld [vmem:[#allocation6 + $0x344] sm:$0xf]  ;;  %2980 = vmatpush.bf16.msra.mxu1 %v9393_v47  ;;  %v9008_v47 = vld [vmem:[#allocation6 + $0x40] sm:$0xf] }
 0x1c8   :  { %v2169_v52 = vmul.f32 0.5, %v2165_v51 }
 0x1ca   :  { %v1963_v35 = vpop.f32.mrf.mxu2  ;;  %v1976_v53 = vpop.f32.mrf.mxu3  ;;  %12791 = vtanh.f32 %v2169_v52 }
 0x1cb   :  { %v1977_v60 = vadd.f32 %v1976_v53, %v1963_v35  ;;  %v1939_v54 = vpop.f32.mrf.mxu0  ;;  %v1952_v56 = vpop.f32.mrf.mxu1 }
 0x1cc   :  { %v9104_v56 = vld [vmem:[#allocation6 + $0x100] sm:$0xf] }
 0x1cd   :  { %v2166_v57 = vadd.f32 %v2162_v36, %v1977_v60  ;;  %v9141_v36 = vor.u32 %v12086_v43, %v9138_v48  ;;  %v9394_v60 = vld [vmem:[#allocation6 + $0x360] sm:$0xf0]  ;;  %v12058_v48 = vld [vmem:[#allocation6 + $0x5c] sm:$0xf0] }
 0x1ce   :  { %v9397_v54 = vor.u32 %v12150_v49, %v9394_v60  ;;  %v9298_v43 = vld [vmem:[#allocation6 + $0x2a0] sm:$0xf0] }
 0x1cf   :  { %v2173_v58 = vmul.f32 0.5, %v2166_v57  ;;  %v12082_v57 = vld [vmem:[#allocation6 + $0x11c] sm:$0xf0]  ;;  %2993 = vmatpush.bf16.msra.mxu2 %v9141_v36  ;;  %v9010_v60 = vld [vmem:[#allocation6 + $0x60] sm:$0xf0] }
 0x1d0   :  { %v12792_v15 = vpop.eup %12791  ;;  %v9105_v62 = vor.u32 %v12082_v57, %v9104_v56  ;;  %3006 = vmatpush.bf16.msra.mxu3 %v9397_v54  ;;  %v12118_v54 = vld [vmem:[#allocation6 + $0x244] sm:$0xf] }
 0x1d1   :  { %12793 = vtanh.f32 %v2173_v58  ;;  %v2171_v33 = vmul.f32 0.5, %v12792_v15  ;;  %v9360_v58 = vld [vmem:[#allocation6 + $0x300] sm:$0xf]  ;;  %v9073_v15 = vor.u32 %v12074_v13, %v9072_v6  ;;  %v9266_v57 = vld [vmem:[#allocation6 + $0x260] sm:$0xf0] }
 0x1d2   :  { %v1965_v1 = vpop.f32.mrf.mxu2  ;;  %v1978_v3 = vpop.f32.mrf.mxu3  ;;  %2968 = vmatpush.bf16.msra.mxu0 %v9105_v62 }
 0x1d3   :  { %v1989_v9 = vpop.f32.mrf.mxu0  ;;  %v2002_v10 = vpop.f32.mrf.mxu1  ;;  %v2172_v50 = vadd.f32 0.5, %v2171_v33  ;;  %v9361_v1 = vor.u32 %v12146_v26, %v9360_v58  ;;  %v9109_v3 = vor.u32 %v12078_v27, %v9106_v63  ;;  %v9269_v26 = vor.u32 %v12118_v54, %v9266_v57  ;;  %v8976_v27 = vld [vmem:[#allocation6] sm:$0xf]  ;;  %v12155_v54 = vld [vmem:[#allocation6 + $0x364] sm:$0xf0] }
 0x1d4   :  { %v2003_v16 = vadd.f32 %v2002_v10, %v1989_v9  ;;  %v12050_v63 = vld [vmem:[#allocation6 + $0x1c] sm:$0xf0] }
 0x1d5   :  { %2981 = vmatpush.bf16.msra.mxu1 %v9361_v1  ;;  %2994 = vmatpush.bf16.msra.mxu2 %v9109_v3  ;;  %v8977_v6 = vor.u32 %v12050_v63, %v8976_v27  ;;  %v9112_v63 = vld [vmem:[#allocation6 + $0x108] sm:$0xf] }
 0x1d6   :  { %v2167_v24 = vadd.f32 %v2163_v12, %v2003_v16  ;;  %v9365_v12 = vor.u32 %v12142_v4, %v9362_v5  ;;  %v12138_v16 = vld [vmem:[#allocation6 + $0x2dc] sm:$0xf0]  ;;  %2969 = vmatpush.bf16.msra.mxu0 %v9073_v15  ;;  %v12110_v15 = vld [vmem:[#allocation6 + $0x204] sm:$0xf] }
 0x1d7   :  { %v12794_v32 = vpop.eup %12793  ;;  %v9329_v21 = vor.u32 %v12138_v16, %v9328_v14  ;;  %v9234_v16 = vld [vmem:[#allocation6 + $0x220] sm:$0xf0] }
 0x1d8   :  { %v2175_v37 = vmul.f32 0.5, %v12794_v32  ;;  %12795 = vtanh.f32 %v2167_v24  ;;  %3007 = vmatpush.bf16.msra.mxu3 %v9365_v12  ;;  %v9237_v18 = vor.u32 %v12110_v15, %v9234_v16  ;;  %v12075_v15 = vld [vmem:[#allocation6 + $0xe4] sm:$0xf0] }
 0x1d9   :  { %2982 = vmatpush.bf16.msra.mxu1 %v9329_v21  ;;  %2995 = vmatpush.bf16.msra.mxu2 %v9077_v22  ;;  %v12107_v21 = vld [vmem:[#allocation6 + $0x1e4] sm:$0xf0] }
 0x1da   :  { %v2015_v44 = vpop.f32.mrf.mxu2  ;;  %v2028_v45 = vpop.f32.mrf.mxu3  ;;  %v2176_v51 = vadd.f32 0.5, %v2175_v37  ;;  %v12130_v37 = vld [vmem:[#allocation6 + $0x29c] sm:$0xf0]  ;;  %2970 = vmatpush.bf16.msra.mxu0 %v9041_v34  ;;  %v9464_v22 = vld [vmem:[#allocation6 + $0x3c8] sm:$0xf]  ;;  %v9209_v23 = vor.u32 %v12107_v21, %v9208_v17 }
 0x1db   :  { %v2029_v52 = vadd.f32 %v2028_v45, %v2015_v44  ;;  %v1991_v35 = vpop.f32.mrf.mxu0  ;;  %v2004_v53 = vpop.f32.mrf.mxu1  ;;  %v9297_v40 = vor.u32 %v12130_v37, %v9296_v31  ;;  %v9301_v45 = vor.u32 %v12126_v42, %v9298_v43  ;;  %v9176_v37 = vld [vmem:[#allocation6 + $0x188] sm:$0xf]  ;;  %v12095_v42 = vld [vmem:[#allocation6 + $0x18c] sm:$0xf] }
 0x1dc   :  { %v2182_v8 = vmul.f32 %v2176_v51, %v13120_v61  ;;  %3008 = vmatpush.bf16.msra.mxu3 %v9333_v25  ;;  %v9264_v51 = vld [vmem:[#allocation6 + $0x240] sm:$0xf]  ;;  %v12054_v35 = vld [vmem:[#allocation6 + $0x44] sm:$0xf]  ;;  %v9210_v25 = vld [vmem:[#allocation6 + $0x1e8] sm:$0xf0] }
 0x1dd   :  { %v2168_v59 = vadd.f32 %v2164_v46, %v2029_v52  ;;  %2983 = vmatpush.bf16.msra.mxu1 %v9297_v40  ;;  %2996 = vmatpush.bf16.msra.mxu2 %v9045_v41  ;;  %v12122_v52 = vld [vmem:[#allocation6 + $0x25c] sm:$0xf0]  ;;  %v9013_v56 = vor.u32 %v12054_v35, %v9010_v60  ;;  %v9177_v40 = vor.u32 %v12099_v38, %v9176_v37  ;;  %v12163_v41 = vld [vmem:[#allocation6 + $0x3a4] sm:$0xf0]  ;;  %v12071_v21 = vld [vmem:[#allocation6 + $0xcc] sm:$0xf] }
 0x1de   :  { %v12796_v0 = vpop.eup %12795  ;;  %v9265_v36 = vor.u32 %v12122_v52, %v9264_v51  ;;  %v9144_v35 = vld [vmem:[#allocation6 + $0x148] sm:$0xf] }
 0x1df   :  { %v2183_v9 = vmul.f32 %v12796_v0, %v2172_v50  ;;  %v2178_v10 = vmul.f32 0.5, %v2168_v59  ;;  %v9009_v50 = vor.u32 %v12058_v48, %v9008_v47  ;;  %v9232_v0 = vld [vmem:[#allocation6 + $0x200] sm:$0xf]  ;;  %v12159_v47 = vld [vmem:[#allocation6 + $0x38c] sm:$0xf] }
 0x1e0   :  { %3009 = vmatpush.bf16.msra.mxu3 %v9301_v45  ;;  %v9433_v45 = vor.u32 %v12163_v41, %v9432_v39  ;;  %v9434_v48 = vld [vmem:[#allocation6 + $0x3a8] sm:$0xf0]  ;;  %v9400_v60 = vld [vmem:[#allocation6 + $0x348] sm:$0xf] }
 0x1e1   :  { %v13165_v20 = vadd.f32 %v2183_v9, %v2182_v8  ;;  %12797 = vtanh.f32 %v2178_v10  ;;  %2971 = vmatpush.bf16.msra.mxu0 %v9009_v50  ;;  %2984 = vmatpush.bf16.msra.mxu1 %v9265_v36  ;;  %v12114_v8 = vld [vmem:[#allocation6 + $0x21c] sm:$0xf0]  ;;  %v12046_v9 = vld [vmem:[#allocation6 + $0x4] sm:$0xf]  ;;  %v9437_v52 = vor.u32 %v12159_v47, %v9434_v48  ;;  %v9401_v57 = vor.u32 %v12155_v54, %v9400_v60  ;;  %v9336_v16 = vld [vmem:[#allocation6 + $0x2c8] sm:$0xf] }
 0x1e2   :  { %v2017_v61 = vpop.f32.mrf.mxu2  ;;  %v2030_v24 = vpop.f32.mrf.mxu3  ;;  %2997 = vmatpush.bf16.msra.mxu2 %v9013_v56  ;;  %v8978_v10 = vld [vmem:[#allocation6 + $0x20] sm:$0xf0]  ;;  %v9233_v13 = vor.u32 %v12114_v8, %v9232_v0  ;;  %v12087_v56 = vld [vmem:[#allocation6 + $0x14c] sm:$0xf]  ;;  %v12083_v0 = vld [vmem:[#allocation6 + $0x124] sm:$0xf0] }
 0x1e3   :  { %12799 = vtanh.f32 %v13165_v20  ;;  %v8981_v14 = vor.u32 %v12046_v9, %v8978_v10  ;;  %v9465_v61 = vor.u32 %v12171_v11, %v9464_v22  ;;  %v12103_v24 = vld [vmem:[#allocation6 + $0x1cc] sm:$0xf]  ;;  %v12131_v39 = vld [vmem:[#allocation6 + $0x2a4] sm:$0xf0] }
 0x1e4   :  { %v2041_v32 = vpop.f32.mrf.mxu0  ;;  %v2054_v33 = vpop.f32.mrf.mxu1  ;;  %3010 = vmatpush.bf16.msra.mxu3 %v9269_v26  ;;  %v9213_v31 = vor.u32 %v12103_v24, %v9210_v25  ;;  %v9114_v8 = vld [vmem:[#allocation6 + $0x128] sm:$0xf0] }
 0x1e5   :  { %v2055_v1 = vadd.f32 %v2054_v33, %v2041_v32  ;;  %2972 = vmatpush.bf16.msra.mxu0 %v8977_v6  ;;  %2985 = vmatpush.bf16.msra.mxu1 %v9233_v13  ;;  %v12167_v32 = vld [vmem:[#allocation6 + $0x3cc] sm:$0xf] }
 0x1e6   :  { %2998 = vmatpush.bf16.msra.mxu2 %v8981_v14  ;;  %v9466_v33 = vld [vmem:[#allocation6 + $0x3e8] sm:$0xf0]  ;;  %v9080_v14 = vld [vmem:[#allocation6 + $0xc8] sm:$0xf] }
 0x1e7   :  { %v12798_v44 = vpop.eup %12797  ;;  %v2136_v28 = vadd.f32 %v2055_v1, %v13126_v19  ;;  %v9469_v34 = vor.u32 %v12167_v32, %v9466_v33  ;;  %v9368_v1 = vld [vmem:[#allocation6 + $0x308] sm:$0xf]  ;;  %v12143_v9 = vld [vmem:[#allocation6 + $0x30c] sm:$0xf]  ;;  %v9081_v17 = vor.u32 %v12075_v15, %v9080_v14 }
 0x1e8   :  { %v2180_v46 = vmul.f32 0.5, %v12798_v44  ;;  %3011 = vmatpush.bf16.msra.mxu3 %v9237_v18  ;;  %v9370_v10 = vld [vmem:[#allocation6 + $0x328] sm:$0xf0]  ;;  %v12139_v18 = vld [vmem:[#allocation6 + $0x2e4] sm:$0xf0] }
 0x1e9   :  { %v12800_v49 = vpop.eup %12799  ;;  %3017 = vmatpush.bf16.msrb.mxu0 %v9209_v23  ;;  %3030 = vmatpush.bf16.msrb.mxu1 %v9465_v61  ;;  %v9373_v13 = vor.u32 %v12143_v9, %v9370_v10  ;;  %v9082_v22 = vld [vmem:[#allocation6 + $0xe8] sm:$0xf0]  ;;  %v9337_v11 = vor.u32 %v12139_v18, %v9336_v16  ;;  %v12067_v32 = vld [vmem:[#allocation6 + $0xa4] sm:$0xf0] }
 0x1ea   :  { %v2181_v53 = vadd.f32 0.5, %v2180_v46  ;;  %3043 = vmatpush.bf16.msrb.mxu2 %v9213_v31  ;;  %v9178_v46 = vld [vmem:[#allocation6 + $0x1a8] sm:$0xf0]  ;;  %v9085_v23 = vor.u32 %v12071_v21, %v9082_v22  ;;  %v9048_v31 = vld [vmem:[#allocation6 + $0x88] sm:$0xf] }
 0x1eb   :  { %v9181_v51 = vor.u32 %v12095_v42, %v9178_v46  ;;  %v12135_v61 = vld [vmem:[#allocation6 + $0x2cc] sm:$0xf]  ;;  %v9304_v33 = vld [vmem:[#allocation6 + $0x288] sm:$0xf]  ;;  %v9049_v38 = vor.u32 %v12067_v32, %v9048_v31 }
 0x1ec   :  { %v2186_v58 = vmul.f32 %v12800_v49, %v2181_v53  ;;  %v2043_v4 = vpop.f32.mrf.mxu0  ;;  %v2056_v5 = vpop.f32.mrf.mxu1  ;;  %3056 = vmatpush.bf16.msrb.mxu3 %v9469_v34  ;;  %v2140_v49 = vmul.f32 0.5, %v2136_v28  ;;  %v12091_v53 = vld [vmem:[#allocation6 + $0x164] sm:$0xf0]  ;;  %v9338_v24 = vld [vmem:[#allocation6 + $0x2e8] sm:$0xf0] }
 0x1ed   :  { %v2067_v59 = vpop.f32.mrf.mxu2  ;;  %v2080_v62 = vpop.f32.mrf.mxu3  ;;  %3018 = vmatpush.bf16.msrb.mxu0 %v9177_v40  ;;  %v9145_v36 = vor.u32 %v12091_v53, %v9144_v35  ;;  %3031 = vmatpush.bf16.msrb.mxu1 %v9433_v45  ;;  %v12147_v4 = vld [vmem:[#allocation6 + $0x324] sm:$0xf0]  ;;  %v12079_v5 = vld [vmem:[#allocation6 + $0x10c] sm:$0xf]  ;;  %v9341_v28 = vor.u32 %v12135_v61, %v9338_v24 }
 0x1ee   :  { %v2081_v3 = vadd.f32 %v2080_v62, %v2067_v59  ;;  %v2187_v12 = vpack.c.bf16 %v2186_v58, %v2186_v58  ;;  %3044 = vmatpush.bf16.msrb.mxu2 %v9181_v51  ;;  %v9146_v58 = vld [vmem:[#allocation6 + $0x168] sm:$0xf0]  ;;  %12801 = vtanh.f32 %v2140_v49  ;;  %v9369_v6 = vor.u32 %v12147_v4, %v9368_v1  ;;  %v9016_v51 = vld [vmem:[#allocation6 + $0x48] sm:$0xf] }
 0x1ef   :  { %v12151_v59 = vld [vmem:[#allocation6 + $0x34c] sm:$0xf]  ;;  %v9149_v26 = vor.u32 %v12087_v56, %v9146_v58  ;;  %v9272_v35 = vld [vmem:[#allocation6 + $0x248] sm:$0xf] }
 0x1f0   :  { %2188 = vst [vmem:[#allocation2] sm:$0xf] %v2187_v12  ;;  %v2137_v29 = vadd.f32 %v2081_v3, %v13129_v30  ;;  %v9402_v62 = vld [vmem:[#allocation6 + $0x368] sm:$0xf0]  ;;  %3057 = vmatpush.bf16.msrb.mxu3 %v9437_v52  ;;  %v9113_v3 = vor.u32 %v12083_v0, %v9112_v63  ;;  %v9117_v12 = vor.u32 %v12079_v5, %v9114_v8  ;;  %v12059_v52 = vld [vmem:[#allocation6 + $0x64] sm:$0xf0] }
 0x1f1   :  { %v9405_v27 = vor.u32 %v12151_v59, %v9402_v62  ;;  %3019 = vmatpush.bf16.msrb.mxu0 %v9145_v36  ;;  %3032 = vmatpush.bf16.msrb.mxu1 %v9401_v57  ;;  %v12063_v40 = vld [vmem:[#allocation6 + $0x8c] sm:$0xf]  ;;  %v9017_v53 = vor.u32 %v12059_v52, %v9016_v51  ;;  %v12123_v36 = vld [vmem:[#allocation6 + $0x264] sm:$0xf0]  ;;  %v9184_v52 = vld [vmem:[#allocation6 + $0x190] sm:$0xf] }
 0x1f2   :  { %v2144_v50 = vmul.f32 0.5, %v2137_v29  ;;  %3045 = vmatpush.bf16.msrb.mxu2 %v9149_v26  ;;  %v9050_v41 = vld [vmem:[#allocation6 + $0xa8] sm:$0xf0]  ;;  %v9273_v56 = vor.u32 %v12123_v36, %v9272_v35  ;;  %v8984_v62 = vld [vmem:[#allocation6 + $0x8] sm:$0xf] }
 0x1f3   :  { %v12127_v45 = vld [vmem:[#allocation6 + $0x28c] sm:$0xf]  ;;  %v9240_v63 = vld [vmem:[#allocation6 + $0x208] sm:$0xf]  ;;  %v12100_v35 = vld [vmem:[#allocation6 + $0x1ac] sm:$0xf0] }
 0x1f4   :  { %12803 = vtanh.f32 %v2144_v50  ;;  %3058 = vmatpush.bf16.msrb.mxu3 %v9405_v27  ;;  %v12802_v25 = vpop.eup %12801  ;;  %v9306_v46 = vld [vmem:[#allocation6 + $0x2a8] sm:$0xf0]  ;;  %v12051_v27 = vld [vmem:[#allocation6 + $0x24] sm:$0xf0] }
 0x1f5   :  { %v2069_v43 = vpop.f32.mrf.mxu2  ;;  %v2082_v44 = vpop.f32.mrf.mxu3  ;;  %3020 = vmatpush.bf16.msrb.mxu0 %v9113_v3  ;;  %3033 = vmatpush.bf16.msrb.mxu1 %v9369_v6  ;;  %v2142_v47 = vmul.f32 0.5, %v12802_v25  ;;  %v9309_v49 = vor.u32 %v12127_v45, %v9306_v46  ;;  %v12055_v60 = vld [vmem:[#allocation6 + $0x4c] sm:$0xf]  ;;  %v12115_v0 = vld [vmem:[#allocation6 + $0x224] sm:$0xf0] }
 0x1f6   :  { %3046 = vmatpush.bf16.msrb.mxu2 %v9117_v12  ;;  %v9305_v43 = vor.u32 %v12131_v39, %v9304_v33  ;;  %v9053_v44 = vor.u32 %v12063_v40, %v9050_v41  ;;  %v9018_v54 = vld [vmem:[#allocation6 + $0x68] sm:$0xf0]  ;;  %v9241_v15 = vor.u32 %v12115_v0, %v9240_v63  ;;  %v9472_v39 = vld [vmem:[#allocation6 + $0x3d0] sm:$0xf]  ;;  %v9218_v45 = vld [vmem:[#allocation6 + $0x1f0] sm:$0xf0] }
 0x1f7   :  { %v9021_v57 = vor.u32 %v12055_v60, %v9018_v54  ;;  %v12119_v58 = vld [vmem:[#allocation6 + $0x24c] sm:$0xf]  ;;  %v12172_v41 = vld [vmem:[#allocation6 + $0x3ec] sm:$0xf0]  ;;  %v12168_v46 = vld [vmem:[#allocation6 + $0x3d4] sm:$0xf] }
 0x1f8   :  { %3059 = vmatpush.bf16.msrb.mxu3 %v9373_v13  ;;  %v9274_v59 = vld [vmem:[#allocation6 + $0x268] sm:$0xf0]  ;;  %v8985_v13 = vor.u32 %v12051_v27, %v8984_v62  ;;  %v9473_v51 = vor.u32 %v12172_v41, %v9472_v39  ;;  %v9440_v60 = vld [vmem:[#allocation6 + $0x390] sm:$0xf]  ;;  %v9185_v62 = vor.u32 %v12100_v35, %v9184_v52  ;;  %v9346_v39 = vld [vmem:[#allocation6 + $0x2f0] sm:$0xf0] }
 0x1f9   :  { %3021 = vmatpush.bf16.msrb.mxu0 %v9081_v17  ;;  %3034 = vmatpush.bf16.msrb.mxu1 %v9337_v11  ;;  %v9277_v26 = vor.u32 %v12119_v58, %v9274_v59  ;;  %v12047_v4 = vld [vmem:[#allocation6 + $0xc] sm:$0xf]  ;;  %v2143_v17 = vadd.f32 0.5, %v2142_v47  ;;  %v9474_v47 = vld [vmem:[#allocation6 + $0x3f0] sm:$0xf0] }
 0x1fa   :  { %v12804_v29 = vpop.eup %12803  ;;  %3047 = vmatpush.bf16.msrb.mxu2 %v9085_v23  ;;  %v8986_v5 = vld [vmem:[#allocation6 + $0x28] sm:$0xf0]  ;;  %v9477_v36 = vor.u32 %v12168_v46, %v9474_v47  ;;  %v12164_v54 = vld [vmem:[#allocation6 + $0x3ac] sm:$0xf0]  ;;  %v12160_v58 = vld [vmem:[#allocation6 + $0x394] sm:$0xf] }
 0x1fb   :  { %v2146_v48 = vmul.f32 0.5, %v12804_v29  ;;  %v12111_v6 = vld [vmem:[#allocation6 + $0x20c] sm:$0xf]  ;;  %v8989_v16 = vor.u32 %v12047_v4, %v8986_v5  ;;  %v9442_v59 = vld [vmem:[#allocation6 + $0x3b0] sm:$0xf0] }
 0x1fc   :  { %3060 = vmatpush.bf16.msrb.mxu3 %v9341_v28  ;;  %v9242_v14 = vld [vmem:[#allocation6 + $0x228] sm:$0xf0]  ;;  %v9152_v27 = vld [vmem:[#allocation6 + $0x150] sm:$0xf]  ;;  %v12088_v5 = vld [vmem:[#allocation6 + $0x154] sm:$0xf] }
 0x1fd   :  { %3022 = vmatpush.bf16.msrb.mxu0 %v9049_v38  ;;  %3035 = vmatpush.bf16.msrb.mxu1 %v9305_v43  ;;  %v2147_v8 = vadd.f32 0.5, %v2146_v48  ;;  %v9245_v21 = vor.u32 %v12111_v6, %v9242_v14  ;;  %v12108_v38 = vld [vmem:[#allocation6 + $0x1ec] sm:$0xf0]  ;;  %v9154_v6 = vld [vmem:[#allocation6 + $0x170] sm:$0xf0] }
 0x1fe   :  { %3048 = vmatpush.bf16.msrb.mxu2 %v9053_v44  ;;  %v12092_v63 = vld [vmem:[#allocation6 + $0x16c] sm:$0xf0]  ;;  %v12128_v52 = vld [vmem:[#allocation6 + $0x294] sm:$0xf] }
 0x1ff   :  { %v2153_v11 = vmul.f32 %v2147_v8, %v13141_v2  ;;  %v9216_v2 = vld [vmem:[#allocation6 + $0x1d0] sm:$0xf]  ;;  %v12152_v8 = vld [vmem:[#allocation6 + $0x354] sm:$0xf] }
 0x200   :  { %3061 = vmatpush.bf16.msrb.mxu3 %v9309_v49  ;;  %v12156_v4 = vld [vmem:[#allocation6 + $0x36c] sm:$0xf0]  ;;  %v9314_v35 = vld [vmem:[#allocation6 + $0x2b0] sm:$0xf0] }
 0x201   :  { %3023 = vmatpush.bf16.msrb.mxu0 %v9017_v53  ;;  %3036 = vmatpush.bf16.msrb.mxu1 %v9273_v56  ;;  %v12096_v56 = vld [vmem:[#allocation6 + $0x194] sm:$0xf]  ;;  %v12084_v14 = vld [vmem:[#allocation6 + $0x12c] sm:$0xf0] }
 0x202   :  { %3049 = vmatpush.bf16.msrb.mxu2 %v9021_v57  ;;  %v9186_v57 = vld [vmem:[#allocation6 + $0x1b0] sm:$0xf0]  ;;  %v9312_v46 = vld [vmem:[#allocation6 + $0x290] sm:$0xf] }
 0x203   :  { %v9189_v0 = vor.u32 %v12096_v56, %v9186_v57  ;;  %v12132_v47 = vld [vmem:[#allocation6 + $0x2ac] sm:$0xf0]  ;;  %v9317_v57 = vor.u32 %v12128_v52, %v9314_v35  ;;  %v9416_v52 = vld [vmem:[#allocation6 + $0x358] sm:$0xf] }
 0x204   :  { %v2093_v34 = vpop.f32.mrf.mxu0  ;;  %v2106_v37 = vpop.f32.mrf.mxu1  ;;  %3062 = vmatpush.bf16.msrb.mxu3 %v9277_v26  ;;  %v9441_v26 = vor.u32 %v12164_v54, %v9440_v60  ;;  %v9024_v60 = vld [vmem:[#allocation6 + $0x50] sm:$0xf]  ;;  %v12157_v35 = vld [vmem:[#allocation6 + $0x374] sm:$0xf0] }
 0x205   :  { %v2107_v42 = vadd.f32 %v2106_v37, %v2093_v34  ;;  %3024 = vmatpush.bf16.msrb.mxu0 %v8985_v13  ;;  %3037 = vmatpush.bf16.msrb.mxu1 %v9241_v15  ;;  %v9120_v13 = vld [vmem:[#allocation6 + $0x110] sm:$0xf]  ;;  %v9157_v15 = vor.u32 %v12088_v5, %v9154_v6 }
 0x206   :  { %3050 = vmatpush.bf16.msrb.mxu2 %v8989_v16  ;;  %v12060_v54 = vld [vmem:[#allocation6 + $0x6c] sm:$0xf0] }
 0x207   :  { %v2138_v50 = vadd.f32 %v2107_v42, %v13134_v55  ;;  %v12104_v42 = vld [vmem:[#allocation6 + $0x1d4] sm:$0xf]  ;;  %v9248_v5 = vld [vmem:[#allocation6 + $0x210] sm:$0xf] }
 0x208   :  { %3063 = vmatpush.bf16.msrb.mxu3 %v9245_v21  ;;  %v9221_v53 = vor.u32 %v12104_v42, %v9218_v45  ;;  %v12080_v21 = vld [vmem:[#allocation6 + $0x114] sm:$0xf]  ;;  %v9056_v42 = vld [vmem:[#allocation6 + $0x90] sm:$0xf] }
 0x209   :  { %12805 = vtanh.f32 %v2138_v50  ;;  %v9217_v50 = vor.u32 %v12108_v38, %v9216_v2  ;;  %v9090_v2 = vld [vmem:[#allocation6 + $0xf0] sm:$0xf0]  ;;  %v12116_v6 = vld [vmem:[#allocation6 + $0x22c] sm:$0xf0] }
 0x20a   :  { %v12136_v38 = vld [vmem:[#allocation6 + $0x2d4] sm:$0xf] }
 0x20b   :  { %v2119_v1 = vpop.f32.mrf.mxu2  ;;  %v2132_v3 = vpop.f32.mrf.mxu3  ;;  %v9349_v45 = vor.u32 %v12136_v38, %v9346_v39  ;;  %v9448_v38 = vld [vmem:[#allocation6 + $0x398] sm:$0xf] }
 0x20c   :  { %v2133_v9 = vadd.f32 %v2132_v3, %v2119_v1  ;;  %v2095_v10 = vpop.f32.mrf.mxu0  ;;  %v2108_v12 = vpop.f32.mrf.mxu1  ;;  %v9445_v1 = vor.u32 %v12160_v58, %v9442_v59  ;;  %v9408_v3 = vld [vmem:[#allocation6 + $0x350] sm:$0xf]  ;;  %v12165_v39 = vld [vmem:[#allocation6 + $0x3b4] sm:$0xf0] }
 0x20d   :  { %v9153_v10 = vor.u32 %v12092_v63, %v9152_v27  ;;  %v9409_v12 = vor.u32 %v12156_v4, %v9408_v3  ;;  %v9280_v58 = vld [vmem:[#allocation6 + $0x250] sm:$0xf]  ;;  %v12120_v27 = vld [vmem:[#allocation6 + $0x254] sm:$0xf] }
 0x20e   :  { %v2139_v18 = vadd.f32 %v2133_v9, %v13137_v7  ;;  %v9410_v9 = vld [vmem:[#allocation6 + $0x370] sm:$0xf0]  ;;  %v12124_v59 = vld [vmem:[#allocation6 + $0x26c] sm:$0xf0] }
 0x20f   :  { %v12806_v22 = vpop.eup %12805  ;;  %v9413_v16 = vor.u32 %v12152_v8, %v9410_v9  ;;  %v9282_v63 = vld [vmem:[#allocation6 + $0x270] sm:$0xf0]  ;;  %v9281_v3 = vor.u32 %v12124_v59, %v9280_v58  ;;  %v12052_v4 = vld [vmem:[#allocation6 + $0x2c] sm:$0xf0]  ;;  %v9128_v58 = vld [vmem:[#allocation6 + $0x118] sm:$0xf] }
 0x210   :  { %v2154_v23 = vmul.f32 %v12806_v22, %v2143_v17  ;;  %v2149_v61 = vmul.f32 0.5, %v2139_v18  ;;  %v9376_v17 = vld [vmem:[#allocation6 + $0x310] sm:$0xf]  ;;  %v9122_v22 = vld [vmem:[#allocation6 + $0x130] sm:$0xf0]  ;;  %v9285_v9 = vor.u32 %v12120_v27, %v9282_v63 }
 0x211   :  { %v12148_v18 = vld [vmem:[#allocation6 + $0x32c] sm:$0xf0]  ;;  %v12085_v59 = vld [vmem:[#allocation6 + $0x134] sm:$0xf0] }
 0x212   :  { %v13173_v24 = vadd.f32 %v2154_v23, %v2153_v11  ;;  %12807 = vtanh.f32 %v2149_v61  ;;  %v12144_v11 = vld [vmem:[#allocation6 + $0x314] sm:$0xf]  ;;  %v9121_v61 = vor.u32 %v12084_v14, %v9120_v13  ;;  %v9384_v27 = vld [vmem:[#allocation6 + $0x318] sm:$0xf] }
 0x213   :  { %v2121_v25 = vpop.f32.mrf.mxu2  ;;  %v2134_v28 = vpop.f32.mrf.mxu3  ;;  %v9378_v23 = vld [vmem:[#allocation6 + $0x330] sm:$0xf0]  ;;  %v12149_v63 = vld [vmem:[#allocation6 + $0x334] sm:$0xf0] }
 0x214   :  { %12809 = vtanh.f32 %v13173_v24  ;;  %v9377_v25 = vor.u32 %v12148_v18, %v9376_v17  ;;  %v9088_v28 = vld [vmem:[#allocation6 + $0xd0] sm:$0xf]  ;;  %v12112_v13 = vld [vmem:[#allocation6 + $0x214] sm:$0xf]  ;;  %v9480_v17 = vld [vmem:[#allocation6 + $0x3d8] sm:$0xf] }
 0x215   :  { %v9250_v14 = vld [vmem:[#allocation6 + $0x230] sm:$0xf0]  ;;  %v12173_v18 = vld [vmem:[#allocation6 + $0x3f4] sm:$0xf0] }
 0x218   :  { %v12808_v29 = vpop.eup %12807 }
 0x219   :  { %v2151_v31 = vmul.f32 0.5, %v12808_v29  ;;  %v12076_v29 = vld [vmem:[#allocation6 + $0xec] sm:$0xf0] }
 0x21a   :  { %v12810_v32 = vpop.eup %12809 }
 0x21b   :  { %v2152_v33 = vadd.f32 0.5, %v2151_v31  ;;  %v9125_v31 = vor.u32 %v12080_v21, %v9122_v22  ;;  %v12105_v21 = vld [vmem:[#allocation6 + $0x1dc] sm:$0xf] }
 0x21d   :  { %v2157_v34 = vmul.f32 %v12810_v32, %v2152_v33  ;;  %v9381_v32 = vor.u32 %v12144_v11, %v9378_v23  ;;  %v9344_v33 = vld [vmem:[#allocation6 + $0x2d0] sm:$0xf]  ;;  %v9249_v11 = vor.u32 %v12116_v6, %v9248_v5  ;;  %v9226_v23 = vld [vmem:[#allocation6 + $0x1f8] sm:$0xf0]  ;;  %v9129_v5 = vor.u32 %v12085_v59, %v9128_v58 }
 0x21e   :  { %v9385_v6 = vor.u32 %v12149_v63, %v9384_v27  ;;  %v12113_v58 = vld [vmem:[#allocation6 + $0x21c] sm:$0xf] }
 0x21f   :  { %v2158_v37 = vpack.c.bf16 %v2157_v34, %v2157_v34  ;;  %v12140_v34 = vld [vmem:[#allocation6 + $0x2ec] sm:$0xf0]  ;;  %v9258_v59 = vld [vmem:[#allocation6 + $0x238] sm:$0xf0] }
 0x220   :  { %v9345_v41 = vor.u32 %v12140_v34, %v9344_v33  ;;  %v9192_v33 = vld [vmem:[#allocation6 + $0x198] sm:$0xf]  ;;  %v9261_v63 = vor.u32 %v12113_v58, %v9258_v59  ;;  %v12214_v58 = vld [vmem:[#allocation6 + $0x144] sm:$0xf] }
 0x221   :  { %2159 = vst [vmem:[#allocation2 + $0x4] sm:$0xf] %v2158_v37  ;;  %v12072_v37 = vld [vmem:[#allocation6 + $0xd4] sm:$0xf]  ;;  %v12101_v34 = vld [vmem:[#allocation6 + $0x1b4] sm:$0xf0] }
 0x222   :  { %v9650_v59 = vld [vmem:[#allocation6 + $0x160] sm:$0xf0] }
 0x228   :  { %v2189_v40 = vld [vmem:[#allocation2] sm:$0xff] }
 0x229   :  { %v2319_v43 = vunpack.c.l.b16 %v2189_v40  ;;  %v2320_v44 = vunpack.c.h.b16 %v2189_v40  ;;  %v9089_v40 = vor.u32 %v12076_v29, %v9088_v28  ;;  %v9253_v29 = vor.u32 %v12112_v13, %v9250_v14  ;;  %v9352_v13 = vld [vmem:[#allocation6 + $0x2d8] sm:$0xf] }
 0x22a   :  { %v12141_v14 = vld [vmem:[#allocation6 + $0x2f4] sm:$0xf0] }
 0x22b   :  { %v13176_v48 = vpack.c.b16 %v2319_v43, %v2319_v43  ;;  %v13178_v49 = vpack.c.b16 %v2320_v44, %v2320_v44  ;;  %v12068_v43 = vld [vmem:[#allocation6 + $0xac] sm:$0xf0]  ;;  %v9093_v44 = vor.u32 %v12072_v37, %v9090_v2  ;;  %v9229_v37 = vor.u32 %v12105_v21, %v9226_v23  ;;  %v12069_v23 = vld [vmem:[#allocation6 + $0xb4] sm:$0xf0] }
 0x22d   :  { %2973 = vmatmul.bf16.vlgmr.msra.gmra.mxu0 %v13176_v48  ;;  %2986 = vmatmul.bf16.vlgmr.msra.gmra.mxu1 %v13178_v49 }
 0x22e   :  { %2999 = vmatmul.bf16.vlgmr.msra.gmra.mxu2 %v13176_v48  ;;  %3012 = vmatmul.bf16.vlgmr.msra.gmra.mxu3 %v13178_v49 }
 0x22f   :  { %3069 = vmatpush.bf16.msra.mxu0 %v9217_v50  ;;  %3082 = vmatpush.bf16.msra.mxu1 %v9473_v51  ;;  %v12064_v50 = vld [vmem:[#allocation6 + $0x94] sm:$0xf] }
 0x230   :  { %3095 = vmatpush.bf16.msra.mxu2 %v9221_v53  ;;  %3108 = vmatpush.bf16.msra.mxu3 %v9477_v36  ;;  %v9058_v51 = vld [vmem:[#allocation6 + $0xb0] sm:$0xf0]  ;;  %v9057_v53 = vor.u32 %v12068_v43, %v9056_v42  ;;  %v9313_v36 = vor.u32 %v12132_v47, %v9312_v46  ;;  %v12161_v42 = vld [vmem:[#allocation6 + $0x39c] sm:$0xf]  ;;  %v9160_v46 = vld [vmem:[#allocation6 + $0x158] sm:$0xf] }
 0x231   :  { %v9061_v56 = vor.u32 %v12064_v50, %v9058_v51  ;;  %v9450_v43 = vld [vmem:[#allocation6 + $0x3b8] sm:$0xf0]  ;;  %v12093_v47 = vld [vmem:[#allocation6 + $0x174] sm:$0xf0] }
 0x232   :  { %v9453_v51 = vor.u32 %v12161_v42, %v9450_v43  ;;  %v9288_v42 = vld [vmem:[#allocation6 + $0x258] sm:$0xf] }
 0x233   :  { %3070 = vmatpush.bf16.msra.mxu0 %v9185_v62  ;;  %3083 = vmatpush.bf16.msra.mxu1 %v9441_v26  ;;  %v12056_v62 = vld [vmem:[#allocation6 + $0x54] sm:$0xf]  ;;  %v12125_v43 = vld [vmem:[#allocation6 + $0x274] sm:$0xf0] }
 0x234   :  { %3096 = vmatpush.bf16.msra.mxu2 %v9189_v0  ;;  %3109 = vmatpush.bf16.msra.mxu3 %v9445_v1  ;;  %v9026_v26 = vld [vmem:[#allocation6 + $0x70] sm:$0xf0]  ;;  %v8992_v0 = vld [vmem:[#allocation6 + $0x10] sm:$0xf]  ;;  %v9025_v1 = vor.u32 %v12060_v54, %v9024_v60  ;;  %v12153_v60 = vld [vmem:[#allocation6 + $0x35c] sm:$0xf] }
 0x235   :  { %v9029_v8 = vor.u32 %v12056_v62, %v9026_v26  ;;  %v8993_v22 = vor.u32 %v12052_v4, %v8992_v0  ;;  %v9418_v54 = vld [vmem:[#allocation6 + $0x378] sm:$0xf0] }
 0x236   :  { %v9421_v26 = vor.u32 %v12153_v60, %v9418_v54  ;;  %v12081_v0 = vld [vmem:[#allocation6 + $0x11c] sm:$0xf]  ;;  %v9256_v60 = vld [vmem:[#allocation6 + $0x218] sm:$0xf] }
 0x237   :  { %3071 = vmatpush.bf16.msra.mxu0 %v9153_v10  ;;  %3084 = vmatpush.bf16.msra.mxu1 %v9409_v12  ;;  %v12048_v10 = vld [vmem:[#allocation6 + $0x14] sm:$0xf]  ;;  %v9386_v4 = vld [vmem:[#allocation6 + $0x338] sm:$0xf0]  ;;  %v12117_v54 = vld [vmem:[#allocation6 + $0x234] sm:$0xf0] }
 0x238   :  { %3097 = vmatpush.bf16.msra.mxu2 %v9157_v15  ;;  %3110 = vmatpush.bf16.msra.mxu3 %v9413_v16  ;;  %v8994_v12 = vld [vmem:[#allocation6 + $0x30] sm:$0xf0]  ;;  %v9224_v15 = vld [vmem:[#allocation6 + $0x1d8] sm:$0xf] }
 0x239   :  { %v12109_v16 = vld [vmem:[#allocation6 + $0x1f4] sm:$0xf0]  ;;  %v8997_v28 = vor.u32 %v12048_v10, %v8994_v12 }
 0x23b   :  { %3072 = vmatpush.bf16.msra.mxu0 %v9121_v61  ;;  %3085 = vmatpush.bf16.msra.mxu1 %v9377_v25  ;;  %v12169_v61 = vld [vmem:[#allocation6 + $0x3dc] sm:$0xf] }
 0x23c   :  { %3098 = vmatpush.bf16.msra.mxu2 %v9125_v31  ;;  %3111 = vmatpush.bf16.msra.mxu3 %v9381_v32  ;;  %v9482_v25 = vld [vmem:[#allocation6 + $0x3f8] sm:$0xf0]  ;;  %v9225_v31 = vor.u32 %v12109_v16, %v9224_v15  ;;  %v9481_v32 = vor.u32 %v12173_v18, %v9480_v17 }
 0x23d   :  { %3025 = vmatmul.bf16.vlgmr.msrb.gmra.mxu0 %v13176_v48  ;;  %3038 = vmatmul.bf16.vlgmr.msrb.gmra.mxu1 %v13178_v49  ;;  %v9485_v2 = vor.u32 %v12169_v61, %v9482_v25  ;;  %v12073_v15 = vld [vmem:[#allocation6 + $0xdc] sm:$0xf] }
 0x23e   :  { %3051 = vmatmul.bf16.vlgmr.msrb.gmra.mxu2 %v13176_v48  ;;  %3064 = vmatmul.bf16.vlgmr.msrb.gmra.mxu3 %v13178_v49  ;;  %v9098_v16 = vld [vmem:[#allocation6 + $0xf8] sm:$0xf0] }
 0x23f   :  { %3073 = vmatpush.bf16.msra.mxu0 %v9089_v40  ;;  %3086 = vmatpush.bf16.msra.mxu1 %v9345_v41  ;;  %v12097_v40 = vld [vmem:[#allocation6 + $0x19c] sm:$0xf]  ;;  %v9101_v61 = vor.u32 %v12073_v15, %v9098_v16  ;;  %v9712_v16 = vld [vmem:[#allocation6 + $0x1c0] sm:$0xf] }
 0x240   :  { %3099 = vmatpush.bf16.msra.mxu2 %v9093_v44  ;;  %3112 = vmatpush.bf16.msra.mxu3 %v9349_v45  ;;  %v9194_v41 = vld [vmem:[#allocation6 + $0x1b8] sm:$0xf0]  ;;  %v9193_v44 = vor.u32 %v12101_v34, %v9192_v33  ;;  %v9449_v45 = vor.u32 %v12165_v39, %v9448_v38  ;;  %v9032_v38 = vld [vmem:[#allocation6 + $0x58] sm:$0xf] }
 0x241   :  { %v9197_v50 = vor.u32 %v12097_v40, %v9194_v41  ;;  %v12137_v17 = vld [vmem:[#allocation6 + $0x2dc] sm:$0xf]  ;;  %v12061_v39 = vld [vmem:[#allocation6 + $0x74] sm:$0xf0] }
 0x242   :  { %v9354_v18 = vld [vmem:[#allocation6 + $0x2f8] sm:$0xf0] }
 0x243   :  { %3074 = vmatpush.bf16.msra.mxu0 %v9057_v53  ;;  %3087 = vmatpush.bf16.msra.mxu1 %v9313_v36  ;;  %v12089_v53 = vld [vmem:[#allocation6 + $0x15c] sm:$0xf]  ;;  %v9357_v25 = vor.u32 %v12137_v17, %v9354_v18  ;;  %v12234_v17 = vld [vmem:[#allocation6 + $0x1dc] sm:$0xf0] }
 0x244   :  { %3100 = vmatpush.bf16.msra.mxu2 %v9061_v56  ;;  %3113 = vmatpush.bf16.msra.mxu3 %v9317_v57  ;;  %v9162_v36 = vld [vmem:[#allocation6 + $0x178] sm:$0xf0]  ;;  %v9161_v56 = vor.u32 %v12093_v47, %v9160_v46  ;;  %v9417_v57 = vor.u32 %v12157_v35, %v9416_v52  ;;  %v9000_v52 = vld [vmem:[#allocation6 + $0x18] sm:$0xf]  ;;  %v9968_v18 = vld [vmem:[#allocation6 + $0x3c0] sm:$0xf] }
 0x245   :  { %v9165_v62 = vor.u32 %v12089_v53, %v9162_v36  ;;  %v12129_v33 = vld [vmem:[#allocation6 + $0x29c] sm:$0xf]  ;;  %v12053_v35 = vld [vmem:[#allocation6 + $0x34] sm:$0xf0] }
 0x246   :  { %v9322_v34 = vld [vmem:[#allocation6 + $0x2b8] sm:$0xf0] }
 0x247   :  { %3075 = vmatpush.bf16.msra.mxu0 %v9025_v1  ;;  %3088 = vmatpush.bf16.msra.mxu1 %v9281_v3  ;;  %v9130_v1 = vld [vmem:[#allocation6 + $0x138] sm:$0xf0]  ;;  %v9325_v41 = vor.u32 %v12129_v33, %v9322_v34  ;;  %v9680_v33 = vld [vmem:[#allocation6 + $0x180] sm:$0xf] }
 0x248   :  { %3101 = vmatpush.bf16.msra.mxu2 %v9029_v8  ;;  %3114 = vmatpush.bf16.msra.mxu3 %v9285_v9  ;;  %v12145_v3 = vld [vmem:[#allocation6 + $0x31c] sm:$0xf]  ;;  %v9096_v8 = vld [vmem:[#allocation6 + $0xd8] sm:$0xf]  ;;  %v9133_v10 = vor.u32 %v12081_v0, %v9130_v1  ;;  %v12226_v34 = vld [vmem:[#allocation6 + $0x19c] sm:$0xf0] }
 0x249   :  { %v12077_v9 = vld [vmem:[#allocation6 + $0xf4] sm:$0xf0]  ;;  %v9389_v12 = vor.u32 %v12145_v3, %v9386_v4  ;;  %v12121_v46 = vld [vmem:[#allocation6 + $0x25c] sm:$0xf]  ;;  %v3198_v4 = vld [vmem:[#allocation3 + $0x60] sm:$0xff] }
 0x24a   :  { %v9097_v21 = vor.u32 %v12077_v9, %v9096_v8  ;;  %v9290_v47 = vld [vmem:[#allocation6 + $0x278] sm:$0xf0]  ;;  %v3199_v9 = vld [vmem:[#allocation3 + $0x68] sm:$0xff] }
 0x24b   :  { %3076 = vmatpush.bf16.msra.mxu0 %v8993_v22  ;;  %3089 = vmatpush.bf16.msra.mxu1 %v9249_v11  ;;  %v9353_v22 = vor.u32 %v12141_v14, %v9352_v13  ;;  %v9064_v11 = vld [vmem:[#allocation6 + $0x98] sm:$0xf]  ;;  %v9293_v36 = vor.u32 %v12121_v46, %v9290_v47  ;;  %v12286_v46 = vld [vmem:[#allocation6 + $0x384] sm:$0xf] }
 0x24c   :  { %3102 = vmatpush.bf16.msra.mxu2 %v8997_v28  ;;  %3115 = vmatpush.bf16.msra.mxu3 %v9253_v29  ;;  %v9320_v28 = vld [vmem:[#allocation6 + $0x298] sm:$0xf]  ;;  %v9938_v47 = vld [vmem:[#allocation6 + $0x3a0] sm:$0xf0] }
 0x24d   :  { %v12133_v29 = vld [vmem:[#allocation6 + $0x2b4] sm:$0xf0] }
 0x24e   :  { %3077 = vmatmul.bf16.vlgmr.msra.gmra.mxu0 %v13176_v48  ;;  %3090 = vmatmul.bf16.vlgmr.msra.gmra.mxu1 %v13178_v49 }
 0x24f   :  { %3121 = vmatpush.bf16.msrb.mxu0 %v9225_v31  ;;  %3134 = vmatpush.bf16.msrb.mxu1 %v9481_v32  ;;  %v12065_v31 = vld [vmem:[#allocation6 + $0x9c] sm:$0xf] }
 0x250   :  { %3147 = vmatpush.bf16.msrb.mxu2 %v9229_v37  ;;  %3160 = vmatpush.bf16.msrb.mxu3 %v9485_v2  ;;  %v9066_v32 = vld [vmem:[#allocation6 + $0xb8] sm:$0xf0]  ;;  %v9065_v37 = vor.u32 %v12069_v23, %v9064_v11  ;;  %v9321_v2 = vor.u32 %v12133_v29, %v9320_v28  ;;  %v9714_v23 = vld [vmem:[#allocation6 + $0x1e0] sm:$0xf0] }
 0x251   :  { %3103 = vmatmul.bf16.vlgmr.msra.gmra.mxu2 %v13176_v48  ;;  %3116 = vmatmul.bf16.vlgmr.msra.gmra.mxu3 %v13178_v49  ;;  %v9069_v40 = vor.u32 %v12065_v31, %v9066_v32 }
 0x253   :  { %3122 = vmatpush.bf16.msrb.mxu0 %v9193_v44  ;;  %3135 = vmatpush.bf16.msrb.mxu1 %v9449_v45  ;;  %v12057_v44 = vld [vmem:[#allocation6 + $0x5c] sm:$0xf] }
 0x254   :  { %3148 = vmatpush.bf16.msrb.mxu2 %v9197_v50  ;;  %3161 = vmatpush.bf16.msrb.mxu3 %v9453_v51  ;;  %v9034_v45 = vld [vmem:[#allocation6 + $0x78] sm:$0xf0]  ;;  %v9033_v50 = vor.u32 %v12061_v39, %v9032_v38  ;;  %v9289_v51 = vor.u32 %v12125_v43, %v9288_v42  ;;  %v3200_v39 = vld [vmem:[#allocation3 + $0x70] sm:$0xff]  ;;  %v12222_v42 = vld [vmem:[#allocation6 + $0x184] sm:$0xf] }
 0x255   :  { %v9037_v53 = vor.u32 %v12057_v44, %v9034_v45  ;;  %v9682_v45 = vld [vmem:[#allocation6 + $0x1a0] sm:$0xf0] }
 0x257   :  { %3123 = vmatpush.bf16.msrb.mxu0 %v9161_v56  ;;  %3136 = vmatpush.bf16.msrb.mxu1 %v9417_v57  ;;  %v12049_v56 = vld [vmem:[#allocation6 + $0x1c] sm:$0xf] }
 0x258   :  { %3149 = vmatpush.bf16.msrb.mxu2 %v9165_v62  ;;  %3162 = vmatpush.bf16.msrb.mxu3 %v9421_v26  ;;  %v9002_v57 = vld [vmem:[#allocation6 + $0x38] sm:$0xf0]  ;;  %v9001_v62 = vor.u32 %v12053_v35, %v9000_v52  ;;  %v9257_v26 = vor.u32 %v12117_v54, %v9256_v60  ;;  %v9904_v60 = vld [vmem:[#allocation6 + $0x340] sm:$0xf] }
 0x259   :  { %v9005_v27 = vor.u32 %v12049_v56, %v9002_v57  ;;  %v12282_v57 = vld [vmem:[#allocation6 + $0x35c] sm:$0xf0] }
 0x25b   :  { %3124 = vmatpush.bf16.msrb.mxu0 %v9129_v5  ;;  %3137 = vmatpush.bf16.msrb.mxu1 %v9385_v6 }
 0x25c   :  { %3150 = vmatpush.bf16.msrb.mxu2 %v9133_v10  ;;  %3163 = vmatpush.bf16.msrb.mxu3 %v9389_v12 }
 0x25f   :  { %3125 = vmatpush.bf16.msrb.mxu0 %v9097_v21  ;;  %3138 = vmatpush.bf16.msrb.mxu1 %v9353_v22  ;;  %v12298_v22 = vld [vmem:[#allocation6 + $0x3dc] sm:$0xf0] }
 0x260   :  { %3151 = vmatpush.bf16.msrb.mxu2 %v9101_v61  ;;  %3164 = vmatpush.bf16.msrb.mxu3 %v9357_v25  ;;  %v9969_v11 = vor.u32 %v12298_v22, %v9968_v18  ;;  %v12294_v61 = vld [vmem:[#allocation6 + $0x3c4] sm:$0xf] }
 0x261   :  { %v9970_v25 = vld [vmem:[#allocation6 + $0x3e0] sm:$0xf0] }
 0x262   :  { %v9973_v29 = vor.u32 %v12294_v61, %v9970_v25  ;;  %v12206_v18 = vld [vmem:[#allocation6 + $0x104] sm:$0xf] }
 0x263   :  { %3126 = vmatpush.bf16.msrb.mxu0 %v9065_v37  ;;  %3139 = vmatpush.bf16.msrb.mxu1 %v9321_v2  ;;  %v9936_v37 = vld [vmem:[#allocation6 + $0x380] sm:$0xf]  ;;  %v12270_v22 = vld [vmem:[#allocation6 + $0x304] sm:$0xf] }
 0x264   :  { %3152 = vmatpush.bf16.msrb.mxu2 %v9069_v40  ;;  %3165 = vmatpush.bf16.msrb.mxu3 %v9325_v41  ;;  %v9681_v40 = vor.u32 %v12226_v34, %v9680_v33  ;;  %v12290_v41 = vld [vmem:[#allocation6 + $0x39c] sm:$0xf0] }
 0x265   :  { %v9937_v44 = vor.u32 %v12290_v41, %v9936_v37  ;;  %v9586_v41 = vld [vmem:[#allocation6 + $0xe0] sm:$0xf0] }
 0x267   :  { %3127 = vmatpush.bf16.msrb.mxu0 %v9033_v50  ;;  %3140 = vmatpush.bf16.msrb.mxu1 %v9289_v51  ;;  %v9685_v50 = vor.u32 %v12222_v42, %v9682_v45  ;;  %v9941_v51 = vor.u32 %v12286_v46, %v9938_v47  ;;  %v12262_v42 = vld [vmem:[#allocation6 + $0x2c4] sm:$0xf] }
 0x268   :  { %3153 = vmatpush.bf16.msrb.mxu2 %v9037_v53  ;;  %3166 = vmatpush.bf16.msrb.mxu3 %v9293_v36  ;;  %v9648_v53 = vld [vmem:[#allocation6 + $0x140] sm:$0xf] }
 0x269   :  { %v12218_v36 = vld [vmem:[#allocation6 + $0x15c] sm:$0xf0] }
 0x26a   :  { %v9649_v56 = vor.u32 %v12218_v36, %v9648_v53  ;;  %v12258_v53 = vld [vmem:[#allocation6 + $0x29c] sm:$0xf0]  ;;  %v12190_v36 = vld [vmem:[#allocation6 + $0x84] sm:$0xf] }
 0x26b   :  { %3128 = vmatpush.bf16.msrb.mxu0 %v9001_v62  ;;  %3141 = vmatpush.bf16.msrb.mxu1 %v9257_v26  ;;  %v9905_v26 = vor.u32 %v12282_v57, %v9904_v60  ;;  %v9554_v60 = vld [vmem:[#allocation6 + $0xa0] sm:$0xf0] }
 0x26c   :  { %3154 = vmatpush.bf16.msrb.mxu2 %v9005_v27  ;;  %3167 = vmatpush.bf16.msrb.mxu3 %v9261_v63  ;;  %v9653_v27 = vor.u32 %v12214_v58, %v9650_v59  ;;  %v12278_v63 = vld [vmem:[#allocation6 + $0x344] sm:$0xf] }
 0x26d   :  { %v12254_v57 = vld [vmem:[#allocation6 + $0x284] sm:$0xf] }
 0x26e   :  { %3129 = vmatmul.bf16.vlgmr.msrb.gmra.mxu0 %v13176_v48  ;;  %3142 = vmatmul.bf16.vlgmr.msrb.gmra.mxu1 %v13178_v49  ;;  %v9810_v58 = vld [vmem:[#allocation6 + $0x2a0] sm:$0xf0] }
 0x26f   :  { %3155 = vmatmul.bf16.vlgmr.msrb.gmra.mxu2 %v13176_v48  ;;  %3168 = vmatmul.bf16.vlgmr.msrb.gmra.mxu3 %v13178_v49  ;;  %v9713_v48 = vor.u32 %v12234_v17, %v9712_v16  ;;  %v12230_v49 = vld [vmem:[#allocation6 + $0x1c4] sm:$0xf]  ;;  %v9872_v16 = vld [vmem:[#allocation6 + $0x300] sm:$0xf] }
 0x270   :  { %v9717_v28 = vor.u32 %v12230_v49, %v9714_v23  ;;  %4015 = vmatpush.bf16.msra.mxu1 %v9969_v11  ;;  %4041 = vmatpush.bf16.msra.mxu3 %v9973_v29  ;;  %v12274_v17 = vld [vmem:[#allocation6 + $0x31c] sm:$0xf0]  ;;  %v9874_v49 = vld [vmem:[#allocation6 + $0x320] sm:$0xf0] }
 0x271   :  { %4002 = vmatpush.bf16.msra.mxu0 %v9713_v48  ;;  %v9618_v48 = vld [vmem:[#allocation6 + $0x120] sm:$0xf0]  ;;  %v9877_v25 = vor.u32 %v12270_v22, %v9874_v49  ;;  %v9584_v29 = vld [vmem:[#allocation6 + $0xc0] sm:$0xf] }
 0x272   :  { %4028 = vmatpush.bf16.msra.mxu2 %v9717_v28  ;;  %v9621_v61 = vor.u32 %v12206_v18, %v9618_v48  ;;  %v12178_v18 = vld [vmem:[#allocation6 + $0x1c] sm:$0xf0]  ;;  %v12174_v49 = vld [vmem:[#allocation6 + $0x4] sm:$0xf] }
 0x273   :  { %v9744_v48 = vld [vmem:[#allocation6 + $0x200] sm:$0xf] }
 0x274   :  { %4016 = vmatpush.bf16.msra.mxu1 %v9937_v44  ;;  %4042 = vmatpush.bf16.msra.mxu3 %v9941_v51  ;;  %v12194_v51 = vld [vmem:[#allocation6 + $0x9c] sm:$0xf0] }
 0x275   :  { %4003 = vmatpush.bf16.msra.mxu0 %v9681_v40  ;;  %v12242_v22 = vld [vmem:[#allocation6 + $0x21c] sm:$0xf0] }
 0x276   :  { %4029 = vmatpush.bf16.msra.mxu2 %v9685_v50 }
 0x278   :  { %4017 = vmatpush.bf16.msra.mxu1 %v9905_v26  ;;  %v9813_v26 = vor.u32 %v12254_v57, %v9810_v58 }
 0x279   :  { %4004 = vmatpush.bf16.msra.mxu0 %v9649_v56  ;;  %v9557_v56 = vor.u32 %v12190_v36, %v9554_v60  ;;  %v9944_v36 = vld [vmem:[#allocation6 + $0x388] sm:$0xf] }
 0x27a   :  { %4030 = vmatpush.bf16.msra.mxu2 %v9653_v27  ;;  %v9520_v27 = vld [vmem:[#allocation6 + $0x40] sm:$0xf] }
 0x27e   :  { %4031 = vmatpush.bf16.msra.mxu2 %v9621_v61 }
 0x2aa   :  { %v2974_v0 = vpop.f32.mrf.mxu0  ;;  %v2987_v1 = vpop.f32.mrf.mxu1 }
 0x2ab   :  { %v2988_v3 = vadd.f32 %v2987_v1, %v2974_v0  ;;  %v9906_v0 = vld [vmem:[#allocation6 + $0x360] sm:$0xf0] }
 0x2ad   :  { %v3202_v5 = vadd.f32 %v3198_v4, %v2988_v3  ;;  %v9909_v3 = vor.u32 %v12278_v63, %v9906_v0  ;;  %v12186_v63 = vld [vmem:[#allocation6 + $0x5c] sm:$0xf0] }
 0x2ae   :  { %v9776_v0 = vld [vmem:[#allocation6 + $0x240] sm:$0xf] }
 0x2af   :  { %v3206_v14 = vmul.f32 0.5, %v3202_v5  ;;  %4043 = vmatpush.bf16.msra.mxu3 %v9909_v3  ;;  %v9521_v3 = vor.u32 %v12186_v63, %v9520_v27  ;;  %v9690_v27 = vld [vmem:[#allocation6 + $0x1a8] sm:$0xf0] }
 0x2b0   :  { %v12287_v63 = vld [vmem:[#allocation6 + $0x38c] sm:$0xf] }
 0x2b1   :  { %v3000_v6 = vpop.f32.mrf.mxu2  ;;  %v3013_v8 = vpop.f32.mrf.mxu3  ;;  %12811 = vtanh.f32 %v3206_v14 }
 0x2b2   :  { %v3014_v10 = vadd.f32 %v3013_v8, %v3000_v6  ;;  %v2976_v12 = vpop.f32.mrf.mxu0  ;;  %v2989_v13 = vpop.f32.mrf.mxu1  ;;  %v3201_v8 = vld [vmem:[#allocation3 + $0x78] sm:$0xff] }
 0x2b3   :  { %4044 = vmatpush.bf16.msra.mxu3 %v9877_v25  ;;  %v9745_v25 = vor.u32 %v12242_v22, %v9744_v48  ;;  %v9624_v48 = vld [vmem:[#allocation6 + $0x108] sm:$0xf] }
 0x2b4   :  { %v3203_v15 = vadd.f32 %v3199_v9, %v3014_v10  ;;  %v9616_v9 = vld [vmem:[#allocation6 + $0x100] sm:$0xf]  ;;  %v12211_v22 = vld [vmem:[#allocation6 + $0x124] sm:$0xf0] }
 0x2b5   :  { %v12210_v10 = vld [vmem:[#allocation6 + $0x11c] sm:$0xf0] }
 0x2b6   :  { %v3210_v21 = vmul.f32 0.5, %v3203_v15  ;;  %v9617_v15 = vor.u32 %v12210_v10, %v9616_v9 }
 0x2b7   :  { %v12812_v52 = vpop.eup %12811 }
 0x2b8   :  { %12813 = vtanh.f32 %v3210_v21  ;;  %v3208_v1 = vmul.f32 0.5, %v12812_v52  ;;  %v9873_v21 = vor.u32 %v12274_v17, %v9872_v16  ;;  %4005 = vmatpush.bf16.msra.mxu0 %v9617_v15  ;;  %v9808_v52 = vld [vmem:[#allocation6 + $0x280] sm:$0xf] }
 0x2b9   :  { %v3002_v31 = vpop.f32.mrf.mxu2  ;;  %v3015_v32 = vpop.f32.mrf.mxu3  ;;  %v9488_v17 = vld [vmem:[#allocation6] sm:$0xf] }
 0x2ba   :  { %v3026_v2 = vpop.f32.mrf.mxu0  ;;  %v3039_v38 = vpop.f32.mrf.mxu1  ;;  %v3209_v11 = vadd.f32 0.5, %v3208_v1  ;;  %4018 = vmatpush.bf16.msra.mxu1 %v9873_v21  ;;  %v12202_v31 = vld [vmem:[#allocation6 + $0xdc] sm:$0xf0]  ;;  %v9489_v21 = vor.u32 %v12178_v18, %v9488_v17  ;;  %v9914_v18 = vld [vmem:[#allocation6 + $0x368] sm:$0xf0] }
 0x2bb   :  { %v3040_v43 = vadd.f32 %v3039_v38, %v3026_v2  ;;  %v9840_v32 = vld [vmem:[#allocation6 + $0x2c0] sm:$0xf]  ;;  %v9585_v2 = vor.u32 %v12202_v31, %v9584_v29  ;;  %v12238_v29 = vld [vmem:[#allocation6 + $0x204] sm:$0xf] }
 0x2bc   :  { %v12266_v38 = vld [vmem:[#allocation6 + $0x2dc] sm:$0xf0]  ;;  %v9746_v31 = vld [vmem:[#allocation6 + $0x220] sm:$0xf0] }
 0x2bd   :  { %v3204_v35 = vadd.f32 %v3200_v39, %v3040_v43  ;;  %v12198_v39 = vld [vmem:[#allocation6 + $0xc4] sm:$0xf]  ;;  %v9841_v40 = vor.u32 %v12266_v38, %v9840_v32  ;;  %4006 = vmatpush.bf16.msra.mxu0 %v9585_v2  ;;  %v9720_v2 = vld [vmem:[#allocation6 + $0x1c8] sm:$0xf] }
 0x2be   :  { %v12814_v54 = vpop.eup %12813  ;;  %v9842_v43 = vld [vmem:[#allocation6 + $0x2e0] sm:$0xf0]  ;;  %v9589_v45 = vor.u32 %v12198_v39, %v9586_v41  ;;  %v12235_v38 = vld [vmem:[#allocation6 + $0x1e4] sm:$0xf0] }
 0x2bf   :  { %v3212_v62 = vmul.f32 0.5, %v12814_v54  ;;  %12815 = vtanh.f32 %v3204_v35  ;;  %v9845_v46 = vor.u32 %v12262_v42, %v9842_v43  ;;  %4019 = vmatpush.bf16.msra.mxu1 %v9841_v40  ;;  %v9809_v54 = vor.u32 %v12258_v53, %v9808_v52  ;;  %v9976_v39 = vld [vmem:[#allocation6 + $0x3c8] sm:$0xf] }
 0x2c0   :  { %4032 = vmatpush.bf16.msra.mxu2 %v9589_v45  ;;  %v9721_v42 = vor.u32 %v12235_v38, %v9720_v2  ;;  %v12299_v43 = vld [vmem:[#allocation6 + $0x3e4] sm:$0xf0]  ;;  %v12231_v45 = vld [vmem:[#allocation6 + $0x1cc] sm:$0xf] }
 0x2c1   :  { %v3213_v4 = vadd.f32 0.5, %v3212_v62  ;;  %v3052_v5 = vpop.f32.mrf.mxu2  ;;  %v3065_v6 = vpop.f32.mrf.mxu3  ;;  %4045 = vmatpush.bf16.msra.mxu3 %v9845_v46  ;;  %v9722_v46 = vld [vmem:[#allocation6 + $0x1e8] sm:$0xf0]  ;;  %v9688_v52 = vld [vmem:[#allocation6 + $0x188] sm:$0xf] }
 0x2c2   :  { %v3066_v12 = vadd.f32 %v3065_v6, %v3052_v5  ;;  %v3028_v13 = vpop.f32.mrf.mxu0  ;;  %v3041_v14 = vpop.f32.mrf.mxu1  ;;  %v12182_v5 = vld [vmem:[#allocation6 + $0x44] sm:$0xf]  ;;  %v12227_v53 = vld [vmem:[#allocation6 + $0x1a4] sm:$0xf0] }
 0x2c3   :  { %v3219_v33 = vmul.f32 %v3213_v4, %v13165_v20  ;;  %v9552_v20 = vld [vmem:[#allocation6 + $0x80] sm:$0xf]  ;;  %4020 = vmatpush.bf16.msra.mxu1 %v9809_v54  ;;  %v9522_v6 = vld [vmem:[#allocation6 + $0x60] sm:$0xf0]  ;;  %v9689_v60 = vor.u32 %v12227_v53, %v9688_v52  ;;  %v12291_v54 = vld [vmem:[#allocation6 + $0x3a4] sm:$0xf0] }
 0x2c4   :  { %v3205_v23 = vadd.f32 %v3201_v8, %v3066_v12  ;;  %v9553_v35 = vor.u32 %v12194_v51, %v9552_v20  ;;  %4033 = vmatpush.bf16.msra.mxu2 %v9557_v56  ;;  %v12250_v4 = vld [vmem:[#allocation6 + $0x25c] sm:$0xf0]  ;;  %v9525_v10 = vor.u32 %v12182_v5, %v9522_v6  ;;  %v12246_v12 = vld [vmem:[#allocation6 + $0x244] sm:$0xf]  ;;  %v12295_v20 = vld [vmem:[#allocation6 + $0x3cc] sm:$0xf] }
 0x2c5   :  { %v12816_v28 = vpop.eup %12815  ;;  %4046 = vmatpush.bf16.msra.mxu3 %v9813_v26  ;;  %v9777_v9 = vor.u32 %v12250_v4, %v9776_v0  ;;  %v9778_v13 = vld [vmem:[#allocation6 + $0x260] sm:$0xf0]  ;;  %v9978_v51 = vld [vmem:[#allocation6 + $0x3e8] sm:$0xf0]  ;;  %v9945_v26 = vor.u32 %v12291_v54, %v9944_v36  ;;  %v9656_v4 = vld [vmem:[#allocation6 + $0x148] sm:$0xf] }
 0x2c6   :  { %v3220_v34 = vmul.f32 %v12816_v28, %v3209_v11  ;;  %v3215_v37 = vmul.f32 0.5, %v3205_v23  ;;  %4007 = vmatpush.bf16.msra.mxu0 %v9553_v35  ;;  %v9781_v15 = vor.u32 %v12246_v12, %v9778_v13  ;;  %v9490_v28 = vld [vmem:[#allocation6 + $0x20] sm:$0xf0]  ;;  %v9981_v35 = vor.u32 %v12295_v20, %v9978_v51  ;;  %v12223_v56 = vld [vmem:[#allocation6 + $0x18c] sm:$0xf] }
 0x2c7   :  { %4021 = vmatpush.bf16.msra.mxu1 %v9777_v9  ;;  %v9946_v0 = vld [vmem:[#allocation6 + $0x3a8] sm:$0xf0]  ;;  %v12219_v5 = vld [vmem:[#allocation6 + $0x164] sm:$0xf0] }
 0x2c8   :  { %v13197_v44 = vadd.f32 %v3220_v34, %v3219_v33  ;;  %12817 = vtanh.f32 %v3215_v37  ;;  %4034 = vmatpush.bf16.msra.mxu2 %v9525_v10  ;;  %v9493_v34 = vor.u32 %v12174_v49, %v9490_v28  ;;  %v9749_v37 = vor.u32 %v12238_v29, %v9746_v31  ;;  %v9912_v10 = vld [vmem:[#allocation6 + $0x348] sm:$0xf]  ;;  %v12215_v13 = vld [vmem:[#allocation6 + $0x14c] sm:$0xf] }
 0x2c9   :  { %v3054_v47 = vpop.f32.mrf.mxu2  ;;  %v3067_v50 = vpop.f32.mrf.mxu3  ;;  %4047 = vmatpush.bf16.msra.mxu3 %v9781_v15  ;;  %v9657_v9 = vor.u32 %v12219_v5, %v9656_v4  ;;  %v12283_v12 = vld [vmem:[#allocation6 + $0x364] sm:$0xf0]  ;;  %v12271_v31 = vld [vmem:[#allocation6 + $0x30c] sm:$0xf] }
 0x2ca   :  { %12819 = vtanh.f32 %v13197_v44  ;;  %4008 = vmatpush.bf16.msra.mxu0 %v9521_v3  ;;  %v9977_v47 = vor.u32 %v12299_v43, %v9976_v39  ;;  %v9725_v50 = vor.u32 %v12231_v45, %v9722_v46  ;;  %v9949_v3 = vor.u32 %v12287_v63, %v9946_v0  ;;  %v9880_v49 = vld [vmem:[#allocation6 + $0x308] sm:$0xf]  ;;  %v9594_v43 = vld [vmem:[#allocation6 + $0xe8] sm:$0xf0] }
 0x2cb   :  { %v13200_v59 = vpop.f32.mrf.mxu0  ;;  %v13202_v62 = vpop.f32.mrf.mxu1  ;;  %4022 = vmatpush.bf16.msra.mxu1 %v9745_v25  ;;  %v9626_v25 = vld [vmem:[#allocation6 + $0x128] sm:$0xf0]  ;;  %v12203_v2 = vld [vmem:[#allocation6 + $0xe4] sm:$0xf0] }
 0x2cc   :  { %4035 = vmatpush.bf16.msra.mxu2 %v9493_v34  ;;  %v3092_v57 = vadd.f32 %v13202_v62, %v13200_v59  ;;  %v9913_v59 = vor.u32 %v12283_v12, %v9912_v10  ;;  %v9658_v62 = vld [vmem:[#allocation6 + $0x168] sm:$0xf0]  ;;  %v9848_v38 = vld [vmem:[#allocation6 + $0x2c8] sm:$0xf] }
 0x2cd   :  { %4048 = vmatpush.bf16.msra.mxu3 %v9749_v37  ;;  %v9661_v17 = vor.u32 %v12215_v13, %v9658_v62  ;;  %v9592_v37 = vld [vmem:[#allocation6 + $0xc8] sm:$0xf]  ;;  %v12263_v45 = vld [vmem:[#allocation6 + $0x2cc] sm:$0xf] }
 0x2ce   :  { %v12818_v1 = vpop.eup %12817  ;;  %4009 = vmatpush.bf16.msra.mxu0 %v9489_v21  ;;  %v3173_v15 = vadd.f32 %v3092_v57, %v13126_v19  ;;  %v9593_v39 = vor.u32 %v12203_v2, %v9592_v37  ;;  %v9850_v46 = vld [vmem:[#allocation6 + $0x2e8] sm:$0xf0]  ;;  %v9560_v20 = vld [vmem:[#allocation6 + $0x88] sm:$0xf] }
 0x2cf   :  { %v3217_v8 = vmul.f32 0.5, %v12818_v1  ;;  %4067 = vmatpush.bf16.msrb.mxu1 %v9977_v47  ;;  %v9693_v1 = vor.u32 %v12223_v56, %v9690_v27  ;;  %v12195_v51 = vld [vmem:[#allocation6 + $0xa4] sm:$0xf0]  ;;  %v12191_v36 = vld [vmem:[#allocation6 + $0x8c] sm:$0xf] }
 0x2d0   :  { %v12820_v14 = vpop.eup %12819  ;;  %4080 = vmatpush.bf16.msrb.mxu2 %v9725_v50  ;;  %v9853_v50 = vor.u32 %v12263_v45, %v9850_v46  ;;  %v9816_v52 = vld [vmem:[#allocation6 + $0x288] sm:$0xf]  ;;  %v12247_v10 = vld [vmem:[#allocation6 + $0x24c] sm:$0xf] }
 0x2d1   :  { %v3218_v16 = vadd.f32 0.5, %v3217_v8  ;;  %4093 = vmatpush.bf16.msrb.mxu3 %v9981_v35  ;;  %v9561_v35 = vor.u32 %v12195_v51, %v9560_v20  ;;  %v12259_v53 = vld [vmem:[#allocation6 + $0x2a4] sm:$0xf0] }
 0x2d2   :  { %4054 = vmatpush.bf16.msrb.mxu0 %v9721_v42  ;;  %v9817_v56 = vor.u32 %v12259_v53, %v9816_v52  ;;  %v9528_v27 = vld [vmem:[#allocation6 + $0x48] sm:$0xf] }
 0x2d3   :  { %v3223_v11 = vmul.f32 %v12820_v14, %v3218_v16  ;;  %v3080_v32 = vpop.f32.mrf.mxu0  ;;  %v3093_v33 = vpop.f32.mrf.mxu1  ;;  %4068 = vmatpush.bf16.msrb.mxu1 %v9945_v26  ;;  %v12279_v14 = vld [vmem:[#allocation6 + $0x34c] sm:$0xf]  ;;  %v9784_v4 = vld [vmem:[#allocation6 + $0x248] sm:$0xf] }
 0x2d4   :  { %v3104_v23 = vpop.f32.mrf.mxu2  ;;  %v3117_v61 = vpop.f32.mrf.mxu3  ;;  %4081 = vmatpush.bf16.msrb.mxu2 %v9693_v1  ;;  %v9917_v21 = vor.u32 %v12279_v14, %v9914_v18  ;;  %v9882_v32 = vld [vmem:[#allocation6 + $0x328] sm:$0xf0]  ;;  %v3177_v33 = vmul.f32 0.5, %v3173_v15  ;;  %v12251_v5 = vld [vmem:[#allocation6 + $0x264] sm:$0xf0] }
 0x2d5   :  { %v3224_v40 = vpack.c.bf16 %v3223_v11, %v3223_v11  ;;  %v3118_v41 = vadd.f32 %v3117_v61, %v3104_v23  ;;  %4094 = vmatpush.bf16.msrb.mxu3 %v9949_v3  ;;  %v9625_v11 = vor.u32 %v12211_v22, %v9624_v48  ;;  %v12275_v23 = vld [vmem:[#allocation6 + $0x324] sm:$0xf0]  ;;  %v12207_v61 = vld [vmem:[#allocation6 + $0x10c] sm:$0xf]  ;;  %v9885_v34 = vor.u32 %v12271_v31, %v9882_v32 }
 0x2d6   :  { %4055 = vmatpush.bf16.msrb.mxu0 %v9689_v60  ;;  %v9881_v28 = vor.u32 %v12275_v23, %v9880_v49  ;;  %v9629_v29 = vor.u32 %v12207_v61, %v9626_v25  ;;  %v9562_v60 = vld [vmem:[#allocation6 + $0xa8] sm:$0xf0]  ;;  %v12187_v3 = vld [vmem:[#allocation6 + $0x64] sm:$0xf0]  ;;  %v9785_v15 = vor.u32 %v12251_v5, %v9784_v4 }
 0x2d7   :  { %3225 = vst [vmem:[#allocation2] sm:$0xf] %v3224_v40  ;;  %v3174_v58 = vadd.f32 %v3118_v41, %v13129_v30  ;;  %4069 = vmatpush.bf16.msrb.mxu1 %v9913_v59  ;;  %v12267_v40 = vld [vmem:[#allocation6 + $0x2e4] sm:$0xf0]  ;;  %v12199_v41 = vld [vmem:[#allocation6 + $0xcc] sm:$0xf]  ;;  %v9565_v57 = vor.u32 %v12191_v36, %v9562_v60  ;;  %v9529_v13 = vor.u32 %v12187_v3, %v9528_v27 }
 0x2d8   :  { %4082 = vmatpush.bf16.msrb.mxu2 %v9661_v17  ;;  %v9849_v42 = vor.u32 %v12267_v40, %v9848_v38  ;;  %v9597_v47 = vor.u32 %v12199_v41, %v9594_v43  ;;  %v9818_v26 = vld [vmem:[#allocation6 + $0x2a8] sm:$0xf0]  ;;  %v9496_v17 = vld [vmem:[#allocation6 + $0x8] sm:$0xf]  ;;  %v9986_v3 = vld [vmem:[#allocation6 + $0x3f0] sm:$0xf0] }
 0x2d9   :  { %v3181_v16 = vmul.f32 0.5, %v3174_v58  ;;  %4095 = vmatpush.bf16.msrb.mxu3 %v9917_v21  ;;  %v12255_v58 = vld [vmem:[#allocation6 + $0x28c] sm:$0xf]  ;;  %v12179_v18 = vld [vmem:[#allocation6 + $0x24] sm:$0xf0] }
 0x2da   :  { %4056 = vmatpush.bf16.msrb.mxu0 %v9657_v9  ;;  %v9821_v1 = vor.u32 %v12255_v58, %v9818_v26  ;;  %v9530_v9 = vld [vmem:[#allocation6 + $0x68] sm:$0xf0]  ;;  %v9752_v21 = vld [vmem:[#allocation6 + $0x208] sm:$0xf]  ;;  %v12300_v58 = vld [vmem:[#allocation6 + $0x3ec] sm:$0xf0] }
 0x2db   :  { %12821 = vtanh.f32 %v3181_v16  ;;  %4070 = vmatpush.bf16.msrb.mxu1 %v9881_v28  ;;  %v9786_v59 = vld [vmem:[#allocation6 + $0x268] sm:$0xf0]  ;;  %v12243_v22 = vld [vmem:[#allocation6 + $0x224] sm:$0xf0]  ;;  %v9497_v28 = vor.u32 %v12179_v18, %v9496_v17  ;;  %v12232_v26 = vld [vmem:[#allocation6 + $0x1d4] sm:$0xf] }
 0x2dc   :  { %v3106_v6 = vpop.f32.mrf.mxu2  ;;  %v3119_v8 = vpop.f32.mrf.mxu3  ;;  %4083 = vmatpush.bf16.msrb.mxu2 %v9629_v29  ;;  %12823 = vtanh.f32 %v3177_v33  ;;  %v9789_v48 = vor.u32 %v12247_v10, %v9786_v59  ;;  %v12175_v49 = vld [vmem:[#allocation6 + $0xc] sm:$0xf]  ;;  %v9753_v32 = vor.u32 %v12243_v22, %v9752_v21  ;;  %v12228_v10 = vld [vmem:[#allocation6 + $0x1ac] sm:$0xf0]  ;;  %v9954_v17 = vld [vmem:[#allocation6 + $0x3b0] sm:$0xf0] }
 0x2dd   :  { %4096 = vmatpush.bf16.msrb.mxu3 %v9885_v34  ;;  %v12183_v8 = vld [vmem:[#allocation6 + $0x4c] sm:$0xf]  ;;  %v9952_v59 = vld [vmem:[#allocation6 + $0x390] sm:$0xf] }
 0x2de   :  { %4057 = vmatpush.bf16.msrb.mxu0 %v9625_v11  ;;  %v9533_v16 = vor.u32 %v12183_v8, %v9530_v9  ;;  %v9498_v11 = vld [vmem:[#allocation6 + $0x28] sm:$0xf0]  ;;  %v9696_v9 = vld [vmem:[#allocation6 + $0x190] sm:$0xf] }
 0x2df   :  { %4071 = vmatpush.bf16.msrb.mxu1 %v9849_v42  ;;  %v12239_v23 = vld [vmem:[#allocation6 + $0x20c] sm:$0xf]  ;;  %v9501_v33 = vor.u32 %v12175_v49, %v9498_v11  ;;  %v9697_v18 = vor.u32 %v12228_v10, %v9696_v9  ;;  %v12220_v22 = vld [vmem:[#allocation6 + $0x16c] sm:$0xf0]  ;;  %v12256_v9 = vld [vmem:[#allocation6 + $0x294] sm:$0xf] }
 0x2e0   :  { %4084 = vmatpush.bf16.msrb.mxu2 %v9597_v47  ;;  %v9754_v61 = vld [vmem:[#allocation6 + $0x228] sm:$0xf0]  ;;  %v9826_v10 = vld [vmem:[#allocation6 + $0x2b0] sm:$0xf0] }
 0x2e1   :  { %v12822_v54 = vpop.eup %12821  ;;  %4097 = vmatpush.bf16.msrb.mxu3 %v9853_v50 }
 0x2e2   :  { %4058 = vmatpush.bf16.msrb.mxu0 %v9593_v39  ;;  %v3183_v12 = vmul.f32 0.5, %v12822_v54  ;;  %v12824_v62 = vpop.eup %12823  ;;  %v9757_v39 = vor.u32 %v12239_v23, %v9754_v61  ;;  %v9728_v54 = vld [vmem:[#allocation6 + $0x1d0] sm:$0xf] }
 0x2e3   :  { %4072 = vmatpush.bf16.msrb.mxu1 %v9817_v56  ;;  %v3179_v25 = vmul.f32 0.5, %v12824_v62  ;;  %v12236_v56 = vld [vmem:[#allocation6 + $0x1ec] sm:$0xf0] }
 0x2e4   :  { %4085 = vmatpush.bf16.msrb.mxu2 %v9565_v57  ;;  %v3184_v34 = vadd.f32 0.5, %v3183_v12  ;;  %v12292_v62 = vld [vmem:[#allocation6 + $0x3ac] sm:$0xf0] }
 0x2e5   :  { %4098 = vmatpush.bf16.msrb.mxu3 %v9821_v1  ;;  %v3180_v40 = vadd.f32 0.5, %v3179_v25  ;;  %v12296_v1 = vld [vmem:[#allocation6 + $0x3d4] sm:$0xf]  ;;  %v9953_v21 = vor.u32 %v12292_v62, %v9952_v59  ;;  %v9920_v23 = vld [vmem:[#allocation6 + $0x350] sm:$0xf] }
 0x2e6   :  { %4059 = vmatpush.bf16.msrb.mxu0 %v9561_v35  ;;  %v3190_v43 = vmul.f32 %v3184_v34, %v13173_v24  ;;  %v9984_v24 = vld [vmem:[#allocation6 + $0x3d0] sm:$0xf]  ;;  %v12216_v25 = vld [vmem:[#allocation6 + $0x154] sm:$0xf] }
 0x2e7   :  { %4073 = vmatpush.bf16.msrb.mxu1 %v9785_v15  ;;  %v9985_v8 = vor.u32 %v12300_v58, %v9984_v24  ;;  %v9698_v15 = vld [vmem:[#allocation6 + $0x1b0] sm:$0xf0]  ;;  %v12284_v61 = vld [vmem:[#allocation6 + $0x36c] sm:$0xf0] }
 0x2e8   :  { %4086 = vmatpush.bf16.msrb.mxu2 %v9533_v16  ;;  %v12288_v16 = vld [vmem:[#allocation6 + $0x394] sm:$0xf]  ;;  %v9632_v34 = vld [vmem:[#allocation6 + $0x110] sm:$0xf] }
 0x2e9   :  { %4099 = vmatpush.bf16.msrb.mxu3 %v9789_v48  ;;  %v9664_v48 = vld [vmem:[#allocation6 + $0x150] sm:$0xf]  ;;  %v9957_v11 = vor.u32 %v12288_v16, %v9954_v17  ;;  %v9858_v24 = vld [vmem:[#allocation6 + $0x2f0] sm:$0xf0] }
 0x2ea   :  { %4060 = vmatpush.bf16.msrb.mxu0 %v9529_v13  ;;  %v9989_v13 = vor.u32 %v12296_v1, %v9986_v3  ;;  %v9824_v1 = vld [vmem:[#allocation6 + $0x290] sm:$0xf] }
 0x2eb   :  { %v3130_v63 = vpop.f32.mrf.mxu0  ;;  %v3143_v0 = vpop.f32.mrf.mxu1  ;;  %4074 = vmatpush.bf16.msrb.mxu1 %v9753_v32  ;;  %v9665_v32 = vor.u32 %v12220_v22, %v9664_v48  ;;  %v12260_v3 = vld [vmem:[#allocation6 + $0x2ac] sm:$0xf0]  ;;  %v12248_v48 = vld [vmem:[#allocation6 + $0x254] sm:$0xf] }
 0x2ec   :  { %v3144_v6 = vadd.f32 %v3143_v0, %v3130_v63  ;;  %4087 = vmatpush.bf16.msrb.mxu2 %v9501_v33  ;;  %v9730_v0 = vld [vmem:[#allocation6 + $0x1f0] sm:$0xf0]  ;;  %v9921_v33 = vor.u32 %v12284_v61, %v9920_v23  ;;  %v9536_v59 = vld [vmem:[#allocation6 + $0x50] sm:$0xf] }
 0x2ed   :  { %4100 = vmatpush.bf16.msrb.mxu3 %v9757_v39  ;;  %v9733_v12 = vor.u32 %v12232_v26, %v9730_v0  ;;  %v9888_v39 = vld [vmem:[#allocation6 + $0x310] sm:$0xf]  ;;  %v9794_v22 = vld [vmem:[#allocation6 + $0x270] sm:$0xf0] }
 0x2ee   :  { %v3175_v14 = vadd.f32 %v3144_v6, %v13134_v55  ;;  %4061 = vmatpush.bf16.msrb.mxu0 %v9497_v28  ;;  %v9729_v6 = vor.u32 %v12236_v56, %v9728_v54  ;;  %v9666_v28 = vld [vmem:[#allocation6 + $0x170] sm:$0xf0]  ;;  %v9568_v26 = vld [vmem:[#allocation6 + $0x90] sm:$0xf] }
 0x2ef   :  { %v9602_v54 = vld [vmem:[#allocation6 + $0xf0] sm:$0xf0]  ;;  %v12188_v62 = vld [vmem:[#allocation6 + $0x6c] sm:$0xf0] }
 0x2f0   :  { %12825 = vtanh.f32 %v3175_v14  ;;  %v12224_v14 = vld [vmem:[#allocation6 + $0x194] sm:$0xf]  ;;  %v9792_v16 = vld [vmem:[#allocation6 + $0x250] sm:$0xf] }
 0x2f1   :  { %v9701_v49 = vor.u32 %v12224_v14, %v9698_v15  ;;  %v12264_v56 = vld [vmem:[#allocation6 + $0x2d4] sm:$0xf]  ;;  %v9829_v15 = vor.u32 %v12256_v9, %v9826_v10  ;;  %v12252_v17 = vld [vmem:[#allocation6 + $0x26c] sm:$0xf0]  ;;  %v9928_v9 = vld [vmem:[#allocation6 + $0x358] sm:$0xf] }
 0x2f2   :  { %v3156_v29 = vpop.f32.mrf.mxu2  ;;  %v3169_v31 = vpop.f32.mrf.mxu3  ;;  %v9861_v0 = vor.u32 %v12264_v56, %v9858_v24  ;;  %v9793_v23 = vor.u32 %v12252_v17, %v9792_v16  ;;  %v12180_v61 = vld [vmem:[#allocation6 + $0x2c] sm:$0xf0]  ;;  %v9960_v56 = vld [vmem:[#allocation6 + $0x398] sm:$0xf] }
 0x2f3   :  { %v3170_v37 = vadd.f32 %v3169_v31, %v3156_v29  ;;  %v3132_v2 = vpop.f32.mrf.mxu0  ;;  %v3145_v38 = vpop.f32.mrf.mxu1  ;;  %v12280_v29 = vld [vmem:[#allocation6 + $0x354] sm:$0xf]  ;;  %v12293_v24 = vld [vmem:[#allocation6 + $0x3b4] sm:$0xf0] }
 0x2f4   :  { %v9922_v31 = vld [vmem:[#allocation6 + $0x370] sm:$0xf0]  ;;  %v9669_v2 = vor.u32 %v12216_v25, %v9666_v28  ;;  %v9760_v25 = vld [vmem:[#allocation6 + $0x210] sm:$0xf]  ;;  %v12285_v10 = vld [vmem:[#allocation6 + $0x374] sm:$0xf0] }
 0x2f5   :  { %v3176_v41 = vadd.f32 %v3170_v37, %v13137_v7  ;;  %v12212_v37 = vld [vmem:[#allocation6 + $0x12c] sm:$0xf0]  ;;  %v9925_v38 = vor.u32 %v12280_v29, %v9922_v31  ;;  %v9797_v31 = vor.u32 %v12248_v48, %v9794_v22  ;;  %v9640_v16 = vld [vmem:[#allocation6 + $0x118] sm:$0xf] }
 0x2f6   :  { %v12826_v42 = vpop.eup %12825  ;;  %v12244_v28 = vld [vmem:[#allocation6 + $0x22c] sm:$0xf0]  ;;  %v12213_v17 = vld [vmem:[#allocation6 + $0x134] sm:$0xf0] }
 0x2f7   :  { %v3191_v45 = vmul.f32 %v12826_v42, %v3180_v40  ;;  %v3186_v46 = vmul.f32 0.5, %v3176_v41  ;;  %v12276_v40 = vld [vmem:[#allocation6 + $0x32c] sm:$0xf0]  ;;  %v12208_v41 = vld [vmem:[#allocation6 + $0x114] sm:$0xf] }
 0x2f8   :  { %v9634_v42 = vld [vmem:[#allocation6 + $0x130] sm:$0xf0]  ;;  %v9896_v48 = vld [vmem:[#allocation6 + $0x318] sm:$0xf] }
 0x2f9   :  { %v13211_v47 = vadd.f32 %v3191_v45, %v3190_v43  ;;  %12827 = vtanh.f32 %v3186_v46  ;;  %v12272_v43 = vld [vmem:[#allocation6 + $0x314] sm:$0xf]  ;;  %v9633_v46 = vor.u32 %v12212_v37, %v9632_v34  ;;  %v12277_v22 = vld [vmem:[#allocation6 + $0x334] sm:$0xf0] }
 0x2fa   :  { %v3158_v50 = vpop.f32.mrf.mxu2  ;;  %v3171_v20 = vpop.f32.mrf.mxu3  ;;  %v9890_v45 = vld [vmem:[#allocation6 + $0x330] sm:$0xf0] }
 0x2fb   :  { %12829 = vtanh.f32 %v13211_v47  ;;  %v9889_v50 = vor.u32 %v12276_v40, %v9888_v39  ;;  %v9600_v20 = vld [vmem:[#allocation6 + $0xd0] sm:$0xf]  ;;  %v12240_v34 = vld [vmem:[#allocation6 + $0x214] sm:$0xf]  ;;  %v9992_v39 = vld [vmem:[#allocation6 + $0x3d8] sm:$0xf] }
 0x2fc   :  { %v9762_v37 = vld [vmem:[#allocation6 + $0x230] sm:$0xf0]  ;;  %v12301_v40 = vld [vmem:[#allocation6 + $0x3f4] sm:$0xf0] }
 0x2ff   :  { %v12828_v51 = vpop.eup %12827 }
 0x300   :  { %v3188_v52 = vmul.f32 0.5, %v12828_v51  ;;  %v12204_v51 = vld [vmem:[#allocation6 + $0xec] sm:$0xf0] }
 0x301   :  { %v12830_v35 = vpop.eup %12829 }
 0x302   :  { %v3189_v53 = vadd.f32 0.5, %v3188_v52  ;;  %v9637_v52 = vor.u32 %v12208_v41, %v9634_v42  ;;  %v12233_v41 = vld [vmem:[#allocation6 + $0x1dc] sm:$0xf] }
 0x304   :  { %v3194_v36 = vmul.f32 %v12830_v35, %v3189_v53  ;;  %v9893_v35 = vor.u32 %v12272_v43, %v9890_v45  ;;  %v9856_v53 = vld [vmem:[#allocation6 + $0x2d0] sm:$0xf]  ;;  %v9761_v43 = vor.u32 %v12244_v28, %v9760_v25  ;;  %v9738_v45 = vld [vmem:[#allocation6 + $0x1f8] sm:$0xf0]  ;;  %v9641_v25 = vor.u32 %v12213_v17, %v9640_v16 }
 0x305   :  { %v9897_v28 = vor.u32 %v12277_v22, %v9896_v48  ;;  %v12241_v16 = vld [vmem:[#allocation6 + $0x21c] sm:$0xf] }
 0x306   :  { %v3195_v60 = vpack.c.bf16 %v3194_v36, %v3194_v36  ;;  %v12268_v36 = vld [vmem:[#allocation6 + $0x2ec] sm:$0xf0]  ;;  %v9770_v17 = vld [vmem:[#allocation6 + $0x238] sm:$0xf0] }
 0x307   :  { %v9857_v58 = vor.u32 %v12268_v36, %v9856_v53  ;;  %v9704_v53 = vld [vmem:[#allocation6 + $0x198] sm:$0xf]  ;;  %v9773_v22 = vor.u32 %v12241_v16, %v9770_v17  ;;  %v12342_v16 = vld [vmem:[#allocation6 + $0x144] sm:$0xf] }
 0x308   :  { %3196 = vst [vmem:[#allocation2 + $0x4] sm:$0xf] %v3195_v60  ;;  %v12200_v60 = vld [vmem:[#allocation6 + $0xd4] sm:$0xf]  ;;  %v12229_v36 = vld [vmem:[#allocation6 + $0x1b4] sm:$0xf0] }
 0x309   :  { %v10162_v17 = vld [vmem:[#allocation6 + $0x160] sm:$0xf0] }
 0x30f   :  { %v3226_v57 = vld [vmem:[#allocation2] sm:$0xff] }
 0x310   :  { %v3356_v27 = vunpack.c.l.b16 %v3226_v57  ;;  %v3357_v63 = vunpack.c.h.b16 %v3226_v57  ;;  %v9601_v57 = vor.u32 %v12204_v51, %v9600_v20  ;;  %v9765_v51 = vor.u32 %v12240_v34, %v9762_v37  ;;  %v9864_v34 = vld [vmem:[#allocation6 + $0x2d8] sm:$0xf] }
 0x311   :  { %v12269_v37 = vld [vmem:[#allocation6 + $0x2f4] sm:$0xf0] }
 0x312   :  { %v13214_v4 = vpack.c.b16 %v3356_v27, %v3356_v27  ;;  %v13216_v5 = vpack.c.b16 %v3357_v63, %v3357_v63  ;;  %v12196_v27 = vld [vmem:[#allocation6 + $0xac] sm:$0xf0]  ;;  %v9605_v63 = vor.u32 %v12200_v60, %v9602_v54  ;;  %v9741_v60 = vor.u32 %v12233_v41, %v9738_v45  ;;  %v12197_v45 = vld [vmem:[#allocation6 + $0xb4] sm:$0xf0] }
 0x314   :  { %4010 = vmatmul.bf16.vlgmr.msra.gmra.mxu0 %v13214_v4  ;;  %4023 = vmatmul.bf16.vlgmr.msra.gmra.mxu1 %v13216_v5 }
 0x315   :  { %4036 = vmatmul.bf16.vlgmr.msra.gmra.mxu2 %v13214_v4  ;;  %4049 = vmatmul.bf16.vlgmr.msra.gmra.mxu3 %v13216_v5 }
 0x316   :  { %4106 = vmatpush.bf16.msra.mxu0 %v9729_v6  ;;  %4119 = vmatpush.bf16.msra.mxu1 %v9985_v8  ;;  %v12192_v6 = vld [vmem:[#allocation6 + $0x94] sm:$0xf] }
 0x317   :  { %4132 = vmatpush.bf16.msra.mxu2 %v9733_v12  ;;  %4145 = vmatpush.bf16.msra.mxu3 %v9989_v13  ;;  %v9570_v8 = vld [vmem:[#allocation6 + $0xb0] sm:$0xf0]  ;;  %v9569_v12 = vor.u32 %v12196_v27, %v9568_v26  ;;  %v9825_v13 = vor.u32 %v12260_v3, %v9824_v1  ;;  %v12289_v26 = vld [vmem:[#allocation6 + $0x39c] sm:$0xf]  ;;  %v9672_v1 = vld [vmem:[#allocation6 + $0x158] sm:$0xf] }
 0x318   :  { %v9573_v14 = vor.u32 %v12192_v6, %v9570_v8  ;;  %v9962_v27 = vld [vmem:[#allocation6 + $0x3b8] sm:$0xf0]  ;;  %v12221_v3 = vld [vmem:[#allocation6 + $0x174] sm:$0xf0] }
 0x319   :  { %v9965_v8 = vor.u32 %v12289_v26, %v9962_v27  ;;  %v9800_v26 = vld [vmem:[#allocation6 + $0x258] sm:$0xf] }
 0x31a   :  { %4107 = vmatpush.bf16.msra.mxu0 %v9697_v18  ;;  %4120 = vmatpush.bf16.msra.mxu1 %v9953_v21  ;;  %v12184_v18 = vld [vmem:[#allocation6 + $0x54] sm:$0xf]  ;;  %v12253_v27 = vld [vmem:[#allocation6 + $0x274] sm:$0xf0] }
 0x31b   :  { %4133 = vmatpush.bf16.msra.mxu2 %v9701_v49  ;;  %4146 = vmatpush.bf16.msra.mxu3 %v9957_v11  ;;  %v9538_v21 = vld [vmem:[#allocation6 + $0x70] sm:$0xf0]  ;;  %v9504_v49 = vld [vmem:[#allocation6 + $0x10] sm:$0xf]  ;;  %v9537_v11 = vor.u32 %v12188_v62, %v9536_v59  ;;  %v12281_v59 = vld [vmem:[#allocation6 + $0x35c] sm:$0xf] }
 0x31c   :  { %v9541_v29 = vor.u32 %v12184_v18, %v9538_v21  ;;  %v9505_v42 = vor.u32 %v12180_v61, %v9504_v49  ;;  %v9930_v62 = vld [vmem:[#allocation6 + $0x378] sm:$0xf0] }
 0x31d   :  { %v9933_v21 = vor.u32 %v12281_v59, %v9930_v62  ;;  %v12209_v49 = vld [vmem:[#allocation6 + $0x11c] sm:$0xf]  ;;  %v9768_v59 = vld [vmem:[#allocation6 + $0x218] sm:$0xf] }
 0x31e   :  { %4108 = vmatpush.bf16.msra.mxu0 %v9665_v32  ;;  %4121 = vmatpush.bf16.msra.mxu1 %v9921_v33  ;;  %v12176_v32 = vld [vmem:[#allocation6 + $0x14] sm:$0xf]  ;;  %v9898_v61 = vld [vmem:[#allocation6 + $0x338] sm:$0xf0]  ;;  %v12245_v62 = vld [vmem:[#allocation6 + $0x234] sm:$0xf0] }
 0x31f   :  { %4134 = vmatpush.bf16.msra.mxu2 %v9669_v2  ;;  %4147 = vmatpush.bf16.msra.mxu3 %v9925_v38  ;;  %v9506_v33 = vld [vmem:[#allocation6 + $0x30] sm:$0xf0]  ;;  %v9736_v2 = vld [vmem:[#allocation6 + $0x1d8] sm:$0xf] }
 0x320   :  { %v12237_v38 = vld [vmem:[#allocation6 + $0x1f4] sm:$0xf0]  ;;  %v9509_v20 = vor.u32 %v12176_v32, %v9506_v33 }
 0x322   :  { %4109 = vmatpush.bf16.msra.mxu0 %v9633_v46  ;;  %4122 = vmatpush.bf16.msra.mxu1 %v9889_v50  ;;  %v12297_v46 = vld [vmem:[#allocation6 + $0x3dc] sm:$0xf] }
 0x323   :  { %4135 = vmatpush.bf16.msra.mxu2 %v9637_v52  ;;  %4148 = vmatpush.bf16.msra.mxu3 %v9893_v35  ;;  %v9994_v50 = vld [vmem:[#allocation6 + $0x3f8] sm:$0xf0]  ;;  %v9737_v52 = vor.u32 %v12237_v38, %v9736_v2  ;;  %v9993_v35 = vor.u32 %v12301_v40, %v9992_v39 }
 0x324   :  { %4062 = vmatmul.bf16.vlgmr.msrb.gmra.mxu0 %v13214_v4  ;;  %4075 = vmatmul.bf16.vlgmr.msrb.gmra.mxu1 %v13216_v5  ;;  %v9997_v54 = vor.u32 %v12297_v46, %v9994_v50  ;;  %v12201_v2 = vld [vmem:[#allocation6 + $0xdc] sm:$0xf] }
 0x325   :  { %4088 = vmatmul.bf16.vlgmr.msrb.gmra.mxu2 %v13214_v4  ;;  %4101 = vmatmul.bf16.vlgmr.msrb.gmra.mxu3 %v13216_v5  ;;  %v9610_v38 = vld [vmem:[#allocation6 + $0xf8] sm:$0xf0] }
 0x326   :  { %4110 = vmatpush.bf16.msra.mxu0 %v9601_v57  ;;  %4123 = vmatpush.bf16.msra.mxu1 %v9857_v58  ;;  %v12225_v57 = vld [vmem:[#allocation6 + $0x19c] sm:$0xf]  ;;  %v9613_v46 = vor.u32 %v12201_v2, %v9610_v38  ;;  %v10224_v38 = vld [vmem:[#allocation6 + $0x1c0] sm:$0xf] }
 0x327   :  { %4136 = vmatpush.bf16.msra.mxu2 %v9605_v63  ;;  %4149 = vmatpush.bf16.msra.mxu3 %v9861_v0  ;;  %v9706_v58 = vld [vmem:[#allocation6 + $0x1b8] sm:$0xf0]  ;;  %v9705_v63 = vor.u32 %v12229_v36, %v9704_v53  ;;  %v9961_v0 = vor.u32 %v12293_v24, %v9960_v56  ;;  %v9544_v56 = vld [vmem:[#allocation6 + $0x58] sm:$0xf] }
 0x328   :  { %v9709_v6 = vor.u32 %v12225_v57, %v9706_v58  ;;  %v12265_v39 = vld [vmem:[#allocation6 + $0x2dc] sm:$0xf]  ;;  %v12189_v24 = vld [vmem:[#allocation6 + $0x74] sm:$0xf0] }
 0x329   :  { %v9866_v40 = vld [vmem:[#allocation6 + $0x2f8] sm:$0xf0] }
 0x32a   :  { %4111 = vmatpush.bf16.msra.mxu0 %v9569_v12  ;;  %4124 = vmatpush.bf16.msra.mxu1 %v9825_v13  ;;  %v12217_v12 = vld [vmem:[#allocation6 + $0x15c] sm:$0xf]  ;;  %v9869_v50 = vor.u32 %v12265_v39, %v9866_v40  ;;  %v12362_v39 = vld [vmem:[#allocation6 + $0x1dc] sm:$0xf0] }
 0x32b   :  { %4137 = vmatpush.bf16.msra.mxu2 %v9573_v14  ;;  %4150 = vmatpush.bf16.msra.mxu3 %v9829_v15  ;;  %v9674_v13 = vld [vmem:[#allocation6 + $0x178] sm:$0xf0]  ;;  %v9673_v14 = vor.u32 %v12221_v3, %v9672_v1  ;;  %v9929_v15 = vor.u32 %v12285_v10, %v9928_v9  ;;  %v9512_v9 = vld [vmem:[#allocation6 + $0x18] sm:$0xf]  ;;  %v10480_v40 = vld [vmem:[#allocation6 + $0x3c0] sm:$0xf] }
 0x32c   :  { %v9677_v18 = vor.u32 %v12217_v12, %v9674_v13  ;;  %v12257_v53 = vld [vmem:[#allocation6 + $0x29c] sm:$0xf]  ;;  %v12181_v10 = vld [vmem:[#allocation6 + $0x34] sm:$0xf0] }
 0x32d   :  { %v9834_v36 = vld [vmem:[#allocation6 + $0x2b8] sm:$0xf0] }
 0x32e   :  { %4112 = vmatpush.bf16.msra.mxu0 %v9537_v11  ;;  %4125 = vmatpush.bf16.msra.mxu1 %v9793_v23  ;;  %v9642_v11 = vld [vmem:[#allocation6 + $0x138] sm:$0xf0]  ;;  %v9837_v58 = vor.u32 %v12257_v53, %v9834_v36  ;;  %v10192_v53 = vld [vmem:[#allocation6 + $0x180] sm:$0xf] }
 0x32f   :  { %4138 = vmatpush.bf16.msra.mxu2 %v9541_v29  ;;  %4151 = vmatpush.bf16.msra.mxu3 %v9797_v31  ;;  %v12273_v23 = vld [vmem:[#allocation6 + $0x31c] sm:$0xf]  ;;  %v9608_v29 = vld [vmem:[#allocation6 + $0xd8] sm:$0xf]  ;;  %v9645_v32 = vor.u32 %v12209_v49, %v9642_v11  ;;  %v12354_v36 = vld [vmem:[#allocation6 + $0x19c] sm:$0xf0] }
 0x330   :  { %v12205_v31 = vld [vmem:[#allocation6 + $0xf4] sm:$0xf0]  ;;  %v9901_v33 = vor.u32 %v12273_v23, %v9898_v61  ;;  %v12249_v1 = vld [vmem:[#allocation6 + $0x25c] sm:$0xf]  ;;  %v4235_v61 = vld [vmem:[#allocation3 + $0x80] sm:$0xff] }
 0x331   :  { %v9609_v41 = vor.u32 %v12205_v31, %v9608_v29  ;;  %v9802_v3 = vld [vmem:[#allocation6 + $0x278] sm:$0xf0]  ;;  %v4236_v31 = vld [vmem:[#allocation3 + $0x88] sm:$0xff] }
 0x332   :  { %4113 = vmatpush.bf16.msra.mxu0 %v9505_v42  ;;  %4126 = vmatpush.bf16.msra.mxu1 %v9761_v43  ;;  %v9865_v42 = vor.u32 %v12269_v37, %v9864_v34  ;;  %v9576_v43 = vld [vmem:[#allocation6 + $0x98] sm:$0xf]  ;;  %v9805_v13 = vor.u32 %v12249_v1, %v9802_v3  ;;  %v12414_v1 = vld [vmem:[#allocation6 + $0x384] sm:$0xf] }
 0x333   :  { %4139 = vmatpush.bf16.msra.mxu2 %v9509_v20  ;;  %4152 = vmatpush.bf16.msra.mxu3 %v9765_v51  ;;  %v9832_v20 = vld [vmem:[#allocation6 + $0x298] sm:$0xf]  ;;  %v10450_v3 = vld [vmem:[#allocation6 + $0x3a0] sm:$0xf0] }
 0x334   :  { %v12261_v51 = vld [vmem:[#allocation6 + $0x2b4] sm:$0xf0] }
 0x335   :  { %4114 = vmatmul.bf16.vlgmr.msra.gmra.mxu0 %v13214_v4  ;;  %4127 = vmatmul.bf16.vlgmr.msra.gmra.mxu1 %v13216_v5 }
 0x336   :  { %4158 = vmatpush.bf16.msrb.mxu0 %v9737_v52  ;;  %4171 = vmatpush.bf16.msrb.mxu1 %v9993_v35  ;;  %v12193_v52 = vld [vmem:[#allocation6 + $0x9c] sm:$0xf] }
 0x337   :  { %4184 = vmatpush.bf16.msrb.mxu2 %v9741_v60  ;;  %4197 = vmatpush.bf16.msrb.mxu3 %v9997_v54  ;;  %v9578_v35 = vld [vmem:[#allocation6 + $0xb8] sm:$0xf0]  ;;  %v9577_v60 = vor.u32 %v12197_v45, %v9576_v43  ;;  %v9833_v54 = vor.u32 %v12261_v51, %v9832_v20  ;;  %v10226_v45 = vld [vmem:[#allocation6 + $0x1e0] sm:$0xf0] }
 0x338   :  { %4140 = vmatmul.bf16.vlgmr.msra.gmra.mxu2 %v13214_v4  ;;  %4153 = vmatmul.bf16.vlgmr.msra.gmra.mxu3 %v13216_v5  ;;  %v9581_v57 = vor.u32 %v12193_v52, %v9578_v35 }
 0x33a   :  { %4159 = vmatpush.bf16.msrb.mxu0 %v9705_v63  ;;  %4172 = vmatpush.bf16.msrb.mxu1 %v9961_v0  ;;  %v12185_v63 = vld [vmem:[#allocation6 + $0x5c] sm:$0xf] }
 0x33b   :  { %4185 = vmatpush.bf16.msrb.mxu2 %v9709_v6  ;;  %4198 = vmatpush.bf16.msrb.mxu3 %v9965_v8  ;;  %v9546_v0 = vld [vmem:[#allocation6 + $0x78] sm:$0xf0]  ;;  %v9545_v6 = vor.u32 %v12189_v24, %v9544_v56  ;;  %v9801_v8 = vor.u32 %v12253_v27, %v9800_v26  ;;  %v4237_v24 = vld [vmem:[#allocation3 + $0x90] sm:$0xff]  ;;  %v12350_v26 = vld [vmem:[#allocation6 + $0x184] sm:$0xf] }
 0x33c   :  { %v9549_v12 = vor.u32 %v12185_v63, %v9546_v0  ;;  %v10194_v0 = vld [vmem:[#allocation6 + $0x1a0] sm:$0xf0] }
 0x33e   :  { %4160 = vmatpush.bf16.msrb.mxu0 %v9673_v14  ;;  %4173 = vmatpush.bf16.msrb.mxu1 %v9929_v15  ;;  %v12177_v14 = vld [vmem:[#allocation6 + $0x1c] sm:$0xf] }
 0x33f   :  { %4186 = vmatpush.bf16.msrb.mxu2 %v9677_v18  ;;  %4199 = vmatpush.bf16.msrb.mxu3 %v9933_v21  ;;  %v9514_v15 = vld [vmem:[#allocation6 + $0x38] sm:$0xf0]  ;;  %v9513_v18 = vor.u32 %v12181_v10, %v9512_v9  ;;  %v9769_v21 = vor.u32 %v12245_v62, %v9768_v59  ;;  %v10416_v59 = vld [vmem:[#allocation6 + $0x340] sm:$0xf] }
 0x340   :  { %v9517_v48 = vor.u32 %v12177_v14, %v9514_v15  ;;  %v12410_v15 = vld [vmem:[#allocation6 + $0x35c] sm:$0xf0] }
 0x342   :  { %4161 = vmatpush.bf16.msrb.mxu0 %v9641_v25  ;;  %4174 = vmatpush.bf16.msrb.mxu1 %v9897_v28 }
 0x343   :  { %4187 = vmatpush.bf16.msrb.mxu2 %v9645_v32  ;;  %4200 = vmatpush.bf16.msrb.mxu3 %v9901_v33 }
 0x346   :  { %4162 = vmatpush.bf16.msrb.mxu0 %v9609_v41  ;;  %4175 = vmatpush.bf16.msrb.mxu1 %v9865_v42  ;;  %v12426_v42 = vld [vmem:[#allocation6 + $0x3dc] sm:$0xf0] }
 0x347   :  { %4188 = vmatpush.bf16.msrb.mxu2 %v9613_v46  ;;  %4201 = vmatpush.bf16.msrb.mxu3 %v9869_v50  ;;  %v10481_v43 = vor.u32 %v12426_v42, %v10480_v40  ;;  %v12422_v46 = vld [vmem:[#allocation6 + $0x3c4] sm:$0xf] }
 0x348   :  { %v10482_v50 = vld [vmem:[#allocation6 + $0x3e0] sm:$0xf0] }
 0x349   :  { %v10485_v51 = vor.u32 %v12422_v46, %v10482_v50  ;;  %v12334_v40 = vld [vmem:[#allocation6 + $0x104] sm:$0xf] }
 0x34a   :  { %4163 = vmatpush.bf16.msrb.mxu0 %v9577_v60  ;;  %4176 = vmatpush.bf16.msrb.mxu1 %v9833_v54  ;;  %v10448_v60 = vld [vmem:[#allocation6 + $0x380] sm:$0xf]  ;;  %v12398_v42 = vld [vmem:[#allocation6 + $0x304] sm:$0xf] }
 0x34b   :  { %4189 = vmatpush.bf16.msrb.mxu2 %v9581_v57  ;;  %4202 = vmatpush.bf16.msrb.mxu3 %v9837_v58  ;;  %v10193_v57 = vor.u32 %v12354_v36, %v10192_v53  ;;  %v12418_v58 = vld [vmem:[#allocation6 + $0x39c] sm:$0xf0] }
 0x34c   :  { %v10449_v63 = vor.u32 %v12418_v58, %v10448_v60  ;;  %v10098_v58 = vld [vmem:[#allocation6 + $0xe0] sm:$0xf0] }
 0x34e   :  { %4164 = vmatpush.bf16.msrb.mxu0 %v9545_v6  ;;  %4177 = vmatpush.bf16.msrb.mxu1 %v9801_v8  ;;  %v10197_v6 = vor.u32 %v12350_v26, %v10194_v0  ;;  %v10453_v8 = vor.u32 %v12414_v1, %v10450_v3  ;;  %v12390_v26 = vld [vmem:[#allocation6 + $0x2c4] sm:$0xf] }
 0x34f   :  { %4190 = vmatpush.bf16.msrb.mxu2 %v9549_v12  ;;  %4203 = vmatpush.bf16.msrb.mxu3 %v9805_v13  ;;  %v10160_v12 = vld [vmem:[#allocation6 + $0x140] sm:$0xf] }
 0x350   :  { %v12346_v13 = vld [vmem:[#allocation6 + $0x15c] sm:$0xf0] }
 0x351   :  { %v10161_v14 = vor.u32 %v12346_v13, %v10160_v12  ;;  %v12386_v12 = vld [vmem:[#allocation6 + $0x29c] sm:$0xf0]  ;;  %v12318_v13 = vld [vmem:[#allocation6 + $0x84] sm:$0xf] }
 0x352   :  { %4165 = vmatpush.bf16.msrb.mxu0 %v9513_v18  ;;  %4178 = vmatpush.bf16.msrb.mxu1 %v9769_v21  ;;  %v10417_v21 = vor.u32 %v12410_v15, %v10416_v59  ;;  %v10066_v59 = vld [vmem:[#allocation6 + $0xa0] sm:$0xf0] }
 0x353   :  { %4191 = vmatpush.bf16.msrb.mxu2 %v9517_v48  ;;  %4204 = vmatpush.bf16.msrb.mxu3 %v9773_v22  ;;  %v10165_v48 = vor.u32 %v12342_v16, %v10162_v17  ;;  %v12406_v22 = vld [vmem:[#allocation6 + $0x344] sm:$0xf] }
 0x354   :  { %v12382_v15 = vld [vmem:[#allocation6 + $0x284] sm:$0xf] }
 0x355   :  { %4166 = vmatmul.bf16.vlgmr.msrb.gmra.mxu0 %v13214_v4  ;;  %4179 = vmatmul.bf16.vlgmr.msrb.gmra.mxu1 %v13216_v5  ;;  %v10322_v16 = vld [vmem:[#allocation6 + $0x2a0] sm:$0xf0] }
 0x356   :  { %4192 = vmatmul.bf16.vlgmr.msrb.gmra.mxu2 %v13214_v4  ;;  %4205 = vmatmul.bf16.vlgmr.msrb.gmra.mxu3 %v13216_v5  ;;  %v10225_v4 = vor.u32 %v12362_v39, %v10224_v38  ;;  %v12358_v5 = vld [vmem:[#allocation6 + $0x1c4] sm:$0xf]  ;;  %v10384_v38 = vld [vmem:[#allocation6 + $0x300] sm:$0xf] }
 0x357   :  { %v10229_v20 = vor.u32 %v12358_v5, %v10226_v45  ;;  %5052 = vmatpush.bf16.msra.mxu1 %v10481_v43  ;;  %5078 = vmatpush.bf16.msra.mxu3 %v10485_v51  ;;  %v12402_v39 = vld [vmem:[#allocation6 + $0x31c] sm:$0xf0]  ;;  %v10386_v5 = vld [vmem:[#allocation6 + $0x320] sm:$0xf0] }
 0x358   :  { %5039 = vmatpush.bf16.msra.mxu0 %v10225_v4  ;;  %v10130_v4 = vld [vmem:[#allocation6 + $0x120] sm:$0xf0]  ;;  %v10389_v50 = vor.u32 %v12398_v42, %v10386_v5  ;;  %v10096_v51 = vld [vmem:[#allocation6 + $0xc0] sm:$0xf] }
 0x359   :  { %5065 = vmatpush.bf16.msra.mxu2 %v10229_v20  ;;  %v10133_v46 = vor.u32 %v12334_v40, %v10130_v4  ;;  %v12306_v40 = vld [vmem:[#allocation6 + $0x1c] sm:$0xf0]  ;;  %v12302_v5 = vld [vmem:[#allocation6 + $0x4] sm:$0xf] }
 0x35a   :  { %v10256_v4 = vld [vmem:[#allocation6 + $0x200] sm:$0xf] }
 0x35b   :  { %5053 = vmatpush.bf16.msra.mxu1 %v10449_v63  ;;  %5079 = vmatpush.bf16.msra.mxu3 %v10453_v8  ;;  %v12322_v8 = vld [vmem:[#allocation6 + $0x9c] sm:$0xf0] }
 0x35c   :  { %5040 = vmatpush.bf16.msra.mxu0 %v10193_v57  ;;  %v12370_v42 = vld [vmem:[#allocation6 + $0x21c] sm:$0xf0] }
 0x35d   :  { %5066 = vmatpush.bf16.msra.mxu2 %v10197_v6 }
 0x35f   :  { %5054 = vmatpush.bf16.msra.mxu1 %v10417_v21  ;;  %v10325_v21 = vor.u32 %v12382_v15, %v10322_v16 }
 0x360   :  { %5041 = vmatpush.bf16.msra.mxu0 %v10161_v14  ;;  %v10069_v14 = vor.u32 %v12318_v13, %v10066_v59  ;;  %v10456_v13 = vld [vmem:[#allocation6 + $0x388] sm:$0xf] }
 0x361   :  { %5067 = vmatpush.bf16.msra.mxu2 %v10165_v48  ;;  %v10032_v48 = vld [vmem:[#allocation6 + $0x40] sm:$0xf] }
 0x365   :  { %5068 = vmatpush.bf16.msra.mxu2 %v10133_v46 }
 0x391   :  { %v4011_v49 = vpop.f32.mrf.mxu0  ;;  %v4024_v11 = vpop.f32.mrf.mxu1 }
 0x392   :  { %v4025_v23 = vadd.f32 %v4024_v11, %v4011_v49  ;;  %v10418_v49 = vld [vmem:[#allocation6 + $0x360] sm:$0xf0] }
 0x394   :  { %v4239_v25 = vadd.f32 %v4235_v61, %v4025_v23  ;;  %v10421_v23 = vor.u32 %v12406_v22, %v10418_v49  ;;  %v12314_v22 = vld [vmem:[#allocation6 + $0x5c] sm:$0xf0] }
 0x395   :  { %v10288_v49 = vld [vmem:[#allocation6 + $0x240] sm:$0xf] }
 0x396   :  { %v4243_v37 = vmul.f32 0.5, %v4239_v25  ;;  %5080 = vmatpush.bf16.msra.mxu3 %v10421_v23  ;;  %v10033_v23 = vor.u32 %v12314_v22, %v10032_v48  ;;  %v10202_v48 = vld [vmem:[#allocation6 + $0x1a8] sm:$0xf0] }
 0x397   :  { %v12415_v22 = vld [vmem:[#allocation6 + $0x38c] sm:$0xf] }
 0x398   :  { %v4037_v28 = vpop.f32.mrf.mxu2  ;;  %v4050_v29 = vpop.f32.mrf.mxu3  ;;  %12831 = vtanh.f32 %v4243_v37 }
 0x399   :  { %v4051_v32 = vadd.f32 %v4050_v29, %v4037_v28  ;;  %v4013_v33 = vpop.f32.mrf.mxu0  ;;  %v4026_v34 = vpop.f32.mrf.mxu1  ;;  %v4238_v29 = vld [vmem:[#allocation3 + $0x98] sm:$0xff] }
 0x39a   :  { %5081 = vmatpush.bf16.msra.mxu3 %v10389_v50  ;;  %v10257_v50 = vor.u32 %v12370_v42, %v10256_v4  ;;  %v10136_v4 = vld [vmem:[#allocation6 + $0x108] sm:$0xf] }
 0x39b   :  { %v4240_v2 = vadd.f32 %v4236_v31, %v4051_v32  ;;  %v10128_v31 = vld [vmem:[#allocation6 + $0x100] sm:$0xf]  ;;  %v12339_v42 = vld [vmem:[#allocation6 + $0x124] sm:$0xf0] }
 0x39c   :  { %v12338_v32 = vld [vmem:[#allocation6 + $0x11c] sm:$0xf0] }
 0x39d   :  { %v4247_v41 = vmul.f32 0.5, %v4240_v2  ;;  %v10129_v2 = vor.u32 %v12338_v32, %v10128_v31 }
 0x39e   :  { %v12832_v9 = vpop.eup %12831 }
 0x39f   :  { %12833 = vtanh.f32 %v4247_v41  ;;  %v4245_v11 = vmul.f32 0.5, %v12832_v9  ;;  %v10385_v41 = vor.u32 %v12402_v39, %v10384_v38  ;;  %5042 = vmatpush.bf16.msra.mxu0 %v10129_v2  ;;  %v10320_v9 = vld [vmem:[#allocation6 + $0x280] sm:$0xf] }
 0x3a0   :  { %v4039_v52 = vpop.f32.mrf.mxu2  ;;  %v4052_v35 = vpop.f32.mrf.mxu3  ;;  %v10000_v39 = vld [vmem:[#allocation6] sm:$0xf] }
 0x3a1   :  { %v4063_v54 = vpop.f32.mrf.mxu0  ;;  %v4076_v56 = vpop.f32.mrf.mxu1  ;;  %v4246_v43 = vadd.f32 0.5, %v4245_v11  ;;  %5055 = vmatpush.bf16.msra.mxu1 %v10385_v41  ;;  %v12330_v52 = vld [vmem:[#allocation6 + $0xdc] sm:$0xf0]  ;;  %v10001_v41 = vor.u32 %v12306_v40, %v10000_v39  ;;  %v10426_v40 = vld [vmem:[#allocation6 + $0x368] sm:$0xf0] }
 0x3a2   :  { %v4077_v27 = vadd.f32 %v4076_v56, %v4063_v54  ;;  %v10352_v35 = vld [vmem:[#allocation6 + $0x2c0] sm:$0xf]  ;;  %v10097_v54 = vor.u32 %v12330_v52, %v10096_v51  ;;  %v12366_v51 = vld [vmem:[#allocation6 + $0x204] sm:$0xf] }
 0x3a3   :  { %v12394_v56 = vld [vmem:[#allocation6 + $0x2dc] sm:$0xf0]  ;;  %v10258_v52 = vld [vmem:[#allocation6 + $0x220] sm:$0xf0] }
 0x3a4   :  { %v4241_v10 = vadd.f32 %v4237_v24, %v4077_v27  ;;  %v12326_v24 = vld [vmem:[#allocation6 + $0xc4] sm:$0xf]  ;;  %v10353_v57 = vor.u32 %v12394_v56, %v10352_v35  ;;  %5043 = vmatpush.bf16.msra.mxu0 %v10097_v54  ;;  %v10232_v54 = vld [vmem:[#allocation6 + $0x1c8] sm:$0xf] }
 0x3a5   :  { %v12834_v62 = vpop.eup %12833  ;;  %v10354_v27 = vld [vmem:[#allocation6 + $0x2e0] sm:$0xf0]  ;;  %v10101_v0 = vor.u32 %v12326_v24, %v10098_v58  ;;  %v12363_v56 = vld [vmem:[#allocation6 + $0x1e4] sm:$0xf0] }
 0x3a6   :  { %v4249_v18 = vmul.f32 0.5, %v12834_v62  ;;  %12835 = vtanh.f32 %v4241_v10  ;;  %v10357_v1 = vor.u32 %v12390_v26, %v10354_v27  ;;  %5056 = vmatpush.bf16.msra.mxu1 %v10353_v57  ;;  %v10321_v62 = vor.u32 %v12386_v12, %v10320_v9  ;;  %v10488_v24 = vld [vmem:[#allocation6 + $0x3c8] sm:$0xf] }
 0x3a7   :  { %5069 = vmatpush.bf16.msra.mxu2 %v10101_v0  ;;  %v10233_v26 = vor.u32 %v12363_v56, %v10232_v54  ;;  %v12427_v27 = vld [vmem:[#allocation6 + $0x3e4] sm:$0xf0]  ;;  %v12359_v0 = vld [vmem:[#allocation6 + $0x1cc] sm:$0xf] }
 0x3a8   :  { %v4250_v61 = vadd.f32 0.5, %v4249_v18  ;;  %v4089_v25 = vpop.f32.mrf.mxu2  ;;  %v4102_v28 = vpop.f32.mrf.mxu3  ;;  %5082 = vmatpush.bf16.msra.mxu3 %v10357_v1  ;;  %v10234_v1 = vld [vmem:[#allocation6 + $0x1e8] sm:$0xf0]  ;;  %v10200_v9 = vld [vmem:[#allocation6 + $0x188] sm:$0xf] }
 0x3a9   :  { %v4103_v33 = vadd.f32 %v4102_v28, %v4089_v25  ;;  %v4065_v34 = vpop.f32.mrf.mxu0  ;;  %v4078_v37 = vpop.f32.mrf.mxu1  ;;  %v12310_v25 = vld [vmem:[#allocation6 + $0x44] sm:$0xf]  ;;  %v12355_v12 = vld [vmem:[#allocation6 + $0x1a4] sm:$0xf0] }
 0x3aa   :  { %v4256_v53 = vmul.f32 %v4250_v61, %v13197_v44  ;;  %v10064_v44 = vld [vmem:[#allocation6 + $0x80] sm:$0xf]  ;;  %5057 = vmatpush.bf16.msra.mxu1 %v10321_v62  ;;  %v10034_v28 = vld [vmem:[#allocation6 + $0x60] sm:$0xf0]  ;;  %v10201_v59 = vor.u32 %v12355_v12, %v10200_v9  ;;  %v12419_v62 = vld [vmem:[#allocation6 + $0x3a4] sm:$0xf0] }
 0x3ab   :  { %v4242_v45 = vadd.f32 %v4238_v29, %v4103_v33  ;;  %v10065_v10 = vor.u32 %v12322_v8, %v10064_v44  ;;  %5070 = vmatpush.bf16.msra.mxu2 %v10069_v14  ;;  %v12378_v61 = vld [vmem:[#allocation6 + $0x25c] sm:$0xf0]  ;;  %v10037_v32 = vor.u32 %v12310_v25, %v10034_v28  ;;  %v12374_v33 = vld [vmem:[#allocation6 + $0x244] sm:$0xf]  ;;  %v12423_v44 = vld [vmem:[#allocation6 + $0x3cc] sm:$0xf] }
 0x3ac   :  { %v12836_v20 = vpop.eup %12835  ;;  %5083 = vmatpush.bf16.msra.mxu3 %v10325_v21  ;;  %v10289_v31 = vor.u32 %v12378_v61, %v10288_v49  ;;  %v10290_v34 = vld [vmem:[#allocation6 + $0x260] sm:$0xf0]  ;;  %v10490_v8 = vld [vmem:[#allocation6 + $0x3e8] sm:$0xf0]  ;;  %v10457_v21 = vor.u32 %v12419_v62, %v10456_v13  ;;  %v10168_v61 = vld [vmem:[#allocation6 + $0x148] sm:$0xf] }
 0x3ad   :  { %v4257_v36 = vmul.f32 %v12836_v20, %v4246_v43  ;;  %v4252_v60 = vmul.f32 0.5, %v4242_v45  ;;  %5044 = vmatpush.bf16.msra.mxu0 %v10065_v10  ;;  %v10293_v2 = vor.u32 %v12374_v33, %v10290_v34  ;;  %v10002_v20 = vld [vmem:[#allocation6 + $0x20] sm:$0xf0]  ;;  %v10493_v10 = vor.u32 %v12423_v44, %v10490_v8  ;;  %v12351_v14 = vld [vmem:[#allocation6 + $0x18c] sm:$0xf] }
 0x3ae   :  { %5058 = vmatpush.bf16.msra.mxu1 %v10289_v31  ;;  %v10458_v49 = vld [vmem:[#allocation6 + $0x3a8] sm:$0xf0]  ;;  %v12347_v25 = vld [vmem:[#allocation6 + $0x164] sm:$0xf0] }
 0x3af   :  { %v13235_v63 = vadd.f32 %v4257_v36, %v4256_v53  ;;  %12837 = vtanh.f32 %v4252_v60  ;;  %5071 = vmatpush.bf16.msra.mxu2 %v10037_v32  ;;  %v10005_v36 = vor.u32 %v12302_v5, %v10002_v20  ;;  %v10261_v60 = vor.u32 %v12366_v51, %v10258_v52  ;;  %v10424_v32 = vld [vmem:[#allocation6 + $0x348] sm:$0xf]  ;;  %v12343_v34 = vld [vmem:[#allocation6 + $0x14c] sm:$0xf] }
 0x3b0   :  { %v4091_v3 = vpop.f32.mrf.mxu2  ;;  %v4104_v6 = vpop.f32.mrf.mxu3  ;;  %5084 = vmatpush.bf16.msra.mxu3 %v10293_v2  ;;  %v10169_v31 = vor.u32 %v12347_v25, %v10168_v61  ;;  %v12411_v33 = vld [vmem:[#allocation6 + $0x364] sm:$0xf0]  ;;  %v12399_v52 = vld [vmem:[#allocation6 + $0x30c] sm:$0xf] }
 0x3b1   :  { %12839 = vtanh.f32 %v13235_v63  ;;  %5045 = vmatpush.bf16.msra.mxu0 %v10033_v23  ;;  %v10489_v3 = vor.u32 %v12427_v27, %v10488_v24  ;;  %v10237_v6 = vor.u32 %v12359_v0, %v10234_v1  ;;  %v10461_v23 = vor.u32 %v12415_v22, %v10458_v49  ;;  %v10392_v5 = vld [vmem:[#allocation6 + $0x308] sm:$0xf]  ;;  %v10106_v27 = vld [vmem:[#allocation6 + $0xe8] sm:$0xf0] }
 0x3b2   :  { %v13238_v17 = vpop.f32.mrf.mxu0  ;;  %v13240_v18 = vpop.f32.mrf.mxu1  ;;  %5059 = vmatpush.bf16.msra.mxu1 %v10257_v50  ;;  %v10138_v50 = vld [vmem:[#allocation6 + $0x128] sm:$0xf0]  ;;  %v12331_v54 = vld [vmem:[#allocation6 + $0xe4] sm:$0xf0] }
 0x3b3   :  { %5072 = vmatpush.bf16.msra.mxu2 %v10005_v36  ;;  %v4129_v15 = vadd.f32 %v13240_v18, %v13238_v17  ;;  %v10425_v17 = vor.u32 %v12411_v33, %v10424_v32  ;;  %v10170_v18 = vld [vmem:[#allocation6 + $0x168] sm:$0xf0]  ;;  %v10360_v56 = vld [vmem:[#allocation6 + $0x2c8] sm:$0xf] }
 0x3b4   :  { %5085 = vmatpush.bf16.msra.mxu3 %v10261_v60  ;;  %v10173_v39 = vor.u32 %v12343_v34, %v10170_v18  ;;  %v10104_v60 = vld [vmem:[#allocation6 + $0xc8] sm:$0xf]  ;;  %v12391_v0 = vld [vmem:[#allocation6 + $0x2cc] sm:$0xf] }
 0x3b5   :  { %v12838_v11 = vpop.eup %12837  ;;  %5046 = vmatpush.bf16.msra.mxu0 %v10001_v41  ;;  %v4210_v2 = vadd.f32 %v4129_v15, %v13126_v19  ;;  %v10105_v24 = vor.u32 %v12331_v54, %v10104_v60  ;;  %v10362_v1 = vld [vmem:[#allocation6 + $0x2e8] sm:$0xf0]  ;;  %v10072_v44 = vld [vmem:[#allocation6 + $0x88] sm:$0xf] }
 0x3b6   :  { %v4254_v29 = vmul.f32 0.5, %v12838_v11  ;;  %5104 = vmatpush.bf16.msrb.mxu1 %v10489_v3  ;;  %v10205_v11 = vor.u32 %v12351_v14, %v10202_v48  ;;  %v12323_v8 = vld [vmem:[#allocation6 + $0xa4] sm:$0xf0]  ;;  %v12319_v13 = vld [vmem:[#allocation6 + $0x8c] sm:$0xf] }
 0x3b7   :  { %v12840_v37 = vpop.eup %12839  ;;  %5117 = vmatpush.bf16.msrb.mxu2 %v10237_v6  ;;  %v10365_v6 = vor.u32 %v12391_v0, %v10362_v1  ;;  %v10328_v9 = vld [vmem:[#allocation6 + $0x288] sm:$0xf]  ;;  %v12375_v32 = vld [vmem:[#allocation6 + $0x24c] sm:$0xf] }
 0x3b8   :  { %v4255_v38 = vadd.f32 0.5, %v4254_v29  ;;  %5130 = vmatpush.bf16.msrb.mxu3 %v10493_v10  ;;  %v10073_v10 = vor.u32 %v12323_v8, %v10072_v44  ;;  %v12387_v12 = vld [vmem:[#allocation6 + $0x2a4] sm:$0xf0] }
 0x3b9   :  { %5091 = vmatpush.bf16.msrb.mxu0 %v10233_v26  ;;  %v10329_v14 = vor.u32 %v12387_v12, %v10328_v9  ;;  %v10040_v48 = vld [vmem:[#allocation6 + $0x48] sm:$0xf] }
 0x3ba   :  { %v4260_v43 = vmul.f32 %v12840_v37, %v4255_v38  ;;  %v4117_v35 = vpop.f32.mrf.mxu0  ;;  %v4130_v53 = vpop.f32.mrf.mxu1  ;;  %5105 = vmatpush.bf16.msrb.mxu1 %v10457_v21  ;;  %v12407_v37 = vld [vmem:[#allocation6 + $0x34c] sm:$0xf]  ;;  %v10296_v61 = vld [vmem:[#allocation6 + $0x248] sm:$0xf] }
 0x3bb   :  { %v4141_v45 = vpop.f32.mrf.mxu2  ;;  %v4154_v46 = vpop.f32.mrf.mxu3  ;;  %5118 = vmatpush.bf16.msrb.mxu2 %v10205_v11  ;;  %v10429_v41 = vor.u32 %v12407_v37, %v10426_v40  ;;  %v10394_v35 = vld [vmem:[#allocation6 + $0x328] sm:$0xf0]  ;;  %v4214_v53 = vmul.f32 0.5, %v4210_v2  ;;  %v12379_v25 = vld [vmem:[#allocation6 + $0x264] sm:$0xf0] }
 0x3bc   :  { %v4261_v57 = vpack.c.bf16 %v4260_v43, %v4260_v43  ;;  %v4155_v58 = vadd.f32 %v4154_v46, %v4141_v45  ;;  %5131 = vmatpush.bf16.msrb.mxu3 %v10461_v23  ;;  %v10137_v43 = vor.u32 %v12339_v42, %v10136_v4  ;;  %v12403_v45 = vld [vmem:[#allocation6 + $0x324] sm:$0xf0]  ;;  %v12335_v46 = vld [vmem:[#allocation6 + $0x10c] sm:$0xf]  ;;  %v10397_v36 = vor.u32 %v12399_v52, %v10394_v35 }
 0x3bd   :  { %5092 = vmatpush.bf16.msrb.mxu0 %v10201_v59  ;;  %v10393_v20 = vor.u32 %v12403_v45, %v10392_v5  ;;  %v10141_v51 = vor.u32 %v12335_v46, %v10138_v50  ;;  %v10074_v59 = vld [vmem:[#allocation6 + $0xa8] sm:$0xf0]  ;;  %v12315_v23 = vld [vmem:[#allocation6 + $0x64] sm:$0xf0]  ;;  %v10297_v2 = vor.u32 %v12379_v25, %v10296_v61 }
 0x3be   :  { %4262 = vst [vmem:[#allocation2] sm:$0xf] %v4261_v57  ;;  %v4211_v16 = vadd.f32 %v4155_v58, %v13129_v30  ;;  %5106 = vmatpush.bf16.msrb.mxu1 %v10425_v17  ;;  %v12395_v57 = vld [vmem:[#allocation6 + $0x2e4] sm:$0xf0]  ;;  %v12327_v58 = vld [vmem:[#allocation6 + $0xcc] sm:$0xf]  ;;  %v10077_v15 = vor.u32 %v12319_v13, %v10074_v59  ;;  %v10041_v34 = vor.u32 %v12315_v23, %v10040_v48 }
 0x3bf   :  { %5119 = vmatpush.bf16.msrb.mxu2 %v10173_v39  ;;  %v10361_v26 = vor.u32 %v12395_v57, %v10360_v56  ;;  %v10109_v3 = vor.u32 %v12327_v58, %v10106_v27  ;;  %v10330_v21 = vld [vmem:[#allocation6 + $0x2a8] sm:$0xf0]  ;;  %v10008_v39 = vld [vmem:[#allocation6 + $0x8] sm:$0xf]  ;;  %v10498_v23 = vld [vmem:[#allocation6 + $0x3f0] sm:$0xf0] }
 0x3c0   :  { %v4218_v38 = vmul.f32 0.5, %v4211_v16  ;;  %5132 = vmatpush.bf16.msrb.mxu3 %v10429_v41  ;;  %v12383_v16 = vld [vmem:[#allocation6 + $0x28c] sm:$0xf]  ;;  %v12307_v40 = vld [vmem:[#allocation6 + $0x24] sm:$0xf0] }
 0x3c1   :  { %5093 = vmatpush.bf16.msrb.mxu0 %v10169_v31  ;;  %v10333_v11 = vor.u32 %v12383_v16, %v10330_v21  ;;  %v10042_v31 = vld [vmem:[#allocation6 + $0x68] sm:$0xf0]  ;;  %v10264_v41 = vld [vmem:[#allocation6 + $0x208] sm:$0xf]  ;;  %v12428_v16 = vld [vmem:[#allocation6 + $0x3ec] sm:$0xf0] }
 0x3c2   :  { %12841 = vtanh.f32 %v4218_v38  ;;  %5107 = vmatpush.bf16.msrb.mxu1 %v10393_v20  ;;  %v10298_v17 = vld [vmem:[#allocation6 + $0x268] sm:$0xf0]  ;;  %v12371_v42 = vld [vmem:[#allocation6 + $0x224] sm:$0xf0]  ;;  %v10009_v20 = vor.u32 %v12307_v40, %v10008_v39  ;;  %v12360_v21 = vld [vmem:[#allocation6 + $0x1d4] sm:$0xf] }
 0x3c3   :  { %v4143_v28 = vpop.f32.mrf.mxu2  ;;  %v4156_v29 = vpop.f32.mrf.mxu3  ;;  %5120 = vmatpush.bf16.msrb.mxu2 %v10141_v51  ;;  %12843 = vtanh.f32 %v4214_v53  ;;  %v10301_v4 = vor.u32 %v12375_v32, %v10298_v17  ;;  %v12303_v5 = vld [vmem:[#allocation6 + $0xc] sm:$0xf]  ;;  %v10265_v35 = vor.u32 %v12371_v42, %v10264_v41  ;;  %v12356_v32 = vld [vmem:[#allocation6 + $0x1ac] sm:$0xf0]  ;;  %v10466_v39 = vld [vmem:[#allocation6 + $0x3b0] sm:$0xf0] }
 0x3c4   :  { %5133 = vmatpush.bf16.msrb.mxu3 %v10397_v36  ;;  %v12311_v29 = vld [vmem:[#allocation6 + $0x4c] sm:$0xf]  ;;  %v10464_v17 = vld [vmem:[#allocation6 + $0x390] sm:$0xf] }
 0x3c5   :  { %5094 = vmatpush.bf16.msrb.mxu0 %v10137_v43  ;;  %v10045_v38 = vor.u32 %v12311_v29, %v10042_v31  ;;  %v10010_v43 = vld [vmem:[#allocation6 + $0x28] sm:$0xf0]  ;;  %v10208_v31 = vld [vmem:[#allocation6 + $0x190] sm:$0xf] }
 0x3c6   :  { %5108 = vmatpush.bf16.msrb.mxu1 %v10361_v26  ;;  %v12367_v45 = vld [vmem:[#allocation6 + $0x20c] sm:$0xf]  ;;  %v10013_v53 = vor.u32 %v12303_v5, %v10010_v43  ;;  %v10209_v40 = vor.u32 %v12356_v32, %v10208_v31  ;;  %v12348_v42 = vld [vmem:[#allocation6 + $0x16c] sm:$0xf0]  ;;  %v12384_v31 = vld [vmem:[#allocation6 + $0x294] sm:$0xf] }
 0x3c7   :  { %5121 = vmatpush.bf16.msrb.mxu2 %v10109_v3  ;;  %v10266_v46 = vld [vmem:[#allocation6 + $0x228] sm:$0xf0]  ;;  %v10338_v32 = vld [vmem:[#allocation6 + $0x2b0] sm:$0xf0] }
 0x3c8   :  { %v12842_v62 = vpop.eup %12841  ;;  %5134 = vmatpush.bf16.msrb.mxu3 %v10365_v6 }
 0x3c9   :  { %5095 = vmatpush.bf16.msrb.mxu0 %v10105_v24  ;;  %v4220_v33 = vmul.f32 0.5, %v12842_v62  ;;  %v12844_v18 = vpop.eup %12843  ;;  %v10269_v24 = vor.u32 %v12367_v45, %v10266_v46  ;;  %v10240_v62 = vld [vmem:[#allocation6 + $0x1d0] sm:$0xf] }
 0x3ca   :  { %5109 = vmatpush.bf16.msrb.mxu1 %v10329_v14  ;;  %v4216_v50 = vmul.f32 0.5, %v12844_v18  ;;  %v12364_v14 = vld [vmem:[#allocation6 + $0x1ec] sm:$0xf0] }
 0x3cb   :  { %5122 = vmatpush.bf16.msrb.mxu2 %v10077_v15  ;;  %v4221_v36 = vadd.f32 0.5, %v4220_v33  ;;  %v12420_v18 = vld [vmem:[#allocation6 + $0x3ac] sm:$0xf0] }
 0x3cc   :  { %5135 = vmatpush.bf16.msrb.mxu3 %v10333_v11  ;;  %v4217_v57 = vadd.f32 0.5, %v4216_v50  ;;  %v12424_v11 = vld [vmem:[#allocation6 + $0x3d4] sm:$0xf]  ;;  %v10465_v41 = vor.u32 %v12420_v18, %v10464_v17  ;;  %v10432_v45 = vld [vmem:[#allocation6 + $0x350] sm:$0xf] }
 0x3cd   :  { %5096 = vmatpush.bf16.msrb.mxu0 %v10073_v10  ;;  %v4227_v27 = vmul.f32 %v4221_v36, %v13211_v47  ;;  %v10496_v47 = vld [vmem:[#allocation6 + $0x3d0] sm:$0xf]  ;;  %v12344_v50 = vld [vmem:[#allocation6 + $0x154] sm:$0xf] }
 0x3ce   :  { %5110 = vmatpush.bf16.msrb.mxu1 %v10297_v2  ;;  %v10497_v29 = vor.u32 %v12428_v16, %v10496_v47  ;;  %v10210_v2 = vld [vmem:[#allocation6 + $0x1b0] sm:$0xf0]  ;;  %v12412_v46 = vld [vmem:[#allocation6 + $0x36c] sm:$0xf0] }
 0x3cf   :  { %5123 = vmatpush.bf16.msrb.mxu2 %v10045_v38  ;;  %v12416_v38 = vld [vmem:[#allocation6 + $0x394] sm:$0xf]  ;;  %v10144_v36 = vld [vmem:[#allocation6 + $0x110] sm:$0xf] }
 0x3d0   :  { %5136 = vmatpush.bf16.msrb.mxu3 %v10301_v4  ;;  %v10176_v4 = vld [vmem:[#allocation6 + $0x150] sm:$0xf]  ;;  %v10469_v43 = vor.u32 %v12416_v38, %v10466_v39  ;;  %v10370_v47 = vld [vmem:[#allocation6 + $0x2f0] sm:$0xf0] }
 0x3d1   :  { %5097 = vmatpush.bf16.msrb.mxu0 %v10041_v34  ;;  %v10501_v34 = vor.u32 %v12424_v11, %v10498_v23  ;;  %v10336_v11 = vld [vmem:[#allocation6 + $0x290] sm:$0xf] }
 0x3d2   :  { %v4167_v22 = vpop.f32.mrf.mxu0  ;;  %v4180_v49 = vpop.f32.mrf.mxu1  ;;  %5111 = vmatpush.bf16.msrb.mxu1 %v10265_v35  ;;  %v10177_v35 = vor.u32 %v12348_v42, %v10176_v4  ;;  %v12388_v23 = vld [vmem:[#allocation6 + $0x2ac] sm:$0xf0]  ;;  %v12376_v4 = vld [vmem:[#allocation6 + $0x254] sm:$0xf] }
 0x3d3   :  { %v4181_v28 = vadd.f32 %v4180_v49, %v4167_v22  ;;  %5124 = vmatpush.bf16.msrb.mxu2 %v10013_v53  ;;  %v10242_v49 = vld [vmem:[#allocation6 + $0x1f0] sm:$0xf0]  ;;  %v10433_v53 = vor.u32 %v12412_v46, %v10432_v45  ;;  %v10048_v17 = vld [vmem:[#allocation6 + $0x50] sm:$0xf] }
 0x3d4   :  { %5137 = vmatpush.bf16.msrb.mxu3 %v10269_v24  ;;  %v10245_v33 = vor.u32 %v12360_v21, %v10242_v49  ;;  %v10400_v24 = vld [vmem:[#allocation6 + $0x310] sm:$0xf]  ;;  %v10306_v42 = vld [vmem:[#allocation6 + $0x270] sm:$0xf0] }
 0x3d5   :  { %v4212_v37 = vadd.f32 %v4181_v28, %v13134_v55  ;;  %5098 = vmatpush.bf16.msrb.mxu0 %v10009_v20  ;;  %v10241_v28 = vor.u32 %v12364_v14, %v10240_v62  ;;  %v10178_v20 = vld [vmem:[#allocation6 + $0x170] sm:$0xf0]  ;;  %v10080_v21 = vld [vmem:[#allocation6 + $0x90] sm:$0xf] }
 0x3d6   :  { %v10114_v62 = vld [vmem:[#allocation6 + $0xf0] sm:$0xf0]  ;;  %v12316_v18 = vld [vmem:[#allocation6 + $0x6c] sm:$0xf0] }
 0x3d7   :  { %12845 = vtanh.f32 %v4212_v37  ;;  %v12352_v37 = vld [vmem:[#allocation6 + $0x194] sm:$0xf]  ;;  %v10304_v38 = vld [vmem:[#allocation6 + $0x250] sm:$0xf] }
 0x3d8   :  { %v10213_v5 = vor.u32 %v12352_v37, %v10210_v2  ;;  %v12392_v14 = vld [vmem:[#allocation6 + $0x2d4] sm:$0xf]  ;;  %v10341_v2 = vor.u32 %v12384_v31, %v10338_v32  ;;  %v12380_v39 = vld [vmem:[#allocation6 + $0x26c] sm:$0xf0]  ;;  %v10440_v31 = vld [vmem:[#allocation6 + $0x358] sm:$0xf] }
 0x3d9   :  { %v4193_v51 = vpop.f32.mrf.mxu2  ;;  %v4206_v52 = vpop.f32.mrf.mxu3  ;;  %v10373_v49 = vor.u32 %v12392_v14, %v10370_v47  ;;  %v10305_v45 = vor.u32 %v12380_v39, %v10304_v38  ;;  %v12308_v46 = vld [vmem:[#allocation6 + $0x2c] sm:$0xf0]  ;;  %v10472_v14 = vld [vmem:[#allocation6 + $0x398] sm:$0xf] }
 0x3da   :  { %v4207_v60 = vadd.f32 %v4206_v52, %v4193_v51  ;;  %v4169_v54 = vpop.f32.mrf.mxu0  ;;  %v4182_v56 = vpop.f32.mrf.mxu1  ;;  %v12408_v51 = vld [vmem:[#allocation6 + $0x354] sm:$0xf]  ;;  %v12421_v47 = vld [vmem:[#allocation6 + $0x3b4] sm:$0xf0] }
 0x3db   :  { %v10434_v52 = vld [vmem:[#allocation6 + $0x370] sm:$0xf0]  ;;  %v10181_v54 = vor.u32 %v12344_v50, %v10178_v20  ;;  %v10272_v50 = vld [vmem:[#allocation6 + $0x210] sm:$0xf]  ;;  %v12413_v32 = vld [vmem:[#allocation6 + $0x374] sm:$0xf0] }
 0x3dc   :  { %v4213_v58 = vadd.f32 %v4207_v60, %v13137_v7  ;;  %v12340_v60 = vld [vmem:[#allocation6 + $0x12c] sm:$0xf0]  ;;  %v10437_v56 = vor.u32 %v12408_v51, %v10434_v52  ;;  %v10309_v52 = vor.u32 %v12376_v4, %v10306_v42  ;;  %v10152_v38 = vld [vmem:[#allocation6 + $0x118] sm:$0xf] }
 0x3dd   :  { %v12846_v26 = vpop.eup %12845  ;;  %v12372_v20 = vld [vmem:[#allocation6 + $0x22c] sm:$0xf0]  ;;  %v12341_v39 = vld [vmem:[#allocation6 + $0x134] sm:$0xf0] }
 0x3de   :  { %v4228_v0 = vmul.f32 %v12846_v26, %v4217_v57  ;;  %v4223_v1 = vmul.f32 0.5, %v4213_v58  ;;  %v12404_v57 = vld [vmem:[#allocation6 + $0x32c] sm:$0xf0]  ;;  %v12336_v58 = vld [vmem:[#allocation6 + $0x114] sm:$0xf] }
 0x3df   :  { %v10146_v26 = vld [vmem:[#allocation6 + $0x130] sm:$0xf0]  ;;  %v10408_v4 = vld [vmem:[#allocation6 + $0x318] sm:$0xf] }
 0x3e0   :  { %v13249_v3 = vadd.f32 %v4228_v0, %v4227_v27  ;;  %12847 = vtanh.f32 %v4223_v1  ;;  %v12400_v27 = vld [vmem:[#allocation6 + $0x314] sm:$0xf]  ;;  %v10145_v1 = vor.u32 %v12340_v60, %v10144_v36  ;;  %v12405_v42 = vld [vmem:[#allocation6 + $0x334] sm:$0xf0] }
 0x3e1   :  { %v4195_v6 = vpop.f32.mrf.mxu2  ;;  %v4208_v44 = vpop.f32.mrf.mxu3  ;;  %v10402_v0 = vld [vmem:[#allocation6 + $0x330] sm:$0xf0] }
 0x3e2   :  { %12849 = vtanh.f32 %v13249_v3  ;;  %v10401_v6 = vor.u32 %v12404_v57, %v10400_v24  ;;  %v10112_v44 = vld [vmem:[#allocation6 + $0xd0] sm:$0xf]  ;;  %v12368_v36 = vld [vmem:[#allocation6 + $0x214] sm:$0xf]  ;;  %v10504_v24 = vld [vmem:[#allocation6 + $0x3d8] sm:$0xf] }
 0x3e3   :  { %v10274_v60 = vld [vmem:[#allocation6 + $0x230] sm:$0xf0]  ;;  %v12429_v57 = vld [vmem:[#allocation6 + $0x3f4] sm:$0xf0] }
 0x3e6   :  { %v12848_v8 = vpop.eup %12847 }
 0x3e7   :  { %v4225_v9 = vmul.f32 0.5, %v12848_v8  ;;  %v12332_v8 = vld [vmem:[#allocation6 + $0xec] sm:$0xf0] }
 0x3e8   :  { %v12850_v10 = vpop.eup %12849 }
 0x3e9   :  { %v4226_v12 = vadd.f32 0.5, %v4225_v9  ;;  %v10149_v9 = vor.u32 %v12336_v58, %v10146_v26  ;;  %v12361_v58 = vld [vmem:[#allocation6 + $0x1dc] sm:$0xf] }
 0x3eb   :  { %v4231_v13 = vmul.f32 %v12850_v10, %v4226_v12  ;;  %v10405_v10 = vor.u32 %v12400_v27, %v10402_v0  ;;  %v10368_v12 = vld [vmem:[#allocation6 + $0x2d0] sm:$0xf]  ;;  %v10273_v27 = vor.u32 %v12372_v20, %v10272_v50  ;;  %v10250_v0 = vld [vmem:[#allocation6 + $0x1f8] sm:$0xf0]  ;;  %v10153_v50 = vor.u32 %v12341_v39, %v10152_v38 }
 0x3ec   :  { %v10409_v20 = vor.u32 %v12405_v42, %v10408_v4  ;;  %v12369_v38 = vld [vmem:[#allocation6 + $0x21c] sm:$0xf] }
 0x3ed   :  { %v4232_v59 = vpack.c.bf16 %v4231_v13, %v4231_v13  ;;  %v12396_v13 = vld [vmem:[#allocation6 + $0x2ec] sm:$0xf0]  ;;  %v10282_v39 = vld [vmem:[#allocation6 + $0x238] sm:$0xf0] }
 0x3ee   :  { %v10369_v16 = vor.u32 %v12396_v13, %v10368_v12  ;;  %v10216_v12 = vld [vmem:[#allocation6 + $0x198] sm:$0xf]  ;;  %v10285_v42 = vor.u32 %v12369_v38, %v10282_v39  ;;  %v12470_v38 = vld [vmem:[#allocation6 + $0x144] sm:$0xf] }
 0x3ef   :  { %4233 = vst [vmem:[#allocation2 + $0x4] sm:$0xf] %v4232_v59  ;;  %v12328_v59 = vld [vmem:[#allocation6 + $0xd4] sm:$0xf]  ;;  %v12357_v13 = vld [vmem:[#allocation6 + $0x1b4] sm:$0xf0] }
 0x3f0   :  { %v10674_v39 = vld [vmem:[#allocation6 + $0x160] sm:$0xf0] }
 0x3f6   :  { %v4263_v15 = vld [vmem:[#allocation2] sm:$0xff] }
 0x3f7   :  { %v4393_v48 = vunpack.c.l.b16 %v4263_v15  ;;  %v4394_v22 = vunpack.c.h.b16 %v4263_v15  ;;  %v10113_v15 = vor.u32 %v12332_v8, %v10112_v44  ;;  %v10277_v8 = vor.u32 %v12368_v36, %v10274_v60  ;;  %v10376_v36 = vld [vmem:[#allocation6 + $0x2d8] sm:$0xf] }
 0x3f8   :  { %v12397_v60 = vld [vmem:[#allocation6 + $0x2f4] sm:$0xf0] }
 0x3f9   :  { %v13252_v61 = vpack.c.b16 %v4393_v48, %v4393_v48  ;;  %v13254_v25 = vpack.c.b16 %v4394_v22, %v4394_v22  ;;  %v12324_v48 = vld [vmem:[#allocation6 + $0xac] sm:$0xf0]  ;;  %v10117_v22 = vor.u32 %v12328_v59, %v10114_v62  ;;  %v10253_v59 = vor.u32 %v12361_v58, %v10250_v0  ;;  %v12325_v0 = vld [vmem:[#allocation6 + $0xb4] sm:$0xf0] }
 0x3fb   :  { %5047 = vmatmul.bf16.vlgmr.msra.gmra.mxu0 %v13252_v61  ;;  %5060 = vmatmul.bf16.vlgmr.msra.gmra.mxu1 %v13254_v25 }
 0x3fc   :  { %5073 = vmatmul.bf16.vlgmr.msra.gmra.mxu2 %v13252_v61  ;;  %5086 = vmatmul.bf16.vlgmr.msra.gmra.mxu3 %v13254_v25 }
 0x3fd   :  { %5143 = vmatpush.bf16.msra.mxu0 %v10241_v28  ;;  %5156 = vmatpush.bf16.msra.mxu1 %v10497_v29  ;;  %v12320_v28 = vld [vmem:[#allocation6 + $0x94] sm:$0xf] }
 0x3fe   :  { %5169 = vmatpush.bf16.msra.mxu2 %v10245_v33  ;;  %5182 = vmatpush.bf16.msra.mxu3 %v10501_v34  ;;  %v10082_v29 = vld [vmem:[#allocation6 + $0xb0] sm:$0xf0]  ;;  %v10081_v33 = vor.u32 %v12324_v48, %v10080_v21  ;;  %v10337_v34 = vor.u32 %v12388_v23, %v10336_v11  ;;  %v12417_v21 = vld [vmem:[#allocation6 + $0x39c] sm:$0xf]  ;;  %v10184_v11 = vld [vmem:[#allocation6 + $0x158] sm:$0xf] }
 0x3ff   :  { %v10085_v37 = vor.u32 %v12320_v28, %v10082_v29  ;;  %v10474_v48 = vld [vmem:[#allocation6 + $0x3b8] sm:$0xf0]  ;;  %v12349_v23 = vld [vmem:[#allocation6 + $0x174] sm:$0xf0] }
 0x400   :  { %v10477_v29 = vor.u32 %v12417_v21, %v10474_v48  ;;  %v10312_v21 = vld [vmem:[#allocation6 + $0x258] sm:$0xf] }
 0x401   :  { %5144 = vmatpush.bf16.msra.mxu0 %v10209_v40  ;;  %5157 = vmatpush.bf16.msra.mxu1 %v10465_v41  ;;  %v12312_v40 = vld [vmem:[#allocation6 + $0x54] sm:$0xf]  ;;  %v12381_v48 = vld [vmem:[#allocation6 + $0x274] sm:$0xf0] }
 0x402   :  { %5170 = vmatpush.bf16.msra.mxu2 %v10213_v5  ;;  %5183 = vmatpush.bf16.msra.mxu3 %v10469_v43  ;;  %v10050_v41 = vld [vmem:[#allocation6 + $0x70] sm:$0xf0]  ;;  %v10016_v5 = vld [vmem:[#allocation6 + $0x10] sm:$0xf]  ;;  %v10049_v43 = vor.u32 %v12316_v18, %v10048_v17  ;;  %v12409_v17 = vld [vmem:[#allocation6 + $0x35c] sm:$0xf] }
 0x403   :  { %v10053_v51 = vor.u32 %v12312_v40, %v10050_v41  ;;  %v10017_v26 = vor.u32 %v12308_v46, %v10016_v5  ;;  %v10442_v18 = vld [vmem:[#allocation6 + $0x378] sm:$0xf0] }
 0x404   :  { %v10445_v41 = vor.u32 %v12409_v17, %v10442_v18  ;;  %v12337_v5 = vld [vmem:[#allocation6 + $0x11c] sm:$0xf]  ;;  %v10280_v17 = vld [vmem:[#allocation6 + $0x218] sm:$0xf] }
 0x405   :  { %5145 = vmatpush.bf16.msra.mxu0 %v10177_v35  ;;  %5158 = vmatpush.bf16.msra.mxu1 %v10433_v53  ;;  %v12304_v35 = vld [vmem:[#allocation6 + $0x14] sm:$0xf]  ;;  %v10410_v46 = vld [vmem:[#allocation6 + $0x338] sm:$0xf0]  ;;  %v12373_v18 = vld [vmem:[#allocation6 + $0x234] sm:$0xf0] }
 0x406   :  { %5171 = vmatpush.bf16.msra.mxu2 %v10181_v54  ;;  %5184 = vmatpush.bf16.msra.mxu3 %v10437_v56  ;;  %v10018_v53 = vld [vmem:[#allocation6 + $0x30] sm:$0xf0]  ;;  %v10248_v54 = vld [vmem:[#allocation6 + $0x1d8] sm:$0xf] }
 0x407   :  { %v12365_v56 = vld [vmem:[#allocation6 + $0x1f4] sm:$0xf0]  ;;  %v10021_v44 = vor.u32 %v12304_v35, %v10018_v53 }
 0x409   :  { %5146 = vmatpush.bf16.msra.mxu0 %v10145_v1  ;;  %5159 = vmatpush.bf16.msra.mxu1 %v10401_v6  ;;  %v12425_v1 = vld [vmem:[#allocation6 + $0x3dc] sm:$0xf] }
 0x40a   :  { %5172 = vmatpush.bf16.msra.mxu2 %v10149_v9  ;;  %5185 = vmatpush.bf16.msra.mxu3 %v10405_v10  ;;  %v10506_v6 = vld [vmem:[#allocation6 + $0x3f8] sm:$0xf0]  ;;  %v10249_v9 = vor.u32 %v12365_v56, %v10248_v54  ;;  %v10505_v10 = vor.u32 %v12429_v57, %v10504_v24 }
 0x40b   :  { %5099 = vmatmul.bf16.vlgmr.msrb.gmra.mxu0 %v13252_v61  ;;  %5112 = vmatmul.bf16.vlgmr.msrb.gmra.mxu1 %v13254_v25  ;;  %v10509_v62 = vor.u32 %v12425_v1, %v10506_v6  ;;  %v12329_v54 = vld [vmem:[#allocation6 + $0xdc] sm:$0xf] }
 0x40c   :  { %5125 = vmatmul.bf16.vlgmr.msrb.gmra.mxu2 %v13252_v61  ;;  %5138 = vmatmul.bf16.vlgmr.msrb.gmra.mxu3 %v13254_v25  ;;  %v10122_v56 = vld [vmem:[#allocation6 + $0xf8] sm:$0xf0] }
 0x40d   :  { %5147 = vmatpush.bf16.msra.mxu0 %v10113_v15  ;;  %5160 = vmatpush.bf16.msra.mxu1 %v10369_v16  ;;  %v12353_v15 = vld [vmem:[#allocation6 + $0x19c] sm:$0xf]  ;;  %v10125_v1 = vor.u32 %v12329_v54, %v10122_v56  ;;  %v10736_v56 = vld [vmem:[#allocation6 + $0x1c0] sm:$0xf] }
 0x40e   :  { %5173 = vmatpush.bf16.msra.mxu2 %v10117_v22  ;;  %5186 = vmatpush.bf16.msra.mxu3 %v10373_v49  ;;  %v10218_v16 = vld [vmem:[#allocation6 + $0x1b8] sm:$0xf0]  ;;  %v10217_v22 = vor.u32 %v12357_v13, %v10216_v12  ;;  %v10473_v49 = vor.u32 %v12421_v47, %v10472_v14  ;;  %v10056_v14 = vld [vmem:[#allocation6 + $0x58] sm:$0xf] }
 0x40f   :  { %v10221_v28 = vor.u32 %v12353_v15, %v10218_v16  ;;  %v12393_v24 = vld [vmem:[#allocation6 + $0x2dc] sm:$0xf]  ;;  %v12317_v47 = vld [vmem:[#allocation6 + $0x74] sm:$0xf0] }
 0x410   :  { %v10378_v57 = vld [vmem:[#allocation6 + $0x2f8] sm:$0xf0] }
 0x411   :  { %5148 = vmatpush.bf16.msra.mxu0 %v10081_v33  ;;  %5161 = vmatpush.bf16.msra.mxu1 %v10337_v34  ;;  %v12345_v33 = vld [vmem:[#allocation6 + $0x15c] sm:$0xf]  ;;  %v10381_v6 = vor.u32 %v12393_v24, %v10378_v57  ;;  %v12490_v24 = vld [vmem:[#allocation6 + $0x1dc] sm:$0xf0] }
 0x412   :  { %5174 = vmatpush.bf16.msra.mxu2 %v10085_v37  ;;  %5187 = vmatpush.bf16.msra.mxu3 %v10341_v2  ;;  %v10186_v34 = vld [vmem:[#allocation6 + $0x178] sm:$0xf0]  ;;  %v10185_v37 = vor.u32 %v12349_v23, %v10184_v11  ;;  %v10441_v2 = vor.u32 %v12413_v32, %v10440_v31  ;;  %v10024_v31 = vld [vmem:[#allocation6 + $0x18] sm:$0xf]  ;;  %v10992_v57 = vld [vmem:[#allocation6 + $0x3c0] sm:$0xf] }
 0x413   :  { %v10189_v40 = vor.u32 %v12345_v33, %v10186_v34  ;;  %v12385_v12 = vld [vmem:[#allocation6 + $0x29c] sm:$0xf]  ;;  %v12309_v32 = vld [vmem:[#allocation6 + $0x34] sm:$0xf0] }
 0x414   :  { %v10346_v13 = vld [vmem:[#allocation6 + $0x2b8] sm:$0xf0] }
 0x415   :  { %5149 = vmatpush.bf16.msra.mxu0 %v10049_v43  ;;  %5162 = vmatpush.bf16.msra.mxu1 %v10305_v45  ;;  %v10154_v43 = vld [vmem:[#allocation6 + $0x138] sm:$0xf0]  ;;  %v10349_v16 = vor.u32 %v12385_v12, %v10346_v13  ;;  %v10704_v12 = vld [vmem:[#allocation6 + $0x180] sm:$0xf] }
 0x416   :  { %5175 = vmatpush.bf16.msra.mxu2 %v10053_v51  ;;  %5188 = vmatpush.bf16.msra.mxu3 %v10309_v52  ;;  %v12401_v45 = vld [vmem:[#allocation6 + $0x31c] sm:$0xf]  ;;  %v10120_v51 = vld [vmem:[#allocation6 + $0xd8] sm:$0xf]  ;;  %v10157_v35 = vor.u32 %v12337_v5, %v10154_v43  ;;  %v12482_v13 = vld [vmem:[#allocation6 + $0x19c] sm:$0xf0] }
 0x417   :  { %v12333_v52 = vld [vmem:[#allocation6 + $0xf4] sm:$0xf0]  ;;  %v10413_v53 = vor.u32 %v12401_v45, %v10410_v46  ;;  %v12377_v11 = vld [vmem:[#allocation6 + $0x25c] sm:$0xf]  ;;  %v5272_v46 = vld [vmem:[#allocation3 + $0xa0] sm:$0xff] }
 0x418   :  { %v10121_v58 = vor.u32 %v12333_v52, %v10120_v51  ;;  %v10314_v23 = vld [vmem:[#allocation6 + $0x278] sm:$0xf0]  ;;  %v5273_v52 = vld [vmem:[#allocation3 + $0xa8] sm:$0xff] }
 0x419   :  { %5150 = vmatpush.bf16.msra.mxu0 %v10017_v26  ;;  %5163 = vmatpush.bf16.msra.mxu1 %v10273_v27  ;;  %v10377_v26 = vor.u32 %v12397_v60, %v10376_v36  ;;  %v10088_v27 = vld [vmem:[#allocation6 + $0x98] sm:$0xf]  ;;  %v10317_v34 = vor.u32 %v12377_v11, %v10314_v23  ;;  %v12542_v11 = vld [vmem:[#allocation6 + $0x384] sm:$0xf] }
 0x41a   :  { %5176 = vmatpush.bf16.msra.mxu2 %v10021_v44  ;;  %5189 = vmatpush.bf16.msra.mxu3 %v10277_v8  ;;  %v10344_v44 = vld [vmem:[#allocation6 + $0x298] sm:$0xf]  ;;  %v10962_v23 = vld [vmem:[#allocation6 + $0x3a0] sm:$0xf0] }
 0x41b   :  { %v12389_v8 = vld [vmem:[#allocation6 + $0x2b4] sm:$0xf0] }
 0x41c   :  { %5151 = vmatmul.bf16.vlgmr.msra.gmra.mxu0 %v13252_v61  ;;  %5164 = vmatmul.bf16.vlgmr.msra.gmra.mxu1 %v13254_v25 }
 0x41d   :  { %5195 = vmatpush.bf16.msrb.mxu0 %v10249_v9  ;;  %5208 = vmatpush.bf16.msrb.mxu1 %v10505_v10  ;;  %v12321_v9 = vld [vmem:[#allocation6 + $0x9c] sm:$0xf] }
 0x41e   :  { %5221 = vmatpush.bf16.msrb.mxu2 %v10253_v59  ;;  %5234 = vmatpush.bf16.msrb.mxu3 %v10509_v62  ;;  %v10090_v10 = vld [vmem:[#allocation6 + $0xb8] sm:$0xf0]  ;;  %v10089_v59 = vor.u32 %v12325_v0, %v10088_v27  ;;  %v10345_v62 = vor.u32 %v12389_v8, %v10344_v44  ;;  %v10738_v0 = vld [vmem:[#allocation6 + $0x1e0] sm:$0xf0] }
 0x41f   :  { %5177 = vmatmul.bf16.vlgmr.msra.gmra.mxu2 %v13252_v61  ;;  %5190 = vmatmul.bf16.vlgmr.msra.gmra.mxu3 %v13254_v25  ;;  %v10093_v15 = vor.u32 %v12321_v9, %v10090_v10 }
 0x421   :  { %5196 = vmatpush.bf16.msrb.mxu0 %v10217_v22  ;;  %5209 = vmatpush.bf16.msrb.mxu1 %v10473_v49  ;;  %v12313_v22 = vld [vmem:[#allocation6 + $0x5c] sm:$0xf] }
 0x422   :  { %5222 = vmatpush.bf16.msrb.mxu2 %v10221_v28  ;;  %5235 = vmatpush.bf16.msrb.mxu3 %v10477_v29  ;;  %v10058_v49 = vld [vmem:[#allocation6 + $0x78] sm:$0xf0]  ;;  %v10057_v28 = vor.u32 %v12317_v47, %v10056_v14  ;;  %v10313_v29 = vor.u32 %v12381_v48, %v10312_v21  ;;  %v5274_v47 = vld [vmem:[#allocation3 + $0xb0] sm:$0xff]  ;;  %v12478_v21 = vld [vmem:[#allocation6 + $0x184] sm:$0xf] }
 0x423   :  { %v10061_v33 = vor.u32 %v12313_v22, %v10058_v49  ;;  %v10706_v49 = vld [vmem:[#allocation6 + $0x1a0] sm:$0xf0] }
 0x425   :  { %5197 = vmatpush.bf16.msrb.mxu0 %v10185_v37  ;;  %5210 = vmatpush.bf16.msrb.mxu1 %v10441_v2  ;;  %v12305_v37 = vld [vmem:[#allocation6 + $0x1c] sm:$0xf] }
 0x426   :  { %5223 = vmatpush.bf16.msrb.mxu2 %v10189_v40  ;;  %5236 = vmatpush.bf16.msrb.mxu3 %v10445_v41  ;;  %v10026_v2 = vld [vmem:[#allocation6 + $0x38] sm:$0xf0]  ;;  %v10025_v40 = vor.u32 %v12309_v32, %v10024_v31  ;;  %v10281_v41 = vor.u32 %v12373_v18, %v10280_v17  ;;  %v10928_v17 = vld [vmem:[#allocation6 + $0x340] sm:$0xf] }
 0x427   :  { %v10029_v4 = vor.u32 %v12305_v37, %v10026_v2  ;;  %v12538_v2 = vld [vmem:[#allocation6 + $0x35c] sm:$0xf0] }
 0x429   :  { %5198 = vmatpush.bf16.msrb.mxu0 %v10153_v50  ;;  %5211 = vmatpush.bf16.msrb.mxu1 %v10409_v20 }
 0x42a   :  { %5224 = vmatpush.bf16.msrb.mxu2 %v10157_v35  ;;  %5237 = vmatpush.bf16.msrb.mxu3 %v10413_v53 }
 0x42d   :  { %5199 = vmatpush.bf16.msrb.mxu0 %v10121_v58  ;;  %5212 = vmatpush.bf16.msrb.mxu1 %v10377_v26  ;;  %v12554_v26 = vld [vmem:[#allocation6 + $0x3dc] sm:$0xf0] }
 0x42e   :  { %5225 = vmatpush.bf16.msrb.mxu2 %v10125_v1  ;;  %5238 = vmatpush.bf16.msrb.mxu3 %v10381_v6  ;;  %v10993_v27 = vor.u32 %v12554_v26, %v10992_v57  ;;  %v12550_v1 = vld [vmem:[#allocation6 + $0x3c4] sm:$0xf] }
 0x42f   :  { %v10994_v6 = vld [vmem:[#allocation6 + $0x3e0] sm:$0xf0] }
 0x430   :  { %v10997_v8 = vor.u32 %v12550_v1, %v10994_v6  ;;  %v12462_v57 = vld [vmem:[#allocation6 + $0x104] sm:$0xf] }
 0x431   :  { %5200 = vmatpush.bf16.msrb.mxu0 %v10089_v59  ;;  %5213 = vmatpush.bf16.msrb.mxu1 %v10345_v62  ;;  %v10960_v59 = vld [vmem:[#allocation6 + $0x380] sm:$0xf]  ;;  %v12526_v26 = vld [vmem:[#allocation6 + $0x304] sm:$0xf] }
 0x432   :  { %5226 = vmatpush.bf16.msrb.mxu2 %v10093_v15  ;;  %5239 = vmatpush.bf16.msrb.mxu3 %v10349_v16  ;;  %v10705_v15 = vor.u32 %v12482_v13, %v10704_v12  ;;  %v12546_v16 = vld [vmem:[#allocation6 + $0x39c] sm:$0xf0] }
 0x433   :  { %v10961_v22 = vor.u32 %v12546_v16, %v10960_v59  ;;  %v10610_v16 = vld [vmem:[#allocation6 + $0xe0] sm:$0xf0] }
 0x435   :  { %5201 = vmatpush.bf16.msrb.mxu0 %v10057_v28  ;;  %5214 = vmatpush.bf16.msrb.mxu1 %v10313_v29  ;;  %v10709_v28 = vor.u32 %v12478_v21, %v10706_v49  ;;  %v10965_v29 = vor.u32 %v12542_v11, %v10962_v23  ;;  %v12518_v21 = vld [vmem:[#allocation6 + $0x2c4] sm:$0xf] }
 0x436   :  { %5227 = vmatpush.bf16.msrb.mxu2 %v10061_v33  ;;  %5240 = vmatpush.bf16.msrb.mxu3 %v10317_v34  ;;  %v10672_v33 = vld [vmem:[#allocation6 + $0x140] sm:$0xf] }
 0x437   :  { %v12474_v34 = vld [vmem:[#allocation6 + $0x15c] sm:$0xf0] }
 0x438   :  { %v10673_v37 = vor.u32 %v12474_v34, %v10672_v33  ;;  %v12514_v33 = vld [vmem:[#allocation6 + $0x29c] sm:$0xf0]  ;;  %v12446_v34 = vld [vmem:[#allocation6 + $0x84] sm:$0xf] }
 0x439   :  { %5202 = vmatpush.bf16.msrb.mxu0 %v10025_v40  ;;  %5215 = vmatpush.bf16.msrb.mxu1 %v10281_v41  ;;  %v10929_v41 = vor.u32 %v12538_v2, %v10928_v17  ;;  %v10578_v17 = vld [vmem:[#allocation6 + $0xa0] sm:$0xf0] }
 0x43a   :  { %5228 = vmatpush.bf16.msrb.mxu2 %v10029_v4  ;;  %5241 = vmatpush.bf16.msrb.mxu3 %v10285_v42  ;;  %v10677_v4 = vor.u32 %v12470_v38, %v10674_v39  ;;  %v12534_v42 = vld [vmem:[#allocation6 + $0x344] sm:$0xf] }
 0x43b   :  { %v12510_v2 = vld [vmem:[#allocation6 + $0x284] sm:$0xf] }
 0x43c   :  { %5203 = vmatmul.bf16.vlgmr.msrb.gmra.mxu0 %v13252_v61  ;;  %5216 = vmatmul.bf16.vlgmr.msrb.gmra.mxu1 %v13254_v25  ;;  %v10834_v38 = vld [vmem:[#allocation6 + $0x2a0] sm:$0xf0] }
 0x43d   :  { %5229 = vmatmul.bf16.vlgmr.msrb.gmra.mxu2 %v13252_v61  ;;  %5242 = vmatmul.bf16.vlgmr.msrb.gmra.mxu3 %v13254_v25  ;;  %v10737_v61 = vor.u32 %v12490_v24, %v10736_v56  ;;  %v12486_v25 = vld [vmem:[#allocation6 + $0x1c4] sm:$0xf]  ;;  %v10896_v56 = vld [vmem:[#allocation6 + $0x300] sm:$0xf] }
 0x43e   :  { %v10741_v44 = vor.u32 %v12486_v25, %v10738_v0  ;;  %6089 = vmatpush.bf16.msra.mxu1 %v10993_v27  ;;  %6115 = vmatpush.bf16.msra.mxu3 %v10997_v8  ;;  %v12530_v24 = vld [vmem:[#allocation6 + $0x31c] sm:$0xf0]  ;;  %v10898_v25 = vld [vmem:[#allocation6 + $0x320] sm:$0xf0] }
 0x43f   :  { %6076 = vmatpush.bf16.msra.mxu0 %v10737_v61  ;;  %v10642_v61 = vld [vmem:[#allocation6 + $0x120] sm:$0xf0]  ;;  %v10901_v6 = vor.u32 %v12526_v26, %v10898_v25  ;;  %v10608_v8 = vld [vmem:[#allocation6 + $0xc0] sm:$0xf] }
 0x440   :  { %6102 = vmatpush.bf16.msra.mxu2 %v10741_v44  ;;  %v10645_v1 = vor.u32 %v12462_v57, %v10642_v61  ;;  %v12434_v57 = vld [vmem:[#allocation6 + $0x1c] sm:$0xf0]  ;;  %v12430_v25 = vld [vmem:[#allocation6 + $0x4] sm:$0xf] }
 0x441   :  { %v10768_v61 = vld [vmem:[#allocation6 + $0x200] sm:$0xf] }
 0x442   :  { %6090 = vmatpush.bf16.msra.mxu1 %v10961_v22  ;;  %6116 = vmatpush.bf16.msra.mxu3 %v10965_v29  ;;  %v12450_v29 = vld [vmem:[#allocation6 + $0x9c] sm:$0xf0] }
 0x443   :  { %6077 = vmatpush.bf16.msra.mxu0 %v10705_v15  ;;  %v12498_v26 = vld [vmem:[#allocation6 + $0x21c] sm:$0xf0] }
 0x444   :  { %6103 = vmatpush.bf16.msra.mxu2 %v10709_v28 }
 0x446   :  { %6091 = vmatpush.bf16.msra.mxu1 %v10929_v41  ;;  %v10837_v41 = vor.u32 %v12510_v2, %v10834_v38 }
 0x447   :  { %6078 = vmatpush.bf16.msra.mxu0 %v10673_v37  ;;  %v10581_v37 = vor.u32 %v12446_v34, %v10578_v17  ;;  %v10968_v34 = vld [vmem:[#allocation6 + $0x388] sm:$0xf] }
 0x448   :  { %6104 = vmatpush.bf16.msra.mxu2 %v10677_v4  ;;  %v10544_v4 = vld [vmem:[#allocation6 + $0x40] sm:$0xf] }
 0x44c   :  { %6105 = vmatpush.bf16.msra.mxu2 %v10645_v1 }
 0x478   :  { %v5048_v5 = vpop.f32.mrf.mxu0  ;;  %v5061_v43 = vpop.f32.mrf.mxu1 }
 0x479   :  { %v5062_v45 = vadd.f32 %v5061_v43, %v5048_v5  ;;  %v10930_v5 = vld [vmem:[#allocation6 + $0x360] sm:$0xf0] }
 0x47b   :  { %v5276_v50 = vadd.f32 %v5272_v46, %v5062_v45  ;;  %v10933_v45 = vor.u32 %v12534_v42, %v10930_v5  ;;  %v12442_v42 = vld [vmem:[#allocation6 + $0x5c] sm:$0xf0] }
 0x47c   :  { %v10800_v5 = vld [vmem:[#allocation6 + $0x240] sm:$0xf] }
 0x47d   :  { %v5280_v60 = vmul.f32 0.5, %v5276_v50  ;;  %6117 = vmatpush.bf16.msra.mxu3 %v10933_v45  ;;  %v10545_v45 = vor.u32 %v12442_v42, %v10544_v4  ;;  %v10714_v4 = vld [vmem:[#allocation6 + $0x1a8] sm:$0xf0] }
 0x47e   :  { %v12543_v42 = vld [vmem:[#allocation6 + $0x38c] sm:$0xf] }
 0x47f   :  { %v5074_v20 = vpop.f32.mrf.mxu2  ;;  %v5087_v51 = vpop.f32.mrf.mxu3  ;;  %12851 = vtanh.f32 %v5280_v60 }
 0x480   :  { %v5088_v35 = vadd.f32 %v5087_v51, %v5074_v20  ;;  %v5050_v53 = vpop.f32.mrf.mxu0  ;;  %v5063_v36 = vpop.f32.mrf.mxu1  ;;  %v5275_v51 = vld [vmem:[#allocation3 + $0xb8] sm:$0xff] }
 0x481   :  { %6118 = vmatpush.bf16.msra.mxu3 %v10901_v6  ;;  %v10769_v6 = vor.u32 %v12498_v26, %v10768_v61  ;;  %v10648_v61 = vld [vmem:[#allocation6 + $0x108] sm:$0xf] }
 0x482   :  { %v5277_v54 = vadd.f32 %v5273_v52, %v5088_v35  ;;  %v10640_v52 = vld [vmem:[#allocation6 + $0x100] sm:$0xf]  ;;  %v12467_v26 = vld [vmem:[#allocation6 + $0x124] sm:$0xf0] }
 0x483   :  { %v12466_v35 = vld [vmem:[#allocation6 + $0x11c] sm:$0xf0] }
 0x484   :  { %v5284_v58 = vmul.f32 0.5, %v5277_v54  ;;  %v10641_v54 = vor.u32 %v12466_v35, %v10640_v52 }
 0x485   :  { %v12852_v31 = vpop.eup %12851 }
 0x486   :  { %12853 = vtanh.f32 %v5284_v58  ;;  %v5282_v43 = vmul.f32 0.5, %v12852_v31  ;;  %v10897_v58 = vor.u32 %v12530_v24, %v10896_v56  ;;  %6079 = vmatpush.bf16.msra.mxu0 %v10641_v54  ;;  %v10832_v31 = vld [vmem:[#allocation6 + $0x280] sm:$0xf] }
 0x487   :  { %v5076_v9 = vpop.f32.mrf.mxu2  ;;  %v5089_v10 = vpop.f32.mrf.mxu3  ;;  %v10512_v24 = vld [vmem:[#allocation6] sm:$0xf] }
 0x488   :  { %v5100_v62 = vpop.f32.mrf.mxu0  ;;  %v5113_v14 = vpop.f32.mrf.mxu1  ;;  %v5283_v27 = vadd.f32 0.5, %v5282_v43  ;;  %6092 = vmatpush.bf16.msra.mxu1 %v10897_v58  ;;  %v12458_v9 = vld [vmem:[#allocation6 + $0xdc] sm:$0xf0]  ;;  %v10513_v58 = vor.u32 %v12434_v57, %v10512_v24  ;;  %v10938_v57 = vld [vmem:[#allocation6 + $0x368] sm:$0xf0] }
 0x489   :  { %v5114_v48 = vadd.f32 %v5113_v14, %v5100_v62  ;;  %v10864_v10 = vld [vmem:[#allocation6 + $0x2c0] sm:$0xf]  ;;  %v10609_v62 = vor.u32 %v12458_v9, %v10608_v8  ;;  %v12494_v8 = vld [vmem:[#allocation6 + $0x204] sm:$0xf] }
 0x48a   :  { %v12522_v14 = vld [vmem:[#allocation6 + $0x2dc] sm:$0xf0]  ;;  %v10770_v9 = vld [vmem:[#allocation6 + $0x220] sm:$0xf0] }
 0x48b   :  { %v5278_v32 = vadd.f32 %v5274_v47, %v5114_v48  ;;  %v12454_v47 = vld [vmem:[#allocation6 + $0xc4] sm:$0xf]  ;;  %v10865_v15 = vor.u32 %v12522_v14, %v10864_v10  ;;  %6080 = vmatpush.bf16.msra.mxu0 %v10609_v62  ;;  %v10744_v62 = vld [vmem:[#allocation6 + $0x1c8] sm:$0xf] }
 0x48c   :  { %v12854_v18 = vpop.eup %12853  ;;  %v10866_v48 = vld [vmem:[#allocation6 + $0x2e0] sm:$0xf0]  ;;  %v10613_v49 = vor.u32 %v12454_v47, %v10610_v16  ;;  %v12491_v14 = vld [vmem:[#allocation6 + $0x1e4] sm:$0xf0] }
 0x48d   :  { %v5286_v40 = vmul.f32 0.5, %v12854_v18  ;;  %12855 = vtanh.f32 %v5278_v32  ;;  %v10869_v11 = vor.u32 %v12518_v21, %v10866_v48  ;;  %6093 = vmatpush.bf16.msra.mxu1 %v10865_v15  ;;  %v10833_v18 = vor.u32 %v12514_v33, %v10832_v31  ;;  %v11000_v47 = vld [vmem:[#allocation6 + $0x3c8] sm:$0xf] }
 0x48e   :  { %6106 = vmatpush.bf16.msra.mxu2 %v10613_v49  ;;  %v10745_v21 = vor.u32 %v12491_v14, %v10744_v62  ;;  %v12555_v48 = vld [vmem:[#allocation6 + $0x3e4] sm:$0xf0]  ;;  %v12487_v49 = vld [vmem:[#allocation6 + $0x1cc] sm:$0xf] }
 0x48f   :  { %v5287_v46 = vadd.f32 0.5, %v5286_v40  ;;  %v5126_v50 = vpop.f32.mrf.mxu2  ;;  %v5139_v20 = vpop.f32.mrf.mxu3  ;;  %6119 = vmatpush.bf16.msra.mxu3 %v10869_v11  ;;  %v10746_v11 = vld [vmem:[#allocation6 + $0x1e8] sm:$0xf0]  ;;  %v10712_v31 = vld [vmem:[#allocation6 + $0x188] sm:$0xf] }
 0x490   :  { %v5140_v53 = vadd.f32 %v5139_v20, %v5126_v50  ;;  %v5102_v36 = vpop.f32.mrf.mxu0  ;;  %v5115_v60 = vpop.f32.mrf.mxu1  ;;  %v12438_v50 = vld [vmem:[#allocation6 + $0x44] sm:$0xf]  ;;  %v12483_v33 = vld [vmem:[#allocation6 + $0x1a4] sm:$0xf0] }
 0x491   :  { %v5293_v12 = vmul.f32 %v5287_v46, %v13235_v63  ;;  %v10576_v63 = vld [vmem:[#allocation6 + $0x80] sm:$0xf]  ;;  %6094 = vmatpush.bf16.msra.mxu1 %v10833_v18  ;;  %v10546_v20 = vld [vmem:[#allocation6 + $0x60] sm:$0xf0]  ;;  %v10713_v17 = vor.u32 %v12483_v33, %v10712_v31  ;;  %v12547_v18 = vld [vmem:[#allocation6 + $0x3a4] sm:$0xf0] }
 0x492   :  { %v5279_v0 = vadd.f32 %v5275_v51, %v5140_v53  ;;  %v10577_v32 = vor.u32 %v12450_v29, %v10576_v63  ;;  %6107 = vmatpush.bf16.msra.mxu2 %v10581_v37  ;;  %v12506_v46 = vld [vmem:[#allocation6 + $0x25c] sm:$0xf0]  ;;  %v10549_v35 = vor.u32 %v12438_v50, %v10546_v20  ;;  %v12502_v53 = vld [vmem:[#allocation6 + $0x244] sm:$0xf]  ;;  %v12551_v63 = vld [vmem:[#allocation6 + $0x3cc] sm:$0xf] }
 0x493   :  { %v12856_v44 = vpop.eup %12855  ;;  %6120 = vmatpush.bf16.msra.mxu3 %v10837_v41  ;;  %v10801_v52 = vor.u32 %v12506_v46, %v10800_v5  ;;  %v10802_v36 = vld [vmem:[#allocation6 + $0x260] sm:$0xf0]  ;;  %v11002_v29 = vld [vmem:[#allocation6 + $0x3e8] sm:$0xf0]  ;;  %v10969_v41 = vor.u32 %v12547_v18, %v10968_v34  ;;  %v10680_v46 = vld [vmem:[#allocation6 + $0x148] sm:$0xf] }
 0x494   :  { %v5294_v13 = vmul.f32 %v12856_v44, %v5283_v27  ;;  %v5289_v59 = vmul.f32 0.5, %v5279_v0  ;;  %6081 = vmatpush.bf16.msra.mxu0 %v10577_v32  ;;  %v10805_v54 = vor.u32 %v12502_v53, %v10802_v36  ;;  %v10514_v44 = vld [vmem:[#allocation6 + $0x20] sm:$0xf0]  ;;  %v11005_v32 = vor.u32 %v12551_v63, %v11002_v29  ;;  %v12479_v37 = vld [vmem:[#allocation6 + $0x18c] sm:$0xf] }
 0x495   :  { %6095 = vmatpush.bf16.msra.mxu1 %v10801_v52  ;;  %v10970_v5 = vld [vmem:[#allocation6 + $0x3a8] sm:$0xf0]  ;;  %v12475_v50 = vld [vmem:[#allocation6 + $0x164] sm:$0xf0] }
 0x496   :  { %v13273_v22 = vadd.f32 %v5294_v13, %v5293_v12  ;;  %12857 = vtanh.f32 %v5289_v59  ;;  %6108 = vmatpush.bf16.msra.mxu2 %v10549_v35  ;;  %v10517_v13 = vor.u32 %v12430_v25, %v10514_v44  ;;  %v10773_v59 = vor.u32 %v12494_v8, %v10770_v9  ;;  %v10936_v35 = vld [vmem:[#allocation6 + $0x348] sm:$0xf]  ;;  %v12471_v36 = vld [vmem:[#allocation6 + $0x14c] sm:$0xf] }
 0x497   :  { %v5128_v23 = vpop.f32.mrf.mxu2  ;;  %v5141_v28 = vpop.f32.mrf.mxu3  ;;  %6121 = vmatpush.bf16.msra.mxu3 %v10805_v54  ;;  %v10681_v52 = vor.u32 %v12475_v50, %v10680_v46  ;;  %v12539_v53 = vld [vmem:[#allocation6 + $0x364] sm:$0xf0]  ;;  %v12527_v9 = vld [vmem:[#allocation6 + $0x30c] sm:$0xf] }
 0x498   :  { %12859 = vtanh.f32 %v13273_v22  ;;  %6082 = vmatpush.bf16.msra.mxu0 %v10545_v45  ;;  %v11001_v23 = vor.u32 %v12555_v48, %v11000_v47  ;;  %v10749_v28 = vor.u32 %v12487_v49, %v10746_v11  ;;  %v10973_v45 = vor.u32 %v12543_v42, %v10970_v5  ;;  %v10904_v25 = vld [vmem:[#allocation6 + $0x308] sm:$0xf]  ;;  %v10618_v48 = vld [vmem:[#allocation6 + $0xe8] sm:$0xf0] }
 0x499   :  { %v13276_v39 = vpop.f32.mrf.mxu0  ;;  %v13278_v40 = vpop.f32.mrf.mxu1  ;;  %6096 = vmatpush.bf16.msra.mxu1 %v10769_v6  ;;  %v10650_v6 = vld [vmem:[#allocation6 + $0x128] sm:$0xf0]  ;;  %v12459_v62 = vld [vmem:[#allocation6 + $0xe4] sm:$0xf0] }
 0x49a   :  { %6109 = vmatpush.bf16.msra.mxu2 %v10517_v13  ;;  %v5166_v2 = vadd.f32 %v13278_v40, %v13276_v39  ;;  %v10937_v39 = vor.u32 %v12539_v53, %v10936_v35  ;;  %v10682_v40 = vld [vmem:[#allocation6 + $0x168] sm:$0xf0]  ;;  %v10872_v14 = vld [vmem:[#allocation6 + $0x2c8] sm:$0xf] }
 0x49b   :  { %6122 = vmatpush.bf16.msra.mxu3 %v10773_v59  ;;  %v10685_v24 = vor.u32 %v12471_v36, %v10682_v40  ;;  %v10616_v59 = vld [vmem:[#allocation6 + $0xc8] sm:$0xf]  ;;  %v12519_v49 = vld [vmem:[#allocation6 + $0x2cc] sm:$0xf] }
 0x49c   :  { %v12858_v43 = vpop.eup %12857  ;;  %6083 = vmatpush.bf16.msra.mxu0 %v10513_v58  ;;  %v5247_v54 = vadd.f32 %v5166_v2, %v13126_v19  ;;  %v10617_v47 = vor.u32 %v12459_v62, %v10616_v59  ;;  %v10874_v11 = vld [vmem:[#allocation6 + $0x2e8] sm:$0xf0]  ;;  %v10584_v63 = vld [vmem:[#allocation6 + $0x88] sm:$0xf] }
 0x49d   :  { %v5291_v51 = vmul.f32 0.5, %v12858_v43  ;;  %6141 = vmatpush.bf16.msrb.mxu1 %v11001_v23  ;;  %v10717_v43 = vor.u32 %v12479_v37, %v10714_v4  ;;  %v12451_v29 = vld [vmem:[#allocation6 + $0xa4] sm:$0xf0]  ;;  %v12447_v34 = vld [vmem:[#allocation6 + $0x8c] sm:$0xf] }
 0x49e   :  { %v12860_v60 = vpop.eup %12859  ;;  %6154 = vmatpush.bf16.msrb.mxu2 %v10749_v28  ;;  %v10877_v28 = vor.u32 %v12519_v49, %v10874_v11  ;;  %v10840_v31 = vld [vmem:[#allocation6 + $0x288] sm:$0xf]  ;;  %v12503_v35 = vld [vmem:[#allocation6 + $0x24c] sm:$0xf] }
 0x49f   :  { %v5292_v56 = vadd.f32 0.5, %v5291_v51  ;;  %6167 = vmatpush.bf16.msrb.mxu3 %v11005_v32  ;;  %v10585_v32 = vor.u32 %v12451_v29, %v10584_v63  ;;  %v12515_v33 = vld [vmem:[#allocation6 + $0x2a4] sm:$0xf0] }
 0x4a0   :  { %6128 = vmatpush.bf16.msrb.mxu0 %v10745_v21  ;;  %v10841_v37 = vor.u32 %v12515_v33, %v10840_v31  ;;  %v10552_v4 = vld [vmem:[#allocation6 + $0x48] sm:$0xf] }
 0x4a1   :  { %v5297_v27 = vmul.f32 %v12860_v60, %v5292_v56  ;;  %v5154_v10 = vpop.f32.mrf.mxu0  ;;  %v5167_v12 = vpop.f32.mrf.mxu1  ;;  %6142 = vmatpush.bf16.msrb.mxu1 %v10969_v41  ;;  %v12535_v60 = vld [vmem:[#allocation6 + $0x34c] sm:$0xf]  ;;  %v10808_v46 = vld [vmem:[#allocation6 + $0x248] sm:$0xf] }
 0x4a2   :  { %v5178_v0 = vpop.f32.mrf.mxu2  ;;  %v5191_v1 = vpop.f32.mrf.mxu3  ;;  %6155 = vmatpush.bf16.msrb.mxu2 %v10717_v43  ;;  %v10941_v58 = vor.u32 %v12535_v60, %v10938_v57  ;;  %v10906_v10 = vld [vmem:[#allocation6 + $0x328] sm:$0xf0]  ;;  %v5251_v12 = vmul.f32 0.5, %v5247_v54  ;;  %v12507_v50 = vld [vmem:[#allocation6 + $0x264] sm:$0xf0] }
 0x4a3   :  { %v5298_v15 = vpack.c.bf16 %v5297_v27, %v5297_v27  ;;  %v5192_v16 = vadd.f32 %v5191_v1, %v5178_v0  ;;  %6168 = vmatpush.bf16.msrb.mxu3 %v10973_v45  ;;  %v10649_v27 = vor.u32 %v12467_v26, %v10648_v61  ;;  %v12531_v0 = vld [vmem:[#allocation6 + $0x324] sm:$0xf0]  ;;  %v12463_v1 = vld [vmem:[#allocation6 + $0x10c] sm:$0xf]  ;;  %v10909_v13 = vor.u32 %v12527_v9, %v10906_v10 }
 0x4a4   :  { %6129 = vmatpush.bf16.msrb.mxu0 %v10713_v17  ;;  %v10905_v44 = vor.u32 %v12531_v0, %v10904_v25  ;;  %v10653_v8 = vor.u32 %v12463_v1, %v10650_v6  ;;  %v10586_v17 = vld [vmem:[#allocation6 + $0xa8] sm:$0xf0]  ;;  %v12443_v45 = vld [vmem:[#allocation6 + $0x64] sm:$0xf0]  ;;  %v10809_v54 = vor.u32 %v12507_v50, %v10808_v46 }
 0x4a5   :  { %5299 = vst [vmem:[#allocation2] sm:$0xf] %v5298_v15  ;;  %v5248_v38 = vadd.f32 %v5192_v16, %v13129_v30  ;;  %6143 = vmatpush.bf16.msrb.mxu1 %v10937_v39  ;;  %v12523_v15 = vld [vmem:[#allocation6 + $0x2e4] sm:$0xf0]  ;;  %v12455_v16 = vld [vmem:[#allocation6 + $0xcc] sm:$0xf]  ;;  %v10589_v2 = vor.u32 %v12447_v34, %v10586_v17  ;;  %v10553_v36 = vor.u32 %v12443_v45, %v10552_v4 }
 0x4a6   :  { %6156 = vmatpush.bf16.msrb.mxu2 %v10685_v24  ;;  %v10873_v21 = vor.u32 %v12523_v15, %v10872_v14  ;;  %v10621_v23 = vor.u32 %v12455_v16, %v10618_v48  ;;  %v10842_v41 = vld [vmem:[#allocation6 + $0x2a8] sm:$0xf0]  ;;  %v10520_v24 = vld [vmem:[#allocation6 + $0x8] sm:$0xf]  ;;  %v11010_v45 = vld [vmem:[#allocation6 + $0x3f0] sm:$0xf0] }
 0x4a7   :  { %v5255_v56 = vmul.f32 0.5, %v5248_v38  ;;  %6169 = vmatpush.bf16.msrb.mxu3 %v10941_v58  ;;  %v12511_v38 = vld [vmem:[#allocation6 + $0x28c] sm:$0xf]  ;;  %v12435_v57 = vld [vmem:[#allocation6 + $0x24] sm:$0xf0] }
 0x4a8   :  { %6130 = vmatpush.bf16.msrb.mxu0 %v10681_v52  ;;  %v10845_v43 = vor.u32 %v12511_v38, %v10842_v41  ;;  %v10554_v52 = vld [vmem:[#allocation6 + $0x68] sm:$0xf0]  ;;  %v10776_v58 = vld [vmem:[#allocation6 + $0x208] sm:$0xf]  ;;  %v12556_v38 = vld [vmem:[#allocation6 + $0x3ec] sm:$0xf0] }
 0x4a9   :  { %12861 = vtanh.f32 %v5255_v56  ;;  %6144 = vmatpush.bf16.msrb.mxu1 %v10905_v44  ;;  %v10810_v39 = vld [vmem:[#allocation6 + $0x268] sm:$0xf0]  ;;  %v12499_v26 = vld [vmem:[#allocation6 + $0x224] sm:$0xf0]  ;;  %v10521_v44 = vor.u32 %v12435_v57, %v10520_v24  ;;  %v12488_v41 = vld [vmem:[#allocation6 + $0x1d4] sm:$0xf] }
 0x4aa   :  { %v5180_v20 = vpop.f32.mrf.mxu2  ;;  %v5193_v51 = vpop.f32.mrf.mxu3  ;;  %6157 = vmatpush.bf16.msrb.mxu2 %v10653_v8  ;;  %12863 = vtanh.f32 %v5251_v12  ;;  %v10813_v61 = vor.u32 %v12503_v35, %v10810_v39  ;;  %v12431_v25 = vld [vmem:[#allocation6 + $0xc] sm:$0xf]  ;;  %v10777_v10 = vor.u32 %v12499_v26, %v10776_v58  ;;  %v12484_v35 = vld [vmem:[#allocation6 + $0x1ac] sm:$0xf0]  ;;  %v10978_v24 = vld [vmem:[#allocation6 + $0x3b0] sm:$0xf0] }
 0x4ab   :  { %6170 = vmatpush.bf16.msrb.mxu3 %v10909_v13  ;;  %v12439_v51 = vld [vmem:[#allocation6 + $0x4c] sm:$0xf]  ;;  %v10976_v39 = vld [vmem:[#allocation6 + $0x390] sm:$0xf] }
 0x4ac   :  { %6131 = vmatpush.bf16.msrb.mxu0 %v10649_v27  ;;  %v10557_v56 = vor.u32 %v12439_v51, %v10554_v52  ;;  %v10522_v27 = vld [vmem:[#allocation6 + $0x28] sm:$0xf0]  ;;  %v10720_v52 = vld [vmem:[#allocation6 + $0x190] sm:$0xf] }
 0x4ad   :  { %6145 = vmatpush.bf16.msrb.mxu1 %v10873_v21  ;;  %v12495_v0 = vld [vmem:[#allocation6 + $0x20c] sm:$0xf]  ;;  %v10525_v12 = vor.u32 %v12431_v25, %v10522_v27  ;;  %v10721_v57 = vor.u32 %v12484_v35, %v10720_v52  ;;  %v12476_v26 = vld [vmem:[#allocation6 + $0x16c] sm:$0xf0]  ;;  %v12512_v52 = vld [vmem:[#allocation6 + $0x294] sm:$0xf] }
 0x4ae   :  { %6158 = vmatpush.bf16.msrb.mxu2 %v10621_v23  ;;  %v10778_v1 = vld [vmem:[#allocation6 + $0x228] sm:$0xf0]  ;;  %v10850_v35 = vld [vmem:[#allocation6 + $0x2b0] sm:$0xf0] }
 0x4af   :  { %v12862_v18 = vpop.eup %12861  ;;  %6171 = vmatpush.bf16.msrb.mxu3 %v10877_v28 }
 0x4b0   :  { %6132 = vmatpush.bf16.msrb.mxu0 %v10617_v47  ;;  %v5257_v53 = vmul.f32 0.5, %v12862_v18  ;;  %v12864_v40 = vpop.eup %12863  ;;  %v10781_v47 = vor.u32 %v12495_v0, %v10778_v1  ;;  %v10752_v18 = vld [vmem:[#allocation6 + $0x1d0] sm:$0xf] }
 0x4b1   :  { %6146 = vmatpush.bf16.msrb.mxu1 %v10841_v37  ;;  %v5253_v6 = vmul.f32 0.5, %v12864_v40  ;;  %v12492_v37 = vld [vmem:[#allocation6 + $0x1ec] sm:$0xf0] }
 0x4b2   :  { %6159 = vmatpush.bf16.msrb.mxu2 %v10589_v2  ;;  %v5258_v13 = vadd.f32 0.5, %v5257_v53  ;;  %v12548_v40 = vld [vmem:[#allocation6 + $0x3ac] sm:$0xf0] }
 0x4b3   :  { %6172 = vmatpush.bf16.msrb.mxu3 %v10845_v43  ;;  %v5254_v15 = vadd.f32 0.5, %v5253_v6  ;;  %v12552_v43 = vld [vmem:[#allocation6 + $0x3d4] sm:$0xf]  ;;  %v10977_v58 = vor.u32 %v12548_v40, %v10976_v39  ;;  %v10944_v0 = vld [vmem:[#allocation6 + $0x350] sm:$0xf] }
 0x4b4   :  { %6133 = vmatpush.bf16.msrb.mxu0 %v10585_v32  ;;  %v5264_v48 = vmul.f32 %v5258_v13, %v13249_v3  ;;  %v11008_v3 = vld [vmem:[#allocation6 + $0x3d0] sm:$0xf]  ;;  %v12472_v6 = vld [vmem:[#allocation6 + $0x154] sm:$0xf] }
 0x4b5   :  { %6147 = vmatpush.bf16.msrb.mxu1 %v10809_v54  ;;  %v11009_v51 = vor.u32 %v12556_v38, %v11008_v3  ;;  %v10722_v54 = vld [vmem:[#allocation6 + $0x1b0] sm:$0xf0]  ;;  %v12540_v1 = vld [vmem:[#allocation6 + $0x36c] sm:$0xf0] }
 0x4b6   :  { %6160 = vmatpush.bf16.msrb.mxu2 %v10557_v56  ;;  %v12544_v56 = vld [vmem:[#allocation6 + $0x394] sm:$0xf]  ;;  %v10656_v13 = vld [vmem:[#allocation6 + $0x110] sm:$0xf] }
 0x4b7   :  { %6173 = vmatpush.bf16.msrb.mxu3 %v10813_v61  ;;  %v10688_v61 = vld [vmem:[#allocation6 + $0x150] sm:$0xf]  ;;  %v10981_v27 = vor.u32 %v12544_v56, %v10978_v24  ;;  %v10882_v3 = vld [vmem:[#allocation6 + $0x2f0] sm:$0xf0] }
 0x4b8   :  { %6134 = vmatpush.bf16.msrb.mxu0 %v10553_v36  ;;  %v11013_v36 = vor.u32 %v12552_v43, %v11010_v45  ;;  %v10848_v43 = vld [vmem:[#allocation6 + $0x290] sm:$0xf] }
 0x4b9   :  { %v5204_v42 = vpop.f32.mrf.mxu0  ;;  %v5217_v5 = vpop.f32.mrf.mxu1  ;;  %6148 = vmatpush.bf16.msrb.mxu1 %v10777_v10  ;;  %v10689_v10 = vor.u32 %v12476_v26, %v10688_v61  ;;  %v12516_v45 = vld [vmem:[#allocation6 + $0x2ac] sm:$0xf0]  ;;  %v12504_v61 = vld [vmem:[#allocation6 + $0x254] sm:$0xf] }
 0x4ba   :  { %v5218_v20 = vadd.f32 %v5217_v5, %v5204_v42  ;;  %6161 = vmatpush.bf16.msrb.mxu2 %v10525_v12  ;;  %v10754_v5 = vld [vmem:[#allocation6 + $0x1f0] sm:$0xf0]  ;;  %v10945_v12 = vor.u32 %v12540_v1, %v10944_v0  ;;  %v10560_v39 = vld [vmem:[#allocation6 + $0x50] sm:$0xf] }
 0x4bb   :  { %6174 = vmatpush.bf16.msrb.mxu3 %v10781_v47  ;;  %v10757_v53 = vor.u32 %v12488_v41, %v10754_v5  ;;  %v10912_v47 = vld [vmem:[#allocation6 + $0x310] sm:$0xf]  ;;  %v10818_v26 = vld [vmem:[#allocation6 + $0x270] sm:$0xf0] }
 0x4bc   :  { %v5249_v60 = vadd.f32 %v5218_v20, %v13134_v55  ;;  %6135 = vmatpush.bf16.msrb.mxu0 %v10521_v44  ;;  %v10753_v20 = vor.u32 %v12492_v37, %v10752_v18  ;;  %v10690_v44 = vld [vmem:[#allocation6 + $0x170] sm:$0xf0]  ;;  %v10592_v41 = vld [vmem:[#allocation6 + $0x90] sm:$0xf] }
 0x4bd   :  { %v10626_v18 = vld [vmem:[#allocation6 + $0xf0] sm:$0xf0]  ;;  %v12444_v40 = vld [vmem:[#allocation6 + $0x6c] sm:$0xf0] }
 0x4be   :  { %12865 = vtanh.f32 %v5249_v60  ;;  %v12480_v60 = vld [vmem:[#allocation6 + $0x194] sm:$0xf]  ;;  %v10816_v56 = vld [vmem:[#allocation6 + $0x250] sm:$0xf] }
 0x4bf   :  { %v10725_v25 = vor.u32 %v12480_v60, %v10722_v54  ;;  %v12520_v37 = vld [vmem:[#allocation6 + $0x2d4] sm:$0xf]  ;;  %v10853_v54 = vor.u32 %v12512_v52, %v10850_v35  ;;  %v12508_v24 = vld [vmem:[#allocation6 + $0x26c] sm:$0xf0]  ;;  %v10952_v52 = vld [vmem:[#allocation6 + $0x358] sm:$0xf] }
 0x4c0   :  { %v5230_v8 = vpop.f32.mrf.mxu2  ;;  %v5243_v9 = vpop.f32.mrf.mxu3  ;;  %v10885_v5 = vor.u32 %v12520_v37, %v10882_v3  ;;  %v10817_v0 = vor.u32 %v12508_v24, %v10816_v56  ;;  %v12436_v1 = vld [vmem:[#allocation6 + $0x2c] sm:$0xf0]  ;;  %v10984_v37 = vld [vmem:[#allocation6 + $0x398] sm:$0xf] }
 0x4c1   :  { %v5244_v59 = vadd.f32 %v5243_v9, %v5230_v8  ;;  %v5206_v62 = vpop.f32.mrf.mxu0  ;;  %v5219_v14 = vpop.f32.mrf.mxu1  ;;  %v12536_v8 = vld [vmem:[#allocation6 + $0x354] sm:$0xf]  ;;  %v12549_v3 = vld [vmem:[#allocation6 + $0x3b4] sm:$0xf0] }
 0x4c2   :  { %v10946_v9 = vld [vmem:[#allocation6 + $0x370] sm:$0xf0]  ;;  %v10693_v62 = vor.u32 %v12472_v6, %v10690_v44  ;;  %v10784_v6 = vld [vmem:[#allocation6 + $0x210] sm:$0xf]  ;;  %v12541_v35 = vld [vmem:[#allocation6 + $0x374] sm:$0xf0] }
 0x4c3   :  { %v5250_v16 = vadd.f32 %v5244_v59, %v13137_v7  ;;  %v12468_v59 = vld [vmem:[#allocation6 + $0x12c] sm:$0xf0]  ;;  %v10949_v14 = vor.u32 %v12536_v8, %v10946_v9  ;;  %v10821_v9 = vor.u32 %v12504_v61, %v10818_v26  ;;  %v10664_v56 = vld [vmem:[#allocation6 + $0x118] sm:$0xf] }
 0x4c4   :  { %v12866_v21 = vpop.eup %12865  ;;  %v12500_v44 = vld [vmem:[#allocation6 + $0x22c] sm:$0xf0]  ;;  %v12469_v24 = vld [vmem:[#allocation6 + $0x134] sm:$0xf0] }
 0x4c5   :  { %v5265_v49 = vmul.f32 %v12866_v21, %v5254_v15  ;;  %v5260_v11 = vmul.f32 0.5, %v5250_v16  ;;  %v12532_v15 = vld [vmem:[#allocation6 + $0x32c] sm:$0xf0]  ;;  %v12464_v16 = vld [vmem:[#allocation6 + $0x114] sm:$0xf] }
 0x4c6   :  { %v10658_v21 = vld [vmem:[#allocation6 + $0x130] sm:$0xf0]  ;;  %v10920_v61 = vld [vmem:[#allocation6 + $0x318] sm:$0xf] }
 0x4c7   :  { %v13287_v23 = vadd.f32 %v5265_v49, %v5264_v48  ;;  %12867 = vtanh.f32 %v5260_v11  ;;  %v12528_v48 = vld [vmem:[#allocation6 + $0x314] sm:$0xf]  ;;  %v10657_v11 = vor.u32 %v12468_v59, %v10656_v13  ;;  %v12533_v26 = vld [vmem:[#allocation6 + $0x334] sm:$0xf0] }
 0x4c8   :  { %v5232_v28 = vpop.f32.mrf.mxu2  ;;  %v5245_v63 = vpop.f32.mrf.mxu3  ;;  %v10914_v49 = vld [vmem:[#allocation6 + $0x330] sm:$0xf0] }
 0x4c9   :  { %12869 = vtanh.f32 %v13287_v23  ;;  %v10913_v28 = vor.u32 %v12532_v15, %v10912_v47  ;;  %v10624_v63 = vld [vmem:[#allocation6 + $0xd0] sm:$0xf]  ;;  %v12496_v13 = vld [vmem:[#allocation6 + $0x214] sm:$0xf]  ;;  %v11016_v47 = vld [vmem:[#allocation6 + $0x3d8] sm:$0xf] }
 0x4ca   :  { %v10786_v59 = vld [vmem:[#allocation6 + $0x230] sm:$0xf0]  ;;  %v12557_v15 = vld [vmem:[#allocation6 + $0x3f4] sm:$0xf0] }
 0x4cd   :  { %v12868_v29 = vpop.eup %12867 }
 0x4ce   :  { %v5262_v31 = vmul.f32 0.5, %v12868_v29  ;;  %v12460_v29 = vld [vmem:[#allocation6 + $0xec] sm:$0xf0] }
 0x4cf   :  { %v12870_v32 = vpop.eup %12869 }
 0x4d0   :  { %v5263_v33 = vadd.f32 0.5, %v5262_v31  ;;  %v10661_v31 = vor.u32 %v12464_v16, %v10658_v21  ;;  %v12489_v16 = vld [vmem:[#allocation6 + $0x1dc] sm:$0xf] }
 0x4d2   :  { %v5268_v34 = vmul.f32 %v12870_v32, %v5263_v33  ;;  %v10917_v32 = vor.u32 %v12528_v48, %v10914_v49  ;;  %v10880_v33 = vld [vmem:[#allocation6 + $0x2d0] sm:$0xf]  ;;  %v10785_v48 = vor.u32 %v12500_v44, %v10784_v6  ;;  %v10762_v49 = vld [vmem:[#allocation6 + $0x1f8] sm:$0xf0]  ;;  %v10665_v6 = vor.u32 %v12469_v24, %v10664_v56 }
 0x4d3   :  { %v10921_v44 = vor.u32 %v12533_v26, %v10920_v61  ;;  %v12497_v56 = vld [vmem:[#allocation6 + $0x21c] sm:$0xf] }
 0x4d4   :  { %v5269_v17 = vpack.c.bf16 %v5268_v34, %v5268_v34  ;;  %v12524_v34 = vld [vmem:[#allocation6 + $0x2ec] sm:$0xf0]  ;;  %v10794_v24 = vld [vmem:[#allocation6 + $0x238] sm:$0xf0] }
 0x4d5   :  { %v10881_v38 = vor.u32 %v12524_v34, %v10880_v33  ;;  %v10728_v33 = vld [vmem:[#allocation6 + $0x198] sm:$0xf]  ;;  %v10797_v26 = vor.u32 %v12497_v56, %v10794_v24  ;;  %v12598_v56 = vld [vmem:[#allocation6 + $0x144] sm:$0xf] }
 0x4d6   :  { %5270 = vst [vmem:[#allocation2 + $0x4] sm:$0xf] %v5269_v17  ;;  %v12456_v17 = vld [vmem:[#allocation6 + $0xd4] sm:$0xf]  ;;  %v12485_v34 = vld [vmem:[#allocation6 + $0x1b4] sm:$0xf0] }
 0x4d7   :  { %v11186_v24 = vld [vmem:[#allocation6 + $0x160] sm:$0xf0] }
 0x4dd   :  { %v5300_v2 = vld [vmem:[#allocation2] sm:$0xff] }
 0x4de   :  { %v5430_v4 = vunpack.c.l.b16 %v5300_v2  ;;  %v5431_v42 = vunpack.c.h.b16 %v5300_v2  ;;  %v10625_v2 = vor.u32 %v12460_v29, %v10624_v63  ;;  %v10789_v29 = vor.u32 %v12496_v13, %v10786_v59  ;;  %v10888_v13 = vld [vmem:[#allocation6 + $0x2d8] sm:$0xf] }
 0x4df   :  { %v12525_v59 = vld [vmem:[#allocation6 + $0x2f4] sm:$0xf0] }
 0x4e0   :  { %v13290_v46 = vpack.c.b16 %v5430_v4, %v5430_v4  ;;  %v13292_v50 = vpack.c.b16 %v5431_v42, %v5431_v42  ;;  %v12452_v4 = vld [vmem:[#allocation6 + $0xac] sm:$0xf0]  ;;  %v10629_v42 = vor.u32 %v12456_v17, %v10626_v18  ;;  %v10765_v17 = vor.u32 %v12489_v16, %v10762_v49  ;;  %v12453_v49 = vld [vmem:[#allocation6 + $0xb4] sm:$0xf0] }
 0x4e2   :  { %6084 = vmatmul.bf16.vlgmr.msra.gmra.mxu0 %v13290_v46  ;;  %6097 = vmatmul.bf16.vlgmr.msra.gmra.mxu1 %v13292_v50 }
 0x4e3   :  { %6110 = vmatmul.bf16.vlgmr.msra.gmra.mxu2 %v13290_v46  ;;  %6123 = vmatmul.bf16.vlgmr.msra.gmra.mxu3 %v13292_v50 }
 0x4e4   :  { %6180 = vmatpush.bf16.msra.mxu0 %v10753_v20  ;;  %6193 = vmatpush.bf16.msra.mxu1 %v11009_v51  ;;  %v12448_v20 = vld [vmem:[#allocation6 + $0x94] sm:$0xf] }
 0x4e5   :  { %6206 = vmatpush.bf16.msra.mxu2 %v10757_v53  ;;  %6219 = vmatpush.bf16.msra.mxu3 %v11013_v36  ;;  %v10594_v51 = vld [vmem:[#allocation6 + $0xb0] sm:$0xf0]  ;;  %v10593_v53 = vor.u32 %v12452_v4, %v10592_v41  ;;  %v10849_v36 = vor.u32 %v12516_v45, %v10848_v43  ;;  %v12545_v41 = vld [vmem:[#allocation6 + $0x39c] sm:$0xf]  ;;  %v10696_v43 = vld [vmem:[#allocation6 + $0x158] sm:$0xf] }
 0x4e6   :  { %v10597_v60 = vor.u32 %v12448_v20, %v10594_v51  ;;  %v10986_v4 = vld [vmem:[#allocation6 + $0x3b8] sm:$0xf0]  ;;  %v12477_v45 = vld [vmem:[#allocation6 + $0x174] sm:$0xf0] }
 0x4e7   :  { %v10989_v51 = vor.u32 %v12545_v41, %v10986_v4  ;;  %v10824_v41 = vld [vmem:[#allocation6 + $0x258] sm:$0xf] }
 0x4e8   :  { %6181 = vmatpush.bf16.msra.mxu0 %v10721_v57  ;;  %6194 = vmatpush.bf16.msra.mxu1 %v10977_v58  ;;  %v12440_v57 = vld [vmem:[#allocation6 + $0x54] sm:$0xf]  ;;  %v12509_v4 = vld [vmem:[#allocation6 + $0x274] sm:$0xf0] }
 0x4e9   :  { %6207 = vmatpush.bf16.msra.mxu2 %v10725_v25  ;;  %6220 = vmatpush.bf16.msra.mxu3 %v10981_v27  ;;  %v10562_v58 = vld [vmem:[#allocation6 + $0x70] sm:$0xf0]  ;;  %v10528_v25 = vld [vmem:[#allocation6 + $0x10] sm:$0xf]  ;;  %v10561_v27 = vor.u32 %v12444_v40, %v10560_v39  ;;  %v12537_v39 = vld [vmem:[#allocation6 + $0x35c] sm:$0xf] }
 0x4ea   :  { %v10565_v8 = vor.u32 %v12440_v57, %v10562_v58  ;;  %v10529_v21 = vor.u32 %v12436_v1, %v10528_v25  ;;  %v10954_v40 = vld [vmem:[#allocation6 + $0x378] sm:$0xf0] }
 0x4eb   :  { %v10957_v58 = vor.u32 %v12537_v39, %v10954_v40  ;;  %v12465_v25 = vld [vmem:[#allocation6 + $0x11c] sm:$0xf]  ;;  %v10792_v39 = vld [vmem:[#allocation6 + $0x218] sm:$0xf] }
 0x4ec   :  { %6182 = vmatpush.bf16.msra.mxu0 %v10689_v10  ;;  %6195 = vmatpush.bf16.msra.mxu1 %v10945_v12  ;;  %v12432_v10 = vld [vmem:[#allocation6 + $0x14] sm:$0xf]  ;;  %v10922_v1 = vld [vmem:[#allocation6 + $0x338] sm:$0xf0]  ;;  %v12501_v40 = vld [vmem:[#allocation6 + $0x234] sm:$0xf0] }
 0x4ed   :  { %6208 = vmatpush.bf16.msra.mxu2 %v10693_v62  ;;  %6221 = vmatpush.bf16.msra.mxu3 %v10949_v14  ;;  %v10530_v12 = vld [vmem:[#allocation6 + $0x30] sm:$0xf0]  ;;  %v10760_v62 = vld [vmem:[#allocation6 + $0x1d8] sm:$0xf] }
 0x4ee   :  { %v12493_v14 = vld [vmem:[#allocation6 + $0x1f4] sm:$0xf0]  ;;  %v10533_v63 = vor.u32 %v12432_v10, %v10530_v12 }
 0x4f0   :  { %6183 = vmatpush.bf16.msra.mxu0 %v10657_v11  ;;  %6196 = vmatpush.bf16.msra.mxu1 %v10913_v28  ;;  %v12553_v11 = vld [vmem:[#allocation6 + $0x3dc] sm:$0xf] }
 0x4f1   :  { %6209 = vmatpush.bf16.msra.mxu2 %v10661_v31  ;;  %6222 = vmatpush.bf16.msra.mxu3 %v10917_v32  ;;  %v11018_v28 = vld [vmem:[#allocation6 + $0x3f8] sm:$0xf0]  ;;  %v10761_v31 = vor.u32 %v12493_v14, %v10760_v62  ;;  %v11017_v32 = vor.u32 %v12557_v15, %v11016_v47 }
 0x4f2   :  { %6136 = vmatmul.bf16.vlgmr.msrb.gmra.mxu0 %v13290_v46  ;;  %6149 = vmatmul.bf16.vlgmr.msrb.gmra.mxu1 %v13292_v50  ;;  %v11021_v18 = vor.u32 %v12553_v11, %v11018_v28  ;;  %v12457_v62 = vld [vmem:[#allocation6 + $0xdc] sm:$0xf] }
 0x4f3   :  { %6162 = vmatmul.bf16.vlgmr.msrb.gmra.mxu2 %v13290_v46  ;;  %6175 = vmatmul.bf16.vlgmr.msrb.gmra.mxu3 %v13292_v50  ;;  %v10634_v14 = vld [vmem:[#allocation6 + $0xf8] sm:$0xf0] }
 0x4f4   :  { %6184 = vmatpush.bf16.msra.mxu0 %v10625_v2  ;;  %6197 = vmatpush.bf16.msra.mxu1 %v10881_v38  ;;  %v12481_v2 = vld [vmem:[#allocation6 + $0x19c] sm:$0xf]  ;;  %v10637_v11 = vor.u32 %v12457_v62, %v10634_v14  ;;  %v11248_v14 = vld [vmem:[#allocation6 + $0x1c0] sm:$0xf] }
 0x4f5   :  { %6210 = vmatpush.bf16.msra.mxu2 %v10629_v42  ;;  %6223 = vmatpush.bf16.msra.mxu3 %v10885_v5  ;;  %v10730_v38 = vld [vmem:[#allocation6 + $0x1b8] sm:$0xf0]  ;;  %v10729_v42 = vor.u32 %v12485_v34, %v10728_v33  ;;  %v10985_v5 = vor.u32 %v12549_v3, %v10984_v37  ;;  %v10568_v37 = vld [vmem:[#allocation6 + $0x58] sm:$0xf] }
 0x4f6   :  { %v10733_v20 = vor.u32 %v12481_v2, %v10730_v38  ;;  %v12521_v47 = vld [vmem:[#allocation6 + $0x2dc] sm:$0xf]  ;;  %v12445_v3 = vld [vmem:[#allocation6 + $0x74] sm:$0xf0] }
 0x4f7   :  { %v10890_v15 = vld [vmem:[#allocation6 + $0x2f8] sm:$0xf0] }
 0x4f8   :  { %6185 = vmatpush.bf16.msra.mxu0 %v10593_v53  ;;  %6198 = vmatpush.bf16.msra.mxu1 %v10849_v36  ;;  %v12473_v53 = vld [vmem:[#allocation6 + $0x15c] sm:$0xf]  ;;  %v10893_v28 = vor.u32 %v12521_v47, %v10890_v15  ;;  %v12618_v47 = vld [vmem:[#allocation6 + $0x1dc] sm:$0xf0] }
 0x4f9   :  { %6211 = vmatpush.bf16.msra.mxu2 %v10597_v60  ;;  %6224 = vmatpush.bf16.msra.mxu3 %v10853_v54  ;;  %v10698_v36 = vld [vmem:[#allocation6 + $0x178] sm:$0xf0]  ;;  %v10697_v60 = vor.u32 %v12477_v45, %v10696_v43  ;;  %v10953_v54 = vor.u32 %v12541_v35, %v10952_v52  ;;  %v10536_v52 = vld [vmem:[#allocation6 + $0x18] sm:$0xf]  ;;  %v11504_v15 = vld [vmem:[#allocation6 + $0x3c0] sm:$0xf] }
 0x4fa   :  { %v10701_v57 = vor.u32 %v12473_v53, %v10698_v36  ;;  %v12513_v33 = vld [vmem:[#allocation6 + $0x29c] sm:$0xf]  ;;  %v12437_v35 = vld [vmem:[#allocation6 + $0x34] sm:$0xf0] }
 0x4fb   :  { %v10858_v34 = vld [vmem:[#allocation6 + $0x2b8] sm:$0xf0] }
 0x4fc   :  { %6186 = vmatpush.bf16.msra.mxu0 %v10561_v27  ;;  %6199 = vmatpush.bf16.msra.mxu1 %v10817_v0  ;;  %v10666_v27 = vld [vmem:[#allocation6 + $0x138] sm:$0xf0]  ;;  %v10861_v38 = vor.u32 %v12513_v33, %v10858_v34  ;;  %v11216_v33 = vld [vmem:[#allocation6 + $0x180] sm:$0xf] }
 0x4fd   :  { %6212 = vmatpush.bf16.msra.mxu2 %v10565_v8  ;;  %6225 = vmatpush.bf16.msra.mxu3 %v10821_v9  ;;  %v12529_v0 = vld [vmem:[#allocation6 + $0x31c] sm:$0xf]  ;;  %v10632_v8 = vld [vmem:[#allocation6 + $0xd8] sm:$0xf]  ;;  %v10669_v10 = vor.u32 %v12465_v25, %v10666_v27  ;;  %v12610_v34 = vld [vmem:[#allocation6 + $0x19c] sm:$0xf0] }
 0x4fe   :  { %v12461_v9 = vld [vmem:[#allocation6 + $0xf4] sm:$0xf0]  ;;  %v10925_v12 = vor.u32 %v12529_v0, %v10922_v1  ;;  %v12505_v43 = vld [vmem:[#allocation6 + $0x25c] sm:$0xf]  ;;  %v6309_v1 = vld [vmem:[#allocation3 + $0xc0] sm:$0xff] }
 0x4ff   :  { %v10633_v16 = vor.u32 %v12461_v9, %v10632_v8  ;;  %v10826_v45 = vld [vmem:[#allocation6 + $0x278] sm:$0xf0]  ;;  %v6310_v9 = vld [vmem:[#allocation3 + $0xc8] sm:$0xff] }
 0x500   :  { %6187 = vmatpush.bf16.msra.mxu0 %v10529_v21  ;;  %6200 = vmatpush.bf16.msra.mxu1 %v10785_v48  ;;  %v10889_v21 = vor.u32 %v12525_v59, %v10888_v13  ;;  %v10600_v48 = vld [vmem:[#allocation6 + $0x98] sm:$0xf]  ;;  %v10829_v36 = vor.u32 %v12505_v43, %v10826_v45  ;;  %v12670_v43 = vld [vmem:[#allocation6 + $0x384] sm:$0xf] }
 0x501   :  { %6213 = vmatpush.bf16.msra.mxu2 %v10533_v63  ;;  %6226 = vmatpush.bf16.msra.mxu3 %v10789_v29  ;;  %v10856_v63 = vld [vmem:[#allocation6 + $0x298] sm:$0xf]  ;;  %v11474_v45 = vld [vmem:[#allocation6 + $0x3a0] sm:$0xf0] }
 0x502   :  { %v12517_v29 = vld [vmem:[#allocation6 + $0x2b4] sm:$0xf0] }
 0x503   :  { %6188 = vmatmul.bf16.vlgmr.msra.gmra.mxu0 %v13290_v46  ;;  %6201 = vmatmul.bf16.vlgmr.msra.gmra.mxu1 %v13292_v50 }
 0x504   :  { %6232 = vmatpush.bf16.msrb.mxu0 %v10761_v31  ;;  %6245 = vmatpush.bf16.msrb.mxu1 %v11017_v32  ;;  %v12449_v31 = vld [vmem:[#allocation6 + $0x9c] sm:$0xf] }
 0x505   :  { %6258 = vmatpush.bf16.msrb.mxu2 %v10765_v17  ;;  %6271 = vmatpush.bf16.msrb.mxu3 %v11021_v18  ;;  %v10602_v32 = vld [vmem:[#allocation6 + $0xb8] sm:$0xf0]  ;;  %v10601_v17 = vor.u32 %v12453_v49, %v10600_v48  ;;  %v10857_v18 = vor.u32 %v12517_v29, %v10856_v63  ;;  %v11250_v49 = vld [vmem:[#allocation6 + $0x1e0] sm:$0xf0] }
 0x506   :  { %6214 = vmatmul.bf16.vlgmr.msra.gmra.mxu2 %v13290_v46  ;;  %6227 = vmatmul.bf16.vlgmr.msra.gmra.mxu3 %v13292_v50  ;;  %v10605_v2 = vor.u32 %v12449_v31, %v10602_v32 }
 0x508   :  { %6233 = vmatpush.bf16.msrb.mxu0 %v10729_v42  ;;  %6246 = vmatpush.bf16.msrb.mxu1 %v10985_v5  ;;  %v12441_v42 = vld [vmem:[#allocation6 + $0x5c] sm:$0xf] }
 0x509   :  { %6259 = vmatpush.bf16.msrb.mxu2 %v10733_v20  ;;  %6272 = vmatpush.bf16.msrb.mxu3 %v10989_v51  ;;  %v10570_v5 = vld [vmem:[#allocation6 + $0x78] sm:$0xf0]  ;;  %v10569_v20 = vor.u32 %v12445_v3, %v10568_v37  ;;  %v10825_v51 = vor.u32 %v12509_v4, %v10824_v41  ;;  %v6311_v3 = vld [vmem:[#allocation3 + $0xd0] sm:$0xff]  ;;  %v12606_v41 = vld [vmem:[#allocation6 + $0x184] sm:$0xf] }
 0x50a   :  { %v10573_v53 = vor.u32 %v12441_v42, %v10570_v5  ;;  %v11218_v5 = vld [vmem:[#allocation6 + $0x1a0] sm:$0xf0] }
 0x50c   :  { %6234 = vmatpush.bf16.msrb.mxu0 %v10697_v60  ;;  %6247 = vmatpush.bf16.msrb.mxu1 %v10953_v54  ;;  %v12433_v60 = vld [vmem:[#allocation6 + $0x1c] sm:$0xf] }
 0x50d   :  { %6260 = vmatpush.bf16.msrb.mxu2 %v10701_v57  ;;  %6273 = vmatpush.bf16.msrb.mxu3 %v10957_v58  ;;  %v10538_v54 = vld [vmem:[#allocation6 + $0x38] sm:$0xf0]  ;;  %v10537_v57 = vor.u32 %v12437_v35, %v10536_v52  ;;  %v10793_v58 = vor.u32 %v12501_v40, %v10792_v39  ;;  %v11440_v39 = vld [vmem:[#allocation6 + $0x340] sm:$0xf] }
 0x50e   :  { %v10541_v61 = vor.u32 %v12433_v60, %v10538_v54  ;;  %v12666_v54 = vld [vmem:[#allocation6 + $0x35c] sm:$0xf0] }
 0x510   :  { %6235 = vmatpush.bf16.msrb.mxu0 %v10665_v6  ;;  %6248 = vmatpush.bf16.msrb.mxu1 %v10921_v44 }
 0x511   :  { %6261 = vmatpush.bf16.msrb.mxu2 %v10669_v10  ;;  %6274 = vmatpush.bf16.msrb.mxu3 %v10925_v12 }
 0x514   :  { %6236 = vmatpush.bf16.msrb.mxu0 %v10633_v16  ;;  %6249 = vmatpush.bf16.msrb.mxu1 %v10889_v21  ;;  %v12682_v21 = vld [vmem:[#allocation6 + $0x3dc] sm:$0xf0] }
 0x515   :  { %6262 = vmatpush.bf16.msrb.mxu2 %v10637_v11  ;;  %6275 = vmatpush.bf16.msrb.mxu3 %v10893_v28  ;;  %v11505_v48 = vor.u32 %v12682_v21, %v11504_v15  ;;  %v12678_v11 = vld [vmem:[#allocation6 + $0x3c4] sm:$0xf] }
 0x516   :  { %v11506_v28 = vld [vmem:[#allocation6 + $0x3e0] sm:$0xf0] }
 0x517   :  { %v11509_v29 = vor.u32 %v12678_v11, %v11506_v28  ;;  %v12590_v15 = vld [vmem:[#allocation6 + $0x104] sm:$0xf] }
 0x518   :  { %6237 = vmatpush.bf16.msrb.mxu0 %v10601_v17  ;;  %6250 = vmatpush.bf16.msrb.mxu1 %v10857_v18  ;;  %v11472_v17 = vld [vmem:[#allocation6 + $0x380] sm:$0xf]  ;;  %v12654_v21 = vld [vmem:[#allocation6 + $0x304] sm:$0xf] }
 0x519   :  { %6263 = vmatpush.bf16.msrb.mxu2 %v10605_v2  ;;  %6276 = vmatpush.bf16.msrb.mxu3 %v10861_v38  ;;  %v11217_v2 = vor.u32 %v12610_v34, %v11216_v33  ;;  %v12674_v38 = vld [vmem:[#allocation6 + $0x39c] sm:$0xf0] }
 0x51a   :  { %v11473_v42 = vor.u32 %v12674_v38, %v11472_v17  ;;  %v11122_v38 = vld [vmem:[#allocation6 + $0xe0] sm:$0xf0] }
 0x51c   :  { %6238 = vmatpush.bf16.msrb.mxu0 %v10569_v20  ;;  %6251 = vmatpush.bf16.msrb.mxu1 %v10825_v51  ;;  %v11221_v20 = vor.u32 %v12606_v41, %v11218_v5  ;;  %v11477_v51 = vor.u32 %v12670_v43, %v11474_v45  ;;  %v12646_v41 = vld [vmem:[#allocation6 + $0x2c4] sm:$0xf] }
 0x51d   :  { %6264 = vmatpush.bf16.msrb.mxu2 %v10573_v53  ;;  %6277 = vmatpush.bf16.msrb.mxu3 %v10829_v36  ;;  %v11184_v53 = vld [vmem:[#allocation6 + $0x140] sm:$0xf] }
 0x51e   :  { %v12602_v36 = vld [vmem:[#allocation6 + $0x15c] sm:$0xf0] }
 0x51f   :  { %v11185_v60 = vor.u32 %v12602_v36, %v11184_v53  ;;  %v12642_v53 = vld [vmem:[#allocation6 + $0x29c] sm:$0xf0]  ;;  %v12574_v36 = vld [vmem:[#allocation6 + $0x84] sm:$0xf] }
 0x520   :  { %6239 = vmatpush.bf16.msrb.mxu0 %v10537_v57  ;;  %6252 = vmatpush.bf16.msrb.mxu1 %v10793_v58  ;;  %v11441_v58 = vor.u32 %v12666_v54, %v11440_v39  ;;  %v11090_v39 = vld [vmem:[#allocation6 + $0xa0] sm:$0xf0] }
 0x521   :  { %6265 = vmatpush.bf16.msrb.mxu2 %v10541_v61  ;;  %6278 = vmatpush.bf16.msrb.mxu3 %v10797_v26  ;;  %v11189_v61 = vor.u32 %v12598_v56, %v11186_v24  ;;  %v12662_v26 = vld [vmem:[#allocation6 + $0x344] sm:$0xf] }
 0x522   :  { %v12638_v54 = vld [vmem:[#allocation6 + $0x284] sm:$0xf] }
 0x523   :  { %6240 = vmatmul.bf16.vlgmr.msrb.gmra.mxu0 %v13290_v46  ;;  %6253 = vmatmul.bf16.vlgmr.msrb.gmra.mxu1 %v13292_v50  ;;  %v11346_v56 = vld [vmem:[#allocation6 + $0x2a0] sm:$0xf0] }
 0x524   :  { %6266 = vmatmul.bf16.vlgmr.msrb.gmra.mxu2 %v13290_v46  ;;  %6279 = vmatmul.bf16.vlgmr.msrb.gmra.mxu3 %v13292_v50  ;;  %v11249_v46 = vor.u32 %v12618_v47, %v11248_v14  ;;  %v12614_v50 = vld [vmem:[#allocation6 + $0x1c4] sm:$0xf]  ;;  %v11408_v14 = vld [vmem:[#allocation6 + $0x300] sm:$0xf] }
 0x525   :  { %v11253_v63 = vor.u32 %v12614_v50, %v11250_v49  ;;  %7126 = vmatpush.bf16.msra.mxu1 %v11505_v48  ;;  %7152 = vmatpush.bf16.msra.mxu3 %v11509_v29  ;;  %v12658_v47 = vld [vmem:[#allocation6 + $0x31c] sm:$0xf0]  ;;  %v11410_v50 = vld [vmem:[#allocation6 + $0x320] sm:$0xf0] }
 0x526   :  { %7113 = vmatpush.bf16.msra.mxu0 %v11249_v46  ;;  %v11154_v46 = vld [vmem:[#allocation6 + $0x120] sm:$0xf0]  ;;  %v11413_v28 = vor.u32 %v12654_v21, %v11410_v50  ;;  %v11120_v29 = vld [vmem:[#allocation6 + $0xc0] sm:$0xf] }
 0x527   :  { %7139 = vmatpush.bf16.msra.mxu2 %v11253_v63  ;;  %v11157_v11 = vor.u32 %v12590_v15, %v11154_v46  ;;  %v12562_v15 = vld [vmem:[#allocation6 + $0x1c] sm:$0xf0]  ;;  %v12558_v50 = vld [vmem:[#allocation6 + $0x4] sm:$0xf] }
 0x528   :  { %v11280_v46 = vld [vmem:[#allocation6 + $0x200] sm:$0xf] }
 0x529   :  { %7127 = vmatpush.bf16.msra.mxu1 %v11473_v42  ;;  %7153 = vmatpush.bf16.msra.mxu3 %v11477_v51  ;;  %v12578_v51 = vld [vmem:[#allocation6 + $0x9c] sm:$0xf0] }
 0x52a   :  { %7114 = vmatpush.bf16.msra.mxu0 %v11217_v2  ;;  %v12626_v21 = vld [vmem:[#allocation6 + $0x21c] sm:$0xf0] }
 0x52b   :  { %7140 = vmatpush.bf16.msra.mxu2 %v11221_v20 }
 0x52d   :  { %7128 = vmatpush.bf16.msra.mxu1 %v11441_v58  ;;  %v11349_v58 = vor.u32 %v12638_v54, %v11346_v56 }
 0x52e   :  { %7115 = vmatpush.bf16.msra.mxu0 %v11185_v60  ;;  %v11093_v60 = vor.u32 %v12574_v36, %v11090_v39  ;;  %v11480_v36 = vld [vmem:[#allocation6 + $0x388] sm:$0xf] }
 0x52f   :  { %7141 = vmatpush.bf16.msra.mxu2 %v11189_v61  ;;  %v11056_v61 = vld [vmem:[#allocation6 + $0x40] sm:$0xf] }
 0x533   :  { %7142 = vmatpush.bf16.msra.mxu2 %v11157_v11 }
 0x55f   :  { %v6085_v25 = vpop.f32.mrf.mxu0  ;;  %v6098_v27 = vpop.f32.mrf.mxu1 }
 0x560   :  { %v6099_v0 = vadd.f32 %v6098_v27, %v6085_v25  ;;  %v11442_v25 = vld [vmem:[#allocation6 + $0x360] sm:$0xf0] }
 0x562   :  { %v6313_v6 = vadd.f32 %v6309_v1, %v6099_v0  ;;  %v11445_v0 = vor.u32 %v12662_v26, %v11442_v25  ;;  %v12570_v26 = vld [vmem:[#allocation6 + $0x5c] sm:$0xf0] }
 0x563   :  { %v11312_v25 = vld [vmem:[#allocation6 + $0x240] sm:$0xf] }
 0x564   :  { %v6317_v59 = vmul.f32 0.5, %v6313_v6  ;;  %7154 = vmatpush.bf16.msra.mxu3 %v11445_v0  ;;  %v11057_v0 = vor.u32 %v12570_v26, %v11056_v61  ;;  %v11226_v61 = vld [vmem:[#allocation6 + $0x1a8] sm:$0xf0] }
 0x565   :  { %v12671_v26 = vld [vmem:[#allocation6 + $0x38c] sm:$0xf] }
 0x566   :  { %v6111_v44 = vpop.f32.mrf.mxu2  ;;  %v6124_v8 = vpop.f32.mrf.mxu3  ;;  %12871 = vtanh.f32 %v6317_v59 }
 0x567   :  { %v6125_v10 = vadd.f32 %v6124_v8, %v6111_v44  ;;  %v6087_v12 = vpop.f32.mrf.mxu0  ;;  %v6100_v13 = vpop.f32.mrf.mxu1  ;;  %v6312_v8 = vld [vmem:[#allocation3 + $0xd8] sm:$0xff] }
 0x568   :  { %7155 = vmatpush.bf16.msra.mxu3 %v11413_v28  ;;  %v11281_v28 = vor.u32 %v12626_v21, %v11280_v46  ;;  %v11160_v46 = vld [vmem:[#allocation6 + $0x108] sm:$0xf] }
 0x569   :  { %v6314_v62 = vadd.f32 %v6310_v9, %v6125_v10  ;;  %v11152_v9 = vld [vmem:[#allocation6 + $0x100] sm:$0xf]  ;;  %v12595_v21 = vld [vmem:[#allocation6 + $0x124] sm:$0xf0] }
 0x56a   :  { %v12594_v10 = vld [vmem:[#allocation6 + $0x11c] sm:$0xf0] }
 0x56b   :  { %v6321_v16 = vmul.f32 0.5, %v6314_v62  ;;  %v11153_v62 = vor.u32 %v12594_v10, %v11152_v9 }
 0x56c   :  { %v12872_v52 = vpop.eup %12871 }
 0x56d   :  { %12873 = vtanh.f32 %v6321_v16  ;;  %v6319_v27 = vmul.f32 0.5, %v12872_v52  ;;  %v11409_v16 = vor.u32 %v12658_v47, %v11408_v14  ;;  %7116 = vmatpush.bf16.msra.mxu0 %v11153_v62  ;;  %v11344_v52 = vld [vmem:[#allocation6 + $0x280] sm:$0xf] }
 0x56e   :  { %v6113_v31 = vpop.f32.mrf.mxu2  ;;  %v6126_v32 = vpop.f32.mrf.mxu3  ;;  %v11024_v47 = vld [vmem:[#allocation6] sm:$0xf] }
 0x56f   :  { %v6137_v18 = vpop.f32.mrf.mxu0  ;;  %v6150_v37 = vpop.f32.mrf.mxu1  ;;  %v6320_v48 = vadd.f32 0.5, %v6319_v27  ;;  %7129 = vmatpush.bf16.msra.mxu1 %v11409_v16  ;;  %v12586_v31 = vld [vmem:[#allocation6 + $0xdc] sm:$0xf0]  ;;  %v11025_v16 = vor.u32 %v12562_v15, %v11024_v47  ;;  %v11450_v15 = vld [vmem:[#allocation6 + $0x368] sm:$0xf0] }
 0x570   :  { %v6151_v4 = vadd.f32 %v6150_v37, %v6137_v18  ;;  %v11376_v32 = vld [vmem:[#allocation6 + $0x2c0] sm:$0xf]  ;;  %v11121_v18 = vor.u32 %v12586_v31, %v11120_v29  ;;  %v12622_v29 = vld [vmem:[#allocation6 + $0x204] sm:$0xf] }
 0x571   :  { %v12650_v37 = vld [vmem:[#allocation6 + $0x2dc] sm:$0xf0]  ;;  %v11282_v31 = vld [vmem:[#allocation6 + $0x220] sm:$0xf0] }
 0x572   :  { %v6315_v35 = vadd.f32 %v6311_v3, %v6151_v4  ;;  %v12582_v3 = vld [vmem:[#allocation6 + $0xc4] sm:$0xf]  ;;  %v11377_v2 = vor.u32 %v12650_v37, %v11376_v32  ;;  %7117 = vmatpush.bf16.msra.mxu0 %v11121_v18  ;;  %v11256_v18 = vld [vmem:[#allocation6 + $0x1c8] sm:$0xf] }
 0x573   :  { %v12874_v40 = vpop.eup %12873  ;;  %v11378_v4 = vld [vmem:[#allocation6 + $0x2e0] sm:$0xf0]  ;;  %v11125_v5 = vor.u32 %v12582_v3, %v11122_v38  ;;  %v12619_v37 = vld [vmem:[#allocation6 + $0x1e4] sm:$0xf0] }
 0x574   :  { %v6323_v57 = vmul.f32 0.5, %v12874_v40  ;;  %12875 = vtanh.f32 %v6315_v35  ;;  %v11381_v43 = vor.u32 %v12646_v41, %v11378_v4  ;;  %7130 = vmatpush.bf16.msra.mxu1 %v11377_v2  ;;  %v11345_v40 = vor.u32 %v12642_v53, %v11344_v52  ;;  %v11512_v3 = vld [vmem:[#allocation6 + $0x3c8] sm:$0xf] }
 0x575   :  { %7143 = vmatpush.bf16.msra.mxu2 %v11125_v5  ;;  %v11257_v41 = vor.u32 %v12619_v37, %v11256_v18  ;;  %v12683_v4 = vld [vmem:[#allocation6 + $0x3e4] sm:$0xf0]  ;;  %v12615_v5 = vld [vmem:[#allocation6 + $0x1cc] sm:$0xf] }
 0x576   :  { %v6324_v1 = vadd.f32 0.5, %v6323_v57  ;;  %v6163_v6 = vpop.f32.mrf.mxu2  ;;  %v6176_v44 = vpop.f32.mrf.mxu3  ;;  %7156 = vmatpush.bf16.msra.mxu3 %v11381_v43  ;;  %v11258_v43 = vld [vmem:[#allocation6 + $0x1e8] sm:$0xf0]  ;;  %v11224_v52 = vld [vmem:[#allocation6 + $0x188] sm:$0xf] }
 0x577   :  { %v6177_v12 = vadd.f32 %v6176_v44, %v6163_v6  ;;  %v6139_v13 = vpop.f32.mrf.mxu0  ;;  %v6152_v59 = vpop.f32.mrf.mxu1  ;;  %v12566_v6 = vld [vmem:[#allocation6 + $0x44] sm:$0xf]  ;;  %v12611_v53 = vld [vmem:[#allocation6 + $0x1a4] sm:$0xf0] }
 0x578   :  { %v6330_v33 = vmul.f32 %v6324_v1, %v13273_v22  ;;  %v11088_v22 = vld [vmem:[#allocation6 + $0x80] sm:$0xf]  ;;  %7131 = vmatpush.bf16.msra.mxu1 %v11345_v40  ;;  %v11058_v44 = vld [vmem:[#allocation6 + $0x60] sm:$0xf0]  ;;  %v11225_v39 = vor.u32 %v12611_v53, %v11224_v52  ;;  %v12675_v40 = vld [vmem:[#allocation6 + $0x3a4] sm:$0xf0] }
 0x579   :  { %v6316_v49 = vadd.f32 %v6312_v8, %v6177_v12  ;;  %v11089_v35 = vor.u32 %v12578_v51, %v11088_v22  ;;  %7144 = vmatpush.bf16.msra.mxu2 %v11093_v60  ;;  %v12634_v1 = vld [vmem:[#allocation6 + $0x25c] sm:$0xf0]  ;;  %v11061_v10 = vor.u32 %v12566_v6, %v11058_v44  ;;  %v12630_v12 = vld [vmem:[#allocation6 + $0x244] sm:$0xf]  ;;  %v12679_v22 = vld [vmem:[#allocation6 + $0x3cc] sm:$0xf] }
 0x57a   :  { %v12876_v63 = vpop.eup %12875  ;;  %7157 = vmatpush.bf16.msra.mxu3 %v11349_v58  ;;  %v11313_v9 = vor.u32 %v12634_v1, %v11312_v25  ;;  %v11314_v13 = vld [vmem:[#allocation6 + $0x260] sm:$0xf0]  ;;  %v11514_v51 = vld [vmem:[#allocation6 + $0x3e8] sm:$0xf0]  ;;  %v11481_v58 = vor.u32 %v12675_v40, %v11480_v36  ;;  %v11192_v1 = vld [vmem:[#allocation6 + $0x148] sm:$0xf] }
 0x57b   :  { %v6331_v34 = vmul.f32 %v12876_v63, %v6320_v48  ;;  %v6326_v17 = vmul.f32 0.5, %v6316_v49  ;;  %7118 = vmatpush.bf16.msra.mxu0 %v11089_v35  ;;  %v11317_v62 = vor.u32 %v12630_v12, %v11314_v13  ;;  %v11026_v63 = vld [vmem:[#allocation6 + $0x20] sm:$0xf0]  ;;  %v11517_v35 = vor.u32 %v12679_v22, %v11514_v51  ;;  %v12607_v60 = vld [vmem:[#allocation6 + $0x18c] sm:$0xf] }
 0x57c   :  { %7132 = vmatpush.bf16.msra.mxu1 %v11313_v9  ;;  %v11482_v25 = vld [vmem:[#allocation6 + $0x3a8] sm:$0xf0]  ;;  %v12603_v6 = vld [vmem:[#allocation6 + $0x164] sm:$0xf0] }
 0x57d   :  { %v13311_v42 = vadd.f32 %v6331_v34, %v6330_v33  ;;  %12877 = vtanh.f32 %v6326_v17  ;;  %7145 = vmatpush.bf16.msra.mxu2 %v11061_v10  ;;  %v11029_v34 = vor.u32 %v12558_v50, %v11026_v63  ;;  %v11285_v17 = vor.u32 %v12622_v29, %v11282_v31  ;;  %v11448_v10 = vld [vmem:[#allocation6 + $0x348] sm:$0xf]  ;;  %v12599_v13 = vld [vmem:[#allocation6 + $0x14c] sm:$0xf] }
 0x57e   :  { %v6165_v45 = vpop.f32.mrf.mxu2  ;;  %v6178_v20 = vpop.f32.mrf.mxu3  ;;  %7158 = vmatpush.bf16.msra.mxu3 %v11317_v62  ;;  %v11193_v9 = vor.u32 %v12603_v6, %v11192_v1  ;;  %v12667_v12 = vld [vmem:[#allocation6 + $0x364] sm:$0xf0]  ;;  %v12655_v31 = vld [vmem:[#allocation6 + $0x30c] sm:$0xf] }
 0x57f   :  { %12879 = vtanh.f32 %v13311_v42  ;;  %7119 = vmatpush.bf16.msra.mxu0 %v11057_v0  ;;  %v11513_v45 = vor.u32 %v12683_v4, %v11512_v3  ;;  %v11261_v20 = vor.u32 %v12615_v5, %v11258_v43  ;;  %v11485_v0 = vor.u32 %v12671_v26, %v11482_v25  ;;  %v11416_v50 = vld [vmem:[#allocation6 + $0x308] sm:$0xf]  ;;  %v11130_v4 = vld [vmem:[#allocation6 + $0xe8] sm:$0xf0] }
 0x580   :  { %v13314_v24 = vpop.f32.mrf.mxu0  ;;  %v13316_v57 = vpop.f32.mrf.mxu1  ;;  %7133 = vmatpush.bf16.msra.mxu1 %v11281_v28  ;;  %v11162_v28 = vld [vmem:[#allocation6 + $0x128] sm:$0xf0]  ;;  %v12587_v18 = vld [vmem:[#allocation6 + $0xe4] sm:$0xf0] }
 0x581   :  { %7146 = vmatpush.bf16.msra.mxu2 %v11029_v34  ;;  %v6203_v54 = vadd.f32 %v13316_v57, %v13314_v24  ;;  %v11449_v24 = vor.u32 %v12667_v12, %v11448_v10  ;;  %v11194_v57 = vld [vmem:[#allocation6 + $0x168] sm:$0xf0]  ;;  %v11384_v37 = vld [vmem:[#allocation6 + $0x2c8] sm:$0xf] }
 0x582   :  { %7159 = vmatpush.bf16.msra.mxu3 %v11285_v17  ;;  %v11197_v47 = vor.u32 %v12599_v13, %v11194_v57  ;;  %v11128_v17 = vld [vmem:[#allocation6 + $0xc8] sm:$0xf]  ;;  %v12647_v5 = vld [vmem:[#allocation6 + $0x2cc] sm:$0xf] }
 0x583   :  { %v12878_v27 = vpop.eup %12877  ;;  %7120 = vmatpush.bf16.msra.mxu0 %v11025_v16  ;;  %v6284_v62 = vadd.f32 %v6203_v54, %v13126_v19  ;;  %v11129_v3 = vor.u32 %v12587_v18, %v11128_v17  ;;  %v11386_v43 = vld [vmem:[#allocation6 + $0x2e8] sm:$0xf0]  ;;  %v11096_v22 = vld [vmem:[#allocation6 + $0x88] sm:$0xf] }
 0x584   :  { %v6328_v8 = vmul.f32 0.5, %v12878_v27  ;;  %7178 = vmatpush.bf16.msrb.mxu1 %v11513_v45  ;;  %v11229_v27 = vor.u32 %v12607_v60, %v11226_v61  ;;  %v12579_v51 = vld [vmem:[#allocation6 + $0xa4] sm:$0xf0]  ;;  %v12575_v36 = vld [vmem:[#allocation6 + $0x8c] sm:$0xf] }
 0x585   :  { %v12880_v59 = vpop.eup %12879  ;;  %7191 = vmatpush.bf16.msrb.mxu2 %v11261_v20  ;;  %v11389_v20 = vor.u32 %v12647_v5, %v11386_v43  ;;  %v11352_v52 = vld [vmem:[#allocation6 + $0x288] sm:$0xf]  ;;  %v12631_v10 = vld [vmem:[#allocation6 + $0x24c] sm:$0xf] }
 0x586   :  { %v6329_v14 = vadd.f32 0.5, %v6328_v8  ;;  %7204 = vmatpush.bf16.msrb.mxu3 %v11517_v35  ;;  %v11097_v35 = vor.u32 %v12579_v51, %v11096_v22  ;;  %v12643_v53 = vld [vmem:[#allocation6 + $0x2a4] sm:$0xf0] }
 0x587   :  { %7165 = vmatpush.bf16.msrb.mxu0 %v11257_v41  ;;  %v11353_v60 = vor.u32 %v12643_v53, %v11352_v52  ;;  %v11064_v61 = vld [vmem:[#allocation6 + $0x48] sm:$0xf] }
 0x588   :  { %v6334_v48 = vmul.f32 %v12880_v59, %v6329_v14  ;;  %v6191_v32 = vpop.f32.mrf.mxu0  ;;  %v6204_v33 = vpop.f32.mrf.mxu1  ;;  %7179 = vmatpush.bf16.msrb.mxu1 %v11481_v58  ;;  %v12663_v59 = vld [vmem:[#allocation6 + $0x34c] sm:$0xf]  ;;  %v11320_v1 = vld [vmem:[#allocation6 + $0x248] sm:$0xf] }
 0x589   :  { %v6215_v49 = vpop.f32.mrf.mxu2  ;;  %v6228_v11 = vpop.f32.mrf.mxu3  ;;  %7192 = vmatpush.bf16.msrb.mxu2 %v11229_v27  ;;  %v11453_v16 = vor.u32 %v12663_v59, %v11450_v15  ;;  %v11418_v32 = vld [vmem:[#allocation6 + $0x328] sm:$0xf0]  ;;  %v6288_v33 = vmul.f32 0.5, %v6284_v62  ;;  %v12635_v6 = vld [vmem:[#allocation6 + $0x264] sm:$0xf0] }
 0x58a   :  { %v6335_v2 = vpack.c.bf16 %v6334_v48, %v6334_v48  ;;  %v6229_v38 = vadd.f32 %v6228_v11, %v6215_v49  ;;  %7205 = vmatpush.bf16.msrb.mxu3 %v11485_v0  ;;  %v11161_v48 = vor.u32 %v12595_v21, %v11160_v46  ;;  %v12659_v49 = vld [vmem:[#allocation6 + $0x324] sm:$0xf0]  ;;  %v12591_v11 = vld [vmem:[#allocation6 + $0x10c] sm:$0xf]  ;;  %v11421_v34 = vor.u32 %v12655_v31, %v11418_v32 }
 0x58b   :  { %7166 = vmatpush.bf16.msrb.mxu0 %v11225_v39  ;;  %v11417_v63 = vor.u32 %v12659_v49, %v11416_v50  ;;  %v11165_v29 = vor.u32 %v12591_v11, %v11162_v28  ;;  %v11098_v39 = vld [vmem:[#allocation6 + $0xa8] sm:$0xf0]  ;;  %v12571_v0 = vld [vmem:[#allocation6 + $0x64] sm:$0xf0]  ;;  %v11321_v62 = vor.u32 %v12635_v6, %v11320_v1 }
 0x58c   :  { %6336 = vst [vmem:[#allocation2] sm:$0xf] %v6335_v2  ;;  %v6285_v56 = vadd.f32 %v6229_v38, %v13129_v30  ;;  %7180 = vmatpush.bf16.msrb.mxu1 %v11449_v24  ;;  %v12651_v2 = vld [vmem:[#allocation6 + $0x2e4] sm:$0xf0]  ;;  %v12583_v38 = vld [vmem:[#allocation6 + $0xcc] sm:$0xf]  ;;  %v11101_v54 = vor.u32 %v12575_v36, %v11098_v39  ;;  %v11065_v13 = vor.u32 %v12571_v0, %v11064_v61 }
 0x58d   :  { %7193 = vmatpush.bf16.msrb.mxu2 %v11197_v47  ;;  %v11385_v41 = vor.u32 %v12651_v2, %v11384_v37  ;;  %v11133_v45 = vor.u32 %v12583_v38, %v11130_v4  ;;  %v11354_v58 = vld [vmem:[#allocation6 + $0x2a8] sm:$0xf0]  ;;  %v11032_v47 = vld [vmem:[#allocation6 + $0x8] sm:$0xf]  ;;  %v11522_v0 = vld [vmem:[#allocation6 + $0x3f0] sm:$0xf0] }
 0x58e   :  { %v6292_v14 = vmul.f32 0.5, %v6285_v56  ;;  %7206 = vmatpush.bf16.msrb.mxu3 %v11453_v16  ;;  %v12639_v56 = vld [vmem:[#allocation6 + $0x28c] sm:$0xf]  ;;  %v12563_v15 = vld [vmem:[#allocation6 + $0x24] sm:$0xf0] }
 0x58f   :  { %7167 = vmatpush.bf16.msrb.mxu0 %v11193_v9  ;;  %v11357_v27 = vor.u32 %v12639_v56, %v11354_v58  ;;  %v11066_v9 = vld [vmem:[#allocation6 + $0x68] sm:$0xf0]  ;;  %v11288_v16 = vld [vmem:[#allocation6 + $0x208] sm:$0xf]  ;;  %v12684_v56 = vld [vmem:[#allocation6 + $0x3ec] sm:$0xf0] }
 0x590   :  { %12881 = vtanh.f32 %v6292_v14  ;;  %7181 = vmatpush.bf16.msrb.mxu1 %v11417_v63  ;;  %v11322_v24 = vld [vmem:[#allocation6 + $0x268] sm:$0xf0]  ;;  %v12627_v21 = vld [vmem:[#allocation6 + $0x224] sm:$0xf0]  ;;  %v11033_v63 = vor.u32 %v12563_v15, %v11032_v47  ;;  %v12616_v58 = vld [vmem:[#allocation6 + $0x1d4] sm:$0xf] }
 0x591   :  { %v6217_v44 = vpop.f32.mrf.mxu2  ;;  %v6230_v8 = vpop.f32.mrf.mxu3  ;;  %7194 = vmatpush.bf16.msrb.mxu2 %v11165_v29  ;;  %12883 = vtanh.f32 %v6288_v33  ;;  %v11325_v46 = vor.u32 %v12631_v10, %v11322_v24  ;;  %v12559_v50 = vld [vmem:[#allocation6 + $0xc] sm:$0xf]  ;;  %v11289_v32 = vor.u32 %v12627_v21, %v11288_v16  ;;  %v12612_v10 = vld [vmem:[#allocation6 + $0x1ac] sm:$0xf0]  ;;  %v11490_v47 = vld [vmem:[#allocation6 + $0x3b0] sm:$0xf0] }
 0x592   :  { %7207 = vmatpush.bf16.msrb.mxu3 %v11421_v34  ;;  %v12567_v8 = vld [vmem:[#allocation6 + $0x4c] sm:$0xf]  ;;  %v11488_v24 = vld [vmem:[#allocation6 + $0x390] sm:$0xf] }
 0x593   :  { %7168 = vmatpush.bf16.msrb.mxu0 %v11161_v48  ;;  %v11069_v14 = vor.u32 %v12567_v8, %v11066_v9  ;;  %v11034_v48 = vld [vmem:[#allocation6 + $0x28] sm:$0xf0]  ;;  %v11232_v9 = vld [vmem:[#allocation6 + $0x190] sm:$0xf] }
 0x594   :  { %7182 = vmatpush.bf16.msrb.mxu1 %v11385_v41  ;;  %v12623_v49 = vld [vmem:[#allocation6 + $0x20c] sm:$0xf]  ;;  %v11037_v33 = vor.u32 %v12559_v50, %v11034_v48  ;;  %v11233_v15 = vor.u32 %v12612_v10, %v11232_v9  ;;  %v12604_v21 = vld [vmem:[#allocation6 + $0x16c] sm:$0xf0]  ;;  %v12640_v9 = vld [vmem:[#allocation6 + $0x294] sm:$0xf] }
 0x595   :  { %7195 = vmatpush.bf16.msrb.mxu2 %v11133_v45  ;;  %v11290_v11 = vld [vmem:[#allocation6 + $0x228] sm:$0xf0]  ;;  %v11362_v10 = vld [vmem:[#allocation6 + $0x2b0] sm:$0xf0] }
 0x596   :  { %v12882_v40 = vpop.eup %12881  ;;  %7208 = vmatpush.bf16.msrb.mxu3 %v11389_v20 }
 0x597   :  { %7169 = vmatpush.bf16.msrb.mxu0 %v11129_v3  ;;  %v6294_v12 = vmul.f32 0.5, %v12882_v40  ;;  %v12884_v57 = vpop.eup %12883  ;;  %v11293_v3 = vor.u32 %v12623_v49, %v11290_v11  ;;  %v11264_v40 = vld [vmem:[#allocation6 + $0x1d0] sm:$0xf] }
 0x598   :  { %7183 = vmatpush.bf16.msrb.mxu1 %v11353_v60  ;;  %v6290_v28 = vmul.f32 0.5, %v12884_v57  ;;  %v12620_v60 = vld [vmem:[#allocation6 + $0x1ec] sm:$0xf0] }
 0x599   :  { %7196 = vmatpush.bf16.msrb.mxu2 %v11101_v54  ;;  %v6295_v34 = vadd.f32 0.5, %v6294_v12  ;;  %v12676_v57 = vld [vmem:[#allocation6 + $0x3ac] sm:$0xf0] }
 0x59a   :  { %7209 = vmatpush.bf16.msrb.mxu3 %v11357_v27  ;;  %v6291_v2 = vadd.f32 0.5, %v6290_v28  ;;  %v12680_v27 = vld [vmem:[#allocation6 + $0x3d4] sm:$0xf]  ;;  %v11489_v16 = vor.u32 %v12676_v57, %v11488_v24  ;;  %v11456_v49 = vld [vmem:[#allocation6 + $0x350] sm:$0xf] }
 0x59b   :  { %7170 = vmatpush.bf16.msrb.mxu0 %v11097_v35  ;;  %v6301_v4 = vmul.f32 %v6295_v34, %v13287_v23  ;;  %v11520_v23 = vld [vmem:[#allocation6 + $0x3d0] sm:$0xf]  ;;  %v12600_v28 = vld [vmem:[#allocation6 + $0x154] sm:$0xf] }
 0x59c   :  { %7184 = vmatpush.bf16.msrb.mxu1 %v11321_v62  ;;  %v11521_v8 = vor.u32 %v12684_v56, %v11520_v23  ;;  %v11234_v62 = vld [vmem:[#allocation6 + $0x1b0] sm:$0xf0]  ;;  %v12668_v11 = vld [vmem:[#allocation6 + $0x36c] sm:$0xf0] }
 0x59d   :  { %7197 = vmatpush.bf16.msrb.mxu2 %v11069_v14  ;;  %v12672_v14 = vld [vmem:[#allocation6 + $0x394] sm:$0xf]  ;;  %v11168_v34 = vld [vmem:[#allocation6 + $0x110] sm:$0xf] }
 0x59e   :  { %7210 = vmatpush.bf16.msrb.mxu3 %v11325_v46  ;;  %v11200_v46 = vld [vmem:[#allocation6 + $0x150] sm:$0xf]  ;;  %v11493_v48 = vor.u32 %v12672_v14, %v11490_v47  ;;  %v11394_v23 = vld [vmem:[#allocation6 + $0x2f0] sm:$0xf0] }
 0x59f   :  { %7171 = vmatpush.bf16.msrb.mxu0 %v11065_v13  ;;  %v11525_v13 = vor.u32 %v12680_v27, %v11522_v0  ;;  %v11360_v27 = vld [vmem:[#allocation6 + $0x290] sm:$0xf] }
 0x5a0   :  { %v6241_v26 = vpop.f32.mrf.mxu0  ;;  %v6254_v25 = vpop.f32.mrf.mxu1  ;;  %7185 = vmatpush.bf16.msrb.mxu1 %v11289_v32  ;;  %v11201_v32 = vor.u32 %v12604_v21, %v11200_v46  ;;  %v12644_v0 = vld [vmem:[#allocation6 + $0x2ac] sm:$0xf0]  ;;  %v12632_v46 = vld [vmem:[#allocation6 + $0x254] sm:$0xf] }
 0x5a1   :  { %v6255_v44 = vadd.f32 %v6254_v25, %v6241_v26  ;;  %7198 = vmatpush.bf16.msrb.mxu2 %v11037_v33  ;;  %v11266_v25 = vld [vmem:[#allocation6 + $0x1f0] sm:$0xf0]  ;;  %v11457_v33 = vor.u32 %v12668_v11, %v11456_v49  ;;  %v11072_v24 = vld [vmem:[#allocation6 + $0x50] sm:$0xf] }
 0x5a2   :  { %7211 = vmatpush.bf16.msrb.mxu3 %v11293_v3  ;;  %v11269_v12 = vor.u32 %v12616_v58, %v11266_v25  ;;  %v11424_v3 = vld [vmem:[#allocation6 + $0x310] sm:$0xf]  ;;  %v11330_v21 = vld [vmem:[#allocation6 + $0x270] sm:$0xf0] }
 0x5a3   :  { %v6286_v59 = vadd.f32 %v6255_v44, %v13134_v55  ;;  %7172 = vmatpush.bf16.msrb.mxu0 %v11033_v63  ;;  %v11265_v44 = vor.u32 %v12620_v60, %v11264_v40  ;;  %v11202_v63 = vld [vmem:[#allocation6 + $0x170] sm:$0xf0]  ;;  %v11104_v58 = vld [vmem:[#allocation6 + $0x90] sm:$0xf] }
 0x5a4   :  { %v11138_v40 = vld [vmem:[#allocation6 + $0xf0] sm:$0xf0]  ;;  %v12572_v57 = vld [vmem:[#allocation6 + $0x6c] sm:$0xf0] }
 0x5a5   :  { %12885 = vtanh.f32 %v6286_v59  ;;  %v12608_v59 = vld [vmem:[#allocation6 + $0x194] sm:$0xf]  ;;  %v11328_v14 = vld [vmem:[#allocation6 + $0x250] sm:$0xf] }
 0x5a6   :  { %v11237_v50 = vor.u32 %v12608_v59, %v11234_v62  ;;  %v12648_v60 = vld [vmem:[#allocation6 + $0x2d4] sm:$0xf]  ;;  %v11365_v62 = vor.u32 %v12640_v9, %v11362_v10  ;;  %v12636_v47 = vld [vmem:[#allocation6 + $0x26c] sm:$0xf0]  ;;  %v11464_v9 = vld [vmem:[#allocation6 + $0x358] sm:$0xf] }
 0x5a7   :  { %v6267_v29 = vpop.f32.mrf.mxu2  ;;  %v6280_v31 = vpop.f32.mrf.mxu3  ;;  %v11397_v25 = vor.u32 %v12648_v60, %v11394_v23  ;;  %v11329_v49 = vor.u32 %v12636_v47, %v11328_v14  ;;  %v12564_v11 = vld [vmem:[#allocation6 + $0x2c] sm:$0xf0]  ;;  %v11496_v60 = vld [vmem:[#allocation6 + $0x398] sm:$0xf] }
 0x5a8   :  { %v6281_v17 = vadd.f32 %v6280_v31, %v6267_v29  ;;  %v6243_v18 = vpop.f32.mrf.mxu0  ;;  %v6256_v37 = vpop.f32.mrf.mxu1  ;;  %v12664_v29 = vld [vmem:[#allocation6 + $0x354] sm:$0xf]  ;;  %v12677_v23 = vld [vmem:[#allocation6 + $0x3b4] sm:$0xf0] }
 0x5a9   :  { %v11458_v31 = vld [vmem:[#allocation6 + $0x370] sm:$0xf0]  ;;  %v11205_v18 = vor.u32 %v12600_v28, %v11202_v63  ;;  %v11296_v28 = vld [vmem:[#allocation6 + $0x210] sm:$0xf]  ;;  %v12669_v10 = vld [vmem:[#allocation6 + $0x374] sm:$0xf0] }
 0x5aa   :  { %v6287_v38 = vadd.f32 %v6281_v17, %v13137_v7  ;;  %v12596_v17 = vld [vmem:[#allocation6 + $0x12c] sm:$0xf0]  ;;  %v11461_v37 = vor.u32 %v12664_v29, %v11458_v31  ;;  %v11333_v31 = vor.u32 %v12632_v46, %v11330_v21  ;;  %v11176_v14 = vld [vmem:[#allocation6 + $0x118] sm:$0xf] }
 0x5ab   :  { %v12886_v41 = vpop.eup %12885  ;;  %v12628_v63 = vld [vmem:[#allocation6 + $0x22c] sm:$0xf0]  ;;  %v12597_v47 = vld [vmem:[#allocation6 + $0x134] sm:$0xf0] }
 0x5ac   :  { %v6302_v5 = vmul.f32 %v12886_v41, %v6291_v2  ;;  %v6297_v43 = vmul.f32 0.5, %v6287_v38  ;;  %v12660_v2 = vld [vmem:[#allocation6 + $0x32c] sm:$0xf0]  ;;  %v12592_v38 = vld [vmem:[#allocation6 + $0x114] sm:$0xf] }
 0x5ad   :  { %v11170_v41 = vld [vmem:[#allocation6 + $0x130] sm:$0xf0]  ;;  %v11432_v46 = vld [vmem:[#allocation6 + $0x318] sm:$0xf] }
 0x5ae   :  { %v13325_v45 = vadd.f32 %v6302_v5, %v6301_v4  ;;  %12887 = vtanh.f32 %v6297_v43  ;;  %v12656_v4 = vld [vmem:[#allocation6 + $0x314] sm:$0xf]  ;;  %v11169_v43 = vor.u32 %v12596_v17, %v11168_v34  ;;  %v12661_v21 = vld [vmem:[#allocation6 + $0x334] sm:$0xf0] }
 0x5af   :  { %v6269_v20 = vpop.f32.mrf.mxu2  ;;  %v6282_v22 = vpop.f32.mrf.mxu3  ;;  %v11426_v5 = vld [vmem:[#allocation6 + $0x330] sm:$0xf0] }
 0x5b0   :  { %12889 = vtanh.f32 %v13325_v45  ;;  %v11425_v20 = vor.u32 %v12660_v2, %v11424_v3  ;;  %v11136_v22 = vld [vmem:[#allocation6 + $0xd0] sm:$0xf]  ;;  %v12624_v34 = vld [vmem:[#allocation6 + $0x214] sm:$0xf]  ;;  %v11528_v3 = vld [vmem:[#allocation6 + $0x3d8] sm:$0xf] }
 0x5b1   :  { %v11298_v17 = vld [vmem:[#allocation6 + $0x230] sm:$0xf0]  ;;  %v12685_v2 = vld [vmem:[#allocation6 + $0x3f4] sm:$0xf0] }
 0x5b4   :  { %v12888_v51 = vpop.eup %12887 }
 0x5b5   :  { %v6299_v52 = vmul.f32 0.5, %v12888_v51  ;;  %v12588_v51 = vld [vmem:[#allocation6 + $0xec] sm:$0xf0] }
 0x5b6   :  { %v12890_v35 = vpop.eup %12889 }
 0x5b7   :  { %v6300_v53 = vadd.f32 0.5, %v6299_v52  ;;  %v11173_v52 = vor.u32 %v12592_v38, %v11170_v41  ;;  %v12617_v38 = vld [vmem:[#allocation6 + $0x1dc] sm:$0xf] }
 0x5b9   :  { %v6305_v36 = vmul.f32 %v12890_v35, %v6300_v53  ;;  %v11429_v35 = vor.u32 %v12656_v4, %v11426_v5  ;;  %v11392_v53 = vld [vmem:[#allocation6 + $0x2d0] sm:$0xf]  ;;  %v11297_v4 = vor.u32 %v12628_v63, %v11296_v28  ;;  %v11274_v5 = vld [vmem:[#allocation6 + $0x1f8] sm:$0xf0]  ;;  %v11177_v28 = vor.u32 %v12597_v47, %v11176_v14 }
 0x5ba   :  { %v11433_v63 = vor.u32 %v12661_v21, %v11432_v46  ;;  %v12625_v14 = vld [vmem:[#allocation6 + $0x21c] sm:$0xf] }
 0x5bb   :  { %v6306_v39 = vpack.c.bf16 %v6305_v36, %v6305_v36  ;;  %v12652_v36 = vld [vmem:[#allocation6 + $0x2ec] sm:$0xf0]  ;;  %v11306_v47 = vld [vmem:[#allocation6 + $0x238] sm:$0xf0] }
 0x5bc   :  { %v11393_v56 = vor.u32 %v12652_v36, %v11392_v53  ;;  %v11240_v53 = vld [vmem:[#allocation6 + $0x198] sm:$0xf]  ;;  %v11309_v21 = vor.u32 %v12625_v14, %v11306_v47  ;;  %v11760_v14 = vld [vmem:[#allocation6 + $0x390] sm:$0xf] }
 0x5bd   :  { %6307 = vst [vmem:[#allocation2 + $0x4] sm:$0xf] %v6306_v39  ;;  %v12584_v39 = vld [vmem:[#allocation6 + $0xd4] sm:$0xf]  ;;  %v12613_v36 = vld [vmem:[#allocation6 + $0x1b4] sm:$0xf0] }
 0x5c4   :  { %v6337_v54 = vld [vmem:[#allocation2] sm:$0xff] }
 0x5c5   :  { %v6467_v61 = vunpack.c.l.b16 %v6337_v54  ;;  %v6468_v26 = vunpack.c.h.b16 %v6337_v54  ;;  %v11137_v54 = vor.u32 %v12588_v51, %v11136_v22  ;;  %v11301_v51 = vor.u32 %v12624_v34, %v11298_v17  ;;  %v11400_v34 = vld [vmem:[#allocation6 + $0x2d8] sm:$0xf] }
 0x5c6   :  { %v12653_v17 = vld [vmem:[#allocation6 + $0x2f4] sm:$0xf0] }
 0x5c7   :  { %v13328_v1 = vpack.c.b16 %v6467_v61, %v6467_v61  ;;  %v13330_v6 = vpack.c.b16 %v6468_v26, %v6468_v26  ;;  %v12580_v61 = vld [vmem:[#allocation6 + $0xac] sm:$0xf0]  ;;  %v11141_v26 = vor.u32 %v12584_v39, %v11138_v40  ;;  %v11277_v39 = vor.u32 %v12617_v38, %v11274_v5  ;;  %v12581_v5 = vld [vmem:[#allocation6 + $0xb4] sm:$0xf0] }
 0x5c9   :  { %7121 = vmatmul.bf16.vlgmr.msra.gmra.mxu0 %v13328_v1  ;;  %7134 = vmatmul.bf16.vlgmr.msra.gmra.mxu1 %v13330_v6 }
 0x5ca   :  { %7147 = vmatmul.bf16.vlgmr.msra.gmra.mxu2 %v13328_v1  ;;  %7160 = vmatmul.bf16.vlgmr.msra.gmra.mxu3 %v13330_v6 }
 0x5cb   :  { %7217 = vmatpush.bf16.msra.mxu0 %v11265_v44  ;;  %7230 = vmatpush.bf16.msra.mxu1 %v11521_v8  ;;  %v12576_v44 = vld [vmem:[#allocation6 + $0x94] sm:$0xf] }
 0x5cc   :  { %7243 = vmatpush.bf16.msra.mxu2 %v11269_v12  ;;  %7256 = vmatpush.bf16.msra.mxu3 %v11525_v13  ;;  %v11106_v8 = vld [vmem:[#allocation6 + $0xb0] sm:$0xf0]  ;;  %v11105_v12 = vor.u32 %v12580_v61, %v11104_v58  ;;  %v11361_v13 = vor.u32 %v12644_v0, %v11360_v27  ;;  %v12673_v58 = vld [vmem:[#allocation6 + $0x39c] sm:$0xf]  ;;  %v11208_v27 = vld [vmem:[#allocation6 + $0x158] sm:$0xf] }
 0x5cd   :  { %v11109_v59 = vor.u32 %v12576_v44, %v11106_v8  ;;  %v11498_v61 = vld [vmem:[#allocation6 + $0x3b8] sm:$0xf0]  ;;  %v12605_v0 = vld [vmem:[#allocation6 + $0x174] sm:$0xf0] }
 0x5ce   :  { %v11501_v8 = vor.u32 %v12673_v58, %v11498_v61  ;;  %v11336_v58 = vld [vmem:[#allocation6 + $0x258] sm:$0xf] }
 0x5cf   :  { %7218 = vmatpush.bf16.msra.mxu0 %v11233_v15  ;;  %7231 = vmatpush.bf16.msra.mxu1 %v11489_v16  ;;  %v12568_v15 = vld [vmem:[#allocation6 + $0x54] sm:$0xf]  ;;  %v12637_v61 = vld [vmem:[#allocation6 + $0x274] sm:$0xf0] }
 0x5d0   :  { %7244 = vmatpush.bf16.msra.mxu2 %v11237_v50  ;;  %7257 = vmatpush.bf16.msra.mxu3 %v11493_v48  ;;  %v11074_v16 = vld [vmem:[#allocation6 + $0x70] sm:$0xf0]  ;;  %v11040_v50 = vld [vmem:[#allocation6 + $0x10] sm:$0xf]  ;;  %v11073_v48 = vor.u32 %v12572_v57, %v11072_v24  ;;  %v12665_v24 = vld [vmem:[#allocation6 + $0x35c] sm:$0xf] }
 0x5d1   :  { %v11077_v29 = vor.u32 %v12568_v15, %v11074_v16  ;;  %v11041_v41 = vor.u32 %v12564_v11, %v11040_v50  ;;  %v11466_v57 = vld [vmem:[#allocation6 + $0x378] sm:$0xf0] }
 0x5d2   :  { %v11469_v16 = vor.u32 %v12665_v24, %v11466_v57  ;;  %v12593_v50 = vld [vmem:[#allocation6 + $0x11c] sm:$0xf]  ;;  %v11304_v24 = vld [vmem:[#allocation6 + $0x218] sm:$0xf] }
 0x5d3   :  { %7219 = vmatpush.bf16.msra.mxu0 %v11201_v32  ;;  %7232 = vmatpush.bf16.msra.mxu1 %v11457_v33  ;;  %v12560_v32 = vld [vmem:[#allocation6 + $0x14] sm:$0xf]  ;;  %v11434_v11 = vld [vmem:[#allocation6 + $0x338] sm:$0xf0]  ;;  %v12629_v57 = vld [vmem:[#allocation6 + $0x234] sm:$0xf0] }
 0x5d4   :  { %7245 = vmatpush.bf16.msra.mxu2 %v11205_v18  ;;  %7258 = vmatpush.bf16.msra.mxu3 %v11461_v37  ;;  %v11042_v33 = vld [vmem:[#allocation6 + $0x30] sm:$0xf0]  ;;  %v11272_v18 = vld [vmem:[#allocation6 + $0x1d8] sm:$0xf] }
 0x5d5   :  { %v12621_v37 = vld [vmem:[#allocation6 + $0x1f4] sm:$0xf0]  ;;  %v11045_v22 = vor.u32 %v12560_v32, %v11042_v33 }
 0x5d7   :  { %7220 = vmatpush.bf16.msra.mxu0 %v11169_v43  ;;  %7233 = vmatpush.bf16.msra.mxu1 %v11425_v20  ;;  %v12681_v43 = vld [vmem:[#allocation6 + $0x3dc] sm:$0xf] }
 0x5d8   :  { %7246 = vmatpush.bf16.msra.mxu2 %v11173_v52  ;;  %7259 = vmatpush.bf16.msra.mxu3 %v11429_v35  ;;  %v11530_v20 = vld [vmem:[#allocation6 + $0x3f8] sm:$0xf0]  ;;  %v11273_v52 = vor.u32 %v12621_v37, %v11272_v18  ;;  %v11529_v35 = vor.u32 %v12685_v2, %v11528_v3 }
 0x5d9   :  { %7173 = vmatmul.bf16.vlgmr.msrb.gmra.mxu0 %v13328_v1  ;;  %7186 = vmatmul.bf16.vlgmr.msrb.gmra.mxu1 %v13330_v6  ;;  %v11533_v40 = vor.u32 %v12681_v43, %v11530_v20  ;;  %v12585_v18 = vld [vmem:[#allocation6 + $0xdc] sm:$0xf] }
 0x5da   :  { %7199 = vmatmul.bf16.vlgmr.msrb.gmra.mxu2 %v13328_v1  ;;  %7212 = vmatmul.bf16.vlgmr.msrb.gmra.mxu3 %v13330_v6  ;;  %v11146_v37 = vld [vmem:[#allocation6 + $0xf8] sm:$0xf0] }
 0x5db   :  { %7221 = vmatpush.bf16.msra.mxu0 %v11137_v54  ;;  %7234 = vmatpush.bf16.msra.mxu1 %v11393_v56  ;;  %v12609_v54 = vld [vmem:[#allocation6 + $0x19c] sm:$0xf]  ;;  %v11149_v43 = vor.u32 %v12585_v18, %v11146_v37 }
 0x5dc   :  { %7247 = vmatpush.bf16.msra.mxu2 %v11141_v26  ;;  %7260 = vmatpush.bf16.msra.mxu3 %v11397_v25  ;;  %v11242_v56 = vld [vmem:[#allocation6 + $0x1b8] sm:$0xf0]  ;;  %v11241_v26 = vor.u32 %v12613_v36, %v11240_v53  ;;  %v11497_v25 = vor.u32 %v12677_v23, %v11496_v60  ;;  %v11080_v60 = vld [vmem:[#allocation6 + $0x58] sm:$0xf] }
 0x5dd   :  { %v11245_v44 = vor.u32 %v12609_v54, %v11242_v56  ;;  %v12649_v3 = vld [vmem:[#allocation6 + $0x2dc] sm:$0xf]  ;;  %v12573_v23 = vld [vmem:[#allocation6 + $0x74] sm:$0xf0] }
 0x5de   :  { %v11402_v2 = vld [vmem:[#allocation6 + $0x2f8] sm:$0xf0] }
 0x5df   :  { %7222 = vmatpush.bf16.msra.mxu0 %v11105_v12  ;;  %7235 = vmatpush.bf16.msra.mxu1 %v11361_v13  ;;  %v12601_v12 = vld [vmem:[#allocation6 + $0x15c] sm:$0xf]  ;;  %v11405_v20 = vor.u32 %v12649_v3, %v11402_v2 }
 0x5e0   :  { %7248 = vmatpush.bf16.msra.mxu2 %v11109_v59  ;;  %7261 = vmatpush.bf16.msra.mxu3 %v11365_v62  ;;  %v11210_v13 = vld [vmem:[#allocation6 + $0x178] sm:$0xf0]  ;;  %v11209_v59 = vor.u32 %v12605_v0, %v11208_v27  ;;  %v11465_v62 = vor.u32 %v12669_v10, %v11464_v9  ;;  %v11048_v9 = vld [vmem:[#allocation6 + $0x18] sm:$0xf] }
 0x5e1   :  { %v11213_v15 = vor.u32 %v12601_v12, %v11210_v13  ;;  %v12641_v53 = vld [vmem:[#allocation6 + $0x29c] sm:$0xf]  ;;  %v12565_v10 = vld [vmem:[#allocation6 + $0x34] sm:$0xf0] }
 0x5e2   :  { %v11370_v36 = vld [vmem:[#allocation6 + $0x2b8] sm:$0xf0] }
 0x5e3   :  { %7223 = vmatpush.bf16.msra.mxu0 %v11073_v48  ;;  %7236 = vmatpush.bf16.msra.mxu1 %v11329_v49  ;;  %v11178_v48 = vld [vmem:[#allocation6 + $0x138] sm:$0xf0]  ;;  %v11373_v56 = vor.u32 %v12641_v53, %v11370_v36 }
 0x5e4   :  { %7249 = vmatpush.bf16.msra.mxu2 %v11077_v29  ;;  %7262 = vmatpush.bf16.msra.mxu3 %v11333_v31  ;;  %v12657_v49 = vld [vmem:[#allocation6 + $0x31c] sm:$0xf]  ;;  %v11144_v29 = vld [vmem:[#allocation6 + $0xd8] sm:$0xf]  ;;  %v11181_v32 = vor.u32 %v12593_v50, %v11178_v48 }
 0x5e5   :  { %v12589_v31 = vld [vmem:[#allocation6 + $0xf4] sm:$0xf0]  ;;  %v11437_v33 = vor.u32 %v12657_v49, %v11434_v11  ;;  %v12633_v27 = vld [vmem:[#allocation6 + $0x25c] sm:$0xf]  ;;  %v7346_v49 = vld [vmem:[#allocation3 + $0xe0] sm:$0xff] }
 0x5e6   :  { %v11145_v38 = vor.u32 %v12589_v31, %v11144_v29  ;;  %v11338_v0 = vld [vmem:[#allocation6 + $0x278] sm:$0xf0] }
 0x5e7   :  { %7224 = vmatpush.bf16.msra.mxu0 %v11041_v41  ;;  %7237 = vmatpush.bf16.msra.mxu1 %v11297_v4  ;;  %v11401_v41 = vor.u32 %v12653_v17, %v11400_v34  ;;  %v11112_v4 = vld [vmem:[#allocation6 + $0x98] sm:$0xf]  ;;  %v11341_v13 = vor.u32 %v12633_v27, %v11338_v0  ;;  %v11650_v27 = vld [vmem:[#allocation6 + $0x1f0] sm:$0xf0] }
 0x5e8   :  { %7250 = vmatpush.bf16.msra.mxu2 %v11045_v22  ;;  %7263 = vmatpush.bf16.msra.mxu3 %v11301_v51  ;;  %v11368_v22 = vld [vmem:[#allocation6 + $0x298] sm:$0xf] }
 0x5e9   :  { %v12645_v51 = vld [vmem:[#allocation6 + $0x2b4] sm:$0xf0] }
 0x5ea   :  { %7225 = vmatmul.bf16.vlgmr.msra.gmra.mxu0 %v13328_v1  ;;  %7238 = vmatmul.bf16.vlgmr.msra.gmra.mxu1 %v13330_v6 }
 0x5eb   :  { %7269 = vmatpush.bf16.msrb.mxu0 %v11273_v52  ;;  %7282 = vmatpush.bf16.msrb.mxu1 %v11529_v35  ;;  %v12577_v52 = vld [vmem:[#allocation6 + $0x9c] sm:$0xf] }
 0x5ec   :  { %7295 = vmatpush.bf16.msrb.mxu2 %v11277_v39  ;;  %7308 = vmatpush.bf16.msrb.mxu3 %v11533_v40  ;;  %v11114_v35 = vld [vmem:[#allocation6 + $0xb8] sm:$0xf0]  ;;  %v11113_v39 = vor.u32 %v12581_v5, %v11112_v4  ;;  %v11369_v40 = vor.u32 %v12645_v51, %v11368_v22 }
 0x5ed   :  { %7251 = vmatmul.bf16.vlgmr.msra.gmra.mxu2 %v13328_v1  ;;  %7264 = vmatmul.bf16.vlgmr.msra.gmra.mxu3 %v13330_v6  ;;  %v11117_v54 = vor.u32 %v12577_v52, %v11114_v35  ;;  %v7349_v35 = vld [vmem:[#allocation3 + $0xf8] sm:$0xff] }
 0x5ef   :  { %7270 = vmatpush.bf16.msrb.mxu0 %v11241_v26  ;;  %7283 = vmatpush.bf16.msrb.mxu1 %v11497_v25  ;;  %v12569_v26 = vld [vmem:[#allocation6 + $0x5c] sm:$0xf] }
 0x5f0   :  { %7296 = vmatpush.bf16.msrb.mxu2 %v11245_v44  ;;  %7309 = vmatpush.bf16.msrb.mxu3 %v11501_v8  ;;  %v11082_v25 = vld [vmem:[#allocation6 + $0x78] sm:$0xf0]  ;;  %v11081_v44 = vor.u32 %v12573_v23, %v11080_v60  ;;  %v11337_v8 = vor.u32 %v12637_v61, %v11336_v58  ;;  %v11648_v23 = vld [vmem:[#allocation6 + $0x1d0] sm:$0xf] }
 0x5f1   :  { %v11085_v12 = vor.u32 %v12569_v26, %v11082_v25  ;;  %v12748_v26 = vld [vmem:[#allocation6 + $0x3ec] sm:$0xf0]  ;;  %v12714_v25 = vld [vmem:[#allocation6 + $0x1d4] sm:$0xf] }
 0x5f3   :  { %7271 = vmatpush.bf16.msrb.mxu0 %v11209_v59  ;;  %7284 = vmatpush.bf16.msrb.mxu1 %v11465_v62  ;;  %v12561_v59 = vld [vmem:[#allocation6 + $0x1c] sm:$0xf] }
 0x5f4   :  { %7297 = vmatpush.bf16.msrb.mxu2 %v11213_v15  ;;  %7310 = vmatpush.bf16.msrb.mxu3 %v11469_v16  ;;  %v11050_v62 = vld [vmem:[#allocation6 + $0x38] sm:$0xf0]  ;;  %v11049_v15 = vor.u32 %v12565_v10, %v11048_v9  ;;  %v11305_v16 = vor.u32 %v12629_v57, %v11304_v24  ;;  %v12746_v9 = vld [vmem:[#allocation6 + $0x3d4] sm:$0xf] }
 0x5f5   :  { %v11053_v46 = vor.u32 %v12561_v59, %v11050_v62  ;;  %v11778_v10 = vld [vmem:[#allocation6 + $0x3f0] sm:$0xf0]  ;;  %v11632_v59 = vld [vmem:[#allocation6 + $0x190] sm:$0xf] }
 0x5f6   :  { %v11781_v57 = vor.u32 %v12746_v9, %v11778_v10  ;;  %v12712_v62 = vld [vmem:[#allocation6 + $0x1ac] sm:$0xf0] }
 0x5f7   :  { %7272 = vmatpush.bf16.msrb.mxu0 %v11177_v28  ;;  %7285 = vmatpush.bf16.msrb.mxu1 %v11433_v63 }
 0x5f8   :  { %7298 = vmatpush.bf16.msrb.mxu2 %v11181_v32  ;;  %7311 = vmatpush.bf16.msrb.mxu3 %v11437_v33  ;;  %v7347_v32 = vld [vmem:[#allocation3 + $0xe8] sm:$0xff] }
 0x5fb   :  { %7273 = vmatpush.bf16.msrb.mxu0 %v11145_v38  ;;  %7286 = vmatpush.bf16.msrb.mxu1 %v11401_v41  ;;  %v7348_v38 = vld [vmem:[#allocation3 + $0xf0] sm:$0xff] }
 0x5fc   :  { %7299 = vmatpush.bf16.msrb.mxu2 %v11149_v43  ;;  %7312 = vmatpush.bf16.msrb.mxu3 %v11405_v20 }
 0x5ff   :  { %7274 = vmatpush.bf16.msrb.mxu0 %v11113_v39  ;;  %7287 = vmatpush.bf16.msrb.mxu1 %v11369_v40 }
 0x600   :  { %7300 = vmatpush.bf16.msrb.mxu2 %v11117_v54  ;;  %7313 = vmatpush.bf16.msrb.mxu3 %v11373_v56  ;;  %v12716_v54 = vld [vmem:[#allocation6 + $0x1ec] sm:$0xf0] }
 0x601   :  { %v11776_v56 = vld [vmem:[#allocation6 + $0x3d0] sm:$0xf]  ;;  %v11649_v61 = vor.u32 %v12716_v54, %v11648_v23  ;;  %v11602_v23 = vld [vmem:[#allocation6 + $0x130] sm:$0xf0] }
 0x602   :  { %v12734_v54 = vld [vmem:[#allocation6 + $0x314] sm:$0xf] }
 0x603   :  { %7275 = vmatpush.bf16.msrb.mxu0 %v11081_v44  ;;  %7288 = vmatpush.bf16.msrb.mxu1 %v11337_v8  ;;  %v11777_v44 = vor.u32 %v12748_v26, %v11776_v56  ;;  %v11653_v8 = vor.u32 %v12714_v25, %v11650_v27 }
 0x604   :  { %7301 = vmatpush.bf16.msrb.mxu2 %v11085_v12  ;;  %7314 = vmatpush.bf16.msrb.mxu3 %v11341_v13 }
 0x607   :  { %7276 = vmatpush.bf16.msrb.mxu0 %v11049_v15  ;;  %7289 = vmatpush.bf16.msrb.mxu1 %v11305_v16  ;;  %v11633_v15 = vor.u32 %v12712_v62, %v11632_v59  ;;  %v12744_v16 = vld [vmem:[#allocation6 + $0x3ac] sm:$0xf0]  ;;  %v11586_v59 = vld [vmem:[#allocation6 + $0xf0] sm:$0xf0] }
 0x608   :  { %7302 = vmatpush.bf16.msrb.mxu2 %v11053_v46  ;;  %7315 = vmatpush.bf16.msrb.mxu3 %v11309_v21  ;;  %v12710_v46 = vld [vmem:[#allocation6 + $0x194] sm:$0xf] }
 0x609   :  { %v11634_v21 = vld [vmem:[#allocation6 + $0x1b0] sm:$0xf0] }
 0x60a   :  { %7277 = vmatmul.bf16.vlgmr.msrb.gmra.mxu0 %v13328_v1  ;;  %7290 = vmatmul.bf16.vlgmr.msrb.gmra.mxu1 %v13330_v6 }
 0x60b   :  { %7303 = vmatmul.bf16.vlgmr.msrb.gmra.mxu2 %v13328_v1  ;;  %7316 = vmatmul.bf16.vlgmr.msrb.gmra.mxu3 %v13330_v6 }
 0x60c   :  { %7766 = vmatpush.bf16.msra.mxu0 %v11649_v61  ;;  %7779 = vmatpush.bf16.msra.mxu1 %v11777_v44  ;;  %v12700_v44 = vld [vmem:[#allocation6 + $0xec] sm:$0xf0] }
 0x60d   :  { %7792 = vmatpush.bf16.msra.mxu2 %v11653_v8  ;;  %7805 = vmatpush.bf16.msra.mxu3 %v11781_v57  ;;  %v11712_v8 = vld [vmem:[#allocation6 + $0x2d0] sm:$0xf]  ;;  %v12698_v57 = vld [vmem:[#allocation6 + $0xd4] sm:$0xf] }
 0x610   :  { %7767 = vmatpush.bf16.msra.mxu0 %v11633_v15  ;;  %v11589_v15 = vor.u32 %v12698_v57, %v11586_v59  ;;  %v11658_v59 = vld [vmem:[#allocation6 + $0x1f8] sm:$0xf0] }
 0x646   :  { %v7122_v50 = vpop.f32.mrf.mxu0  ;;  %v7135_v48 = vpop.f32.mrf.mxu1 }
 0x647   :  { %v7136_v11 = vadd.f32 %v7135_v48, %v7122_v50 }
 0x649   :  { %v7350_v28 = vadd.f32 %v7346_v49, %v7136_v11  ;;  %v11761_v49 = vor.u32 %v12744_v16, %v11760_v14  ;;  %v12742_v11 = vld [vmem:[#allocation6 + $0x394] sm:$0xf] }
 0x64a   :  { %v12730_v16 = vld [vmem:[#allocation6 + $0x2d4] sm:$0xf] }
 0x64b   :  { %v7354_v63 = vmul.f32 0.5, %v7350_v28  ;;  %v11762_v28 = vld [vmem:[#allocation6 + $0x3b0] sm:$0xf0]  ;;  %7780 = vmatpush.bf16.msra.mxu1 %v11761_v49  ;;  %v12696_v49 = vld [vmem:[#allocation6 + $0xac] sm:$0xf0] }
 0x64d   :  { %v7148_v29 = vpop.f32.mrf.mxu2  ;;  %v7161_v31 = vpop.f32.mrf.mxu3  ;;  %12891 = vtanh.f32 %v7354_v63  ;;  %v11765_v63 = vor.u32 %v12742_v11, %v11762_v28  ;;  %v11696_v28 = vld [vmem:[#allocation6 + $0x290] sm:$0xf] }
 0x64e   :  { %v7162_v33 = vadd.f32 %v7161_v31, %v7148_v29  ;;  %v7124_v34 = vpop.f32.mrf.mxu0  ;;  %v7137_v17 = vpop.f32.mrf.mxu1  ;;  %v11616_v29 = vld [vmem:[#allocation6 + $0x150] sm:$0xf] }
 0x64f   :  { %v12708_v31 = vld [vmem:[#allocation6 + $0x16c] sm:$0xf0]  ;;  %7806 = vmatpush.bf16.msra.mxu3 %v11765_v63 }
 0x650   :  { %v7351_v18 = vadd.f32 %v7347_v32, %v7162_v33  ;;  %v11744_v32 = vld [vmem:[#allocation6 + $0x350] sm:$0xf]  ;;  %v11617_v17 = vor.u32 %v12708_v31, %v11616_v29  ;;  %v12694_v31 = vld [vmem:[#allocation6 + $0x94] sm:$0xf] }
 0x651   :  { %v12728_v63 = vld [vmem:[#allocation6 + $0x2ac] sm:$0xf0] }
 0x652   :  { %v7358_v37 = vmul.f32 0.5, %v7351_v18  ;;  %v12740_v18 = vld [vmem:[#allocation6 + $0x36c] sm:$0xf0]  ;;  %7768 = vmatpush.bf16.msra.mxu0 %v11617_v17  ;;  %v11697_v29 = vor.u32 %v12728_v63, %v11696_v28  ;;  %v11698_v17 = vld [vmem:[#allocation6 + $0x2b0] sm:$0xf0] }
 0x653   :  { %v12892_v41 = vpop.eup %12891  ;;  %v12743_v63 = vld [vmem:[#allocation6 + $0x39c] sm:$0xf] }
 0x654   :  { %12893 = vtanh.f32 %v7358_v37  ;;  %v7356_v20 = vmul.f32 0.5, %v12892_v41  ;;  %v12706_v37 = vld [vmem:[#allocation6 + $0x154] sm:$0xf] }
 0x655   :  { %v7150_v3 = vpop.f32.mrf.mxu2  ;;  %v7163_v1 = vpop.f32.mrf.mxu3  ;;  %v11746_v41 = vld [vmem:[#allocation6 + $0x370] sm:$0xf0] }
 0x656   :  { %v7174_v2 = vpop.f32.mrf.mxu0  ;;  %v7187_v6 = vpop.f32.mrf.mxu1  ;;  %v7357_v53 = vadd.f32 0.5, %v7356_v20  ;;  %v11618_v3 = vld [vmem:[#allocation6 + $0x170] sm:$0xf0]  ;;  %v11600_v20 = vld [vmem:[#allocation6 + $0x110] sm:$0xf] }
 0x657   :  { %v7188_v4 = vadd.f32 %v7187_v6, %v7174_v2  ;;  %v11745_v2 = vor.u32 %v12740_v18, %v11744_v32  ;;  %v11621_v6 = vor.u32 %v12706_v37, %v11618_v3  ;;  %v11570_v32 = vld [vmem:[#allocation6 + $0xb0] sm:$0xf0] }
 0x659   :  { %v7352_v5 = vadd.f32 %v7348_v38, %v7188_v4  ;;  %v12738_v38 = vld [vmem:[#allocation6 + $0x354] sm:$0xf]  ;;  %7781 = vmatpush.bf16.msra.mxu1 %v11745_v2  ;;  %v12692_v2 = vld [vmem:[#allocation6 + $0x6c] sm:$0xf0] }
 0x65a   :  { %v12894_v43 = vpop.eup %12893 }
 0x65b   :  { %v7360_v22 = vmul.f32 0.5, %v12894_v43  ;;  %12895 = vtanh.f32 %v7352_v5  ;;  %v11749_v5 = vor.u32 %v12738_v38, %v11746_v41  ;;  %v12724_v41 = vld [vmem:[#allocation6 + $0x26c] sm:$0xf0] }
 0x65d   :  { %v7200_v51 = vpop.f32.mrf.mxu2  ;;  %v7213_v52 = vpop.f32.mrf.mxu3  ;;  %v7361_v36 = vadd.f32 0.5, %v7360_v22  ;;  %v12704_v22 = vld [vmem:[#allocation6 + $0x12c] sm:$0xf0]  ;;  %7807 = vmatpush.bf16.msra.mxu3 %v11749_v5 }
 0x65e   :  { %v7214_v39 = vadd.f32 %v7213_v52, %v7200_v51  ;;  %v7176_v40 = vpop.f32.mrf.mxu0  ;;  %v7189_v60 = vpop.f32.mrf.mxu1  ;;  %v11601_v52 = vor.u32 %v12704_v22, %v11600_v20  ;;  %v12722_v20 = vld [vmem:[#allocation6 + $0x254] sm:$0xf] }
 0x65f   :  { %v7367_v12 = vmul.f32 %v7361_v36, %v13311_v42  ;;  %v11637_v42 = vor.u32 %v12710_v46, %v11634_v21  ;;  %v12702_v36 = vld [vmem:[#allocation6 + $0x114] sm:$0xf] }
 0x660   :  { %v7353_v58 = vadd.f32 %v7349_v35, %v7214_v39  ;;  %v11728_v35 = vld [vmem:[#allocation6 + $0x310] sm:$0xf]  ;;  %7769 = vmatpush.bf16.msra.mxu0 %v11601_v52  ;;  %v11605_v56 = vor.u32 %v12702_v36, %v11602_v23  ;;  %v11714_v46 = vld [vmem:[#allocation6 + $0x2f0] sm:$0xf0] }
 0x661   :  { %v12896_v0 = vpop.eup %12895  ;;  %7793 = vmatpush.bf16.msra.mxu2 %v11637_v42  ;;  %v11682_v22 = vld [vmem:[#allocation6 + $0x270] sm:$0xf0]  ;;  %v12688_v36 = vld [vmem:[#allocation6 + $0x2c] sm:$0xf0] }
 0x662   :  { %v7368_v13 = vmul.f32 %v12896_v0, %v7357_v53  ;;  %v7363_v24 = vmul.f32 0.5, %v7353_v58  ;;  %v12736_v53 = vld [vmem:[#allocation6 + $0x32c] sm:$0xf0]  ;;  %v11730_v58 = vld [vmem:[#allocation6 + $0x330] sm:$0xf0]  ;;  %v11685_v52 = vor.u32 %v12722_v20, %v11682_v22 }
 0x663   :  { %v11729_v60 = vor.u32 %v12736_v53, %v11728_v35  ;;  %v11733_v27 = vor.u32 %v12734_v54, %v11730_v58  ;;  %v11584_v0 = vld [vmem:[#allocation6 + $0xd0] sm:$0xf]  ;;  %v12686_v54 = vld [vmem:[#allocation6 + $0x14] sm:$0xf] }
 0x664   :  { %v7369_v47 = vadd.f32 %v7368_v13, %v7367_v12  ;;  %12897 = vtanh.f32 %v7363_v24  ;;  %v11585_v13 = vor.u32 %v12700_v44, %v11584_v0  ;;  %v12732_v24 = vld [vmem:[#allocation6 + $0x2ec] sm:$0xf0]  ;;  %v11656_v0 = vld [vmem:[#allocation6 + $0x1d8] sm:$0xf] }
 0x665   :  { %v7202_v50 = vpop.f32.mrf.mxu2  ;;  %v7215_v48 = vpop.f32.mrf.mxu3  ;;  %7794 = vmatpush.bf16.msra.mxu2 %v11621_v6  ;;  %7782 = vmatpush.bf16.msra.mxu1 %v11729_v60  ;;  %v11680_v6 = vld [vmem:[#allocation6 + $0x250] sm:$0xf]  ;;  %v12717_v44 = vld [vmem:[#allocation6 + $0x1f4] sm:$0xf0] }
 0x666   :  { %12899 = vtanh.f32 %v7369_v47  ;;  %7808 = vmatpush.bf16.msra.mxu3 %v11733_v27  ;;  %v11713_v47 = vor.u32 %v12732_v24, %v11712_v8  ;;  %7770 = vmatpush.bf16.msra.mxu0 %v11585_v13  ;;  %v11717_v50 = vor.u32 %v12730_v16, %v11714_v46  ;;  %v11568_v48 = vld [vmem:[#allocation6 + $0x90] sm:$0xf]  ;;  %v11681_v5 = vor.u32 %v12724_v41, %v11680_v6  ;;  %v11784_v8 = vld [vmem:[#allocation6 + $0x3d8] sm:$0xf]  ;;  %v12715_v24 = vld [vmem:[#allocation6 + $0x1dc] sm:$0xf] }
 0x667   :  { %v7226_v33 = vpop.f32.mrf.mxu0  ;;  %v7239_v34 = vpop.f32.mrf.mxu1  ;;  %v11569_v11 = vor.u32 %v12696_v49, %v11568_v48  ;;  %v11536_v53 = vld [vmem:[#allocation6 + $0x10] sm:$0xf]  ;;  %v12749_v13 = vld [vmem:[#allocation6 + $0x3f4] sm:$0xf0]  ;;  %v12711_v49 = vld [vmem:[#allocation6 + $0x19c] sm:$0xf] }
 0x668   :  { %v7240_v1 = vadd.f32 %v7239_v34, %v7226_v33  ;;  %v12726_v33 = vld [vmem:[#allocation6 + $0x294] sm:$0xf]  ;;  %v11573_v34 = vor.u32 %v12694_v31, %v11570_v32  ;;  %v11537_v60 = vor.u32 %v12688_v36, %v11536_v53  ;;  %v12720_v23 = vld [vmem:[#allocation6 + $0x22c] sm:$0xf0]  ;;  %v11785_v57 = vor.u32 %v12749_v13, %v11784_v8  ;;  %v11640_v16 = vld [vmem:[#allocation6 + $0x198] sm:$0xf] }
 0x669   :  { %7795 = vmatpush.bf16.msra.mxu2 %v11605_v56  ;;  %7783 = vmatpush.bf16.msra.mxu1 %v11713_v47  ;;  %v11701_v3 = vor.u32 %v12726_v33, %v11698_v17  ;;  %v11538_v56 = vld [vmem:[#allocation6 + $0x30] sm:$0xf0]  ;;  %v11661_v47 = vor.u32 %v12715_v24, %v11658_v59  ;;  %v12713_v46 = vld [vmem:[#allocation6 + $0x1b4] sm:$0xf0]  ;;  %v12739_v6 = vld [vmem:[#allocation6 + $0x35c] sm:$0xf] }
 0x66a   :  { %v12898_v4 = vpop.eup %12897  ;;  %v7321_v40 = vadd.f32 %v7240_v1, %v13126_v19  ;;  %7809 = vmatpush.bf16.msra.mxu3 %v11717_v50  ;;  %7771 = vmatpush.bf16.msra.mxu0 %v11569_v11  ;;  %v11552_v1 = vld [vmem:[#allocation6 + $0x50] sm:$0xf]  ;;  %v11641_v50 = vor.u32 %v12713_v46, %v11640_v16  ;;  %v12745_v48 = vld [vmem:[#allocation6 + $0x3b4] sm:$0xf0]  ;;  %v11610_v36 = vld [vmem:[#allocation6 + $0x138] sm:$0xf0] }
 0x66b   :  { %v7365_v43 = vmul.f32 0.5, %v12898_v4  ;;  %v11553_v38 = vor.u32 %v12692_v2, %v11552_v1  ;;  %v12690_v4 = vld [vmem:[#allocation6 + $0x54] sm:$0xf]  ;;  %v11624_v31 = vld [vmem:[#allocation6 + $0x158] sm:$0xf] }
 0x66c   :  { %v12900_v51 = vpop.eup %12899  ;;  %v7325_v14 = vmul.f32 0.5, %v7321_v40  ;;  %v12709_v33 = vld [vmem:[#allocation6 + $0x174] sm:$0xf0]  ;;  %v12707_v1 = vld [vmem:[#allocation6 + $0x15c] sm:$0xf] }
 0x66d   :  { %v7366_v39 = vadd.f32 0.5, %v7365_v43  ;;  %7796 = vmatpush.bf16.msra.mxu2 %v11589_v15  ;;  %7784 = vmatpush.bf16.msra.mxu1 %v11697_v29  ;;  %v11554_v43 = vld [vmem:[#allocation6 + $0x70] sm:$0xf0]  ;;  %v11770_v29 = vld [vmem:[#allocation6 + $0x3b8] sm:$0xf0] }
 0x66e   :  { %12901 = vtanh.f32 %v7325_v14  ;;  %7810 = vmatpush.bf16.msra.mxu3 %v11701_v3  ;;  %7772 = vmatpush.bf16.msra.mxu0 %v11553_v38  ;;  %v11786_v14 = vld [vmem:[#allocation6 + $0x3f8] sm:$0xf0]  ;;  %v11773_v32 = vor.u32 %v12743_v63, %v11770_v29  ;;  %v12741_v17 = vld [vmem:[#allocation6 + $0x374] sm:$0xf0]  ;;  %v11625_v3 = vor.u32 %v12709_v33, %v11624_v31 }
 0x66f   :  { %v7371_v61 = vmul.f32 %v12900_v51, %v7366_v39  ;;  %v7228_v10 = vpop.f32.mrf.mxu0  ;;  %v7241_v12 = vpop.f32.mrf.mxu1  ;;  %v11557_v51 = vor.u32 %v12690_v4, %v11554_v43  ;;  %v11664_v39 = vld [vmem:[#allocation6 + $0x210] sm:$0xf]  ;;  %v11626_v2 = vld [vmem:[#allocation6 + $0x178] sm:$0xf0]  ;;  %v12705_v43 = vld [vmem:[#allocation6 + $0x134] sm:$0xf0] }
 0x670   :  { %v7252_v26 = vpop.f32.mrf.mxu2  ;;  %v7265_v25 = vpop.f32.mrf.mxu3  ;;  %v11665_v58 = vor.u32 %v12720_v23, %v11664_v39  ;;  %v11657_v12 = vor.u32 %v12717_v44, %v11656_v0  ;;  %v11754_v4 = vld [vmem:[#allocation6 + $0x378] sm:$0xf0]  ;;  %v11629_v20 = vor.u32 %v12707_v1, %v11626_v2  ;;  %v11592_v8 = vld [vmem:[#allocation6 + $0xd8] sm:$0xf] }
 0x671   :  { %v7266_v9 = vadd.f32 %v7265_v25, %v7252_v26  ;;  %v7372_v62 = vpack.c.bf16 %v7371_v61, %v7371_v61  ;;  %7797 = vmatpush.bf16.msra.mxu2 %v11573_v34  ;;  %7785 = vmatpush.bf16.msra.mxu1 %v11681_v5  ;;  %v11541_v61 = vor.u32 %v12686_v54, %v11538_v56  ;;  %v12718_v26 = vld [vmem:[#allocation6 + $0x214] sm:$0xf]  ;;  %v11752_v34 = vld [vmem:[#allocation6 + $0x358] sm:$0xf]  ;;  %v12735_v39 = vld [vmem:[#allocation6 + $0x31c] sm:$0xf] }
 0x672   :  { %7811 = vmatpush.bf16.msra.mxu3 %v11685_v52  ;;  %v11666_v25 = vld [vmem:[#allocation6 + $0x230] sm:$0xf0]  ;;  %7773 = vmatpush.bf16.msra.mxu0 %v11537_v60  ;;  %v11753_v41 = vor.u32 %v12741_v17, %v11752_v34  ;;  %v11608_v5 = vld [vmem:[#allocation6 + $0x118] sm:$0xf]  ;;  %v11757_v22 = vor.u32 %v12739_v6, %v11754_v4  ;;  %v12699_v59 = vld [vmem:[#allocation6 + $0xdc] sm:$0xf] }
 0x673   :  { %v7322_v21 = vadd.f32 %v7266_v9, %v13129_v30  ;;  %7373 = vst [vmem:[#allocation2] sm:$0xf] %v7372_v62  ;;  %v11669_v27 = vor.u32 %v12718_v26, %v11666_v25  ;;  %v12747_v62 = vld [vmem:[#allocation6 + $0x3dc] sm:$0xf]  ;;  %v12737_v52 = vld [vmem:[#allocation6 + $0x334] sm:$0xf0]  ;;  %v11609_v60 = vor.u32 %v12705_v43, %v11608_v5 }
 0x674   :  { %v12902_v35 = vpop.eup %12901  ;;  %v11789_v15 = vor.u32 %v12747_v62, %v11786_v14  ;;  %v11720_v13 = vld [vmem:[#allocation6 + $0x2d8] sm:$0xf]  ;;  %v11594_v62 = vld [vmem:[#allocation6 + $0xf8] sm:$0xf0] }
 0x675   :  { %v7329_v42 = vmul.f32 0.5, %v7322_v21  ;;  %7798 = vmatpush.bf16.msra.mxu2 %v11557_v51  ;;  %v13351_v9 = vmul.f32 0.5, %v12902_v35  ;;  %7786 = vmatpush.bf16.msra.mxu1 %v11665_v58  ;;  %v11768_v21 = vld [vmem:[#allocation6 + $0x398] sm:$0xf]  ;;  %v12703_v35 = vld [vmem:[#allocation6 + $0x11c] sm:$0xf] }
 0x676   :  { %7812 = vmatpush.bf16.msra.mxu3 %v11669_v27  ;;  %7818 = vmatpush.bf16.msrb.mxu0 %v11657_v12  ;;  %v11769_v11 = vor.u32 %v12745_v48, %v11768_v21  ;;  %v11736_v51 = vld [vmem:[#allocation6 + $0x318] sm:$0xf]  ;;  %v11613_v54 = vor.u32 %v12703_v35, %v11610_v36  ;;  %v12695_v29 = vld [vmem:[#allocation6 + $0x9c] sm:$0xf] }
 0x677   :  { %12903 = vtanh.f32 %v7329_v42  ;;  %v11642_v42 = vld [vmem:[#allocation6 + $0x1b8] sm:$0xf0]  ;;  %v11737_v23 = vor.u32 %v12737_v52, %v11736_v51  ;;  %v7328_v58 = vadd.f32 0.5, %v13351_v9  ;;  %v12701_v12 = vld [vmem:[#allocation6 + $0xf4] sm:$0xf0] }
 0x678   :  { %v7254_v18 = vpop.f32.mrf.mxu2  ;;  %v7267_v37 = vpop.f32.mrf.mxu3  ;;  %v11645_v28 = vor.u32 %v12711_v49, %v11642_v42  ;;  %v11593_v24 = vor.u32 %v12701_v12, %v11592_v8  ;;  %v11576_v16 = vld [vmem:[#allocation6 + $0x98] sm:$0xf]  ;;  %v11578_v31 = vld [vmem:[#allocation6 + $0xb8] sm:$0xf0] }
 0x679   :  { %7799 = vmatpush.bf16.msra.mxu2 %v11541_v61  ;;  %7831 = vmatpush.bf16.msrb.mxu1 %v11785_v57  ;;  %v12733_v57 = vld [vmem:[#allocation6 + $0x2f4] sm:$0xf0]  ;;  %v12727_v33 = vld [vmem:[#allocation6 + $0x29c] sm:$0xf] }
 0x67a   :  { %7857 = vmatpush.bf16.msrb.mxu3 %v11789_v15  ;;  %7819 = vmatpush.bf16.msrb.mxu0 %v11641_v50  ;;  %v11721_v9 = vor.u32 %v12733_v57, %v11720_v13  ;;  %v11722_v15 = vld [vmem:[#allocation6 + $0x2f8] sm:$0xf0]  ;;  %v12697_v50 = vld [vmem:[#allocation6 + $0xb4] sm:$0xf0] }
 0x67b   :  { %v11704_v48 = vld [vmem:[#allocation6 + $0x298] sm:$0xf]  ;;  %v11577_v63 = vor.u32 %v12697_v50, %v11576_v16  ;;  %v11706_v34 = vld [vmem:[#allocation6 + $0x2b8] sm:$0xf0] }
 0x67c   :  { %v12729_v49 = vld [vmem:[#allocation6 + $0x2b4] sm:$0xf0]  ;;  %v11562_v4 = vld [vmem:[#allocation6 + $0x78] sm:$0xf0] }
 0x67d   :  { %v12904_v40 = vpop.eup %12903  ;;  %7844 = vmatpush.bf16.msrb.mxu2 %v11661_v47  ;;  %7832 = vmatpush.bf16.msrb.mxu1 %v11769_v11  ;;  %v12731_v47 = vld [vmem:[#allocation6 + $0x2dc] sm:$0xf]  ;;  %v11560_v17 = vld [vmem:[#allocation6 + $0x58] sm:$0xf] }
 0x67e   :  { %v13353_v10 = vmul.f32 0.5, %v12904_v40  ;;  %7858 = vmatpush.bf16.msrb.mxu3 %v11773_v32  ;;  %v11738_v40 = vld [vmem:[#allocation6 + $0x338] sm:$0xf0]  ;;  %7820 = vmatpush.bf16.msrb.mxu0 %v11625_v3  ;;  %v11725_v21 = vor.u32 %v12731_v47, %v11722_v15  ;;  %v11705_v32 = vor.u32 %v12729_v49, %v11704_v48  ;;  %v11709_v3 = vor.u32 %v12727_v33, %v11706_v34  ;;  %v12693_v1 = vld [vmem:[#allocation6 + $0x74] sm:$0xf0]  ;;  %v7904_v47 = vld [vmem:[#allocation9 + $0x60] sm:$0xff] }
 0x67f   :  { %v11741_v56 = vor.u32 %v12735_v39, %v11738_v40  ;;  %v12725_v2 = vld [vmem:[#allocation6 + $0x274] sm:$0xf0]  ;;  %v12723_v5 = vld [vmem:[#allocation6 + $0x25c] sm:$0xf]  ;;  %v11561_v43 = vor.u32 %v12693_v1, %v11560_v17  ;;  %v7897_v49 = vld [vmem:[#allocation9 + $0x28] sm:$0xff] }
 0x680   :  { %v7332_v61 = vadd.f32 0.5, %v13353_v10  ;;  %v11597_v10 = vor.u32 %v12699_v59, %v11594_v62  ;;  %v11544_v51 = vld [vmem:[#allocation6 + $0x18] sm:$0xf]  ;;  %v12687_v40 = vld [vmem:[#allocation6 + $0x1c] sm:$0xf]  ;;  %v7893_v17 = vld [vmem:[#allocation9 + $0x8] sm:$0xff] }
 0x681   :  { %7845 = vmatpush.bf16.msrb.mxu2 %v11645_v28  ;;  %7833 = vmatpush.bf16.msrb.mxu1 %v11753_v41  ;;  %v12691_v41 = vld [vmem:[#allocation6 + $0x5c] sm:$0xf]  ;;  %v12689_v52 = vld [vmem:[#allocation6 + $0x34] sm:$0xf0] }
 0x682   :  { %7859 = vmatpush.bf16.msrb.mxu3 %v11757_v22  ;;  %7821 = vmatpush.bf16.msrb.mxu0 %v11609_v60  ;;  %v7338_v42 = vmul.f32 %v7332_v61, %v13325_v45  ;;  %v11688_v45 = vld [vmem:[#allocation6 + $0x258] sm:$0xf]  ;;  %v11565_v35 = vor.u32 %v12691_v41, %v11562_v4  ;;  %v11546_v60 = vld [vmem:[#allocation6 + $0x38] sm:$0xf0] }
 0x683   :  { %v11689_v22 = vor.u32 %v12725_v2, %v11688_v45  ;;  %v11672_v36 = vld [vmem:[#allocation6 + $0x218] sm:$0xf]  ;;  %v7903_v15 = vld [vmem:[#allocation9 + $0x58] sm:$0xff]  ;;  %v7892_v2 = vld [vmem:[#allocation9] sm:$0xff] }
 0x684   :  { %v12721_v39 = vld [vmem:[#allocation6 + $0x234] sm:$0xf0]  ;;  %v7899_v50 = vld [vmem:[#allocation9 + $0x38] sm:$0xff] }
 0x685   :  { %7846 = vmatpush.bf16.msrb.mxu2 %v11629_v20  ;;  %7834 = vmatpush.bf16.msrb.mxu1 %v11737_v23  ;;  %v11690_v20 = vld [vmem:[#allocation6 + $0x278] sm:$0xf0]  ;;  %v7902_v16 = vld [vmem:[#allocation9 + $0x50] sm:$0xff] }
 0x686   :  { %7860 = vmatpush.bf16.msrb.mxu3 %v11741_v56  ;;  %7822 = vmatpush.bf16.msrb.mxu0 %v11593_v24  ;;  %v12719_v23 = vld [vmem:[#allocation6 + $0x21c] sm:$0xf]  ;;  %v7898_v48 = vld [vmem:[#allocation9 + $0x30] sm:$0xff] }
 0x687   :  { %v7278_v18 = vpop.f32.mrf.mxu0  ;;  %v7291_v37 = vpop.f32.mrf.mxu1 }
 0x688   :  { %v7292_v38 = vadd.f32 %v7291_v37, %v7278_v18  ;;  %v11581_v37 = vor.u32 %v12695_v29, %v11578_v31  ;;  %v7895_v29 = vld [vmem:[#allocation9 + $0x18] sm:$0xff] }
 0x689   :  { %7847 = vmatpush.bf16.msrb.mxu2 %v11613_v54  ;;  %7835 = vmatpush.bf16.msrb.mxu1 %v11721_v9  ;;  %v11674_v54 = vld [vmem:[#allocation6 + $0x238] sm:$0xf0]  ;;  %v7906_v9 = vld [vmem:[#allocation9 + $0x70] sm:$0xff] }
 0x68a   :  { %v7323_v53 = vadd.f32 %v7292_v38, %v13134_v55  ;;  %7861 = vmatpush.bf16.msrb.mxu3 %v11725_v21  ;;  %7823 = vmatpush.bf16.msrb.mxu0 %v11577_v63  ;;  %v7900_v21 = vld [vmem:[#allocation9 + $0x40] sm:$0xff] }
 0x68b   :  { %v7896_v63 = vld [vmem:[#allocation9 + $0x20] sm:$0xff] }
 0x68c   :  { %12905 = vtanh.f32 %v7323_v53  ;;  %v11693_v53 = vor.u32 %v12723_v5, %v11690_v20 }
 0x68d   :  { %7848 = vmatpush.bf16.msrb.mxu2 %v11597_v10  ;;  %7836 = vmatpush.bf16.msrb.mxu1 %v11705_v32  ;;  %v7905_v10 = vld [vmem:[#allocation9 + $0x68] sm:$0xff]  ;;  %v7894_v32 = vld [vmem:[#allocation9 + $0x10] sm:$0xff] }
 0x68e   :  { %v7304_v26 = vpop.f32.mrf.mxu2  ;;  %v7317_v25 = vpop.f32.mrf.mxu3  ;;  %7862 = vmatpush.bf16.msrb.mxu3 %v11709_v3  ;;  %7824 = vmatpush.bf16.msrb.mxu0 %v11561_v43 }
 0x68f   :  { %v7318_v27 = vadd.f32 %v7317_v25, %v7304_v26  ;;  %v7280_v0 = vpop.f32.mrf.mxu0  ;;  %v7293_v44 = vpop.f32.mrf.mxu1  ;;  %v11673_v26 = vor.u32 %v12721_v39, %v11672_v36 }
 0x690   :  { %v11677_v0 = vor.u32 %v12719_v23, %v11674_v54 }
 0x691   :  { %v7324_v14 = vadd.f32 %v7318_v27, %v13137_v7  ;;  %7849 = vmatpush.bf16.msrb.mxu2 %v11581_v37  ;;  %7837 = vmatpush.bf16.msrb.mxu1 %v11689_v22  ;;  %v11549_v27 = vor.u32 %v12687_v40, %v11546_v60 }
 0x692   :  { %v12906_v46 = vpop.eup %12905  ;;  %7863 = vmatpush.bf16.msrb.mxu3 %v11693_v53 }
 0x693   :  { %v7339_v11 = vmul.f32 %v12906_v46, %v7328_v58  ;;  %v7334_v28 = vmul.f32 0.5, %v7324_v14  ;;  %v11545_v58 = vor.u32 %v12689_v52, %v11544_v51  ;;  %v7907_v14 = vld [vmem:[#allocation9 + $0x78] sm:$0xff]  ;;  %v7901_v46 = vld [vmem:[#allocation9 + $0x48] sm:$0xff] }
 0x695   :  { %v13360_v18 = vadd.f32 %v7339_v11, %v7338_v42  ;;  %12907 = vtanh.f32 %v7334_v28  ;;  %7850 = vmatpush.bf16.msrb.mxu2 %v11565_v35  ;;  %7825 = vmatpush.bf16.msrb.mxu0 %v11545_v58 }
 0x696   :  { %v7306_v6 = vpop.f32.mrf.mxu2  ;;  %v7319_v38 = vpop.f32.mrf.mxu3  ;;  %7838 = vmatpush.bf16.msrb.mxu1 %v11673_v26  ;;  %7864 = vmatpush.bf16.msrb.mxu3 %v11677_v0 }
 0x697   :  { %12909 = vtanh.f32 %v13360_v18 }
 0x699   :  { %7851 = vmatpush.bf16.msrb.mxu2 %v11549_v27 }
 0x69b   :  { %v12908_v56 = vpop.eup %12907 }
 0x69c   :  { %v7336_v61 = vmul.f32 0.5, %v12908_v56 }
 0x69d   :  { %v12910_v25 = vpop.eup %12909 }
 0x69e   :  { %v7337_v44 = vadd.f32 0.5, %v7336_v61 }
 0x6a0   :  { %v7342_v8 = vmul.f32 %v12910_v25, %v7337_v44 }
 0x6a2   :  { %v7343_v12 = vpack.c.bf16 %v7342_v8, %v7342_v8 }
 0x6a4   :  { %7344 = vst [vmem:[#allocation2 + $0x4] sm:$0xf] %v7343_v12 }
 0x6ab   :  { %v7374_v13 = vld [vmem:[#allocation2] sm:$0xff] }
 0x6ac   :  { %v7440_v24 = vunpack.c.l.b16 %v7374_v13  ;;  %v7441_v57 = vunpack.c.h.b16 %v7374_v13 }
 0x6ae   :  { %v7442_v59 = vpack.c.b16 %v7440_v24, %v7440_v24  ;;  %v7443_v62 = vpack.c.b16 %v7441_v57, %v7441_v57  ;;  %v12760_v24 = vld [vmem:[#allocation9 + $0x80] ss:$0 sm:$0xff] }
 0x6b0   :  { %7774 = vmatmul.bf16.vlgmr.msra.gmra.mxu0 %v7442_v59  ;;  %7787 = vmatmul.bf16.vlgmr.msra.gmra.mxu1 %v7443_v62 }
 0x6b1   :  { %7800 = vmatmul.bf16.vlgmr.msra.gmra.mxu2 %v7442_v59  ;;  %7813 = vmatmul.bf16.vlgmr.msra.gmra.mxu3 %v7443_v62 }
 0x6b2   :  { %7910 = vmatpush.msra.mxu0 %v7907_v14 }
 0x6b4   :  { %7911 = vmatpush.msra.mxu0 %v7906_v9 }
 0x6b6   :  { %7912 = vmatpush.msra.mxu0 %v7905_v10 }
 0x6b8   :  { %7913 = vmatpush.msra.mxu0 %v7904_v47 }
 0x6ba   :  { %7914 = vmatpush.msra.mxu0 %v7903_v15 }
 0x6bc   :  { %7915 = vmatpush.msra.mxu0 %v7902_v16 }
 0x6be   :  { %7916 = vmatpush.msra.mxu0 %v7901_v46 }
 0x6c0   :  { %7826 = vmatmul.bf16.vlgmr.msrb.gmra.mxu0 %v7442_v59  ;;  %7839 = vmatmul.bf16.vlgmr.msrb.gmra.mxu1 %v7443_v62 }
 0x6c1   :  { %7852 = vmatmul.bf16.vlgmr.msrb.gmra.mxu2 %v7442_v59  ;;  %7865 = vmatmul.bf16.vlgmr.msrb.gmra.mxu3 %v7443_v62 }
 0x6c2   :  { %7917 = vmatpush.msra.mxu0 %v7900_v21 }
 0x6c4   :  { %7918 = vmatpush.msra.mxu0 %v7899_v50 }
 0x6c6   :  { %7919 = vmatpush.msra.mxu0 %v7898_v48 }
 0x6c8   :  { %7920 = vmatpush.msra.mxu0 %v7897_v49 }
 0x6ca   :  { %7921 = vmatpush.msra.mxu0 %v7896_v63 }
 0x6cc   :  { %7922 = vmatpush.msra.mxu0 %v7895_v29 }
 0x6ce   :  { %7923 = vmatpush.msra.mxu0 %v7894_v32 }
 0x6d0   :  { %7924 = vmatpush.msra.mxu0 %v7893_v17 }
 0x6d2   :  { %7925 = vmatpush.msra.mxu0 %v7892_v2 }
 0x72d   :  { %v7775_v42 = vpop.f32.mrf.mxu0  ;;  %v7788_v11 = vpop.f32.mrf.mxu1 }
 0x72e   :  { %v7789_v28 = vadd.f32 %v7788_v11, %v7775_v42 }
 0x730   :  { %v7870_v31 = vadd.f32 %v7789_v28, %v13126_v19 }
 0x732   :  { %v7874_v45 = vmul.f32 0.5, %v7870_v31 }
 0x734   :  { %v7801_v33 = vpop.f32.mrf.mxu2  ;;  %v7814_v34 = vpop.f32.mrf.mxu3  ;;  %12911 = vtanh.f32 %v7874_v45 }
 0x735   :  { %v7815_v37 = vadd.f32 %v7814_v34, %v7801_v33  ;;  %v7777_v3 = vpop.f32.mrf.mxu0  ;;  %v7790_v1 = vpop.f32.mrf.mxu1 }
 0x737   :  { %v7871_v6 = vadd.f32 %v7815_v37, %v13129_v30 }
 0x739   :  { %v7878_v38 = vmul.f32 0.5, %v7871_v6 }
 0x73a   :  { %v12912_v20 = vpop.eup %12911 }
 0x73b   :  { %12913 = vtanh.f32 %v7878_v38  ;;  %v7876_v35 = vmul.f32 0.5, %v12912_v20 }
 0x73c   :  { %v7803_v41 = vpop.f32.mrf.mxu2  ;;  %v7816_v4 = vpop.f32.mrf.mxu3 }
 0x73d   :  { %v7827_v19 = vpop.f32.mrf.mxu0  ;;  %v7840_v5 = vpop.f32.mrf.mxu1  ;;  %v7877_v23 = vadd.f32 0.5, %v7876_v35 }
 0x73e   :  { %v7841_v43 = vadd.f32 %v7840_v5, %v7827_v19 }
 0x740   :  { %v7872_v22 = vadd.f32 %v7841_v43, %v13134_v55 }
 0x741   :  { %v12914_v51 = vpop.eup %12913 }
 0x742   :  { %v7880_v52 = vmul.f32 0.5, %v12914_v51  ;;  %12915 = vtanh.f32 %v7872_v22 }
 0x744   :  { %v7853_v53 = vpop.f32.mrf.mxu2  ;;  %v7866_v36 = vpop.f32.mrf.mxu3  ;;  %v7881_v39 = vadd.f32 0.5, %v7880_v52 }
 0x745   :  { %v7867_v30 = vadd.f32 %v7866_v36, %v7853_v53  ;;  %v7829_v40 = vpop.f32.mrf.mxu0  ;;  %v7842_v60 = vpop.f32.mrf.mxu1 }
 0x746   :  { %v7887_v58 = vmul.f32 %v7881_v39, %v13360_v18 }
 0x747   :  { %v7873_v54 = vadd.f32 %v7867_v30, %v13137_v7 }
 0x748   :  { %v12916_v56 = vpop.eup %12915 }
 0x749   :  { %v7888_v61 = vmul.f32 %v12916_v56, %v7877_v23  ;;  %v7883_v26 = vmul.f32 0.5, %v7873_v54 }
 0x74b   :  { %v7889_v25 = vadd.f32 %v7888_v61, %v7887_v58  ;;  %12917 = vtanh.f32 %v7883_v26 }
 0x74c   :  { %v7855_v55 = vpop.f32.mrf.mxu2  ;;  %v7868_v27 = vpop.f32.mrf.mxu3 }
 0x74d   :  { %12919 = vtanh.f32 %v7889_v25 }
 0x751   :  { %v12918_v0 = vpop.eup %12917 }
 0x752   :  { %v7885_v44 = vmul.f32 0.5, %v12918_v0 }
 0x753   :  { %v12920_v8 = vpop.eup %12919 }
 0x754   :  { %v7886_v12 = vadd.f32 0.5, %v7885_v44 }
 0x756   :  { %v7891_v13 = vmul.f32 %v12920_v8, %v7886_v12 }
 0x758   :  { %7926 = vmatmul.f32.vlgmr.msra.gmra.mxu0 %v7891_v13 }
 0x7d5   :  { %v7927_v7 = vpop.f32.mrf.mxu0 }
 0x7d6   :  { %v7928_v18 = vadd.f32 %v12760_v24, %v7927_v7 }
 0x7d8   :  { %7930 = vst [vmem:[#allocation11] sm:$0xff] %v7928_v18 }
 0x7d9   :  { %7941 = dma.vmem_to_hbm [thread:$0]  %s7937_s3, 128, %s7939_s13, [#allocation5]  }
 0x7da   :  { %13047 = dma.done.wait [#allocation5], 128  }
 0x7db   :  { %13048 = vsyncadd [#allocation5], 4294967168 }
 0x7dc   :  { %7946 = vsyncpa [#allocation4], 1 }
 0x7dd   :  { %7947 = vsyncpa [#allocation7], 1 }
 0x7de   :  { %7948 = vsyncpa [#allocation10], 1 }
 0x7df   :  { %7949 = vsyncpa [#allocation5], 1 }

</bundles_post_ra>
